<compile_context>
chip_gen: v7x
topology: tpu7x:2x2x1
jax: 0.10.0
libtpu: 0.0.40
codegen_flags: <defaults>
</compile_context>

<pallas_src>
import functools

import jax
import jax.numpy as jnp
import numpy as np
from jax import lax
from jax.experimental import pallas as pl
from jax.experimental.pallas import tpu as pltpu

EPS = 1e-5
_ROW_TILE_CAP = 8                  # rows unrolled per grid step (bounds Mosaic code size)
_P1_VMEM_BUDGET = 12 * 1024 * 1024
_P2_VMEM_BUDGET = 4 * 1024 * 1024


def _pick_row_tile(H, W, Cin, Cout):
    """Largest TH dividing H (capped) whose double-buffered pass-1 blocks fit the budget."""
    for th in range(min(H, _ROW_TILE_CAP), 0, -1):
        if H % th:
            continue
        blk = (th * (W + 2) * Cin * 2          # main input rows (bf16)
               + 2 * (W + 2) * Cin * 2         # halo rows
               + 16 * Cin * Cout * 2           # tap weight matrices
               + th * 4 * W * Cout * 2         # phase-separated output
               + 2 * Cout * 4)                 # stats accumulator
        if 2 * blk <= _P1_VMEM_BUDGET or th == 1:
            return th
    return 1


def _deconv_rows_kernel(xm_ref, xh_ref, w_ref, y_ref, stats_ref, *, W, TH, Cout):
    # xm_ref    : (1, TH, W+2, Cin) bf16     padded input rows [hb*TH, hb*TH+TH)
    # xh_ref    : (1, 1, 2, W+2, Cin) bf16   bottom halo rows hb*TH+TH, hb*TH+TH+1
    # w_ref     : (16, Cin, Cout) bf16       weight matrix per (phase r,s ; tap a,b)
    # y_ref     : (1, TH, 4*W, Cout) bf16    conv-transpose output, phase-separated cols
    # stats_ref : (1, 2, Cout) f32           resident per-(n,c) [sum, sum_sq]
    hb = pl.program_id(1)

    @pl.when(hb == 0)
    def _init():
        stats_ref[...] = jnp.zeros_like(stats_ref)

    def get_row(i):                            # union row i in [0, TH+2): (W+2, Cin) bf16
        return xm_ref[0, i] if i < TH else xh_ref[0, 0, i - TH]

    tot_sum = jnp.zeros((1, Cout), jnp.float32)
    tot_sq = jnp.zeros((1, Cout), jnp.float32)
    for p in range(TH):                        # static unroll over local pre-upsample rows
        rows = (get_row(p), get_row(p + 1), get_row(p + 2))
        for r in range(2):
            for s in range(2):
                acc = jnp.zeros((W, Cout), jnp.float32)
                for a in range(2):
                    for b in range(2):
                        kidx = (r * 2 + s) * 4 + a * 2 + b
                        acc += jnp.dot(rows[r + a][s + b:s + b + W, :], w_ref[kidx],
                                       preferred_element_type=jnp.float32)
                ph = r * 2 + s
                y_ref[0, p, ph * W:(ph + 1) * W, :] = acc.astype(y_ref.dtype)
                tot_sum += jnp.sum(acc, axis=0, keepdims=True)
                tot_sq += jnp.sum(acc * acc, axis=0, keepdims=True)

    stats_ref[0, 0:1, :] = stats_ref[0, 0:1, :] + tot_sum
    stats_ref[0, 1:2, :] = stats_ref[0, 1:2, :] + tot_sq


def _instnorm_relu_kernel(stats_ref, y_ref, o_ref, *, inv_count):
    # stats_ref: (1, 2, Cout) f32 ; y_ref: (1, TH2, 4W, Cout) bf16 ; o_ref: f32
    mean = stats_ref[0, 0:1, :] * inv_count             # (1, Cout)
    mean_sq = stats_ref[0, 1:2, :] * inv_count
    var = mean_sq - mean * mean
    scale = lax.rsqrt(var + EPS)                         # EUP rsqrt (free slot)
    shift = -mean * scale                                # fused scale/shift
    y = y_ref[0].astype(jnp.float32)                     # (TH2, 4W, Cout)
    o_ref[0] = jnp.maximum(y * scale + shift, 0.0).astype(o_ref.dtype)


def unet_up_pix(x_nchw, skip_nchw, deconv_w):
    """deconv_w: PyTorch ConvTranspose2d weight [Cin, Cout, 4, 4]. Returns NCHW."""
    N, Cin, H, W = x_nchw.shape
    Cin_w, Cout, KH, KW = deconv_w.shape
    assert (Cin_w, KH, KW) == (Cin, 4, 4)
    _, Cskip, Hs, Ws = skip_nchw.shape
    H2, W2 = 2 * H, 2 * W
    assert (Hs, Ws) == (H2, W2), "skip_input must match 2x-upsampled spatial size"

    # ---- glue: NCHW -> NHWC, 1-px zero pad, bf16 for the MXU stream ----
    x_nhwc = jnp.transpose(x_nchw, (0, 2, 3, 1)).astype(jnp.bfloat16)
    x_pad = jnp.pad(x_nhwc, ((0, 0), (1, 1), (1, 1), (0, 0)))       # (N, H+2, W+2, Cin)

    # Phase decomposition of ConvTranspose2d(4, stride=2, pad=1):
    #   y[n, 2p+r, 2q+s, co] = sum_{a,b,ci} x_pad[n, p+r+a, q+s+b, ci]
    #                                        * Wt[ci, co, 3-r-2a, 3-s-2b]
    mats = []
    for r in range(2):
        for s in range(2):
            for a in range(2):
                for b in range(2):
                    mats.append(deconv_w[:, :, 3 - r - 2 * a, 3 - s - 2 * b])
    wmat = jnp.stack(mats, axis=0).astype(jnp.bfloat16)              # (16, Cin, Cout)

    TH = _pick_row_tile(H, W, Cin, Cout)
    HB = H // TH
    # Tiny wrapper-built bottom halo (2 rows per row tile); plain blocked indexing,
    # valid for any TH dividing H.
    halo = jnp.stack([x_pad[:, hb * TH + TH: hb * TH + TH + 2]
                      for hb in range(HB)], axis=1)                  # (N, HB, 2, W+2, Cin)

    conv_flops = 2 * N * H * W * 16 * Cin * Cout
    conv_bytes = (x_pad.size * 2 + halo.size * 2 + wmat.size * 2
                  + N * H * 4 * W * Cout * 2 + N * 2 * Cout * 4)

    # ---- pass 1: transposed conv (bf16 MXU) + global per-(n,c) sum/sumsq ----
    y_phase, stats = pl.pallas_call(
        functools.partial(_deconv_rows_kernel, W=W, TH=TH, Cout=Cout),
        grid=(N, HB),
        in_specs=[pl.BlockSpec((1, TH, W + 2, Cin), lambda n, h: (n, h, 0, 0)),
                  pl.BlockSpec((1, 1, 2, W + 2, Cin), lambda n, h: (n, h, 0, 0, 0)),
                  pl.BlockSpec((16, Cin, Cout), lambda n, h: (0, 0, 0))],
        out_specs=(pl.BlockSpec((1, TH, 4 * W, Cout), lambda n, h: (n, h, 0, 0)),
                   pl.BlockSpec((1, 2, Cout), lambda n, h: (n, 0, 0))),
        out_shape=(jax.ShapeDtypeStruct((N, H, 4 * W, Cout), jnp.bfloat16),
                   jax.ShapeDtypeStruct((N, 2, Cout), jnp.float32)),
        compiler_params=pltpu.CompilerParams(
            dimension_semantics=("parallel", "arbitrary")),
        cost_estimate=pl.CostEstimate(flops=conv_flops, transcendentals=0,
                                      bytes_accessed=conv_bytes),
    )(x_pad, halo, wmat)

    # ---- pass 2: InstanceNorm (no affine) + ReLU, tiled over rows ----
    row_bytes = 4 * W * Cout * (2 + 4)                 # bf16 in + f32 out per H row
    TH2 = 1
    for cand in range(H, 0, -1):
        if H % cand == 0 and cand * row_bytes <= _P2_VMEM_BUDGET:
            TH2 = cand
            break
    inv_count = 1.0 / float(H2 * W2)

    y_norm = pl.pallas_call(
        functools.partial(_instnorm_relu_kernel, inv_count=inv_count),
        grid=(N, H // TH2),
        in_specs=[pl.BlockSpec((1, 2, Cout), lambda n, hb: (n, 0, 0)),
                  pl.BlockSpec((1, TH2, 4 * W, Cout), lambda n, hb: (n, hb, 0, 0))],
        out_specs=pl.BlockSpec((1, TH2, 4 * W, Cout), lambda n, hb: (n, hb, 0, 0)),
        out_shape=jax.ShapeDtypeStruct((N, H, 4 * W, Cout), jnp.float32),
        compiler_params=pltpu.CompilerParams(
            dimension_semantics=("parallel", "parallel")),
        cost_estimate=pl.CostEstimate(
            flops=3 * N * H * 4 * W * Cout, transcendentals=N * (H // TH2) * Cout,
            bytes_accessed=N * H * 4 * W * Cout * (2 + 4) + N * 2 * Cout * 4),
    )(stats, y_phase)

    # ---- single composed de-interleave + NHWC->NCHW transpose, then concat (XLA) ----
    y = y_norm.reshape(N, H, 2, 2, W, Cout)             # (n, p, r, s, q, c)
    y_nchw = jnp.transpose(y, (0, 5, 1, 2, 4, 3)).reshape(N, Cout, H2, W2)
    return jnp.concatenate([y_nchw, skip_nchw.astype(y_nchw.dtype)], axis=1)


def _reference(x, skip, w):
    """Pure-JAX reference of the PyTorch forward (numeric sanity check)."""
    # ConvTranspose2d(k=4, s=2, p=1) == conv of 2x-dilated input, pad 2, flipped kernel.
    w_conv = jnp.transpose(w[:, :, ::-1, ::-1], (1, 0, 2, 3))       # OIHW
    y = lax.conv_general_dilated(
        x, w_conv, window_strides=(1, 1), padding=((2, 2), (2, 2)),
        lhs_dilation=(2, 2), dimension_numbers=("NCHW", "OIHW", "NCHW"))
    mean = jnp.mean(y, axis=(2, 3), keepdims=True)
    var = jnp.mean(jnp.square(y - mean), axis=(2, 3), keepdims=True)
    y = (y - mean) * lax.rsqrt(var + EPS)
    y = jnp.maximum(y, 0.0)
    return jnp.concatenate([y, skip], axis=1)


if __name__ == "__main__":
    # small deterministic shapes: batch=2, in_size=4, out_size=8, spatial=16x16
    N, in_size, out_size, H, W = 2, 4, 8, 16, 16
    skip_ch = 4

    key = jax.random.PRNGKey(0)
    kx, ks, kw = jax.random.split(key, 3)
    x = jax.random.normal(kx, (N, in_size, H, W), dtype=jnp.float32)
    skip = jax.random.normal(ks, (N, skip_ch, 2 * H, 2 * W), dtype=jnp.float32)
    # PyTorch ConvTranspose2d weight layout: (in_channels, out_channels, kH, kW)
    deconv_w = 0.1 * jax.random.normal(kw, (in_size, out_size, 4, 4), dtype=jnp.float32)

    fn = jax.jit(unet_up_pix)
    out = jax.block_until_ready(fn(x, skip, deconv_w))
    ref = jax.block_until_ready(_reference(x, skip, deconv_w))

    assert out.shape == (N, out_size + skip_ch, 2 * H, 2 * W), out.shape
    assert np.allclose(np.asarray(out), np.asarray(ref), atol=2e-2, rtol=2e-2)

    print("KERNEL_OK")
</pallas_src>

<mosaic_0001>
module attributes {stable_mosaic.version = 11 : i64} {
  func.func @_instnorm_relu_kernel(%arg0: i32, %arg1: i32, %arg2: memref<1x2x8xf32, #tpu.memory_space<vmem>>, %arg3: memref<1x16x64x8xbf16, #tpu.memory_space<vmem>>, %arg4: memref<1x16x64x8xf32, #tpu.memory_space<vmem>>) attributes {dimension_semantics = [#tpu.dimension_semantics<parallel>, #tpu.dimension_semantics<parallel>], iteration_bounds = array<i64: 2, 1>, scalar_prefetch = 0 : i64, scratch_operands = 0 : i64, tpu.core_type = #tpu.core_type<tc>, window_params = [{transform_indices = @transform_0, window_bounds = array<i64: 1, 2, 8>}, {transform_indices = @transform_1, window_bounds = array<i64: 1, 16, 64, 8>}, {transform_indices = @transform_2, window_bounds = array<i64: 1, 16, 64, 8>}]} {
    %c0 = arith.constant 0 : index
    %c0_0 = arith.constant 0 : index
    %c0_1 = arith.constant 0 : index
    %0 = vector.load %arg2[%c0, %c0_0, %c0_1] : memref<1x2x8xf32, #tpu.memory_space<vmem>>, vector<1x1x8xf32>
    %1 = vector.shape_cast %0 : vector<1x1x8xf32> to vector<1x8xf32>
    %cst = arith.constant 9.765625E-4 : f32
    %2 = vector.broadcast %cst : f32 to vector<1x8xf32>
    %3 = arith.mulf %1, %2 : vector<1x8xf32>
    %c0_2 = arith.constant 0 : index
    %c1 = arith.constant 1 : index
    %c0_3 = arith.constant 0 : index
    %4 = vector.load %arg2[%c0_2, %c1, %c0_3] : memref<1x2x8xf32, #tpu.memory_space<vmem>>, vector<1x1x8xf32>
    %5 = vector.shape_cast %4 : vector<1x1x8xf32> to vector<1x8xf32>
    %cst_4 = arith.constant 9.765625E-4 : f32
    %6 = vector.broadcast %cst_4 : f32 to vector<1x8xf32>
    %7 = arith.mulf %5, %6 : vector<1x8xf32>
    %8 = arith.mulf %3, %3 : vector<1x8xf32>
    %9 = arith.subf %7, %8 : vector<1x8xf32>
    %cst_5 = arith.constant 9.99999974E-6 : f32
    %10 = vector.broadcast %cst_5 : f32 to vector<1x8xf32>
    %11 = arith.addf %9, %10 : vector<1x8xf32>
    %12 = math.rsqrt %11 : vector<1x8xf32>
    %cst_6 = arith.constant 0.000000e+00 : f32
    %13 = vector.broadcast %cst_6 : f32 to vector<1x8xf32>
    %14 = arith.subf %13, %3 : vector<1x8xf32>
    %15 = arith.mulf %14, %12 : vector<1x8xf32>
    %c0_7 = arith.constant 0 : index
    %c0_8 = arith.constant 0 : index
    %c0_9 = arith.constant 0 : index
    %c0_10 = arith.constant 0 : index
    %16 = vector.load %arg3[%c0_7, %c0_8, %c0_9, %c0_10] : memref<1x16x64x8xbf16, #tpu.memory_space<vmem>>, vector<1x16x64x8xbf16>
    %17 = vector.shape_cast %16 : vector<1x16x64x8xbf16> to vector<16x64x8xbf16>
    %18 = arith.extf %17 : vector<16x64x8xbf16> to vector<16x64x8xf32>
    %19 = vector.shape_cast %12 : vector<1x8xf32> to vector<1x1x8xf32>
    %20 = vector.broadcast %19 : vector<1x1x8xf32> to vector<16x64x8xf32>
    %21 = arith.mulf %18, %20 : vector<16x64x8xf32>
    %22 = vector.shape_cast %15 : vector<1x8xf32> to vector<1x1x8xf32>
    %23 = vector.broadcast %22 : vector<1x1x8xf32> to vector<16x64x8xf32>
    %24 = arith.addf %21, %23 : vector<16x64x8xf32>
    %cst_11 = arith.constant 0.000000e+00 : f32
    %25 = vector.broadcast %cst_11 : f32 to vector<16x64x8xf32>
    %26 = arith.maximumf %24, %25 : vector<16x64x8xf32>
    %c0_12 = arith.constant 0 : index
    %c0_13 = arith.constant 0 : index
    %c0_14 = arith.constant 0 : index
    %c0_15 = arith.constant 0 : index
    %27 = vector.load %arg4[%c0_12, %c0_13, %c0_14, %c0_15] : memref<1x16x64x8xf32, #tpu.memory_space<vmem>>, vector<1x16x64x8xf32>
    %28 = vector.shape_cast %27 : vector<1x16x64x8xf32> to vector<16x64x8xf32>
    %29 = vector.shape_cast %26 : vector<16x64x8xf32> to vector<1x16x64x8xf32>
    tpu.vector_store %arg4[%c0_12, %c0_13, %c0_14, %c0_15], %29 {strides = array<i32>} : memref<1x16x64x8xf32, #tpu.memory_space<vmem>>, vector<1x16x64x8xf32>,
    return
  }
  func.func @transform_0(%arg0: i32, %arg1: i32) -> (i32, i32, i32) {
    %c0_i32 = arith.constant 0 : i32
    %c0_i32_0 = arith.constant 0 : i32
    %c0_i32_1 = arith.constant 0 : i32
    return %arg0, %c0_i32, %c0_i32_0 : i32, i32, i32
  }
  func.func @transform_1(%arg0: i32, %arg1: i32) -> (i32, i32, i32, i32) {
    %c0_i32 = arith.constant 0 : i32
    %c0_i32_0 = arith.constant 0 : i32
    %c0_i32_1 = arith.constant 0 : i32
    return %arg0, %arg1, %c0_i32, %c0_i32_0 : i32, i32, i32, i32
  }
  func.func @transform_2(%arg0: i32, %arg1: i32) -> (i32, i32, i32, i32) {
    %c0_i32 = arith.constant 0 : i32
    %c0_i32_0 = arith.constant 0 : i32
    %c0_i32_1 = arith.constant 0 : i32
    return %arg0, %arg1, %c0_i32, %c0_i32_0 : i32, i32, i32, i32
  }
}

module attributes {stable_mosaic.version = 11 : i64} {
  func.func @_deconv_rows_kernel(%arg0: i32, %arg1: i32, %arg2: memref<1x8x18x4xbf16, #tpu.memory_space<vmem>>, %arg3: memref<1x1x2x18x4xbf16, #tpu.memory_space<vmem>>, %arg4: memref<16x4x8xbf16, #tpu.memory_space<vmem>>, %arg5: memref<1x8x64x8xbf16, #tpu.memory_space<vmem>>, %arg6: memref<1x2x8xf32, #tpu.memory_space<vmem>>) attributes {dimension_semantics = [#tpu.dimension_semantics<parallel>, #tpu.dimension_semantics<arbitrary>], iteration_bounds = array<i64: 2, 2>, scalar_prefetch = 0 : i64, scratch_operands = 0 : i64, tpu.core_type = #tpu.core_type<tc>, window_params = [{transform_indices = @transform_0, window_bounds = array<i64: 1, 8, 18, 4>}, {transform_indices = @transform_1, window_bounds = array<i64: 1, 1, 2, 18, 4>}, {pipeline_mode = #tpu.pipeline_mode<synchronous>, transform_indices = @transform_2, window_bounds = array<i64: 16, 4, 8>}, {transform_indices = @transform_3, window_bounds = array<i64: 1, 8, 64, 8>}, {transform_indices = @transform_4, window_bounds = array<i64: 1, 2, 8>}]} {
    %c0_i32 = arith.constant 0 : i32
    %0 = arith.cmpi eq, %arg1, %c0_i32 : i32
    %1 = arith.extui %0 : i1 to i32
    %c0_i32_0 = arith.constant 0 : i32
    %2 = arith.cmpi ne, %1, %c0_i32_0 : i32
    scf.if %2 {
      %cst_830 = arith.constant 0.000000e+00 : f32
      %1089 = vector.broadcast %cst_830 : f32 to vector<1x2x8xf32>
      %c0_831 = arith.constant 0 : index
      %c0_832 = arith.constant 0 : index
      %c0_833 = arith.constant 0 : index
      %1090 = vector.load %arg6[%c0_831, %c0_832, %c0_833] : memref<1x2x8xf32, #tpu.memory_space<vmem>>, vector<1x2x8xf32>
      tpu.vector_store %arg6[%c0_831, %c0_832, %c0_833], %1089 {strides = array<i32>} : memref<1x2x8xf32, #tpu.memory_space<vmem>>, vector<1x2x8xf32>,
    } else {
    }
    %cst = arith.constant 0.000000e+00 : f32
    %3 = vector.broadcast %cst : f32 to vector<1x8xf32>
    %cst_1 = arith.constant 0.000000e+00 : f32
    %4 = vector.broadcast %cst_1 : f32 to vector<1x8xf32>
    %c0 = arith.constant 0 : index
    %c0_2 = arith.constant 0 : index
    %c0_3 = arith.constant 0 : index
    %c0_4 = arith.constant 0 : index
    %5 = vector.load %arg2[%c0, %c0_2, %c0_3, %c0_4] : memref<1x8x18x4xbf16, #tpu.memory_space<vmem>>, vector<1x1x18x4xbf16>
    %6 = vector.shape_cast %5 : vector<1x1x18x4xbf16> to vector<18x4xbf16>
    %c0_5 = arith.constant 0 : index
    %c1 = arith.constant 1 : index
    %c0_6 = arith.constant 0 : index
    %c0_7 = arith.constant 0 : index
    %7 = vector.load %arg2[%c0_5, %c1, %c0_6, %c0_7] : memref<1x8x18x4xbf16, #tpu.memory_space<vmem>>, vector<1x1x18x4xbf16>
    %8 = vector.shape_cast %7 : vector<1x1x18x4xbf16> to vector<18x4xbf16>
    %c0_8 = arith.constant 0 : index
    %c2 = arith.constant 2 : index
    %c0_9 = arith.constant 0 : index
    %c0_10 = arith.constant 0 : index
    %9 = vector.load %arg2[%c0_8, %c2, %c0_9, %c0_10] : memref<1x8x18x4xbf16, #tpu.memory_space<vmem>>, vector<1x1x18x4xbf16>
    %10 = vector.shape_cast %9 : vector<1x1x18x4xbf16> to vector<18x4xbf16>
    %cst_11 = arith.constant 0.000000e+00 : f32
    %11 = vector.broadcast %cst_11 : f32 to vector<16x8xf32>
    %12 = vector.extract_strided_slice %6 {offsets = [0, 0], sizes = [16, 4], strides = [1, 1]} : vector<18x4xbf16> to vector<16x4xbf16>
    %c0_12 = arith.constant 0 : index
    %c0_13 = arith.constant 0 : index
    %c0_14 = arith.constant 0 : index
    %13 = vector.load %arg4[%c0_12, %c0_13, %c0_14] : memref<16x4x8xbf16, #tpu.memory_space<vmem>>, vector<1x4x8xbf16>
    %14 = vector.shape_cast %13 : vector<1x4x8xbf16> to vector<4x8xbf16>
    %cst_15 = arith.constant dense<0.000000e+00> : vector<16x8xf32>
    %15 = tpu.matmul %12, %14, %cst_15 {dimension_numbers = #tpu.dot_dimension_numbers<[1], [0], [0], [1], [0, 0, 1, 1], [], []>} : vector<16x4xbf16>, vector<4x8xbf16>, vector<16x8xf32> -> vector<16x8xf32>
    %16 = arith.addf %11, %15 : vector<16x8xf32>
    %17 = vector.extract_strided_slice %6 {offsets = [1, 0], sizes = [16, 4], strides = [1, 1]} : vector<18x4xbf16> to vector<16x4xbf16>
    %c1_16 = arith.constant 1 : index
    %c0_17 = arith.constant 0 : index
    %c0_18 = arith.constant 0 : index
    %18 = vector.load %arg4[%c1_16, %c0_17, %c0_18] : memref<16x4x8xbf16, #tpu.memory_space<vmem>>, vector<1x4x8xbf16>
    %19 = vector.shape_cast %18 : vector<1x4x8xbf16> to vector<4x8xbf16>
    %cst_19 = arith.constant dense<0.000000e+00> : vector<16x8xf32>
    %20 = tpu.matmul %17, %19, %cst_19 {dimension_numbers = #tpu.dot_dimension_numbers<[1], [0], [0], [1], [0, 0, 1, 1], [], []>} : vector<16x4xbf16>, vector<4x8xbf16>, vector<16x8xf32> -> vector<16x8xf32>
    %21 = arith.addf %16, %20 : vector<16x8xf32>
    %22 = vector.extract_strided_slice %8 {offsets = [0, 0], sizes = [16, 4], strides = [1, 1]} : vector<18x4xbf16> to vector<16x4xbf16>
    %c2_20 = arith.constant 2 : index
    %c0_21 = arith.constant 0 : index
    %c0_22 = arith.constant 0 : index
    %23 = vector.load %arg4[%c2_20, %c0_21, %c0_22] : memref<16x4x8xbf16, #tpu.memory_space<vmem>>, vector<1x4x8xbf16>
    %24 = vector.shape_cast %23 : vector<1x4x8xbf16> to vector<4x8xbf16>
    %cst_23 = arith.constant dense<0.000000e+00> : vector<16x8xf32>
    %25 = tpu.matmul %22, %24, %cst_23 {dimension_numbers = #tpu.dot_dimension_numbers<[1], [0], [0], [1], [0, 0, 1, 1], [], []>} : vector<16x4xbf16>, vector<4x8xbf16>, vector<16x8xf32> -> vector<16x8xf32>
    %26 = arith.addf %21, %25 : vector<16x8xf32>
    %27 = vector.extract_strided_slice %8 {offsets = [1, 0], sizes = [16, 4], strides = [1, 1]} : vector<18x4xbf16> to vector<16x4xbf16>
    %c3 = arith.constant 3 : index
    %c0_24 = arith.constant 0 : index
    %c0_25 = arith.constant 0 : index
    %28 = vector.load %arg4[%c3, %c0_24, %c0_25] : memref<16x4x8xbf16, #tpu.memory_space<vmem>>, vector<1x4x8xbf16>
    %29 = vector.shape_cast %28 : vector<1x4x8xbf16> to vector<4x8xbf16>
    %cst_26 = arith.constant dense<0.000000e+00> : vector<16x8xf32>
    %30 = tpu.matmul %27, %29, %cst_26 {dimension_numbers = #tpu.dot_dimension_numbers<[1], [0], [0], [1], [0, 0, 1, 1], [], []>} : vector<16x4xbf16>, vector<4x8xbf16>, vector<16x8xf32> -> vector<16x8xf32>
    %31 = arith.addf %26, %30 : vector<16x8xf32>
    %32 = arith.truncf %31 : vector<16x8xf32> to vector<16x8xbf16>
    %c0_27 = arith.constant 0 : index
    %c0_28 = arith.constant 0 : index
    %c0_29 = arith.constant 0 : index
    %c0_30 = arith.constant 0 : index
    %33 = vector.load %arg5[%c0_27, %c0_28, %c0_29, %c0_30] : memref<1x8x64x8xbf16, #tpu.memory_space<vmem>>, vector<1x1x16x8xbf16>
    %34 = vector.shape_cast %33 : vector<1x1x16x8xbf16> to vector<16x8xbf16>
    %35 = vector.shape_cast %32 : vector<16x8xbf16> to vector<1x1x16x8xbf16>
    tpu.vector_store %arg5[%c0_27, %c0_28, %c0_29, %c0_30], %35 {strides = array<i32>} : memref<1x8x64x8xbf16, #tpu.memory_space<vmem>>, vector<1x1x16x8xbf16>,
    %cst_31 = arith.constant dense<0.000000e+00> : vector<8xf32>
    %36 = vector.multi_reduction <add>, %31, %cst_31 [0] : vector<16x8xf32> to vector<8xf32>
    %37 = vector.shape_cast %36 : vector<8xf32> to vector<1x8xf32>
    %38 = arith.addf %3, %37 : vector<1x8xf32>
    %39 = arith.mulf %31, %31 : vector<16x8xf32>
    %cst_32 = arith.constant dense<0.000000e+00> : vector<8xf32>
    %40 = vector.multi_reduction <add>, %39, %cst_32 [0] : vector<16x8xf32> to vector<8xf32>
    %41 = vector.shape_cast %40 : vector<8xf32> to vector<1x8xf32>
    %42 = arith.addf %4, %41 : vector<1x8xf32>
    %cst_33 = arith.constant 0.000000e+00 : f32
    %43 = vector.broadcast %cst_33 : f32 to vector<16x8xf32>
    %44 = vector.extract_strided_slice %6 {offsets = [1, 0], sizes = [16, 4], strides = [1, 1]} : vector<18x4xbf16> to vector<16x4xbf16>
    %c4 = arith.constant 4 : index
    %c0_34 = arith.constant 0 : index
    %c0_35 = arith.constant 0 : index
    %45 = vector.load %arg4[%c4, %c0_34, %c0_35] : memref<16x4x8xbf16, #tpu.memory_space<vmem>>, vector<1x4x8xbf16>
    %46 = vector.shape_cast %45 : vector<1x4x8xbf16> to vector<4x8xbf16>
    %cst_36 = arith.constant dense<0.000000e+00> : vector<16x8xf32>
    %47 = tpu.matmul %44, %46, %cst_36 {dimension_numbers = #tpu.dot_dimension_numbers<[1], [0], [0], [1], [0, 0, 1, 1], [], []>} : vector<16x4xbf16>, vector<4x8xbf16>, vector<16x8xf32> -> vector<16x8xf32>
    %48 = arith.addf %43, %47 : vector<16x8xf32>
    %49 = vector.extract_strided_slice %6 {offsets = [2, 0], sizes = [16, 4], strides = [1, 1]} : vector<18x4xbf16> to vector<16x4xbf16>
    %c5 = arith.constant 5 : index
    %c0_37 = arith.constant 0 : index
    %c0_38 = arith.constant 0 : index
    %50 = vector.load %arg4[%c5, %c0_37, %c0_38] : memref<16x4x8xbf16, #tpu.memory_space<vmem>>, vector<1x4x8xbf16>
    %51 = vector.shape_cast %50 : vector<1x4x8xbf16> to vector<4x8xbf16>
    %cst_39 = arith.constant dense<0.000000e+00> : vector<16x8xf32>
    %52 = tpu.matmul %49, %51, %cst_39 {dimension_numbers = #tpu.dot_dimension_numbers<[1], [0], [0], [1], [0, 0, 1, 1], [], []>} : vector<16x4xbf16>, vector<4x8xbf16>, vector<16x8xf32> -> vector<16x8xf32>
    %53 = arith.addf %48, %52 : vector<16x8xf32>
    %54 = vector.extract_strided_slice %8 {offsets = [1, 0], sizes = [16, 4], strides = [1, 1]} : vector<18x4xbf16> to vector<16x4xbf16>
    %c6 = arith.constant 6 : index
    %c0_40 = arith.constant 0 : index
    %c0_41 = arith.constant 0 : index
    %55 = vector.load %arg4[%c6, %c0_40, %c0_41] : memref<16x4x8xbf16, #tpu.memory_space<vmem>>, vector<1x4x8xbf16>
    %56 = vector.shape_cast %55 : vector<1x4x8xbf16> to vector<4x8xbf16>
    %cst_42 = arith.constant dense<0.000000e+00> : vector<16x8xf32>
    %57 = tpu.matmul %54, %56, %cst_42 {dimension_numbers = #tpu.dot_dimension_numbers<[1], [0], [0], [1], [0, 0, 1, 1], [], []>} : vector<16x4xbf16>, vector<4x8xbf16>, vector<16x8xf32> -> vector<16x8xf32>
    %58 = arith.addf %53, %57 : vector<16x8xf32>
    %59 = vector.extract_strided_slice %8 {offsets = [2, 0], sizes = [16, 4], strides = [1, 1]} : vector<18x4xbf16> to vector<16x4xbf16>
    %c7 = arith.constant 7 : index
    %c0_43 = arith.constant 0 : index
    %c0_44 = arith.constant 0 : index
    %60 = vector.load %arg4[%c7, %c0_43, %c0_44] : memref<16x4x8xbf16, #tpu.memory_space<vmem>>, vector<1x4x8xbf16>
    %61 = vector.shape_cast %60 : vector<1x4x8xbf16> to vector<4x8xbf16>
    %cst_45 = arith.constant dense<0.000000e+00> : vector<16x8xf32>
    %62 = tpu.matmul %59, %61, %cst_45 {dimension_numbers = #tpu.dot_dimension_numbers<[1], [0], [0], [1], [0, 0, 1, 1], [], []>} : vector<16x4xbf16>, vector<4x8xbf16>, vector<16x8xf32> -> vector<16x8xf32>
    %63 = arith.addf %58, %62 : vector<16x8xf32>
    %64 = arith.truncf %63 : vector<16x8xf32> to vector<16x8xbf16>
    %c0_46 = arith.constant 0 : index
    %c0_47 = arith.constant 0 : index
    %c16 = arith.constant 16 : index
    %c0_48 = arith.constant 0 : index
    %65 = vector.load %arg5[%c0_46, %c0_47, %c16, %c0_48] : memref<1x8x64x8xbf16, #tpu.memory_space<vmem>>, vector<1x1x16x8xbf16>
    %66 = vector.shape_cast %65 : vector<1x1x16x8xbf16> to vector<16x8xbf16>
    %67 = vector.shape_cast %64 : vector<16x8xbf16> to vector<1x1x16x8xbf16>
    tpu.vector_store %arg5[%c0_46, %c0_47, %c16, %c0_48], %67 {strides = array<i32>} : memref<1x8x64x8xbf16, #tpu.memory_space<vmem>>, vector<1x1x16x8xbf16>,
    %cst_49 = arith.constant dense<0.000000e+00> : vector<8xf32>
    %68 = vector.multi_reduction <add>, %63, %cst_49 [0] : vector<16x8xf32> to vector<8xf32>
    %69 = vector.shape_cast %68 : vector<8xf32> to vector<1x8xf32>
    %70 = arith.addf %38, %69 : vector<1x8xf32>
    %71 = arith.mulf %63, %63 : vector<16x8xf32>
    %cst_50 = arith.constant dense<0.000000e+00> : vector<8xf32>
    %72 = vector.multi_reduction <add>, %71, %cst_50 [0] : vector<16x8xf32> to vector<8xf32>
    %73 = vector.shape_cast %72 : vector<8xf32> to vector<1x8xf32>
    %74 = arith.addf %42, %73 : vector<1x8xf32>
    %cst_51 = arith.constant 0.000000e+00 : f32
    %75 = vector.broadcast %cst_51 : f32 to vector<16x8xf32>
    %76 = vector.extract_strided_slice %8 {offsets = [0, 0], sizes = [16, 4], strides = [1, 1]} : vector<18x4xbf16> to vector<16x4xbf16>
    %c8 = arith.constant 8 : index
    %c0_52 = arith.constant 0 : index
    %c0_53 = arith.constant 0 : index
    %77 = vector.load %arg4[%c8, %c0_52, %c0_53] : memref<16x4x8xbf16, #tpu.memory_space<vmem>>, vector<1x4x8xbf16>
    %78 = vector.shape_cast %77 : vector<1x4x8xbf16> to vector<4x8xbf16>
    %cst_54 = arith.constant dense<0.000000e+00> : vector<16x8xf32>
    %79 = tpu.matmul %76, %78, %cst_54 {dimension_numbers = #tpu.dot_dimension_numbers<[1], [0], [0], [1], [0, 0, 1, 1], [], []>} : vector<16x4xbf16>, vector<4x8xbf16>, vector<16x8xf32> -> vector<16x8xf32>
    %80 = arith.addf %75, %79 : vector<16x8xf32>
    %81 = vector.extract_strided_slice %8 {offsets = [1, 0], sizes = [16, 4], strides = [1, 1]} : vector<18x4xbf16> to vector<16x4xbf16>
    %c9 = arith.constant 9 : index
    %c0_55 = arith.constant 0 : index
    %c0_56 = arith.constant 0 : index
    %82 = vector.load %arg4[%c9, %c0_55, %c0_56] : memref<16x4x8xbf16, #tpu.memory_space<vmem>>, vector<1x4x8xbf16>
    %83 = vector.shape_cast %82 : vector<1x4x8xbf16> to vector<4x8xbf16>
    %cst_57 = arith.constant dense<0.000000e+00> : vector<16x8xf32>
    %84 = tpu.matmul %81, %83, %cst_57 {dimension_numbers = #tpu.dot_dimension_numbers<[1], [0], [0], [1], [0, 0, 1, 1], [], []>} : vector<16x4xbf16>, vector<4x8xbf16>, vector<16x8xf32> -> vector<16x8xf32>
    %85 = arith.addf %80, %84 : vector<16x8xf32>
    %86 = vector.extract_strided_slice %10 {offsets = [0, 0], sizes = [16, 4], strides = [1, 1]} : vector<18x4xbf16> to vector<16x4xbf16>
    %c10 = arith.constant 10 : index
    %c0_58 = arith.constant 0 : index
    %c0_59 = arith.constant 0 : index
    %87 = vector.load %arg4[%c10, %c0_58, %c0_59] : memref<16x4x8xbf16, #tpu.memory_space<vmem>>, vector<1x4x8xbf16>
    %88 = vector.shape_cast %87 : vector<1x4x8xbf16> to vector<4x8xbf16>
    %cst_60 = arith.constant dense<0.000000e+00> : vector<16x8xf32>
    %89 = tpu.matmul %86, %88, %cst_60 {dimension_numbers = #tpu.dot_dimension_numbers<[1], [0], [0], [1], [0, 0, 1, 1], [], []>} : vector<16x4xbf16>, vector<4x8xbf16>, vector<16x8xf32> -> vector<16x8xf32>
    %90 = arith.addf %85, %89 : vector<16x8xf32>
    %91 = vector.extract_strided_slice %10 {offsets = [1, 0], sizes = [16, 4], strides = [1, 1]} : vector<18x4xbf16> to vector<16x4xbf16>
    %c11 = arith.constant 11 : index
    %c0_61 = arith.constant 0 : index
    %c0_62 = arith.constant 0 : index
    %92 = vector.load %arg4[%c11, %c0_61, %c0_62] : memref<16x4x8xbf16, #tpu.memory_space<vmem>>, vector<1x4x8xbf16>
    %93 = vector.shape_cast %92 : vector<1x4x8xbf16> to vector<4x8xbf16>
    %cst_63 = arith.constant dense<0.000000e+00> : vector<16x8xf32>
    %94 = tpu.matmul %91, %93, %cst_63 {dimension_numbers = #tpu.dot_dimension_numbers<[1], [0], [0], [1], [0, 0, 1, 1], [], []>} : vector<16x4xbf16>, vector<4x8xbf16>, vector<16x8xf32> -> vector<16x8xf32>
    %95 = arith.addf %90, %94 : vector<16x8xf32>
    %96 = arith.truncf %95 : vector<16x8xf32> to vector<16x8xbf16>
    %c0_64 = arith.constant 0 : index
    %c0_65 = arith.constant 0 : index
    %c32 = arith.constant 32 : index
    %c0_66 = arith.constant 0 : index
    %97 = vector.load %arg5[%c0_64, %c0_65, %c32, %c0_66] : memref<1x8x64x8xbf16, #tpu.memory_space<vmem>>, vector<1x1x16x8xbf16>
    %98 = vector.shape_cast %97 : vector<1x1x16x8xbf16> to vector<16x8xbf16>
    %99 = vector.shape_cast %96 : vector<16x8xbf16> to vector<1x1x16x8xbf16>
    tpu.vector_store %arg5[%c0_64, %c0_65, %c32, %c0_66], %99 {strides = array<i32>} : memref<1x8x64x8xbf16, #tpu.memory_space<vmem>>, vector<1x1x16x8xbf16>,
    %cst_67 = arith.constant dense<0.000000e+00> : vector<8xf32>
    %100 = vector.multi_reduction <add>, %95, %cst_67 [0] : vector<16x8xf32> to vector<8xf32>
    %101 = vector.shape_cast %100 : vector<8xf32> to vector<1x8xf32>
    %102 = arith.addf %70, %101 : vector<1x8xf32>
    %103 = arith.mulf %95, %95 : vector<16x8xf32>
    %cst_68 = arith.constant dense<0.000000e+00> : vector<8xf32>
    %104 = vector.multi_reduction <add>, %103, %cst_68 [0] : vector<16x8xf32> to vector<8xf32>
    %105 = vector.shape_cast %104 : vector<8xf32> to vector<1x8xf32>
    %106 = arith.addf %74, %105 : vector<1x8xf32>
    %cst_69 = arith.constant 0.000000e+00 : f32
    %107 = vector.broadcast %cst_69 : f32 to vector<16x8xf32>
    %108 = vector.extract_strided_slice %8 {offsets = [1, 0], sizes = [16, 4], strides = [1, 1]} : vector<18x4xbf16> to vector<16x4xbf16>
    %c12 = arith.constant 12 : index
    %c0_70 = arith.constant 0 : index
    %c0_71 = arith.constant 0 : index
    %109 = vector.load %arg4[%c12, %c0_70, %c0_71] : memref<16x4x8xbf16, #tpu.memory_space<vmem>>, vector<1x4x8xbf16>
    %110 = vector.shape_cast %109 : vector<1x4x8xbf16> to vector<4x8xbf16>
    %cst_72 = arith.constant dense<0.000000e+00> : vector<16x8xf32>
    %111 = tpu.matmul %108, %110, %cst_72 {dimension_numbers = #tpu.dot_dimension_numbers<[1], [0], [0], [1], [0, 0, 1, 1], [], []>} : vector<16x4xbf16>, vector<4x8xbf16>, vector<16x8xf32> -> vector<16x8xf32>
    %112 = arith.addf %107, %111 : vector<16x8xf32>
    %113 = vector.extract_strided_slice %8 {offsets = [2, 0], sizes = [16, 4], strides = [1, 1]} : vector<18x4xbf16> to vector<16x4xbf16>
    %c13 = arith.constant 13 : index
    %c0_73 = arith.constant 0 : index
    %c0_74 = arith.constant 0 : index
    %114 = vector.load %arg4[%c13, %c0_73, %c0_74] : memref<16x4x8xbf16, #tpu.memory_space<vmem>>, vector<1x4x8xbf16>
    %115 = vector.shape_cast %114 : vector<1x4x8xbf16> to vector<4x8xbf16>
    %cst_75 = arith.constant dense<0.000000e+00> : vector<16x8xf32>
    %116 = tpu.matmul %113, %115, %cst_75 {dimension_numbers = #tpu.dot_dimension_numbers<[1], [0], [0], [1], [0, 0, 1, 1], [], []>} : vector<16x4xbf16>, vector<4x8xbf16>, vector<16x8xf32> -> vector<16x8xf32>
    %117 = arith.addf %112, %116 : vector<16x8xf32>
    %118 = vector.extract_strided_slice %10 {offsets = [1, 0], sizes = [16, 4], strides = [1, 1]} : vector<18x4xbf16> to vector<16x4xbf16>
    %c14 = arith.constant 14 : index
    %c0_76 = arith.constant 0 : index
    %c0_77 = arith.constant 0 : index
    %119 = vector.load %arg4[%c14, %c0_76, %c0_77] : memref<16x4x8xbf16, #tpu.memory_space<vmem>>, vector<1x4x8xbf16>
    %120 = vector.shape_cast %119 : vector<1x4x8xbf16> to vector<4x8xbf16>
    %cst_78 = arith.constant dense<0.000000e+00> : vector<16x8xf32>
    %121 = tpu.matmul %118, %120, %cst_78 {dimension_numbers = #tpu.dot_dimension_numbers<[1], [0], [0], [1], [0, 0, 1, 1], [], []>} : vector<16x4xbf16>, vector<4x8xbf16>, vector<16x8xf32> -> vector<16x8xf32>
    %122 = arith.addf %117, %121 : vector<16x8xf32>
    %123 = vector.extract_strided_slice %10 {offsets = [2, 0], sizes = [16, 4], strides = [1, 1]} : vector<18x4xbf16> to vector<16x4xbf16>
    %c15 = arith.constant 15 : index
    %c0_79 = arith.constant 0 : index
    %c0_80 = arith.constant 0 : index
    %124 = vector.load %arg4[%c15, %c0_79, %c0_80] : memref<16x4x8xbf16, #tpu.memory_space<vmem>>, vector<1x4x8xbf16>
    %125 = vector.shape_cast %124 : vector<1x4x8xbf16> to vector<4x8xbf16>
    %cst_81 = arith.constant dense<0.000000e+00> : vector<16x8xf32>
    %126 = tpu.matmul %123, %125, %cst_81 {dimension_numbers = #tpu.dot_dimension_numbers<[1], [0], [0], [1], [0, 0, 1, 1], [], []>} : vector<16x4xbf16>, vector<4x8xbf16>, vector<16x8xf32> -> vector<16x8xf32>
    %127 = arith.addf %122, %126 : vector<16x8xf32>
    %128 = arith.truncf %127 : vector<16x8xf32> to vector<16x8xbf16>
    %c0_82 = arith.constant 0 : index
    %c0_83 = arith.constant 0 : index
    %c48 = arith.constant 48 : index
    %c0_84 = arith.constant 0 : index
    %129 = vector.load %arg5[%c0_82, %c0_83, %c48, %c0_84] : memref<1x8x64x8xbf16, #tpu.memory_space<vmem>>, vector<1x1x16x8xbf16>
    %130 = vector.shape_cast %129 : vector<1x1x16x8xbf16> to vector<16x8xbf16>
    %131 = vector.shape_cast %128 : vector<16x8xbf16> to vector<1x1x16x8xbf16>
    tpu.vector_store %arg5[%c0_82, %c0_83, %c48, %c0_84], %131 {strides = array<i32>} : memref<1x8x64x8xbf16, #tpu.memory_space<vmem>>, vector<1x1x16x8xbf16>,
    %cst_85 = arith.constant dense<0.000000e+00> : vector<8xf32>
    %132 = vector.multi_reduction <add>, %127, %cst_85 [0] : vector<16x8xf32> to vector<8xf32>
    %133 = vector.shape_cast %132 : vector<8xf32> to vector<1x8xf32>
    %134 = arith.addf %102, %133 : vector<1x8xf32>
    %135 = arith.mulf %127, %127 : vector<16x8xf32>
    %cst_86 = arith.constant dense<0.000000e+00> : vector<8xf32>
    %136 = vector.multi_reduction <add>, %135, %cst_86 [0] : vector<16x8xf32> to vector<8xf32>
    %137 = vector.shape_cast %136 : vector<8xf32> to vector<1x8xf32>
    %138 = arith.addf %106, %137 : vector<1x8xf32>
    %c0_87 = arith.constant 0 : index
    %c1_88 = arith.constant 1 : index
    %c0_89 = arith.constant 0 : index
    %c0_90 = arith.constant 0 : index
    %139 = vector.load %arg2[%c0_87, %c1_88, %c0_89, %c0_90] : memref<1x8x18x4xbf16, #tpu.memory_space<vmem>>, vector<1x1x18x4xbf16>
    %140 = vector.shape_cast %139 : vector<1x1x18x4xbf16> to vector<18x4xbf16>
    %c0_91 = arith.constant 0 : index
    %c2_92 = arith.constant 2 : index
    %c0_93 = arith.constant 0 : index
    %c0_94 = arith.constant 0 : index
    %141 = vector.load %arg2[%c0_91, %c2_92, %c0_93, %c0_94] : memref<1x8x18x4xbf16, #tpu.memory_space<vmem>>, vector<1x1x18x4xbf16>
    %142 = vector.shape_cast %141 : vector<1x1x18x4xbf16> to vector<18x4xbf16>
    %c0_95 = arith.constant 0 : index
    %c3_96 = arith.constant 3 : index
    %c0_97 = arith.constant 0 : index
    %c0_98 = arith.constant 0 : index
    %143 = vector.load %arg2[%c0_95, %c3_96, %c0_97, %c0_98] : memref<1x8x18x4xbf16, #tpu.memory_space<vmem>>, vector<1x1x18x4xbf16>
    %144 = vector.shape_cast %143 : vector<1x1x18x4xbf16> to vector<18x4xbf16>
    %cst_99 = arith.constant 0.000000e+00 : f32
    %145 = vector.broadcast %cst_99 : f32 to vector<16x8xf32>
    %146 = vector.extract_strided_slice %140 {offsets = [0, 0], sizes = [16, 4], strides = [1, 1]} : vector<18x4xbf16> to vector<16x4xbf16>
    %c0_100 = arith.constant 0 : index
    %c0_101 = arith.constant 0 : index
    %c0_102 = arith.constant 0 : index
    %147 = vector.load %arg4[%c0_100, %c0_101, %c0_102] : memref<16x4x8xbf16, #tpu.memory_space<vmem>>, vector<1x4x8xbf16>
    %148 = vector.shape_cast %147 : vector<1x4x8xbf16> to vector<4x8xbf16>
    %cst_103 = arith.constant dense<0.000000e+00> : vector<16x8xf32>
    %149 = tpu.matmul %146, %148, %cst_103 {dimension_numbers = #tpu.dot_dimension_numbers<[1], [0], [0], [1], [0, 0, 1, 1], [], []>} : vector<16x4xbf16>, vector<4x8xbf16>, vector<16x8xf32> -> vector<16x8xf32>
    %150 = arith.addf %145, %149 : vector<16x8xf32>
    %151 = vector.extract_strided_slice %140 {offsets = [1, 0], sizes = [16, 4], strides = [1, 1]} : vector<18x4xbf16> to vector<16x4xbf16>
    %c1_104 = arith.constant 1 : index
    %c0_105 = arith.constant 0 : index
    %c0_106 = arith.constant 0 : index
    %152 = vector.load %arg4[%c1_104, %c0_105, %c0_106] : memref<16x4x8xbf16, #tpu.memory_space<vmem>>, vector<1x4x8xbf16>
    %153 = vector.shape_cast %152 : vector<1x4x8xbf16> to vector<4x8xbf16>
    %cst_107 = arith.constant dense<0.000000e+00> : vector<16x8xf32>
    %154 = tpu.matmul %151, %153, %cst_107 {dimension_numbers = #tpu.dot_dimension_numbers<[1], [0], [0], [1], [0, 0, 1, 1], [], []>} : vector<16x4xbf16>, vector<4x8xbf16>, vector<16x8xf32> -> vector<16x8xf32>
    %155 = arith.addf %150, %154 : vector<16x8xf32>
    %156 = vector.extract_strided_slice %142 {offsets = [0, 0], sizes = [16, 4], strides = [1, 1]} : vector<18x4xbf16> to vector<16x4xbf16>
    %c2_108 = arith.constant 2 : index
    %c0_109 = arith.constant 0 : index
    %c0_110 = arith.constant 0 : index
    %157 = vector.load %arg4[%c2_108, %c0_109, %c0_110] : memref<16x4x8xbf16, #tpu.memory_space<vmem>>, vector<1x4x8xbf16>
    %158 = vector.shape_cast %157 : vector<1x4x8xbf16> to vector<4x8xbf16>
    %cst_111 = arith.constant dense<0.000000e+00> : vector<16x8xf32>
    %159 = tpu.matmul %156, %158, %cst_111 {dimension_numbers = #tpu.dot_dimension_numbers<[1], [0], [0], [1], [0, 0, 1, 1], [], []>} : vector<16x4xbf16>, vector<4x8xbf16>, vector<16x8xf32> -> vector<16x8xf32>
    %160 = arith.addf %155, %159 : vector<16x8xf32>
    %161 = vector.extract_strided_slice %142 {offsets = [1, 0], sizes = [16, 4], strides = [1, 1]} : vector<18x4xbf16> to vector<16x4xbf16>
    %c3_112 = arith.constant 3 : index
    %c0_113 = arith.constant 0 : index
    %c0_114 = arith.constant 0 : index
    %162 = vector.load %arg4[%c3_112, %c0_113, %c0_114] : memref<16x4x8xbf16, #tpu.memory_space<vmem>>, vector<1x4x8xbf16>
    %163 = vector.shape_cast %162 : vector<1x4x8xbf16> to vector<4x8xbf16>
    %cst_115 = arith.constant dense<0.000000e+00> : vector<16x8xf32>
    %164 = tpu.matmul %161, %163, %cst_115 {dimension_numbers = #tpu.dot_dimension_numbers<[1], [0], [0], [1], [0, 0, 1, 1], [], []>} : vector<16x4xbf16>, vector<4x8xbf16>, vector<16x8xf32> -> vector<16x8xf32>
    %165 = arith.addf %160, %164 : vector<16x8xf32>
    %166 = arith.truncf %165 : vector<16x8xf32> to vector<16x8xbf16>
    %c0_116 = arith.constant 0 : index
    %c1_117 = arith.constant 1 : index
    %c0_118 = arith.constant 0 : index
    %c0_119 = arith.constant 0 : index
    %167 = vector.load %arg5[%c0_116, %c1_117, %c0_118, %c0_119] : memref<1x8x64x8xbf16, #tpu.memory_space<vmem>>, vector<1x1x16x8xbf16>
    %168 = vector.shape_cast %167 : vector<1x1x16x8xbf16> to vector<16x8xbf16>
    %169 = vector.shape_cast %166 : vector<16x8xbf16> to vector<1x1x16x8xbf16>
    tpu.vector_store %arg5[%c0_116, %c1_117, %c0_118, %c0_119], %169 {strides = array<i32>} : memref<1x8x64x8xbf16, #tpu.memory_space<vmem>>, vector<1x1x16x8xbf16>,
    %cst_120 = arith.constant dense<0.000000e+00> : vector<8xf32>
    %170 = vector.multi_reduction <add>, %165, %cst_120 [0] : vector<16x8xf32> to vector<8xf32>
    %171 = vector.shape_cast %170 : vector<8xf32> to vector<1x8xf32>
    %172 = arith.addf %134, %171 : vector<1x8xf32>
    %173 = arith.mulf %165, %165 : vector<16x8xf32>
    %cst_121 = arith.constant dense<0.000000e+00> : vector<8xf32>
    %174 = vector.multi_reduction <add>, %173, %cst_121 [0] : vector<16x8xf32> to vector<8xf32>
    %175 = vector.shape_cast %174 : vector<8xf32> to vector<1x8xf32>
    %176 = arith.addf %138, %175 : vector<1x8xf32>
    %cst_122 = arith.constant 0.000000e+00 : f32
    %177 = vector.broadcast %cst_122 : f32 to vector<16x8xf32>
    %178 = vector.extract_strided_slice %140 {offsets = [1, 0], sizes = [16, 4], strides = [1, 1]} : vector<18x4xbf16> to vector<16x4xbf16>
    %c4_123 = arith.constant 4 : index
    %c0_124 = arith.constant 0 : index
    %c0_125 = arith.constant 0 : index
    %179 = vector.load %arg4[%c4_123, %c0_124, %c0_125] : memref<16x4x8xbf16, #tpu.memory_space<vmem>>, vector<1x4x8xbf16>
    %180 = vector.shape_cast %179 : vector<1x4x8xbf16> to vector<4x8xbf16>
    %cst_126 = arith.constant dense<0.000000e+00> : vector<16x8xf32>
    %181 = tpu.matmul %178, %180, %cst_126 {dimension_numbers = #tpu.dot_dimension_numbers<[1], [0], [0], [1], [0, 0, 1, 1], [], []>} : vector<16x4xbf16>, vector<4x8xbf16>, vector<16x8xf32> -> vector<16x8xf32>
    %182 = arith.addf %177, %181 : vector<16x8xf32>
    %183 = vector.extract_strided_slice %140 {offsets = [2, 0], sizes = [16, 4], strides = [1, 1]} : vector<18x4xbf16> to vector<16x4xbf16>
    %c5_127 = arith.constant 5 : index
    %c0_128 = arith.constant 0 : index
    %c0_129 = arith.constant 0 : index
    %184 = vector.load %arg4[%c5_127, %c0_128, %c0_129] : memref<16x4x8xbf16, #tpu.memory_space<vmem>>, vector<1x4x8xbf16>
    %185 = vector.shape_cast %184 : vector<1x4x8xbf16> to vector<4x8xbf16>
    %cst_130 = arith.constant dense<0.000000e+00> : vector<16x8xf32>
    %186 = tpu.matmul %183, %185, %cst_130 {dimension_numbers = #tpu.dot_dimension_numbers<[1], [0], [0], [1], [0, 0, 1, 1], [], []>} : vector<16x4xbf16>, vector<4x8xbf16>, vector<16x8xf32> -> vector<16x8xf32>
    %187 = arith.addf %182, %186 : vector<16x8xf32>
    %188 = vector.extract_strided_slice %142 {offsets = [1, 0], sizes = [16, 4], strides = [1, 1]} : vector<18x4xbf16> to vector<16x4xbf16>
    %c6_131 = arith.constant 6 : index
    %c0_132 = arith.constant 0 : index
    %c0_133 = arith.constant 0 : index
    %189 = vector.load %arg4[%c6_131, %c0_132, %c0_133] : memref<16x4x8xbf16, #tpu.memory_space<vmem>>, vector<1x4x8xbf16>
    %190 = vector.shape_cast %189 : vector<1x4x8xbf16> to vector<4x8xbf16>
    %cst_134 = arith.constant dense<0.000000e+00> : vector<16x8xf32>
    %191 = tpu.matmul %188, %190, %cst_134 {dimension_numbers = #tpu.dot_dimension_numbers<[1], [0], [0], [1], [0, 0, 1, 1], [], []>} : vector<16x4xbf16>, vector<4x8xbf16>, vector<16x8xf32> -> vector<16x8xf32>
    %192 = arith.addf %187, %191 : vector<16x8xf32>
    %193 = vector.extract_strided_slice %142 {offsets = [2, 0], sizes = [16, 4], strides = [1, 1]} : vector<18x4xbf16> to vector<16x4xbf16>
    %c7_135 = arith.constant 7 : index
    %c0_136 = arith.constant 0 : index
    %c0_137 = arith.constant 0 : index
    %194 = vector.load %arg4[%c7_135, %c0_136, %c0_137] : memref<16x4x8xbf16, #tpu.memory_space<vmem>>, vector<1x4x8xbf16>
    %195 = vector.shape_cast %194 : vector<1x4x8xbf16> to vector<4x8xbf16>
    %cst_138 = arith.constant dense<0.000000e+00> : vector<16x8xf32>
    %196 = tpu.matmul %193, %195, %cst_138 {dimension_numbers = #tpu.dot_dimension_numbers<[1], [0], [0], [1], [0, 0, 1, 1], [], []>} : vector<16x4xbf16>, vector<4x8xbf16>, vector<16x8xf32> -> vector<16x8xf32>
    %197 = arith.addf %192, %196 : vector<16x8xf32>
    %198 = arith.truncf %197 : vector<16x8xf32> to vector<16x8xbf16>
    %c0_139 = arith.constant 0 : index
    %c1_140 = arith.constant 1 : index
    %c16_141 = arith.constant 16 : index
    %c0_142 = arith.constant 0 : index
    %199 = vector.load %arg5[%c0_139, %c1_140, %c16_141, %c0_142] : memref<1x8x64x8xbf16, #tpu.memory_space<vmem>>, vector<1x1x16x8xbf16>
    %200 = vector.shape_cast %199 : vector<1x1x16x8xbf16> to vector<16x8xbf16>
    %201 = vector.shape_cast %198 : vector<16x8xbf16> to vector<1x1x16x8xbf16>
    tpu.vector_store %arg5[%c0_139, %c1_140, %c16_141, %c0_142], %201 {strides = array<i32>} : memref<1x8x64x8xbf16, #tpu.memory_space<vmem>>, vector<1x1x16x8xbf16>,
    %cst_143 = arith.constant dense<0.000000e+00> : vector<8xf32>
    %202 = vector.multi_reduction <add>, %197, %cst_143 [0] : vector<16x8xf32> to vector<8xf32>
    %203 = vector.shape_cast %202 : vector<8xf32> to vector<1x8xf32>
    %204 = arith.addf %172, %203 : vector<1x8xf32>
    %205 = arith.mulf %197, %197 : vector<16x8xf32>
    %cst_144 = arith.constant dense<0.000000e+00> : vector<8xf32>
    %206 = vector.multi_reduction <add>, %205, %cst_144 [0] : vector<16x8xf32> to vector<8xf32>
    %207 = vector.shape_cast %206 : vector<8xf32> to vector<1x8xf32>
    %208 = arith.addf %176, %207 : vector<1x8xf32>
    %cst_145 = arith.constant 0.000000e+00 : f32
    %209 = vector.broadcast %cst_145 : f32 to vector<16x8xf32>
    %210 = vector.extract_strided_slice %142 {offsets = [0, 0], sizes = [16, 4], strides = [1, 1]} : vector<18x4xbf16> to vector<16x4xbf16>
    %c8_146 = arith.constant 8 : index
    %c0_147 = arith.constant 0 : index
    %c0_148 = arith.constant 0 : index
    %211 = vector.load %arg4[%c8_146, %c0_147, %c0_148] : memref<16x4x8xbf16, #tpu.memory_space<vmem>>, vector<1x4x8xbf16>
    %212 = vector.shape_cast %211 : vector<1x4x8xbf16> to vector<4x8xbf16>
    %cst_149 = arith.constant dense<0.000000e+00> : vector<16x8xf32>
    %213 = tpu.matmul %210, %212, %cst_149 {dimension_numbers = #tpu.dot_dimension_numbers<[1], [0], [0], [1], [0, 0, 1, 1], [], []>} : vector<16x4xbf16>, vector<4x8xbf16>, vector<16x8xf32> -> vector<16x8xf32>
    %214 = arith.addf %209, %213 : vector<16x8xf32>
    %215 = vector.extract_strided_slice %142 {offsets = [1, 0], sizes = [16, 4], strides = [1, 1]} : vector<18x4xbf16> to vector<16x4xbf16>
    %c9_150 = arith.constant 9 : index
    %c0_151 = arith.constant 0 : index
    %c0_152 = arith.constant 0 : index
    %216 = vector.load %arg4[%c9_150, %c0_151, %c0_152] : memref<16x4x8xbf16, #tpu.memory_space<vmem>>, vector<1x4x8xbf16>
    %217 = vector.shape_cast %216 : vector<1x4x8xbf16> to vector<4x8xbf16>
    %cst_153 = arith.constant dense<0.000000e+00> : vector<16x8xf32>
    %218 = tpu.matmul %215, %217, %cst_153 {dimension_numbers = #tpu.dot_dimension_numbers<[1], [0], [0], [1], [0, 0, 1, 1], [], []>} : vector<16x4xbf16>, vector<4x8xbf16>, vector<16x8xf32> -> vector<16x8xf32>
    %219 = arith.addf %214, %218 : vector<16x8xf32>
    %220 = vector.extract_strided_slice %144 {offsets = [0, 0], sizes = [16, 4], strides = [1, 1]} : vector<18x4xbf16> to vector<16x4xbf16>
    %c10_154 = arith.constant 10 : index
    %c0_155 = arith.constant 0 : index
    %c0_156 = arith.constant 0 : index
    %221 = vector.load %arg4[%c10_154, %c0_155, %c0_156] : memref<16x4x8xbf16, #tpu.memory_space<vmem>>, vector<1x4x8xbf16>
    %222 = vector.shape_cast %221 : vector<1x4x8xbf16> to vector<4x8xbf16>
    %cst_157 = arith.constant dense<0.000000e+00> : vector<16x8xf32>
    %223 = tpu.matmul %220, %222, %cst_157 {dimension_numbers = #tpu.dot_dimension_numbers<[1], [0], [0], [1], [0, 0, 1, 1], [], []>} : vector<16x4xbf16>, vector<4x8xbf16>, vector<16x8xf32> -> vector<16x8xf32>
    %224 = arith.addf %219, %223 : vector<16x8xf32>
    %225 = vector.extract_strided_slice %144 {offsets = [1, 0], sizes = [16, 4], strides = [1, 1]} : vector<18x4xbf16> to vector<16x4xbf16>
    %c11_158 = arith.constant 11 : index
    %c0_159 = arith.constant 0 : index
    %c0_160 = arith.constant 0 : index
    %226 = vector.load %arg4[%c11_158, %c0_159, %c0_160] : memref<16x4x8xbf16, #tpu.memory_space<vmem>>, vector<1x4x8xbf16>
    %227 = vector.shape_cast %226 : vector<1x4x8xbf16> to vector<4x8xbf16>
    %cst_161 = arith.constant dense<0.000000e+00> : vector<16x8xf32>
    %228 = tpu.matmul %225, %227, %cst_161 {dimension_numbers = #tpu.dot_dimension_numbers<[1], [0], [0], [1], [0, 0, 1, 1], [], []>} : vector<16x4xbf16>, vector<4x8xbf16>, vector<16x8xf32> -> vector<16x8xf32>
    %229 = arith.addf %224, %228 : vector<16x8xf32>
    %230 = arith.truncf %229 : vector<16x8xf32> to vector<16x8xbf16>
    %c0_162 = arith.constant 0 : index
    %c1_163 = arith.constant 1 : index
    %c32_164 = arith.constant 32 : index
    %c0_165 = arith.constant 0 : index
    %231 = vector.load %arg5[%c0_162, %c1_163, %c32_164, %c0_165] : memref<1x8x64x8xbf16, #tpu.memory_space<vmem>>, vector<1x1x16x8xbf16>
    %232 = vector.shape_cast %231 : vector<1x1x16x8xbf16> to vector<16x8xbf16>
    %233 = vector.shape_cast %230 : vector<16x8xbf16> to vector<1x1x16x8xbf16>
    tpu.vector_store %arg5[%c0_162, %c1_163, %c32_164, %c0_165], %233 {strides = array<i32>} : memref<1x8x64x8xbf16, #tpu.memory_space<vmem>>, vector<1x1x16x8xbf16>,
    %cst_166 = arith.constant dense<0.000000e+00> : vector<8xf32>
    %234 = vector.multi_reduction <add>, %229, %cst_166 [0] : vector<16x8xf32> to vector<8xf32>
    %235 = vector.shape_cast %234 : vector<8xf32> to vector<1x8xf32>
    %236 = arith.addf %204, %235 : vector<1x8xf32>
    %237 = arith.mulf %229, %229 : vector<16x8xf32>
    %cst_167 = arith.constant dense<0.000000e+00> : vector<8xf32>
    %238 = vector.multi_reduction <add>, %237, %cst_167 [0] : vector<16x8xf32> to vector<8xf32>
    %239 = vector.shape_cast %238 : vector<8xf32> to vector<1x8xf32>
    %240 = arith.addf %208, %239 : vector<1x8xf32>
    %cst_168 = arith.constant 0.000000e+00 : f32
    %241 = vector.broadcast %cst_168 : f32 to vector<16x8xf32>
    %242 = vector.extract_strided_slice %142 {offsets = [1, 0], sizes = [16, 4], strides = [1, 1]} : vector<18x4xbf16> to vector<16x4xbf16>
    %c12_169 = arith.constant 12 : index
    %c0_170 = arith.constant 0 : index
    %c0_171 = arith.constant 0 : index
    %243 = vector.load %arg4[%c12_169, %c0_170, %c0_171] : memref<16x4x8xbf16, #tpu.memory_space<vmem>>, vector<1x4x8xbf16>
    %244 = vector.shape_cast %243 : vector<1x4x8xbf16> to vector<4x8xbf16>
    %cst_172 = arith.constant dense<0.000000e+00> : vector<16x8xf32>
    %245 = tpu.matmul %242, %244, %cst_172 {dimension_numbers = #tpu.dot_dimension_numbers<[1], [0], [0], [1], [0, 0, 1, 1], [], []>} : vector<16x4xbf16>, vector<4x8xbf16>, vector<16x8xf32> -> vector<16x8xf32>
    %246 = arith.addf %241, %245 : vector<16x8xf32>
    %247 = vector.extract_strided_slice %142 {offsets = [2, 0], sizes = [16, 4], strides = [1, 1]} : vector<18x4xbf16> to vector<16x4xbf16>
    %c13_173 = arith.constant 13 : index
    %c0_174 = arith.constant 0 : index
    %c0_175 = arith.constant 0 : index
    %248 = vector.load %arg4[%c13_173, %c0_174, %c0_175] : memref<16x4x8xbf16, #tpu.memory_space<vmem>>, vector<1x4x8xbf16>
    %249 = vector.shape_cast %248 : vector<1x4x8xbf16> to vector<4x8xbf16>
    %cst_176 = arith.constant dense<0.000000e+00> : vector<16x8xf32>
    %250 = tpu.matmul %247, %249, %cst_176 {dimension_numbers = #tpu.dot_dimension_numbers<[1], [0], [0], [1], [0, 0, 1, 1], [], []>} : vector<16x4xbf16>, vector<4x8xbf16>, vector<16x8xf32> -> vector<16x8xf32>
    %251 = arith.addf %246, %250 : vector<16x8xf32>
    %252 = vector.extract_strided_slice %144 {offsets = [1, 0], sizes = [16, 4], strides = [1, 1]} : vector<18x4xbf16> to vector<16x4xbf16>
    %c14_177 = arith.constant 14 : index
    %c0_178 = arith.constant 0 : index
    %c0_179 = arith.constant 0 : index
    %253 = vector.load %arg4[%c14_177, %c0_178, %c0_179] : memref<16x4x8xbf16, #tpu.memory_space<vmem>>, vector<1x4x8xbf16>
    %254 = vector.shape_cast %253 : vector<1x4x8xbf16> to vector<4x8xbf16>
    %cst_180 = arith.constant dense<0.000000e+00> : vector<16x8xf32>
    %255 = tpu.matmul %252, %254, %cst_180 {dimension_numbers = #tpu.dot_dimension_numbers<[1], [0], [0], [1], [0, 0, 1, 1], [], []>} : vector<16x4xbf16>, vector<4x8xbf16>, vector<16x8xf32> -> vector<16x8xf32>
    %256 = arith.addf %251, %255 : vector<16x8xf32>
    %257 = vector.extract_strided_slice %144 {offsets = [2, 0], sizes = [16, 4], strides = [1, 1]} : vector<18x4xbf16> to vector<16x4xbf16>
    %c15_181 = arith.constant 15 : index
    %c0_182 = arith.constant 0 : index
    %c0_183 = arith.constant 0 : index
    %258 = vector.load %arg4[%c15_181, %c0_182, %c0_183] : memref<16x4x8xbf16, #tpu.memory_space<vmem>>, vector<1x4x8xbf16>
    %259 = vector.shape_cast %258 : vector<1x4x8xbf16> to vector<4x8xbf16>
    %cst_184 = arith.constant dense<0.000000e+00> : vector<16x8xf32>
    %260 = tpu.matmul %257, %259, %cst_184 {dimension_numbers = #tpu.dot_dimension_numbers<[1], [0], [0], [1], [0, 0, 1, 1], [], []>} : vector<16x4xbf16>, vector<4x8xbf16>, vector<16x8xf32> -> vector<16x8xf32>
    %261 = arith.addf %256, %260 : vector<16x8xf32>
    %262 = arith.truncf %261 : vector<16x8xf32> to vector<16x8xbf16>
    %c0_185 = arith.constant 0 : index
    %c1_186 = arith.constant 1 : index
    %c48_187 = arith.constant 48 : index
    %c0_188 = arith.constant 0 : index
    %263 = vector.load %arg5[%c0_185, %c1_186, %c48_187, %c0_188] : memref<1x8x64x8xbf16, #tpu.memory_space<vmem>>, vector<1x1x16x8xbf16>
    %264 = vector.shape_cast %263 : vector<1x1x16x8xbf16> to vector<16x8xbf16>
    %265 = vector.shape_cast %262 : vector<16x8xbf16> to vector<1x1x16x8xbf16>
    tpu.vector_store %arg5[%c0_185, %c1_186, %c48_187, %c0_188], %265 {strides = array<i32>} : memref<1x8x64x8xbf16, #tpu.memory_space<vmem>>, vector<1x1x16x8xbf16>,
    %cst_189 = arith.constant dense<0.000000e+00> : vector<8xf32>
    %266 = vector.multi_reduction <add>, %261, %cst_189 [0] : vector<16x8xf32> to vector<8xf32>
    %267 = vector.shape_cast %266 : vector<8xf32> to vector<1x8xf32>
    %268 = arith.addf %236, %267 : vector<1x8xf32>
    %269 = arith.mulf %261, %261 : vector<16x8xf32>
    %cst_190 = arith.constant dense<0.000000e+00> : vector<8xf32>
    %270 = vector.multi_reduction <add>, %269, %cst_190 [0] : vector<16x8xf32> to vector<8xf32>
    %271 = vector.shape_cast %270 : vector<8xf32> to vector<1x8xf32>
    %272 = arith.addf %240, %271 : vector<1x8xf32>
    %c0_191 = arith.constant 0 : index
    %c2_192 = arith.constant 2 : index
    %c0_193 = arith.constant 0 : index
    %c0_194 = arith.constant 0 : index
    %273 = vector.load %arg2[%c0_191, %c2_192, %c0_193, %c0_194] : memref<1x8x18x4xbf16, #tpu.memory_space<vmem>>, vector<1x1x18x4xbf16>
    %274 = vector.shape_cast %273 : vector<1x1x18x4xbf16> to vector<18x4xbf16>
    %c0_195 = arith.constant 0 : index
    %c3_196 = arith.constant 3 : index
    %c0_197 = arith.constant 0 : index
    %c0_198 = arith.constant 0 : index
    %275 = vector.load %arg2[%c0_195, %c3_196, %c0_197, %c0_198] : memref<1x8x18x4xbf16, #tpu.memory_space<vmem>>, vector<1x1x18x4xbf16>
    %276 = vector.shape_cast %275 : vector<1x1x18x4xbf16> to vector<18x4xbf16>
    %c0_199 = arith.constant 0 : index
    %c4_200 = arith.constant 4 : index
    %c0_201 = arith.constant 0 : index
    %c0_202 = arith.constant 0 : index
    %277 = vector.load %arg2[%c0_199, %c4_200, %c0_201, %c0_202] : memref<1x8x18x4xbf16, #tpu.memory_space<vmem>>, vector<1x1x18x4xbf16>
    %278 = vector.shape_cast %277 : vector<1x1x18x4xbf16> to vector<18x4xbf16>
    %cst_203 = arith.constant 0.000000e+00 : f32
    %279 = vector.broadcast %cst_203 : f32 to vector<16x8xf32>
    %280 = vector.extract_strided_slice %274 {offsets = [0, 0], sizes = [16, 4], strides = [1, 1]} : vector<18x4xbf16> to vector<16x4xbf16>
    %c0_204 = arith.constant 0 : index
    %c0_205 = arith.constant 0 : index
    %c0_206 = arith.constant 0 : index
    %281 = vector.load %arg4[%c0_204, %c0_205, %c0_206] : memref<16x4x8xbf16, #tpu.memory_space<vmem>>, vector<1x4x8xbf16>
    %282 = vector.shape_cast %281 : vector<1x4x8xbf16> to vector<4x8xbf16>
    %cst_207 = arith.constant dense<0.000000e+00> : vector<16x8xf32>
    %283 = tpu.matmul %280, %282, %cst_207 {dimension_numbers = #tpu.dot_dimension_numbers<[1], [0], [0], [1], [0, 0, 1, 1], [], []>} : vector<16x4xbf16>, vector<4x8xbf16>, vector<16x8xf32> -> vector<16x8xf32>
    %284 = arith.addf %279, %283 : vector<16x8xf32>
    %285 = vector.extract_strided_slice %274 {offsets = [1, 0], sizes = [16, 4], strides = [1, 1]} : vector<18x4xbf16> to vector<16x4xbf16>
    %c1_208 = arith.constant 1 : index
    %c0_209 = arith.constant 0 : index
    %c0_210 = arith.constant 0 : index
    %286 = vector.load %arg4[%c1_208, %c0_209, %c0_210] : memref<16x4x8xbf16, #tpu.memory_space<vmem>>, vector<1x4x8xbf16>
    %287 = vector.shape_cast %286 : vector<1x4x8xbf16> to vector<4x8xbf16>
    %cst_211 = arith.constant dense<0.000000e+00> : vector<16x8xf32>
    %288 = tpu.matmul %285, %287, %cst_211 {dimension_numbers = #tpu.dot_dimension_numbers<[1], [0], [0], [1], [0, 0, 1, 1], [], []>} : vector<16x4xbf16>, vector<4x8xbf16>, vector<16x8xf32> -> vector<16x8xf32>
    %289 = arith.addf %284, %288 : vector<16x8xf32>
    %290 = vector.extract_strided_slice %276 {offsets = [0, 0], sizes = [16, 4], strides = [1, 1]} : vector<18x4xbf16> to vector<16x4xbf16>
    %c2_212 = arith.constant 2 : index
    %c0_213 = arith.constant 0 : index
    %c0_214 = arith.constant 0 : index
    %291 = vector.load %arg4[%c2_212, %c0_213, %c0_214] : memref<16x4x8xbf16, #tpu.memory_space<vmem>>, vector<1x4x8xbf16>
    %292 = vector.shape_cast %291 : vector<1x4x8xbf16> to vector<4x8xbf16>
    %cst_215 = arith.constant dense<0.000000e+00> : vector<16x8xf32>
    %293 = tpu.matmul %290, %292, %cst_215 {dimension_numbers = #tpu.dot_dimension_numbers<[1], [0], [0], [1], [0, 0, 1, 1], [], []>} : vector<16x4xbf16>, vector<4x8xbf16>, vector<16x8xf32> -> vector<16x8xf32>
    %294 = arith.addf %289, %293 : vector<16x8xf32>
    %295 = vector.extract_strided_slice %276 {offsets = [1, 0], sizes = [16, 4], strides = [1, 1]} : vector<18x4xbf16> to vector<16x4xbf16>
    %c3_216 = arith.constant 3 : index
    %c0_217 = arith.constant 0 : index
    %c0_218 = arith.constant 0 : index
    %296 = vector.load %arg4[%c3_216, %c0_217, %c0_218] : memref<16x4x8xbf16, #tpu.memory_space<vmem>>, vector<1x4x8xbf16>
    %297 = vector.shape_cast %296 : vector<1x4x8xbf16> to vector<4x8xbf16>
    %cst_219 = arith.constant dense<0.000000e+00> : vector<16x8xf32>
    %298 = tpu.matmul %295, %297, %cst_219 {dimension_numbers = #tpu.dot_dimension_numbers<[1], [0], [0], [1], [0, 0, 1, 1], [], []>} : vector<16x4xbf16>, vector<4x8xbf16>, vector<16x8xf32> -> vector<16x8xf32>
    %299 = arith.addf %294, %298 : vector<16x8xf32>
    %300 = arith.truncf %299 : vector<16x8xf32> to vector<16x8xbf16>
    %c0_220 = arith.constant 0 : index
    %c2_221 = arith.constant 2 : index
    %c0_222 = arith.constant 0 : index
    %c0_223 = arith.constant 0 : index
    %301 = vector.load %arg5[%c0_220, %c2_221, %c0_222, %c0_223] : memref<1x8x64x8xbf16, #tpu.memory_space<vmem>>, vector<1x1x16x8xbf16>
    %302 = vector.shape_cast %301 : vector<1x1x16x8xbf16> to vector<16x8xbf16>
    %303 = vector.shape_cast %300 : vector<16x8xbf16> to vector<1x1x16x8xbf16>
    tpu.vector_store %arg5[%c0_220, %c2_221, %c0_222, %c0_223], %303 {strides = array<i32>} : memref<1x8x64x8xbf16, #tpu.memory_space<vmem>>, vector<1x1x16x8xbf16>,
    %cst_224 = arith.constant dense<0.000000e+00> : vector<8xf32>
    %304 = vector.multi_reduction <add>, %299, %cst_224 [0] : vector<16x8xf32> to vector<8xf32>
    %305 = vector.shape_cast %304 : vector<8xf32> to vector<1x8xf32>
    %306 = arith.addf %268, %305 : vector<1x8xf32>
    %307 = arith.mulf %299, %299 : vector<16x8xf32>
    %cst_225 = arith.constant dense<0.000000e+00> : vector<8xf32>
    %308 = vector.multi_reduction <add>, %307, %cst_225 [0] : vector<16x8xf32> to vector<8xf32>
    %309 = vector.shape_cast %308 : vector<8xf32> to vector<1x8xf32>
    %310 = arith.addf %272, %309 : vector<1x8xf32>
    %cst_226 = arith.constant 0.000000e+00 : f32
    %311 = vector.broadcast %cst_226 : f32 to vector<16x8xf32>
    %312 = vector.extract_strided_slice %274 {offsets = [1, 0], sizes = [16, 4], strides = [1, 1]} : vector<18x4xbf16> to vector<16x4xbf16>
    %c4_227 = arith.constant 4 : index
    %c0_228 = arith.constant 0 : index
    %c0_229 = arith.constant 0 : index
    %313 = vector.load %arg4[%c4_227, %c0_228, %c0_229] : memref<16x4x8xbf16, #tpu.memory_space<vmem>>, vector<1x4x8xbf16>
    %314 = vector.shape_cast %313 : vector<1x4x8xbf16> to vector<4x8xbf16>
    %cst_230 = arith.constant dense<0.000000e+00> : vector<16x8xf32>
    %315 = tpu.matmul %312, %314, %cst_230 {dimension_numbers = #tpu.dot_dimension_numbers<[1], [0], [0], [1], [0, 0, 1, 1], [], []>} : vector<16x4xbf16>, vector<4x8xbf16>, vector<16x8xf32> -> vector<16x8xf32>
    %316 = arith.addf %311, %315 : vector<16x8xf32>
    %317 = vector.extract_strided_slice %274 {offsets = [2, 0], sizes = [16, 4], strides = [1, 1]} : vector<18x4xbf16> to vector<16x4xbf16>
    %c5_231 = arith.constant 5 : index
    %c0_232 = arith.constant 0 : index
    %c0_233 = arith.constant 0 : index
    %318 = vector.load %arg4[%c5_231, %c0_232, %c0_233] : memref<16x4x8xbf16, #tpu.memory_space<vmem>>, vector<1x4x8xbf16>
    %319 = vector.shape_cast %318 : vector<1x4x8xbf16> to vector<4x8xbf16>
    %cst_234 = arith.constant dense<0.000000e+00> : vector<16x8xf32>
    %320 = tpu.matmul %317, %319, %cst_234 {dimension_numbers = #tpu.dot_dimension_numbers<[1], [0], [0], [1], [0, 0, 1, 1], [], []>} : vector<16x4xbf16>, vector<4x8xbf16>, vector<16x8xf32> -> vector<16x8xf32>
    %321 = arith.addf %316, %320 : vector<16x8xf32>
    %322 = vector.extract_strided_slice %276 {offsets = [1, 0], sizes = [16, 4], strides = [1, 1]} : vector<18x4xbf16> to vector<16x4xbf16>
    %c6_235 = arith.constant 6 : index
    %c0_236 = arith.constant 0 : index
    %c0_237 = arith.constant 0 : index
    %323 = vector.load %arg4[%c6_235, %c0_236, %c0_237] : memref<16x4x8xbf16, #tpu.memory_space<vmem>>, vector<1x4x8xbf16>
    %324 = vector.shape_cast %323 : vector<1x4x8xbf16> to vector<4x8xbf16>
    %cst_238 = arith.constant dense<0.000000e+00> : vector<16x8xf32>
    %325 = tpu.matmul %322, %324, %cst_238 {dimension_numbers = #tpu.dot_dimension_numbers<[1], [0], [0], [1], [0, 0, 1, 1], [], []>} : vector<16x4xbf16>, vector<4x8xbf16>, vector<16x8xf32> -> vector<16x8xf32>
    %326 = arith.addf %321, %325 : vector<16x8xf32>
    %327 = vector.extract_strided_slice %276 {offsets = [2, 0], sizes = [16, 4], strides = [1, 1]} : vector<18x4xbf16> to vector<16x4xbf16>
    %c7_239 = arith.constant 7 : index
    %c0_240 = arith.constant 0 : index
    %c0_241 = arith.constant 0 : index
    %328 = vector.load %arg4[%c7_239, %c0_240, %c0_241] : memref<16x4x8xbf16, #tpu.memory_space<vmem>>, vector<1x4x8xbf16>
    %329 = vector.shape_cast %328 : vector<1x4x8xbf16> to vector<4x8xbf16>
    %cst_242 = arith.constant dense<0.000000e+00> : vector<16x8xf32>
    %330 = tpu.matmul %327, %329, %cst_242 {dimension_numbers = #tpu.dot_dimension_numbers<[1], [0], [0], [1], [0, 0, 1, 1], [], []>} : vector<16x4xbf16>, vector<4x8xbf16>, vector<16x8xf32> -> vector<16x8xf32>
    %331 = arith.addf %326, %330 : vector<16x8xf32>
    %332 = arith.truncf %331 : vector<16x8xf32> to vector<16x8xbf16>
    %c0_243 = arith.constant 0 : index
    %c2_244 = arith.constant 2 : index
    %c16_245 = arith.constant 16 : index
    %c0_246 = arith.constant 0 : index
    %333 = vector.load %arg5[%c0_243, %c2_244, %c16_245, %c0_246] : memref<1x8x64x8xbf16, #tpu.memory_space<vmem>>, vector<1x1x16x8xbf16>
    %334 = vector.shape_cast %333 : vector<1x1x16x8xbf16> to vector<16x8xbf16>
    %335 = vector.shape_cast %332 : vector<16x8xbf16> to vector<1x1x16x8xbf16>
    tpu.vector_store %arg5[%c0_243, %c2_244, %c16_245, %c0_246], %335 {strides = array<i32>} : memref<1x8x64x8xbf16, #tpu.memory_space<vmem>>, vector<1x1x16x8xbf16>,
    %cst_247 = arith.constant dense<0.000000e+00> : vector<8xf32>
    %336 = vector.multi_reduction <add>, %331, %cst_247 [0] : vector<16x8xf32> to vector<8xf32>
    %337 = vector.shape_cast %336 : vector<8xf32> to vector<1x8xf32>
    %338 = arith.addf %306, %337 : vector<1x8xf32>
    %339 = arith.mulf %331, %331 : vector<16x8xf32>
    %cst_248 = arith.constant dense<0.000000e+00> : vector<8xf32>
    %340 = vector.multi_reduction <add>, %339, %cst_248 [0] : vector<16x8xf32> to vector<8xf32>
    %341 = vector.shape_cast %340 : vector<8xf32> to vector<1x8xf32>
    %342 = arith.addf %310, %341 : vector<1x8xf32>
    %cst_249 = arith.constant 0.000000e+00 : f32
    %343 = vector.broadcast %cst_249 : f32 to vector<16x8xf32>
    %344 = vector.extract_strided_slice %276 {offsets = [0, 0], sizes = [16, 4], strides = [1, 1]} : vector<18x4xbf16> to vector<16x4xbf16>
    %c8_250 = arith.constant 8 : index
    %c0_251 = arith.constant 0 : index
    %c0_252 = arith.constant 0 : index
    %345 = vector.load %arg4[%c8_250, %c0_251, %c0_252] : memref<16x4x8xbf16, #tpu.memory_space<vmem>>, vector<1x4x8xbf16>
    %346 = vector.shape_cast %345 : vector<1x4x8xbf16> to vector<4x8xbf16>
    %cst_253 = arith.constant dense<0.000000e+00> : vector<16x8xf32>
    %347 = tpu.matmul %344, %346, %cst_253 {dimension_numbers = #tpu.dot_dimension_numbers<[1], [0], [0], [1], [0, 0, 1, 1], [], []>} : vector<16x4xbf16>, vector<4x8xbf16>, vector<16x8xf32> -> vector<16x8xf32>
    %348 = arith.addf %343, %347 : vector<16x8xf32>
    %349 = vector.extract_strided_slice %276 {offsets = [1, 0], sizes = [16, 4], strides = [1, 1]} : vector<18x4xbf16> to vector<16x4xbf16>
    %c9_254 = arith.constant 9 : index
    %c0_255 = arith.constant 0 : index
    %c0_256 = arith.constant 0 : index
    %350 = vector.load %arg4[%c9_254, %c0_255, %c0_256] : memref<16x4x8xbf16, #tpu.memory_space<vmem>>, vector<1x4x8xbf16>
    %351 = vector.shape_cast %350 : vector<1x4x8xbf16> to vector<4x8xbf16>
    %cst_257 = arith.constant dense<0.000000e+00> : vector<16x8xf32>
    %352 = tpu.matmul %349, %351, %cst_257 {dimension_numbers = #tpu.dot_dimension_numbers<[1], [0], [0], [1], [0, 0, 1, 1], [], []>} : vector<16x4xbf16>, vector<4x8xbf16>, vector<16x8xf32> -> vector<16x8xf32>
    %353 = arith.addf %348, %352 : vector<16x8xf32>
    %354 = vector.extract_strided_slice %278 {offsets = [0, 0], sizes = [16, 4], strides = [1, 1]} : vector<18x4xbf16> to vector<16x4xbf16>
    %c10_258 = arith.constant 10 : index
    %c0_259 = arith.constant 0 : index
    %c0_260 = arith.constant 0 : index
    %355 = vector.load %arg4[%c10_258, %c0_259, %c0_260] : memref<16x4x8xbf16, #tpu.memory_space<vmem>>, vector<1x4x8xbf16>
    %356 = vector.shape_cast %355 : vector<1x4x8xbf16> to vector<4x8xbf16>
    %cst_261 = arith.constant dense<0.000000e+00> : vector<16x8xf32>
    %357 = tpu.matmul %354, %356, %cst_261 {dimension_numbers = #tpu.dot_dimension_numbers<[1], [0], [0], [1], [0, 0, 1, 1], [], []>} : vector<16x4xbf16>, vector<4x8xbf16>, vector<16x8xf32> -> vector<16x8xf32>
    %358 = arith.addf %353, %357 : vector<16x8xf32>
    %359 = vector.extract_strided_slice %278 {offsets = [1, 0], sizes = [16, 4], strides = [1, 1]} : vector<18x4xbf16> to vector<16x4xbf16>
    %c11_262 = arith.constant 11 : index
    %c0_263 = arith.constant 0 : index
    %c0_264 = arith.constant 0 : index
    %360 = vector.load %arg4[%c11_262, %c0_263, %c0_264] : memref<16x4x8xbf16, #tpu.memory_space<vmem>>, vector<1x4x8xbf16>
    %361 = vector.shape_cast %360 : vector<1x4x8xbf16> to vector<4x8xbf16>
    %cst_265 = arith.constant dense<0.000000e+00> : vector<16x8xf32>
    %362 = tpu.matmul %359, %361, %cst_265 {dimension_numbers = #tpu.dot_dimension_numbers<[1], [0], [0], [1], [0, 0, 1, 1], [], []>} : vector<16x4xbf16>, vector<4x8xbf16>, vector<16x8xf32> -> vector<16x8xf32>
    %363 = arith.addf %358, %362 : vector<16x8xf32>
    %364 = arith.truncf %363 : vector<16x8xf32> to vector<16x8xbf16>
    %c0_266 = arith.constant 0 : index
    %c2_267 = arith.constant 2 : index
    %c32_268 = arith.constant 32 : index
    %c0_269 = arith.constant 0 : index
    %365 = vector.load %arg5[%c0_266, %c2_267, %c32_268, %c0_269] : memref<1x8x64x8xbf16, #tpu.memory_space<vmem>>, vector<1x1x16x8xbf16>
    %366 = vector.shape_cast %365 : vector<1x1x16x8xbf16> to vector<16x8xbf16>
    %367 = vector.shape_cast %364 : vector<16x8xbf16> to vector<1x1x16x8xbf16>
    tpu.vector_store %arg5[%c0_266, %c2_267, %c32_268, %c0_269], %367 {strides = array<i32>} : memref<1x8x64x8xbf16, #tpu.memory_space<vmem>>, vector<1x1x16x8xbf16>,
    %cst_270 = arith.constant dense<0.000000e+00> : vector<8xf32>
    %368 = vector.multi_reduction <add>, %363, %cst_270 [0] : vector<16x8xf32> to vector<8xf32>
    %369 = vector.shape_cast %368 : vector<8xf32> to vector<1x8xf32>
    %370 = arith.addf %338, %369 : vector<1x8xf32>
    %371 = arith.mulf %363, %363 : vector<16x8xf32>
    %cst_271 = arith.constant dense<0.000000e+00> : vector<8xf32>
    %372 = vector.multi_reduction <add>, %371, %cst_271 [0] : vector<16x8xf32> to vector<8xf32>
    %373 = vector.shape_cast %372 : vector<8xf32> to vector<1x8xf32>
    %374 = arith.addf %342, %373 : vector<1x8xf32>
    %cst_272 = arith.constant 0.000000e+00 : f32
    %375 = vector.broadcast %cst_272 : f32 to vector<16x8xf32>
    %376 = vector.extract_strided_slice %276 {offsets = [1, 0], sizes = [16, 4], strides = [1, 1]} : vector<18x4xbf16> to vector<16x4xbf16>
    %c12_273 = arith.constant 12 : index
    %c0_274 = arith.constant 0 : index
    %c0_275 = arith.constant 0 : index
    %377 = vector.load %arg4[%c12_273, %c0_274, %c0_275] : memref<16x4x8xbf16, #tpu.memory_space<vmem>>, vector<1x4x8xbf16>
    %378 = vector.shape_cast %377 : vector<1x4x8xbf16> to vector<4x8xbf16>
    %cst_276 = arith.constant dense<0.000000e+00> : vector<16x8xf32>
    %379 = tpu.matmul %376, %378, %cst_276 {dimension_numbers = #tpu.dot_dimension_numbers<[1], [0], [0], [1], [0, 0, 1, 1], [], []>} : vector<16x4xbf16>, vector<4x8xbf16>, vector<16x8xf32> -> vector<16x8xf32>
    %380 = arith.addf %375, %379 : vector<16x8xf32>
    %381 = vector.extract_strided_slice %276 {offsets = [2, 0], sizes = [16, 4], strides = [1, 1]} : vector<18x4xbf16> to vector<16x4xbf16>
    %c13_277 = arith.constant 13 : index
    %c0_278 = arith.constant 0 : index
    %c0_279 = arith.constant 0 : index
    %382 = vector.load %arg4[%c13_277, %c0_278, %c0_279] : memref<16x4x8xbf16, #tpu.memory_space<vmem>>, vector<1x4x8xbf16>
    %383 = vector.shape_cast %382 : vector<1x4x8xbf16> to vector<4x8xbf16>
    %cst_280 = arith.constant dense<0.000000e+00> : vector<16x8xf32>
    %384 = tpu.matmul %381, %383, %cst_280 {dimension_numbers = #tpu.dot_dimension_numbers<[1], [0], [0], [1], [0, 0, 1, 1], [], []>} : vector<16x4xbf16>, vector<4x8xbf16>, vector<16x8xf32> -> vector<16x8xf32>
    %385 = arith.addf %380, %384 : vector<16x8xf32>
    %386 = vector.extract_strided_slice %278 {offsets = [1, 0], sizes = [16, 4], strides = [1, 1]} : vector<18x4xbf16> to vector<16x4xbf16>
    %c14_281 = arith.constant 14 : index
    %c0_282 = arith.constant 0 : index
    %c0_283 = arith.constant 0 : index
    %387 = vector.load %arg4[%c14_281, %c0_282, %c0_283] : memref<16x4x8xbf16, #tpu.memory_space<vmem>>, vector<1x4x8xbf16>
    %388 = vector.shape_cast %387 : vector<1x4x8xbf16> to vector<4x8xbf16>
    %cst_284 = arith.constant dense<0.000000e+00> : vector<16x8xf32>
    %389 = tpu.matmul %386, %388, %cst_284 {dimension_numbers = #tpu.dot_dimension_numbers<[1], [0], [0], [1], [0, 0, 1, 1], [], []>} : vector<16x4xbf16>, vector<4x8xbf16>, vector<16x8xf32> -> vector<16x8xf32>
    %390 = arith.addf %385, %389 : vector<16x8xf32>
    %391 = vector.extract_strided_slice %278 {offsets = [2, 0], sizes = [16, 4], strides = [1, 1]} : vector<18x4xbf16> to vector<16x4xbf16>
    %c15_285 = arith.constant 15 : index
    %c0_286 = arith.constant 0 : index
    %c0_287 = arith.constant 0 : index
    %392 = vector.load %arg4[%c15_285, %c0_286, %c0_287] : memref<16x4x8xbf16, #tpu.memory_space<vmem>>, vector<1x4x8xbf16>
    %393 = vector.shape_cast %392 : vector<1x4x8xbf16> to vector<4x8xbf16>
    %cst_288 = arith.constant dense<0.000000e+00> : vector<16x8xf32>
    %394 = tpu.matmul %391, %393, %cst_288 {dimension_numbers = #tpu.dot_dimension_numbers<[1], [0], [0], [1], [0, 0, 1, 1], [], []>} : vector<16x4xbf16>, vector<4x8xbf16>, vector<16x8xf32> -> vector<16x8xf32>
    %395 = arith.addf %390, %394 : vector<16x8xf32>
    %396 = arith.truncf %395 : vector<16x8xf32> to vector<16x8xbf16>
    %c0_289 = arith.constant 0 : index
    %c2_290 = arith.constant 2 : index
    %c48_291 = arith.constant 48 : index
    %c0_292 = arith.constant 0 : index
    %397 = vector.load %arg5[%c0_289, %c2_290, %c48_291, %c0_292] : memref<1x8x64x8xbf16, #tpu.memory_space<vmem>>, vector<1x1x16x8xbf16>
    %398 = vector.shape_cast %397 : vector<1x1x16x8xbf16> to vector<16x8xbf16>
    %399 = vector.shape_cast %396 : vector<16x8xbf16> to vector<1x1x16x8xbf16>
    tpu.vector_store %arg5[%c0_289, %c2_290, %c48_291, %c0_292], %399 {strides = array<i32>} : memref<1x8x64x8xbf16, #tpu.memory_space<vmem>>, vector<1x1x16x8xbf16>,
    %cst_293 = arith.constant dense<0.000000e+00> : vector<8xf32>
    %400 = vector.multi_reduction <add>, %395, %cst_293 [0] : vector<16x8xf32> to vector<8xf32>
    %401 = vector.shape_cast %400 : vector<8xf32> to vector<1x8xf32>
    %402 = arith.addf %370, %401 : vector<1x8xf32>
    %403 = arith.mulf %395, %395 : vector<16x8xf32>
    %cst_294 = arith.constant dense<0.000000e+00> : vector<8xf32>
    %404 = vector.multi_reduction <add>, %403, %cst_294 [0] : vector<16x8xf32> to vector<8xf32>
    %405 = vector.shape_cast %404 : vector<8xf32> to vector<1x8xf32>
    %406 = arith.addf %374, %405 : vector<1x8xf32>
    %c0_295 = arith.constant 0 : index
    %c3_296 = arith.constant 3 : index
    %c0_297 = arith.constant 0 : index
    %c0_298 = arith.constant 0 : index
    %407 = vector.load %arg2[%c0_295, %c3_296, %c0_297, %c0_298] : memref<1x8x18x4xbf16, #tpu.memory_space<vmem>>, vector<1x1x18x4xbf16>
    %408 = vector.shape_cast %407 : vector<1x1x18x4xbf16> to vector<18x4xbf16>
    %c0_299 = arith.constant 0 : index
    %c4_300 = arith.constant 4 : index
    %c0_301 = arith.constant 0 : index
    %c0_302 = arith.constant 0 : index
    %409 = vector.load %arg2[%c0_299, %c4_300, %c0_301, %c0_302] : memref<1x8x18x4xbf16, #tpu.memory_space<vmem>>, vector<1x1x18x4xbf16>
    %410 = vector.shape_cast %409 : vector<1x1x18x4xbf16> to vector<18x4xbf16>
    %c0_303 = arith.constant 0 : index
    %c5_304 = arith.constant 5 : index
    %c0_305 = arith.constant 0 : index
    %c0_306 = arith.constant 0 : index
    %411 = vector.load %arg2[%c0_303, %c5_304, %c0_305, %c0_306] : memref<1x8x18x4xbf16, #tpu.memory_space<vmem>>, vector<1x1x18x4xbf16>
    %412 = vector.shape_cast %411 : vector<1x1x18x4xbf16> to vector<18x4xbf16>
    %cst_307 = arith.constant 0.000000e+00 : f32
    %413 = vector.broadcast %cst_307 : f32 to vector<16x8xf32>
    %414 = vector.extract_strided_slice %408 {offsets = [0, 0], sizes = [16, 4], strides = [1, 1]} : vector<18x4xbf16> to vector<16x4xbf16>
    %c0_308 = arith.constant 0 : index
    %c0_309 = arith.constant 0 : index
    %c0_310 = arith.constant 0 : index
    %415 = vector.load %arg4[%c0_308, %c0_309, %c0_310] : memref<16x4x8xbf16, #tpu.memory_space<vmem>>, vector<1x4x8xbf16>
    %416 = vector.shape_cast %415 : vector<1x4x8xbf16> to vector<4x8xbf16>
    %cst_311 = arith.constant dense<0.000000e+00> : vector<16x8xf32>
    %417 = tpu.matmul %414, %416, %cst_311 {dimension_numbers = #tpu.dot_dimension_numbers<[1], [0], [0], [1], [0, 0, 1, 1], [], []>} : vector<16x4xbf16>, vector<4x8xbf16>, vector<16x8xf32> -> vector<16x8xf32>
    %418 = arith.addf %413, %417 : vector<16x8xf32>
    %419 = vector.extract_strided_slice %408 {offsets = [1, 0], sizes = [16, 4], strides = [1, 1]} : vector<18x4xbf16> to vector<16x4xbf16>
    %c1_312 = arith.constant 1 : index
    %c0_313 = arith.constant 0 : index
    %c0_314 = arith.constant 0 : index
    %420 = vector.load %arg4[%c1_312, %c0_313, %c0_314] : memref<16x4x8xbf16, #tpu.memory_space<vmem>>, vector<1x4x8xbf16>
    %421 = vector.shape_cast %420 : vector<1x4x8xbf16> to vector<4x8xbf16>
    %cst_315 = arith.constant dense<0.000000e+00> : vector<16x8xf32>
    %422 = tpu.matmul %419, %421, %cst_315 {dimension_numbers = #tpu.dot_dimension_numbers<[1], [0], [0], [1], [0, 0, 1, 1], [], []>} : vector<16x4xbf16>, vector<4x8xbf16>, vector<16x8xf32> -> vector<16x8xf32>
    %423 = arith.addf %418, %422 : vector<16x8xf32>
    %424 = vector.extract_strided_slice %410 {offsets = [0, 0], sizes = [16, 4], strides = [1, 1]} : vector<18x4xbf16> to vector<16x4xbf16>
    %c2_316 = arith.constant 2 : index
    %c0_317 = arith.constant 0 : index
    %c0_318 = arith.constant 0 : index
    %425 = vector.load %arg4[%c2_316, %c0_317, %c0_318] : memref<16x4x8xbf16, #tpu.memory_space<vmem>>, vector<1x4x8xbf16>
    %426 = vector.shape_cast %425 : vector<1x4x8xbf16> to vector<4x8xbf16>
    %cst_319 = arith.constant dense<0.000000e+00> : vector<16x8xf32>
    %427 = tpu.matmul %424, %426, %cst_319 {dimension_numbers = #tpu.dot_dimension_numbers<[1], [0], [0], [1], [0, 0, 1, 1], [], []>} : vector<16x4xbf16>, vector<4x8xbf16>, vector<16x8xf32> -> vector<16x8xf32>
    %428 = arith.addf %423, %427 : vector<16x8xf32>
    %429 = vector.extract_strided_slice %410 {offsets = [1, 0], sizes = [16, 4], strides = [1, 1]} : vector<18x4xbf16> to vector<16x4xbf16>
    %c3_320 = arith.constant 3 : index
    %c0_321 = arith.constant 0 : index
    %c0_322 = arith.constant 0 : index
    %430 = vector.load %arg4[%c3_320, %c0_321, %c0_322] : memref<16x4x8xbf16, #tpu.memory_space<vmem>>, vector<1x4x8xbf16>
    %431 = vector.shape_cast %430 : vector<1x4x8xbf16> to vector<4x8xbf16>
    %cst_323 = arith.constant dense<0.000000e+00> : vector<16x8xf32>
    %432 = tpu.matmul %429, %431, %cst_323 {dimension_numbers = #tpu.dot_dimension_numbers<[1], [0], [0], [1], [0, 0, 1, 1], [], []>} : vector<16x4xbf16>, vector<4x8xbf16>, vector<16x8xf32> -> vector<16x8xf32>
    %433 = arith.addf %428, %432 : vector<16x8xf32>
    %434 = arith.truncf %433 : vector<16x8xf32> to vector<16x8xbf16>
    %c0_324 = arith.constant 0 : index
    %c3_325 = arith.constant 3 : index
    %c0_326 = arith.constant 0 : index
    %c0_327 = arith.constant 0 : index
    %435 = vector.load %arg5[%c0_324, %c3_325, %c0_326, %c0_327] : memref<1x8x64x8xbf16, #tpu.memory_space<vmem>>, vector<1x1x16x8xbf16>
    %436 = vector.shape_cast %435 : vector<1x1x16x8xbf16> to vector<16x8xbf16>
    %437 = vector.shape_cast %434 : vector<16x8xbf16> to vector<1x1x16x8xbf16>
    tpu.vector_store %arg5[%c0_324, %c3_325, %c0_326, %c0_327], %437 {strides = array<i32>} : memref<1x8x64x8xbf16, #tpu.memory_space<vmem>>, vector<1x1x16x8xbf16>,
    %cst_328 = arith.constant dense<0.000000e+00> : vector<8xf32>
    %438 = vector.multi_reduction <add>, %433, %cst_328 [0] : vector<16x8xf32> to vector<8xf32>
    %439 = vector.shape_cast %438 : vector<8xf32> to vector<1x8xf32>
    %440 = arith.addf %402, %439 : vector<1x8xf32>
    %441 = arith.mulf %433, %433 : vector<16x8xf32>
    %cst_329 = arith.constant dense<0.000000e+00> : vector<8xf32>
    %442 = vector.multi_reduction <add>, %441, %cst_329 [0] : vector<16x8xf32> to vector<8xf32>
    %443 = vector.shape_cast %442 : vector<8xf32> to vector<1x8xf32>
    %444 = arith.addf %406, %443 : vector<1x8xf32>
    %cst_330 = arith.constant 0.000000e+00 : f32
    %445 = vector.broadcast %cst_330 : f32 to vector<16x8xf32>
    %446 = vector.extract_strided_slice %408 {offsets = [1, 0], sizes = [16, 4], strides = [1, 1]} : vector<18x4xbf16> to vector<16x4xbf16>
    %c4_331 = arith.constant 4 : index
    %c0_332 = arith.constant 0 : index
    %c0_333 = arith.constant 0 : index
    %447 = vector.load %arg4[%c4_331, %c0_332, %c0_333] : memref<16x4x8xbf16, #tpu.memory_space<vmem>>, vector<1x4x8xbf16>
    %448 = vector.shape_cast %447 : vector<1x4x8xbf16> to vector<4x8xbf16>
    %cst_334 = arith.constant dense<0.000000e+00> : vector<16x8xf32>
    %449 = tpu.matmul %446, %448, %cst_334 {dimension_numbers = #tpu.dot_dimension_numbers<[1], [0], [0], [1], [0, 0, 1, 1], [], []>} : vector<16x4xbf16>, vector<4x8xbf16>, vector<16x8xf32> -> vector<16x8xf32>
    %450 = arith.addf %445, %449 : vector<16x8xf32>
    %451 = vector.extract_strided_slice %408 {offsets = [2, 0], sizes = [16, 4], strides = [1, 1]} : vector<18x4xbf16> to vector<16x4xbf16>
    %c5_335 = arith.constant 5 : index
    %c0_336 = arith.constant 0 : index
    %c0_337 = arith.constant 0 : index
    %452 = vector.load %arg4[%c5_335, %c0_336, %c0_337] : memref<16x4x8xbf16, #tpu.memory_space<vmem>>, vector<1x4x8xbf16>
    %453 = vector.shape_cast %452 : vector<1x4x8xbf16> to vector<4x8xbf16>
    %cst_338 = arith.constant dense<0.000000e+00> : vector<16x8xf32>
    %454 = tpu.matmul %451, %453, %cst_338 {dimension_numbers = #tpu.dot_dimension_numbers<[1], [0], [0], [1], [0, 0, 1, 1], [], []>} : vector<16x4xbf16>, vector<4x8xbf16>, vector<16x8xf32> -> vector<16x8xf32>
    %455 = arith.addf %450, %454 : vector<16x8xf32>
    %456 = vector.extract_strided_slice %410 {offsets = [1, 0], sizes = [16, 4], strides = [1, 1]} : vector<18x4xbf16> to vector<16x4xbf16>
    %c6_339 = arith.constant 6 : index
    %c0_340 = arith.constant 0 : index
    %c0_341 = arith.constant 0 : index
    %457 = vector.load %arg4[%c6_339, %c0_340, %c0_341] : memref<16x4x8xbf16, #tpu.memory_space<vmem>>, vector<1x4x8xbf16>
    %458 = vector.shape_cast %457 : vector<1x4x8xbf16> to vector<4x8xbf16>
    %cst_342 = arith.constant dense<0.000000e+00> : vector<16x8xf32>
    %459 = tpu.matmul %456, %458, %cst_342 {dimension_numbers = #tpu.dot_dimension_numbers<[1], [0], [0], [1], [0, 0, 1, 1], [], []>} : vector<16x4xbf16>, vector<4x8xbf16>, vector<16x8xf32> -> vector<16x8xf32>
    %460 = arith.addf %455, %459 : vector<16x8xf32>
    %461 = vector.extract_strided_slice %410 {offsets = [2, 0], sizes = [16, 4], strides = [1, 1]} : vector<18x4xbf16> to vector<16x4xbf16>
    %c7_343 = arith.constant 7 : index
    %c0_344 = arith.constant 0 : index
    %c0_345 = arith.constant 0 : index
    %462 = vector.load %arg4[%c7_343, %c0_344, %c0_345] : memref<16x4x8xbf16, #tpu.memory_space<vmem>>, vector<1x4x8xbf16>
    %463 = vector.shape_cast %462 : vector<1x4x8xbf16> to vector<4x8xbf16>
    %cst_346 = arith.constant dense<0.000000e+00> : vector<16x8xf32>
    %464 = tpu.matmul %461, %463, %cst_346 {dimension_numbers = #tpu.dot_dimension_numbers<[1], [0], [0], [1], [0, 0, 1, 1], [], []>} : vector<16x4xbf16>, vector<4x8xbf16>, vector<16x8xf32> -> vector<16x8xf32>
    %465 = arith.addf %460, %464 : vector<16x8xf32>
    %466 = arith.truncf %465 : vector<16x8xf32> to vector<16x8xbf16>
    %c0_347 = arith.constant 0 : index
    %c3_348 = arith.constant 3 : index
    %c16_349 = arith.constant 16 : index
    %c0_350 = arith.constant 0 : index
    %467 = vector.load %arg5[%c0_347, %c3_348, %c16_349, %c0_350] : memref<1x8x64x8xbf16, #tpu.memory_space<vmem>>, vector<1x1x16x8xbf16>
    %468 = vector.shape_cast %467 : vector<1x1x16x8xbf16> to vector<16x8xbf16>
    %469 = vector.shape_cast %466 : vector<16x8xbf16> to vector<1x1x16x8xbf16>
    tpu.vector_store %arg5[%c0_347, %c3_348, %c16_349, %c0_350], %469 {strides = array<i32>} : memref<1x8x64x8xbf16, #tpu.memory_space<vmem>>, vector<1x1x16x8xbf16>,
    %cst_351 = arith.constant dense<0.000000e+00> : vector<8xf32>
    %470 = vector.multi_reduction <add>, %465, %cst_351 [0] : vector<16x8xf32> to vector<8xf32>
    %471 = vector.shape_cast %470 : vector<8xf32> to vector<1x8xf32>
    %472 = arith.addf %440, %471 : vector<1x8xf32>
    %473 = arith.mulf %465, %465 : vector<16x8xf32>
    %cst_352 = arith.constant dense<0.000000e+00> : vector<8xf32>
    %474 = vector.multi_reduction <add>, %473, %cst_352 [0] : vector<16x8xf32> to vector<8xf32>
    %475 = vector.shape_cast %474 : vector<8xf32> to vector<1x8xf32>
    %476 = arith.addf %444, %475 : vector<1x8xf32>
    %cst_353 = arith.constant 0.000000e+00 : f32
    %477 = vector.broadcast %cst_353 : f32 to vector<16x8xf32>
    %478 = vector.extract_strided_slice %410 {offsets = [0, 0], sizes = [16, 4], strides = [1, 1]} : vector<18x4xbf16> to vector<16x4xbf16>
    %c8_354 = arith.constant 8 : index
    %c0_355 = arith.constant 0 : index
    %c0_356 = arith.constant 0 : index
    %479 = vector.load %arg4[%c8_354, %c0_355, %c0_356] : memref<16x4x8xbf16, #tpu.memory_space<vmem>>, vector<1x4x8xbf16>
    %480 = vector.shape_cast %479 : vector<1x4x8xbf16> to vector<4x8xbf16>
    %cst_357 = arith.constant dense<0.000000e+00> : vector<16x8xf32>
    %481 = tpu.matmul %478, %480, %cst_357 {dimension_numbers = #tpu.dot_dimension_numbers<[1], [0], [0], [1], [0, 0, 1, 1], [], []>} : vector<16x4xbf16>, vector<4x8xbf16>, vector<16x8xf32> -> vector<16x8xf32>
    %482 = arith.addf %477, %481 : vector<16x8xf32>
    %483 = vector.extract_strided_slice %410 {offsets = [1, 0], sizes = [16, 4], strides = [1, 1]} : vector<18x4xbf16> to vector<16x4xbf16>
    %c9_358 = arith.constant 9 : index
    %c0_359 = arith.constant 0 : index
    %c0_360 = arith.constant 0 : index
    %484 = vector.load %arg4[%c9_358, %c0_359, %c0_360] : memref<16x4x8xbf16, #tpu.memory_space<vmem>>, vector<1x4x8xbf16>
    %485 = vector.shape_cast %484 : vector<1x4x8xbf16> to vector<4x8xbf16>
    %cst_361 = arith.constant dense<0.000000e+00> : vector<16x8xf32>
    %486 = tpu.matmul %483, %485, %cst_361 {dimension_numbers = #tpu.dot_dimension_numbers<[1], [0], [0], [1], [0, 0, 1, 1], [], []>} : vector<16x4xbf16>, vector<4x8xbf16>, vector<16x8xf32> -> vector<16x8xf32>
    %487 = arith.addf %482, %486 : vector<16x8xf32>
    %488 = vector.extract_strided_slice %412 {offsets = [0, 0], sizes = [16, 4], strides = [1, 1]} : vector<18x4xbf16> to vector<16x4xbf16>
    %c10_362 = arith.constant 10 : index
    %c0_363 = arith.constant 0 : index
    %c0_364 = arith.constant 0 : index
    %489 = vector.load %arg4[%c10_362, %c0_363, %c0_364] : memref<16x4x8xbf16, #tpu.memory_space<vmem>>, vector<1x4x8xbf16>
    %490 = vector.shape_cast %489 : vector<1x4x8xbf16> to vector<4x8xbf16>
    %cst_365 = arith.constant dense<0.000000e+00> : vector<16x8xf32>
    %491 = tpu.matmul %488, %490, %cst_365 {dimension_numbers = #tpu.dot_dimension_numbers<[1], [0], [0], [1], [0, 0, 1, 1], [], []>} : vector<16x4xbf16>, vector<4x8xbf16>, vector<16x8xf32> -> vector<16x8xf32>
    %492 = arith.addf %487, %491 : vector<16x8xf32>
    %493 = vector.extract_strided_slice %412 {offsets = [1, 0], sizes = [16, 4], strides = [1, 1]} : vector<18x4xbf16> to vector<16x4xbf16>
    %c11_366 = arith.constant 11 : index
    %c0_367 = arith.constant 0 : index
    %c0_368 = arith.constant 0 : index
    %494 = vector.load %arg4[%c11_366, %c0_367, %c0_368] : memref<16x4x8xbf16, #tpu.memory_space<vmem>>, vector<1x4x8xbf16>
    %495 = vector.shape_cast %494 : vector<1x4x8xbf16> to vector<4x8xbf16>
    %cst_369 = arith.constant dense<0.000000e+00> : vector<16x8xf32>
    %496 = tpu.matmul %493, %495, %cst_369 {dimension_numbers = #tpu.dot_dimension_numbers<[1], [0], [0], [1], [0, 0, 1, 1], [], []>} : vector<16x4xbf16>, vector<4x8xbf16>, vector<16x8xf32> -> vector<16x8xf32>
    %497 = arith.addf %492, %496 : vector<16x8xf32>
    %498 = arith.truncf %497 : vector<16x8xf32> to vector<16x8xbf16>
    %c0_370 = arith.constant 0 : index
    %c3_371 = arith.constant 3 : index
    %c32_372 = arith.constant 32 : index
    %c0_373 = arith.constant 0 : index
    %499 = vector.load %arg5[%c0_370, %c3_371, %c32_372, %c0_373] : memref<1x8x64x8xbf16, #tpu.memory_space<vmem>>, vector<1x1x16x8xbf16>
    %500 = vector.shape_cast %499 : vector<1x1x16x8xbf16> to vector<16x8xbf16>
    %501 = vector.shape_cast %498 : vector<16x8xbf16> to vector<1x1x16x8xbf16>
    tpu.vector_store %arg5[%c0_370, %c3_371, %c32_372, %c0_373], %501 {strides = array<i32>} : memref<1x8x64x8xbf16, #tpu.memory_space<vmem>>, vector<1x1x16x8xbf16>,
    %cst_374 = arith.constant dense<0.000000e+00> : vector<8xf32>
    %502 = vector.multi_reduction <add>, %497, %cst_374 [0] : vector<16x8xf32> to vector<8xf32>
    %503 = vector.shape_cast %502 : vector<8xf32> to vector<1x8xf32>
    %504 = arith.addf %472, %503 : vector<1x8xf32>
    %505 = arith.mulf %497, %497 : vector<16x8xf32>
    %cst_375 = arith.constant dense<0.000000e+00> : vector<8xf32>
    %506 = vector.multi_reduction <add>, %505, %cst_375 [0] : vector<16x8xf32> to vector<8xf32>
    %507 = vector.shape_cast %506 : vector<8xf32> to vector<1x8xf32>
    %508 = arith.addf %476, %507 : vector<1x8xf32>
    %cst_376 = arith.constant 0.000000e+00 : f32
    %509 = vector.broadcast %cst_376 : f32 to vector<16x8xf32>
    %510 = vector.extract_strided_slice %410 {offsets = [1, 0], sizes = [16, 4], strides = [1, 1]} : vector<18x4xbf16> to vector<16x4xbf16>
    %c12_377 = arith.constant 12 : index
    %c0_378 = arith.constant 0 : index
    %c0_379 = arith.constant 0 : index
    %511 = vector.load %arg4[%c12_377, %c0_378, %c0_379] : memref<16x4x8xbf16, #tpu.memory_space<vmem>>, vector<1x4x8xbf16>
    %512 = vector.shape_cast %511 : vector<1x4x8xbf16> to vector<4x8xbf16>
    %cst_380 = arith.constant dense<0.000000e+00> : vector<16x8xf32>
    %513 = tpu.matmul %510, %512, %cst_380 {dimension_numbers = #tpu.dot_dimension_numbers<[1], [0], [0], [1], [0, 0, 1, 1], [], []>} : vector<16x4xbf16>, vector<4x8xbf16>, vector<16x8xf32> -> vector<16x8xf32>
    %514 = arith.addf %509, %513 : vector<16x8xf32>
    %515 = vector.extract_strided_slice %410 {offsets = [2, 0], sizes = [16, 4], strides = [1, 1]} : vector<18x4xbf16> to vector<16x4xbf16>
    %c13_381 = arith.constant 13 : index
    %c0_382 = arith.constant 0 : index
    %c0_383 = arith.constant 0 : index
    %516 = vector.load %arg4[%c13_381, %c0_382, %c0_383] : memref<16x4x8xbf16, #tpu.memory_space<vmem>>, vector<1x4x8xbf16>
    %517 = vector.shape_cast %516 : vector<1x4x8xbf16> to vector<4x8xbf16>
    %cst_384 = arith.constant dense<0.000000e+00> : vector<16x8xf32>
    %518 = tpu.matmul %515, %517, %cst_384 {dimension_numbers = #tpu.dot_dimension_numbers<[1], [0], [0], [1], [0, 0, 1, 1], [], []>} : vector<16x4xbf16>, vector<4x8xbf16>, vector<16x8xf32> -> vector<16x8xf32>
    %519 = arith.addf %514, %518 : vector<16x8xf32>
    %520 = vector.extract_strided_slice %412 {offsets = [1, 0], sizes = [16, 4], strides = [1, 1]} : vector<18x4xbf16> to vector<16x4xbf16>
    %c14_385 = arith.constant 14 : index
    %c0_386 = arith.constant 0 : index
    %c0_387 = arith.constant 0 : index
    %521 = vector.load %arg4[%c14_385, %c0_386, %c0_387] : memref<16x4x8xbf16, #tpu.memory_space<vmem>>, vector<1x4x8xbf16>
    %522 = vector.shape_cast %521 : vector<1x4x8xbf16> to vector<4x8xbf16>
    %cst_388 = arith.constant dense<0.000000e+00> : vector<16x8xf32>
    %523 = tpu.matmul %520, %522, %cst_388 {dimension_numbers = #tpu.dot_dimension_numbers<[1], [0], [0], [1], [0, 0, 1, 1], [], []>} : vector<16x4xbf16>, vector<4x8xbf16>, vector<16x8xf32> -> vector<16x8xf32>
    %524 = arith.addf %519, %523 : vector<16x8xf32>
    %525 = vector.extract_strided_slice %412 {offsets = [2, 0], sizes = [16, 4], strides = [1, 1]} : vector<18x4xbf16> to vector<16x4xbf16>
    %c15_389 = arith.constant 15 : index
    %c0_390 = arith.constant 0 : index
    %c0_391 = arith.constant 0 : index
    %526 = vector.load %arg4[%c15_389, %c0_390, %c0_391] : memref<16x4x8xbf16, #tpu.memory_space<vmem>>, vector<1x4x8xbf16>
    %527 = vector.shape_cast %526 : vector<1x4x8xbf16> to vector<4x8xbf16>
    %cst_392 = arith.constant dense<0.000000e+00> : vector<16x8xf32>
    %528 = tpu.matmul %525, %527, %cst_392 {dimension_numbers = #tpu.dot_dimension_numbers<[1], [0], [0], [1], [0, 0, 1, 1], [], []>} : vector<16x4xbf16>, vector<4x8xbf16>, vector<16x8xf32> -> vector<16x8xf32>
    %529 = arith.addf %524, %528 : vector<16x8xf32>
    %530 = arith.truncf %529 : vector<16x8xf32> to vector<16x8xbf16>
    %c0_393 = arith.constant 0 : index
    %c3_394 = arith.constant 3 : index
    %c48_395 = arith.constant 48 : index
    %c0_396 = arith.constant 0 : index
    %531 = vector.load %arg5[%c0_393, %c3_394, %c48_395, %c0_396] : memref<1x8x64x8xbf16, #tpu.memory_space<vmem>>, vector<1x1x16x8xbf16>
    %532 = vector.shape_cast %531 : vector<1x1x16x8xbf16> to vector<16x8xbf16>
    %533 = vector.shape_cast %530 : vector<16x8xbf16> to vector<1x1x16x8xbf16>
    tpu.vector_store %arg5[%c0_393, %c3_394, %c48_395, %c0_396], %533 {strides = array<i32>} : memref<1x8x64x8xbf16, #tpu.memory_space<vmem>>, vector<1x1x16x8xbf16>,
    %cst_397 = arith.constant dense<0.000000e+00> : vector<8xf32>
    %534 = vector.multi_reduction <add>, %529, %cst_397 [0] : vector<16x8xf32> to vector<8xf32>
    %535 = vector.shape_cast %534 : vector<8xf32> to vector<1x8xf32>
    %536 = arith.addf %504, %535 : vector<1x8xf32>
    %537 = arith.mulf %529, %529 : vector<16x8xf32>
    %cst_398 = arith.constant dense<0.000000e+00> : vector<8xf32>
    %538 = vector.multi_reduction <add>, %537, %cst_398 [0] : vector<16x8xf32> to vector<8xf32>
    %539 = vector.shape_cast %538 : vector<8xf32> to vector<1x8xf32>
    %540 = arith.addf %508, %539 : vector<1x8xf32>
    %c0_399 = arith.constant 0 : index
    %c4_400 = arith.constant 4 : index
    %c0_401 = arith.constant 0 : index
    %c0_402 = arith.constant 0 : index
    %541 = vector.load %arg2[%c0_399, %c4_400, %c0_401, %c0_402] : memref<1x8x18x4xbf16, #tpu.memory_space<vmem>>, vector<1x1x18x4xbf16>
    %542 = vector.shape_cast %541 : vector<1x1x18x4xbf16> to vector<18x4xbf16>
    %c0_403 = arith.constant 0 : index
    %c5_404 = arith.constant 5 : index
    %c0_405 = arith.constant 0 : index
    %c0_406 = arith.constant 0 : index
    %543 = vector.load %arg2[%c0_403, %c5_404, %c0_405, %c0_406] : memref<1x8x18x4xbf16, #tpu.memory_space<vmem>>, vector<1x1x18x4xbf16>
    %544 = vector.shape_cast %543 : vector<1x1x18x4xbf16> to vector<18x4xbf16>
    %c0_407 = arith.constant 0 : index
    %c6_408 = arith.constant 6 : index
    %c0_409 = arith.constant 0 : index
    %c0_410 = arith.constant 0 : index
    %545 = vector.load %arg2[%c0_407, %c6_408, %c0_409, %c0_410] : memref<1x8x18x4xbf16, #tpu.memory_space<vmem>>, vector<1x1x18x4xbf16>
    %546 = vector.shape_cast %545 : vector<1x1x18x4xbf16> to vector<18x4xbf16>
    %cst_411 = arith.constant 0.000000e+00 : f32
    %547 = vector.broadcast %cst_411 : f32 to vector<16x8xf32>
    %548 = vector.extract_strided_slice %542 {offsets = [0, 0], sizes = [16, 4], strides = [1, 1]} : vector<18x4xbf16> to vector<16x4xbf16>
    %c0_412 = arith.constant 0 : index
    %c0_413 = arith.constant 0 : index
    %c0_414 = arith.constant 0 : index
    %549 = vector.load %arg4[%c0_412, %c0_413, %c0_414] : memref<16x4x8xbf16, #tpu.memory_space<vmem>>, vector<1x4x8xbf16>
    %550 = vector.shape_cast %549 : vector<1x4x8xbf16> to vector<4x8xbf16>
    %cst_415 = arith.constant dense<0.000000e+00> : vector<16x8xf32>
    %551 = tpu.matmul %548, %550, %cst_415 {dimension_numbers = #tpu.dot_dimension_numbers<[1], [0], [0], [1], [0, 0, 1, 1], [], []>} : vector<16x4xbf16>, vector<4x8xbf16>, vector<16x8xf32> -> vector<16x8xf32>
    %552 = arith.addf %547, %551 : vector<16x8xf32>
    %553 = vector.extract_strided_slice %542 {offsets = [1, 0], sizes = [16, 4], strides = [1, 1]} : vector<18x4xbf16> to vector<16x4xbf16>
    %c1_416 = arith.constant 1 : index
    %c0_417 = arith.constant 0 : index
    %c0_418 = arith.constant 0 : index
    %554 = vector.load %arg4[%c1_416, %c0_417, %c0_418] : memref<16x4x8xbf16, #tpu.memory_space<vmem>>, vector<1x4x8xbf16>
    %555 = vector.shape_cast %554 : vector<1x4x8xbf16> to vector<4x8xbf16>
    %cst_419 = arith.constant dense<0.000000e+00> : vector<16x8xf32>
    %556 = tpu.matmul %553, %555, %cst_419 {dimension_numbers = #tpu.dot_dimension_numbers<[1], [0], [0], [1], [0, 0, 1, 1], [], []>} : vector<16x4xbf16>, vector<4x8xbf16>, vector<16x8xf32> -> vector<16x8xf32>
    %557 = arith.addf %552, %556 : vector<16x8xf32>
    %558 = vector.extract_strided_slice %544 {offsets = [0, 0], sizes = [16, 4], strides = [1, 1]} : vector<18x4xbf16> to vector<16x4xbf16>
    %c2_420 = arith.constant 2 : index
    %c0_421 = arith.constant 0 : index
    %c0_422 = arith.constant 0 : index
    %559 = vector.load %arg4[%c2_420, %c0_421, %c0_422] : memref<16x4x8xbf16, #tpu.memory_space<vmem>>, vector<1x4x8xbf16>
    %560 = vector.shape_cast %559 : vector<1x4x8xbf16> to vector<4x8xbf16>
    %cst_423 = arith.constant dense<0.000000e+00> : vector<16x8xf32>
    %561 = tpu.matmul %558, %560, %cst_423 {dimension_numbers = #tpu.dot_dimension_numbers<[1], [0], [0], [1], [0, 0, 1, 1], [], []>} : vector<16x4xbf16>, vector<4x8xbf16>, vector<16x8xf32> -> vector<16x8xf32>
    %562 = arith.addf %557, %561 : vector<16x8xf32>
    %563 = vector.extract_strided_slice %544 {offsets = [1, 0], sizes = [16, 4], strides = [1, 1]} : vector<18x4xbf16> to vector<16x4xbf16>
    %c3_424 = arith.constant 3 : index
    %c0_425 = arith.constant 0 : index
    %c0_426 = arith.constant 0 : index
    %564 = vector.load %arg4[%c3_424, %c0_425, %c0_426] : memref<16x4x8xbf16, #tpu.memory_space<vmem>>, vector<1x4x8xbf16>
    %565 = vector.shape_cast %564 : vector<1x4x8xbf16> to vector<4x8xbf16>
    %cst_427 = arith.constant dense<0.000000e+00> : vector<16x8xf32>
    %566 = tpu.matmul %563, %565, %cst_427 {dimension_numbers = #tpu.dot_dimension_numbers<[1], [0], [0], [1], [0, 0, 1, 1], [], []>} : vector<16x4xbf16>, vector<4x8xbf16>, vector<16x8xf32> -> vector<16x8xf32>
    %567 = arith.addf %562, %566 : vector<16x8xf32>
    %568 = arith.truncf %567 : vector<16x8xf32> to vector<16x8xbf16>
    %c0_428 = arith.constant 0 : index
    %c4_429 = arith.constant 4 : index
    %c0_430 = arith.constant 0 : index
    %c0_431 = arith.constant 0 : index
    %569 = vector.load %arg5[%c0_428, %c4_429, %c0_430, %c0_431] : memref<1x8x64x8xbf16, #tpu.memory_space<vmem>>, vector<1x1x16x8xbf16>
    %570 = vector.shape_cast %569 : vector<1x1x16x8xbf16> to vector<16x8xbf16>
    %571 = vector.shape_cast %568 : vector<16x8xbf16> to vector<1x1x16x8xbf16>
    tpu.vector_store %arg5[%c0_428, %c4_429, %c0_430, %c0_431], %571 {strides = array<i32>} : memref<1x8x64x8xbf16, #tpu.memory_space<vmem>>, vector<1x1x16x8xbf16>,
    %cst_432 = arith.constant dense<0.000000e+00> : vector<8xf32>
    %572 = vector.multi_reduction <add>, %567, %cst_432 [0] : vector<16x8xf32> to vector<8xf32>
    %573 = vector.shape_cast %572 : vector<8xf32> to vector<1x8xf32>
    %574 = arith.addf %536, %573 : vector<1x8xf32>
    %575 = arith.mulf %567, %567 : vector<16x8xf32>
    %cst_433 = arith.constant dense<0.000000e+00> : vector<8xf32>
    %576 = vector.multi_reduction <add>, %575, %cst_433 [0] : vector<16x8xf32> to vector<8xf32>
    %577 = vector.shape_cast %576 : vector<8xf32> to vector<1x8xf32>
    %578 = arith.addf %540, %577 : vector<1x8xf32>
    %cst_434 = arith.constant 0.000000e+00 : f32
    %579 = vector.broadcast %cst_434 : f32 to vector<16x8xf32>
    %580 = vector.extract_strided_slice %542 {offsets = [1, 0], sizes = [16, 4], strides = [1, 1]} : vector<18x4xbf16> to vector<16x4xbf16>
    %c4_435 = arith.constant 4 : index
    %c0_436 = arith.constant 0 : index
    %c0_437 = arith.constant 0 : index
    %581 = vector.load %arg4[%c4_435, %c0_436, %c0_437] : memref<16x4x8xbf16, #tpu.memory_space<vmem>>, vector<1x4x8xbf16>
    %582 = vector.shape_cast %581 : vector<1x4x8xbf16> to vector<4x8xbf16>
    %cst_438 = arith.constant dense<0.000000e+00> : vector<16x8xf32>
    %583 = tpu.matmul %580, %582, %cst_438 {dimension_numbers = #tpu.dot_dimension_numbers<[1], [0], [0], [1], [0, 0, 1, 1], [], []>} : vector<16x4xbf16>, vector<4x8xbf16>, vector<16x8xf32> -> vector<16x8xf32>
    %584 = arith.addf %579, %583 : vector<16x8xf32>
    %585 = vector.extract_strided_slice %542 {offsets = [2, 0], sizes = [16, 4], strides = [1, 1]} : vector<18x4xbf16> to vector<16x4xbf16>
    %c5_439 = arith.constant 5 : index
    %c0_440 = arith.constant 0 : index
    %c0_441 = arith.constant 0 : index
    %586 = vector.load %arg4[%c5_439, %c0_440, %c0_441] : memref<16x4x8xbf16, #tpu.memory_space<vmem>>, vector<1x4x8xbf16>
    %587 = vector.shape_cast %586 : vector<1x4x8xbf16> to vector<4x8xbf16>
    %cst_442 = arith.constant dense<0.000000e+00> : vector<16x8xf32>
    %588 = tpu.matmul %585, %587, %cst_442 {dimension_numbers = #tpu.dot_dimension_numbers<[1], [0], [0], [1], [0, 0, 1, 1], [], []>} : vector<16x4xbf16>, vector<4x8xbf16>, vector<16x8xf32> -> vector<16x8xf32>
    %589 = arith.addf %584, %588 : vector<16x8xf32>
    %590 = vector.extract_strided_slice %544 {offsets = [1, 0], sizes = [16, 4], strides = [1, 1]} : vector<18x4xbf16> to vector<16x4xbf16>
    %c6_443 = arith.constant 6 : index
    %c0_444 = arith.constant 0 : index
    %c0_445 = arith.constant 0 : index
    %591 = vector.load %arg4[%c6_443, %c0_444, %c0_445] : memref<16x4x8xbf16, #tpu.memory_space<vmem>>, vector<1x4x8xbf16>
    %592 = vector.shape_cast %591 : vector<1x4x8xbf16> to vector<4x8xbf16>
    %cst_446 = arith.constant dense<0.000000e+00> : vector<16x8xf32>
    %593 = tpu.matmul %590, %592, %cst_446 {dimension_numbers = #tpu.dot_dimension_numbers<[1], [0], [0], [1], [0, 0, 1, 1], [], []>} : vector<16x4xbf16>, vector<4x8xbf16>, vector<16x8xf32> -> vector<16x8xf32>
    %594 = arith.addf %589, %593 : vector<16x8xf32>
    %595 = vector.extract_strided_slice %544 {offsets = [2, 0], sizes = [16, 4], strides = [1, 1]} : vector<18x4xbf16> to vector<16x4xbf16>
    %c7_447 = arith.constant 7 : index
    %c0_448 = arith.constant 0 : index
    %c0_449 = arith.constant 0 : index
    %596 = vector.load %arg4[%c7_447, %c0_448, %c0_449] : memref<16x4x8xbf16, #tpu.memory_space<vmem>>, vector<1x4x8xbf16>
    %597 = vector.shape_cast %596 : vector<1x4x8xbf16> to vector<4x8xbf16>
    %cst_450 = arith.constant dense<0.000000e+00> : vector<16x8xf32>
    %598 = tpu.matmul %595, %597, %cst_450 {dimension_numbers = #tpu.dot_dimension_numbers<[1], [0], [0], [1], [0, 0, 1, 1], [], []>} : vector<16x4xbf16>, vector<4x8xbf16>, vector<16x8xf32> -> vector<16x8xf32>
    %599 = arith.addf %594, %598 : vector<16x8xf32>
    %600 = arith.truncf %599 : vector<16x8xf32> to vector<16x8xbf16>
    %c0_451 = arith.constant 0 : index
    %c4_452 = arith.constant 4 : index
    %c16_453 = arith.constant 16 : index
    %c0_454 = arith.constant 0 : index
    %601 = vector.load %arg5[%c0_451, %c4_452, %c16_453, %c0_454] : memref<1x8x64x8xbf16, #tpu.memory_space<vmem>>, vector<1x1x16x8xbf16>
    %602 = vector.shape_cast %601 : vector<1x1x16x8xbf16> to vector<16x8xbf16>
    %603 = vector.shape_cast %600 : vector<16x8xbf16> to vector<1x1x16x8xbf16>
    tpu.vector_store %arg5[%c0_451, %c4_452, %c16_453, %c0_454], %603 {strides = array<i32>} : memref<1x8x64x8xbf16, #tpu.memory_space<vmem>>, vector<1x1x16x8xbf16>,
    %cst_455 = arith.constant dense<0.000000e+00> : vector<8xf32>
    %604 = vector.multi_reduction <add>, %599, %cst_455 [0] : vector<16x8xf32> to vector<8xf32>
    %605 = vector.shape_cast %604 : vector<8xf32> to vector<1x8xf32>
    %606 = arith.addf %574, %605 : vector<1x8xf32>
    %607 = arith.mulf %599, %599 : vector<16x8xf32>
    %cst_456 = arith.constant dense<0.000000e+00> : vector<8xf32>
    %608 = vector.multi_reduction <add>, %607, %cst_456 [0] : vector<16x8xf32> to vector<8xf32>
    %609 = vector.shape_cast %608 : vector<8xf32> to vector<1x8xf32>
    %610 = arith.addf %578, %609 : vector<1x8xf32>
    %cst_457 = arith.constant 0.000000e+00 : f32
    %611 = vector.broadcast %cst_457 : f32 to vector<16x8xf32>
    %612 = vector.extract_strided_slice %544 {offsets = [0, 0], sizes = [16, 4], strides = [1, 1]} : vector<18x4xbf16> to vector<16x4xbf16>
    %c8_458 = arith.constant 8 : index
    %c0_459 = arith.constant 0 : index
    %c0_460 = arith.constant 0 : index
    %613 = vector.load %arg4[%c8_458, %c0_459, %c0_460] : memref<16x4x8xbf16, #tpu.memory_space<vmem>>, vector<1x4x8xbf16>
    %614 = vector.shape_cast %613 : vector<1x4x8xbf16> to vector<4x8xbf16>
    %cst_461 = arith.constant dense<0.000000e+00> : vector<16x8xf32>
    %615 = tpu.matmul %612, %614, %cst_461 {dimension_numbers = #tpu.dot_dimension_numbers<[1], [0], [0], [1], [0, 0, 1, 1], [], []>} : vector<16x4xbf16>, vector<4x8xbf16>, vector<16x8xf32> -> vector<16x8xf32>
    %616 = arith.addf %611, %615 : vector<16x8xf32>
    %617 = vector.extract_strided_slice %544 {offsets = [1, 0], sizes = [16, 4], strides = [1, 1]} : vector<18x4xbf16> to vector<16x4xbf16>
    %c9_462 = arith.constant 9 : index
    %c0_463 = arith.constant 0 : index
    %c0_464 = arith.constant 0 : index
    %618 = vector.load %arg4[%c9_462, %c0_463, %c0_464] : memref<16x4x8xbf16, #tpu.memory_space<vmem>>, vector<1x4x8xbf16>
    %619 = vector.shape_cast %618 : vector<1x4x8xbf16> to vector<4x8xbf16>
    %cst_465 = arith.constant dense<0.000000e+00> : vector<16x8xf32>
    %620 = tpu.matmul %617, %619, %cst_465 {dimension_numbers = #tpu.dot_dimension_numbers<[1], [0], [0], [1], [0, 0, 1, 1], [], []>} : vector<16x4xbf16>, vector<4x8xbf16>, vector<16x8xf32> -> vector<16x8xf32>
    %621 = arith.addf %616, %620 : vector<16x8xf32>
    %622 = vector.extract_strided_slice %546 {offsets = [0, 0], sizes = [16, 4], strides = [1, 1]} : vector<18x4xbf16> to vector<16x4xbf16>
    %c10_466 = arith.constant 10 : index
    %c0_467 = arith.constant 0 : index
    %c0_468 = arith.constant 0 : index
    %623 = vector.load %arg4[%c10_466, %c0_467, %c0_468] : memref<16x4x8xbf16, #tpu.memory_space<vmem>>, vector<1x4x8xbf16>
    %624 = vector.shape_cast %623 : vector<1x4x8xbf16> to vector<4x8xbf16>
    %cst_469 = arith.constant dense<0.000000e+00> : vector<16x8xf32>
    %625 = tpu.matmul %622, %624, %cst_469 {dimension_numbers = #tpu.dot_dimension_numbers<[1], [0], [0], [1], [0, 0, 1, 1], [], []>} : vector<16x4xbf16>, vector<4x8xbf16>, vector<16x8xf32> -> vector<16x8xf32>
    %626 = arith.addf %621, %625 : vector<16x8xf32>
    %627 = vector.extract_strided_slice %546 {offsets = [1, 0], sizes = [16, 4], strides = [1, 1]} : vector<18x4xbf16> to vector<16x4xbf16>
    %c11_470 = arith.constant 11 : index
    %c0_471 = arith.constant 0 : index
    %c0_472 = arith.constant 0 : index
    %628 = vector.load %arg4[%c11_470, %c0_471, %c0_472] : memref<16x4x8xbf16, #tpu.memory_space<vmem>>, vector<1x4x8xbf16>
    %629 = vector.shape_cast %628 : vector<1x4x8xbf16> to vector<4x8xbf16>
    %cst_473 = arith.constant dense<0.000000e+00> : vector<16x8xf32>
    %630 = tpu.matmul %627, %629, %cst_473 {dimension_numbers = #tpu.dot_dimension_numbers<[1], [0], [0], [1], [0, 0, 1, 1], [], []>} : vector<16x4xbf16>, vector<4x8xbf16>, vector<16x8xf32> -> vector<16x8xf32>
    %631 = arith.addf %626, %630 : vector<16x8xf32>
    %632 = arith.truncf %631 : vector<16x8xf32> to vector<16x8xbf16>
    %c0_474 = arith.constant 0 : index
    %c4_475 = arith.constant 4 : index
    %c32_476 = arith.constant 32 : index
    %c0_477 = arith.constant 0 : index
    %633 = vector.load %arg5[%c0_474, %c4_475, %c32_476, %c0_477] : memref<1x8x64x8xbf16, #tpu.memory_space<vmem>>, vector<1x1x16x8xbf16>
    %634 = vector.shape_cast %633 : vector<1x1x16x8xbf16> to vector<16x8xbf16>
    %635 = vector.shape_cast %632 : vector<16x8xbf16> to vector<1x1x16x8xbf16>
    tpu.vector_store %arg5[%c0_474, %c4_475, %c32_476, %c0_477], %635 {strides = array<i32>} : memref<1x8x64x8xbf16, #tpu.memory_space<vmem>>, vector<1x1x16x8xbf16>,
    %cst_478 = arith.constant dense<0.000000e+00> : vector<8xf32>
    %636 = vector.multi_reduction <add>, %631, %cst_478 [0] : vector<16x8xf32> to vector<8xf32>
    %637 = vector.shape_cast %636 : vector<8xf32> to vector<1x8xf32>
    %638 = arith.addf %606, %637 : vector<1x8xf32>
    %639 = arith.mulf %631, %631 : vector<16x8xf32>
    %cst_479 = arith.constant dense<0.000000e+00> : vector<8xf32>
    %640 = vector.multi_reduction <add>, %639, %cst_479 [0] : vector<16x8xf32> to vector<8xf32>
    %641 = vector.shape_cast %640 : vector<8xf32> to vector<1x8xf32>
    %642 = arith.addf %610, %641 : vector<1x8xf32>
    %cst_480 = arith.constant 0.000000e+00 : f32
    %643 = vector.broadcast %cst_480 : f32 to vector<16x8xf32>
    %644 = vector.extract_strided_slice %544 {offsets = [1, 0], sizes = [16, 4], strides = [1, 1]} : vector<18x4xbf16> to vector<16x4xbf16>
    %c12_481 = arith.constant 12 : index
    %c0_482 = arith.constant 0 : index
    %c0_483 = arith.constant 0 : index
    %645 = vector.load %arg4[%c12_481, %c0_482, %c0_483] : memref<16x4x8xbf16, #tpu.memory_space<vmem>>, vector<1x4x8xbf16>
    %646 = vector.shape_cast %645 : vector<1x4x8xbf16> to vector<4x8xbf16>
    %cst_484 = arith.constant dense<0.000000e+00> : vector<16x8xf32>
    %647 = tpu.matmul %644, %646, %cst_484 {dimension_numbers = #tpu.dot_dimension_numbers<[1], [0], [0], [1], [0, 0, 1, 1], [], []>} : vector<16x4xbf16>, vector<4x8xbf16>, vector<16x8xf32> -> vector<16x8xf32>
    %648 = arith.addf %643, %647 : vector<16x8xf32>
    %649 = vector.extract_strided_slice %544 {offsets = [2, 0], sizes = [16, 4], strides = [1, 1]} : vector<18x4xbf16> to vector<16x4xbf16>
    %c13_485 = arith.constant 13 : index
    %c0_486 = arith.constant 0 : index
    %c0_487 = arith.constant 0 : index
    %650 = vector.load %arg4[%c13_485, %c0_486, %c0_487] : memref<16x4x8xbf16, #tpu.memory_space<vmem>>, vector<1x4x8xbf16>
    %651 = vector.shape_cast %650 : vector<1x4x8xbf16> to vector<4x8xbf16>
    %cst_488 = arith.constant dense<0.000000e+00> : vector<16x8xf32>
    %652 = tpu.matmul %649, %651, %cst_488 {dimension_numbers = #tpu.dot_dimension_numbers<[1], [0], [0], [1], [0, 0, 1, 1], [], []>} : vector<16x4xbf16>, vector<4x8xbf16>, vector<16x8xf32> -> vector<16x8xf32>
    %653 = arith.addf %648, %652 : vector<16x8xf32>
    %654 = vector.extract_strided_slice %546 {offsets = [1, 0], sizes = [16, 4], strides = [1, 1]} : vector<18x4xbf16> to vector<16x4xbf16>
    %c14_489 = arith.constant 14 : index
    %c0_490 = arith.constant 0 : index
    %c0_491 = arith.constant 0 : index
    %655 = vector.load %arg4[%c14_489, %c0_490, %c0_491] : memref<16x4x8xbf16, #tpu.memory_space<vmem>>, vector<1x4x8xbf16>
    %656 = vector.shape_cast %655 : vector<1x4x8xbf16> to vector<4x8xbf16>
    %cst_492 = arith.constant dense<0.000000e+00> : vector<16x8xf32>
    %657 = tpu.matmul %654, %656, %cst_492 {dimension_numbers = #tpu.dot_dimension_numbers<[1], [0], [0], [1], [0, 0, 1, 1], [], []>} : vector<16x4xbf16>, vector<4x8xbf16>, vector<16x8xf32> -> vector<16x8xf32>
    %658 = arith.addf %653, %657 : vector<16x8xf32>
    %659 = vector.extract_strided_slice %546 {offsets = [2, 0], sizes = [16, 4], strides = [1, 1]} : vector<18x4xbf16> to vector<16x4xbf16>
    %c15_493 = arith.constant 15 : index
    %c0_494 = arith.constant 0 : index
    %c0_495 = arith.constant 0 : index
    %660 = vector.load %arg4[%c15_493, %c0_494, %c0_495] : memref<16x4x8xbf16, #tpu.memory_space<vmem>>, vector<1x4x8xbf16>
    %661 = vector.shape_cast %660 : vector<1x4x8xbf16> to vector<4x8xbf16>
    %cst_496 = arith.constant dense<0.000000e+00> : vector<16x8xf32>
    %662 = tpu.matmul %659, %661, %cst_496 {dimension_numbers = #tpu.dot_dimension_numbers<[1], [0], [0], [1], [0, 0, 1, 1], [], []>} : vector<16x4xbf16>, vector<4x8xbf16>, vector<16x8xf32> -> vector<16x8xf32>
    %663 = arith.addf %658, %662 : vector<16x8xf32>
    %664 = arith.truncf %663 : vector<16x8xf32> to vector<16x8xbf16>
    %c0_497 = arith.constant 0 : index
    %c4_498 = arith.constant 4 : index
    %c48_499 = arith.constant 48 : index
    %c0_500 = arith.constant 0 : index
    %665 = vector.load %arg5[%c0_497, %c4_498, %c48_499, %c0_500] : memref<1x8x64x8xbf16, #tpu.memory_space<vmem>>, vector<1x1x16x8xbf16>
    %666 = vector.shape_cast %665 : vector<1x1x16x8xbf16> to vector<16x8xbf16>
    %667 = vector.shape_cast %664 : vector<16x8xbf16> to vector<1x1x16x8xbf16>
    tpu.vector_store %arg5[%c0_497, %c4_498, %c48_499, %c0_500], %667 {strides = array<i32>} : memref<1x8x64x8xbf16, #tpu.memory_space<vmem>>, vector<1x1x16x8xbf16>,
    %cst_501 = arith.constant dense<0.000000e+00> : vector<8xf32>
    %668 = vector.multi_reduction <add>, %663, %cst_501 [0] : vector<16x8xf32> to vector<8xf32>
    %669 = vector.shape_cast %668 : vector<8xf32> to vector<1x8xf32>
    %670 = arith.addf %638, %669 : vector<1x8xf32>
    %671 = arith.mulf %663, %663 : vector<16x8xf32>
    %cst_502 = arith.constant dense<0.000000e+00> : vector<8xf32>
    %672 = vector.multi_reduction <add>, %671, %cst_502 [0] : vector<16x8xf32> to vector<8xf32>
    %673 = vector.shape_cast %672 : vector<8xf32> to vector<1x8xf32>
    %674 = arith.addf %642, %673 : vector<1x8xf32>
    %c0_503 = arith.constant 0 : index
    %c5_504 = arith.constant 5 : index
    %c0_505 = arith.constant 0 : index
    %c0_506 = arith.constant 0 : index
    %675 = vector.load %arg2[%c0_503, %c5_504, %c0_505, %c0_506] : memref<1x8x18x4xbf16, #tpu.memory_space<vmem>>, vector<1x1x18x4xbf16>
    %676 = vector.shape_cast %675 : vector<1x1x18x4xbf16> to vector<18x4xbf16>
    %c0_507 = arith.constant 0 : index
    %c6_508 = arith.constant 6 : index
    %c0_509 = arith.constant 0 : index
    %c0_510 = arith.constant 0 : index
    %677 = vector.load %arg2[%c0_507, %c6_508, %c0_509, %c0_510] : memref<1x8x18x4xbf16, #tpu.memory_space<vmem>>, vector<1x1x18x4xbf16>
    %678 = vector.shape_cast %677 : vector<1x1x18x4xbf16> to vector<18x4xbf16>
    %c0_511 = arith.constant 0 : index
    %c7_512 = arith.constant 7 : index
    %c0_513 = arith.constant 0 : index
    %c0_514 = arith.constant 0 : index
    %679 = vector.load %arg2[%c0_511, %c7_512, %c0_513, %c0_514] : memref<1x8x18x4xbf16, #tpu.memory_space<vmem>>, vector<1x1x18x4xbf16>
    %680 = vector.shape_cast %679 : vector<1x1x18x4xbf16> to vector<18x4xbf16>
    %cst_515 = arith.constant 0.000000e+00 : f32
    %681 = vector.broadcast %cst_515 : f32 to vector<16x8xf32>
    %682 = vector.extract_strided_slice %676 {offsets = [0, 0], sizes = [16, 4], strides = [1, 1]} : vector<18x4xbf16> to vector<16x4xbf16>
    %c0_516 = arith.constant 0 : index
    %c0_517 = arith.constant 0 : index
    %c0_518 = arith.constant 0 : index
    %683 = vector.load %arg4[%c0_516, %c0_517, %c0_518] : memref<16x4x8xbf16, #tpu.memory_space<vmem>>, vector<1x4x8xbf16>
    %684 = vector.shape_cast %683 : vector<1x4x8xbf16> to vector<4x8xbf16>
    %cst_519 = arith.constant dense<0.000000e+00> : vector<16x8xf32>
    %685 = tpu.matmul %682, %684, %cst_519 {dimension_numbers = #tpu.dot_dimension_numbers<[1], [0], [0], [1], [0, 0, 1, 1], [], []>} : vector<16x4xbf16>, vector<4x8xbf16>, vector<16x8xf32> -> vector<16x8xf32>
    %686 = arith.addf %681, %685 : vector<16x8xf32>
    %687 = vector.extract_strided_slice %676 {offsets = [1, 0], sizes = [16, 4], strides = [1, 1]} : vector<18x4xbf16> to vector<16x4xbf16>
    %c1_520 = arith.constant 1 : index
    %c0_521 = arith.constant 0 : index
    %c0_522 = arith.constant 0 : index
    %688 = vector.load %arg4[%c1_520, %c0_521, %c0_522] : memref<16x4x8xbf16, #tpu.memory_space<vmem>>, vector<1x4x8xbf16>
    %689 = vector.shape_cast %688 : vector<1x4x8xbf16> to vector<4x8xbf16>
    %cst_523 = arith.constant dense<0.000000e+00> : vector<16x8xf32>
    %690 = tpu.matmul %687, %689, %cst_523 {dimension_numbers = #tpu.dot_dimension_numbers<[1], [0], [0], [1], [0, 0, 1, 1], [], []>} : vector<16x4xbf16>, vector<4x8xbf16>, vector<16x8xf32> -> vector<16x8xf32>
    %691 = arith.addf %686, %690 : vector<16x8xf32>
    %692 = vector.extract_strided_slice %678 {offsets = [0, 0], sizes = [16, 4], strides = [1, 1]} : vector<18x4xbf16> to vector<16x4xbf16>
    %c2_524 = arith.constant 2 : index
    %c0_525 = arith.constant 0 : index
    %c0_526 = arith.constant 0 : index
    %693 = vector.load %arg4[%c2_524, %c0_525, %c0_526] : memref<16x4x8xbf16, #tpu.memory_space<vmem>>, vector<1x4x8xbf16>
    %694 = vector.shape_cast %693 : vector<1x4x8xbf16> to vector<4x8xbf16>
    %cst_527 = arith.constant dense<0.000000e+00> : vector<16x8xf32>
    %695 = tpu.matmul %692, %694, %cst_527 {dimension_numbers = #tpu.dot_dimension_numbers<[1], [0], [0], [1], [0, 0, 1, 1], [], []>} : vector<16x4xbf16>, vector<4x8xbf16>, vector<16x8xf32> -> vector<16x8xf32>
    %696 = arith.addf %691, %695 : vector<16x8xf32>
    %697 = vector.extract_strided_slice %678 {offsets = [1, 0], sizes = [16, 4], strides = [1, 1]} : vector<18x4xbf16> to vector<16x4xbf16>
    %c3_528 = arith.constant 3 : index
    %c0_529 = arith.constant 0 : index
    %c0_530 = arith.constant 0 : index
    %698 = vector.load %arg4[%c3_528, %c0_529, %c0_530] : memref<16x4x8xbf16, #tpu.memory_space<vmem>>, vector<1x4x8xbf16>
    %699 = vector.shape_cast %698 : vector<1x4x8xbf16> to vector<4x8xbf16>
    %cst_531 = arith.constant dense<0.000000e+00> : vector<16x8xf32>
    %700 = tpu.matmul %697, %699, %cst_531 {dimension_numbers = #tpu.dot_dimension_numbers<[1], [0], [0], [1], [0, 0, 1, 1], [], []>} : vector<16x4xbf16>, vector<4x8xbf16>, vector<16x8xf32> -> vector<16x8xf32>
    %701 = arith.addf %696, %700 : vector<16x8xf32>
    %702 = arith.truncf %701 : vector<16x8xf32> to vector<16x8xbf16>
    %c0_532 = arith.constant 0 : index
    %c5_533 = arith.constant 5 : index
    %c0_534 = arith.constant 0 : index
    %c0_535 = arith.constant 0 : index
    %703 = vector.load %arg5[%c0_532, %c5_533, %c0_534, %c0_535] : memref<1x8x64x8xbf16, #tpu.memory_space<vmem>>, vector<1x1x16x8xbf16>
    %704 = vector.shape_cast %703 : vector<1x1x16x8xbf16> to vector<16x8xbf16>
    %705 = vector.shape_cast %702 : vector<16x8xbf16> to vector<1x1x16x8xbf16>
    tpu.vector_store %arg5[%c0_532, %c5_533, %c0_534, %c0_535], %705 {strides = array<i32>} : memref<1x8x64x8xbf16, #tpu.memory_space<vmem>>, vector<1x1x16x8xbf16>,
    %cst_536 = arith.constant dense<0.000000e+00> : vector<8xf32>
    %706 = vector.multi_reduction <add>, %701, %cst_536 [0] : vector<16x8xf32> to vector<8xf32>
    %707 = vector.shape_cast %706 : vector<8xf32> to vector<1x8xf32>
    %708 = arith.addf %670, %707 : vector<1x8xf32>
    %709 = arith.mulf %701, %701 : vector<16x8xf32>
    %cst_537 = arith.constant dense<0.000000e+00> : vector<8xf32>
    %710 = vector.multi_reduction <add>, %709, %cst_537 [0] : vector<16x8xf32> to vector<8xf32>
    %711 = vector.shape_cast %710 : vector<8xf32> to vector<1x8xf32>
    %712 = arith.addf %674, %711 : vector<1x8xf32>
    %cst_538 = arith.constant 0.000000e+00 : f32
    %713 = vector.broadcast %cst_538 : f32 to vector<16x8xf32>
    %714 = vector.extract_strided_slice %676 {offsets = [1, 0], sizes = [16, 4], strides = [1, 1]} : vector<18x4xbf16> to vector<16x4xbf16>
    %c4_539 = arith.constant 4 : index
    %c0_540 = arith.constant 0 : index
    %c0_541 = arith.constant 0 : index
    %715 = vector.load %arg4[%c4_539, %c0_540, %c0_541] : memref<16x4x8xbf16, #tpu.memory_space<vmem>>, vector<1x4x8xbf16>
    %716 = vector.shape_cast %715 : vector<1x4x8xbf16> to vector<4x8xbf16>
    %cst_542 = arith.constant dense<0.000000e+00> : vector<16x8xf32>
    %717 = tpu.matmul %714, %716, %cst_542 {dimension_numbers = #tpu.dot_dimension_numbers<[1], [0], [0], [1], [0, 0, 1, 1], [], []>} : vector<16x4xbf16>, vector<4x8xbf16>, vector<16x8xf32> -> vector<16x8xf32>
    %718 = arith.addf %713, %717 : vector<16x8xf32>
    %719 = vector.extract_strided_slice %676 {offsets = [2, 0], sizes = [16, 4], strides = [1, 1]} : vector<18x4xbf16> to vector<16x4xbf16>
    %c5_543 = arith.constant 5 : index
    %c0_544 = arith.constant 0 : index
    %c0_545 = arith.constant 0 : index
    %720 = vector.load %arg4[%c5_543, %c0_544, %c0_545] : memref<16x4x8xbf16, #tpu.memory_space<vmem>>, vector<1x4x8xbf16>
    %721 = vector.shape_cast %720 : vector<1x4x8xbf16> to vector<4x8xbf16>
    %cst_546 = arith.constant dense<0.000000e+00> : vector<16x8xf32>
    %722 = tpu.matmul %719, %721, %cst_546 {dimension_numbers = #tpu.dot_dimension_numbers<[1], [0], [0], [1], [0, 0, 1, 1], [], []>} : vector<16x4xbf16>, vector<4x8xbf16>, vector<16x8xf32> -> vector<16x8xf32>
    %723 = arith.addf %718, %722 : vector<16x8xf32>
    %724 = vector.extract_strided_slice %678 {offsets = [1, 0], sizes = [16, 4], strides = [1, 1]} : vector<18x4xbf16> to vector<16x4xbf16>
    %c6_547 = arith.constant 6 : index
    %c0_548 = arith.constant 0 : index
    %c0_549 = arith.constant 0 : index
    %725 = vector.load %arg4[%c6_547, %c0_548, %c0_549] : memref<16x4x8xbf16, #tpu.memory_space<vmem>>, vector<1x4x8xbf16>
    %726 = vector.shape_cast %725 : vector<1x4x8xbf16> to vector<4x8xbf16>
    %cst_550 = arith.constant dense<0.000000e+00> : vector<16x8xf32>
    %727 = tpu.matmul %724, %726, %cst_550 {dimension_numbers = #tpu.dot_dimension_numbers<[1], [0], [0], [1], [0, 0, 1, 1], [], []>} : vector<16x4xbf16>, vector<4x8xbf16>, vector<16x8xf32> -> vector<16x8xf32>
    %728 = arith.addf %723, %727 : vector<16x8xf32>
    %729 = vector.extract_strided_slice %678 {offsets = [2, 0], sizes = [16, 4], strides = [1, 1]} : vector<18x4xbf16> to vector<16x4xbf16>
    %c7_551 = arith.constant 7 : index
    %c0_552 = arith.constant 0 : index
    %c0_553 = arith.constant 0 : index
    %730 = vector.load %arg4[%c7_551, %c0_552, %c0_553] : memref<16x4x8xbf16, #tpu.memory_space<vmem>>, vector<1x4x8xbf16>
    %731 = vector.shape_cast %730 : vector<1x4x8xbf16> to vector<4x8xbf16>
    %cst_554 = arith.constant dense<0.000000e+00> : vector<16x8xf32>
    %732 = tpu.matmul %729, %731, %cst_554 {dimension_numbers = #tpu.dot_dimension_numbers<[1], [0], [0], [1], [0, 0, 1, 1], [], []>} : vector<16x4xbf16>, vector<4x8xbf16>, vector<16x8xf32> -> vector<16x8xf32>
    %733 = arith.addf %728, %732 : vector<16x8xf32>
    %734 = arith.truncf %733 : vector<16x8xf32> to vector<16x8xbf16>
    %c0_555 = arith.constant 0 : index
    %c5_556 = arith.constant 5 : index
    %c16_557 = arith.constant 16 : index
    %c0_558 = arith.constant 0 : index
    %735 = vector.load %arg5[%c0_555, %c5_556, %c16_557, %c0_558] : memref<1x8x64x8xbf16, #tpu.memory_space<vmem>>, vector<1x1x16x8xbf16>
    %736 = vector.shape_cast %735 : vector<1x1x16x8xbf16> to vector<16x8xbf16>
    %737 = vector.shape_cast %734 : vector<16x8xbf16> to vector<1x1x16x8xbf16>
    tpu.vector_store %arg5[%c0_555, %c5_556, %c16_557, %c0_558], %737 {strides = array<i32>} : memref<1x8x64x8xbf16, #tpu.memory_space<vmem>>, vector<1x1x16x8xbf16>,
    %cst_559 = arith.constant dense<0.000000e+00> : vector<8xf32>
    %738 = vector.multi_reduction <add>, %733, %cst_559 [0] : vector<16x8xf32> to vector<8xf32>
    %739 = vector.shape_cast %738 : vector<8xf32> to vector<1x8xf32>
    %740 = arith.addf %708, %739 : vector<1x8xf32>
    %741 = arith.mulf %733, %733 : vector<16x8xf32>
    %cst_560 = arith.constant dense<0.000000e+00> : vector<8xf32>
    %742 = vector.multi_reduction <add>, %741, %cst_560 [0] : vector<16x8xf32> to vector<8xf32>
    %743 = vector.shape_cast %742 : vector<8xf32> to vector<1x8xf32>
    %744 = arith.addf %712, %743 : vector<1x8xf32>
    %cst_561 = arith.constant 0.000000e+00 : f32
    %745 = vector.broadcast %cst_561 : f32 to vector<16x8xf32>
    %746 = vector.extract_strided_slice %678 {offsets = [0, 0], sizes = [16, 4], strides = [1, 1]} : vector<18x4xbf16> to vector<16x4xbf16>
    %c8_562 = arith.constant 8 : index
    %c0_563 = arith.constant 0 : index
    %c0_564 = arith.constant 0 : index
    %747 = vector.load %arg4[%c8_562, %c0_563, %c0_564] : memref<16x4x8xbf16, #tpu.memory_space<vmem>>, vector<1x4x8xbf16>
    %748 = vector.shape_cast %747 : vector<1x4x8xbf16> to vector<4x8xbf16>
    %cst_565 = arith.constant dense<0.000000e+00> : vector<16x8xf32>
    %749 = tpu.matmul %746, %748, %cst_565 {dimension_numbers = #tpu.dot_dimension_numbers<[1], [0], [0], [1], [0, 0, 1, 1], [], []>} : vector<16x4xbf16>, vector<4x8xbf16>, vector<16x8xf32> -> vector<16x8xf32>
    %750 = arith.addf %745, %749 : vector<16x8xf32>
    %751 = vector.extract_strided_slice %678 {offsets = [1, 0], sizes = [16, 4], strides = [1, 1]} : vector<18x4xbf16> to vector<16x4xbf16>
    %c9_566 = arith.constant 9 : index
    %c0_567 = arith.constant 0 : index
    %c0_568 = arith.constant 0 : index
    %752 = vector.load %arg4[%c9_566, %c0_567, %c0_568] : memref<16x4x8xbf16, #tpu.memory_space<vmem>>, vector<1x4x8xbf16>
    %753 = vector.shape_cast %752 : vector<1x4x8xbf16> to vector<4x8xbf16>
    %cst_569 = arith.constant dense<0.000000e+00> : vector<16x8xf32>
    %754 = tpu.matmul %751, %753, %cst_569 {dimension_numbers = #tpu.dot_dimension_numbers<[1], [0], [0], [1], [0, 0, 1, 1], [], []>} : vector<16x4xbf16>, vector<4x8xbf16>, vector<16x8xf32> -> vector<16x8xf32>
    %755 = arith.addf %750, %754 : vector<16x8xf32>
    %756 = vector.extract_strided_slice %680 {offsets = [0, 0], sizes = [16, 4], strides = [1, 1]} : vector<18x4xbf16> to vector<16x4xbf16>
    %c10_570 = arith.constant 10 : index
    %c0_571 = arith.constant 0 : index
    %c0_572 = arith.constant 0 : index
    %757 = vector.load %arg4[%c10_570, %c0_571, %c0_572] : memref<16x4x8xbf16, #tpu.memory_space<vmem>>, vector<1x4x8xbf16>
    %758 = vector.shape_cast %757 : vector<1x4x8xbf16> to vector<4x8xbf16>
    %cst_573 = arith.constant dense<0.000000e+00> : vector<16x8xf32>
    %759 = tpu.matmul %756, %758, %cst_573 {dimension_numbers = #tpu.dot_dimension_numbers<[1], [0], [0], [1], [0, 0, 1, 1], [], []>} : vector<16x4xbf16>, vector<4x8xbf16>, vector<16x8xf32> -> vector<16x8xf32>
    %760 = arith.addf %755, %759 : vector<16x8xf32>
    %761 = vector.extract_strided_slice %680 {offsets = [1, 0], sizes = [16, 4], strides = [1, 1]} : vector<18x4xbf16> to vector<16x4xbf16>
    %c11_574 = arith.constant 11 : index
    %c0_575 = arith.constant 0 : index
    %c0_576 = arith.constant 0 : index
    %762 = vector.load %arg4[%c11_574, %c0_575, %c0_576] : memref<16x4x8xbf16, #tpu.memory_space<vmem>>, vector<1x4x8xbf16>
    %763 = vector.shape_cast %762 : vector<1x4x8xbf16> to vector<4x8xbf16>
    %cst_577 = arith.constant dense<0.000000e+00> : vector<16x8xf32>
    %764 = tpu.matmul %761, %763, %cst_577 {dimension_numbers = #tpu.dot_dimension_numbers<[1], [0], [0], [1], [0, 0, 1, 1], [], []>} : vector<16x4xbf16>, vector<4x8xbf16>, vector<16x8xf32> -> vector<16x8xf32>
    %765 = arith.addf %760, %764 : vector<16x8xf32>
    %766 = arith.truncf %765 : vector<16x8xf32> to vector<16x8xbf16>
    %c0_578 = arith.constant 0 : index
    %c5_579 = arith.constant 5 : index
    %c32_580 = arith.constant 32 : index
    %c0_581 = arith.constant 0 : index
    %767 = vector.load %arg5[%c0_578, %c5_579, %c32_580, %c0_581] : memref<1x8x64x8xbf16, #tpu.memory_space<vmem>>, vector<1x1x16x8xbf16>
    %768 = vector.shape_cast %767 : vector<1x1x16x8xbf16> to vector<16x8xbf16>
    %769 = vector.shape_cast %766 : vector<16x8xbf16> to vector<1x1x16x8xbf16>
    tpu.vector_store %arg5[%c0_578, %c5_579, %c32_580, %c0_581], %769 {strides = array<i32>} : memref<1x8x64x8xbf16, #tpu.memory_space<vmem>>, vector<1x1x16x8xbf16>,
    %cst_582 = arith.constant dense<0.000000e+00> : vector<8xf32>
    %770 = vector.multi_reduction <add>, %765, %cst_582 [0] : vector<16x8xf32> to vector<8xf32>
    %771 = vector.shape_cast %770 : vector<8xf32> to vector<1x8xf32>
    %772 = arith.addf %740, %771 : vector<1x8xf32>
    %773 = arith.mulf %765, %765 : vector<16x8xf32>
    %cst_583 = arith.constant dense<0.000000e+00> : vector<8xf32>
    %774 = vector.multi_reduction <add>, %773, %cst_583 [0] : vector<16x8xf32> to vector<8xf32>
    %775 = vector.shape_cast %774 : vector<8xf32> to vector<1x8xf32>
    %776 = arith.addf %744, %775 : vector<1x8xf32>
    %cst_584 = arith.constant 0.000000e+00 : f32
    %777 = vector.broadcast %cst_584 : f32 to vector<16x8xf32>
    %778 = vector.extract_strided_slice %678 {offsets = [1, 0], sizes = [16, 4], strides = [1, 1]} : vector<18x4xbf16> to vector<16x4xbf16>
    %c12_585 = arith.constant 12 : index
    %c0_586 = arith.constant 0 : index
    %c0_587 = arith.constant 0 : index
    %779 = vector.load %arg4[%c12_585, %c0_586, %c0_587] : memref<16x4x8xbf16, #tpu.memory_space<vmem>>, vector<1x4x8xbf16>
    %780 = vector.shape_cast %779 : vector<1x4x8xbf16> to vector<4x8xbf16>
    %cst_588 = arith.constant dense<0.000000e+00> : vector<16x8xf32>
    %781 = tpu.matmul %778, %780, %cst_588 {dimension_numbers = #tpu.dot_dimension_numbers<[1], [0], [0], [1], [0, 0, 1, 1], [], []>} : vector<16x4xbf16>, vector<4x8xbf16>, vector<16x8xf32> -> vector<16x8xf32>
    %782 = arith.addf %777, %781 : vector<16x8xf32>
    %783 = vector.extract_strided_slice %678 {offsets = [2, 0], sizes = [16, 4], strides = [1, 1]} : vector<18x4xbf16> to vector<16x4xbf16>
    %c13_589 = arith.constant 13 : index
    %c0_590 = arith.constant 0 : index
    %c0_591 = arith.constant 0 : index
    %784 = vector.load %arg4[%c13_589, %c0_590, %c0_591] : memref<16x4x8xbf16, #tpu.memory_space<vmem>>, vector<1x4x8xbf16>
    %785 = vector.shape_cast %784 : vector<1x4x8xbf16> to vector<4x8xbf16>
    %cst_592 = arith.constant dense<0.000000e+00> : vector<16x8xf32>
    %786 = tpu.matmul %783, %785, %cst_592 {dimension_numbers = #tpu.dot_dimension_numbers<[1], [0], [0], [1], [0, 0, 1, 1], [], []>} : vector<16x4xbf16>, vector<4x8xbf16>, vector<16x8xf32> -> vector<16x8xf32>
    %787 = arith.addf %782, %786 : vector<16x8xf32>
    %788 = vector.extract_strided_slice %680 {offsets = [1, 0], sizes = [16, 4], strides = [1, 1]} : vector<18x4xbf16> to vector<16x4xbf16>
    %c14_593 = arith.constant 14 : index
    %c0_594 = arith.constant 0 : index
    %c0_595 = arith.constant 0 : index
    %789 = vector.load %arg4[%c14_593, %c0_594, %c0_595] : memref<16x4x8xbf16, #tpu.memory_space<vmem>>, vector<1x4x8xbf16>
    %790 = vector.shape_cast %789 : vector<1x4x8xbf16> to vector<4x8xbf16>
    %cst_596 = arith.constant dense<0.000000e+00> : vector<16x8xf32>
    %791 = tpu.matmul %788, %790, %cst_596 {dimension_numbers = #tpu.dot_dimension_numbers<[1], [0], [0], [1], [0, 0, 1, 1], [], []>} : vector<16x4xbf16>, vector<4x8xbf16>, vector<16x8xf32> -> vector<16x8xf32>
    %792 = arith.addf %787, %791 : vector<16x8xf32>
    %793 = vector.extract_strided_slice %680 {offsets = [2, 0], sizes = [16, 4], strides = [1, 1]} : vector<18x4xbf16> to vector<16x4xbf16>
    %c15_597 = arith.constant 15 : index
    %c0_598 = arith.constant 0 : index
    %c0_599 = arith.constant 0 : index
    %794 = vector.load %arg4[%c15_597, %c0_598, %c0_599] : memref<16x4x8xbf16, #tpu.memory_space<vmem>>, vector<1x4x8xbf16>
    %795 = vector.shape_cast %794 : vector<1x4x8xbf16> to vector<4x8xbf16>
    %cst_600 = arith.constant dense<0.000000e+00> : vector<16x8xf32>
    %796 = tpu.matmul %793, %795, %cst_600 {dimension_numbers = #tpu.dot_dimension_numbers<[1], [0], [0], [1], [0, 0, 1, 1], [], []>} : vector<16x4xbf16>, vector<4x8xbf16>, vector<16x8xf32> -> vector<16x8xf32>
    %797 = arith.addf %792, %796 : vector<16x8xf32>
    %798 = arith.truncf %797 : vector<16x8xf32> to vector<16x8xbf16>
    %c0_601 = arith.constant 0 : index
    %c5_602 = arith.constant 5 : index
    %c48_603 = arith.constant 48 : index
    %c0_604 = arith.constant 0 : index
    %799 = vector.load %arg5[%c0_601, %c5_602, %c48_603, %c0_604] : memref<1x8x64x8xbf16, #tpu.memory_space<vmem>>, vector<1x1x16x8xbf16>
    %800 = vector.shape_cast %799 : vector<1x1x16x8xbf16> to vector<16x8xbf16>
    %801 = vector.shape_cast %798 : vector<16x8xbf16> to vector<1x1x16x8xbf16>
    tpu.vector_store %arg5[%c0_601, %c5_602, %c48_603, %c0_604], %801 {strides = array<i32>} : memref<1x8x64x8xbf16, #tpu.memory_space<vmem>>, vector<1x1x16x8xbf16>,
    %cst_605 = arith.constant dense<0.000000e+00> : vector<8xf32>
    %802 = vector.multi_reduction <add>, %797, %cst_605 [0] : vector<16x8xf32> to vector<8xf32>
    %803 = vector.shape_cast %802 : vector<8xf32> to vector<1x8xf32>
    %804 = arith.addf %772, %803 : vector<1x8xf32>
    %805 = arith.mulf %797, %797 : vector<16x8xf32>
    %cst_606 = arith.constant dense<0.000000e+00> : vector<8xf32>
    %806 = vector.multi_reduction <add>, %805, %cst_606 [0] : vector<16x8xf32> to vector<8xf32>
    %807 = vector.shape_cast %806 : vector<8xf32> to vector<1x8xf32>
    %808 = arith.addf %776, %807 : vector<1x8xf32>
    %c0_607 = arith.constant 0 : index
    %c6_608 = arith.constant 6 : index
    %c0_609 = arith.constant 0 : index
    %c0_610 = arith.constant 0 : index
    %809 = vector.load %arg2[%c0_607, %c6_608, %c0_609, %c0_610] : memref<1x8x18x4xbf16, #tpu.memory_space<vmem>>, vector<1x1x18x4xbf16>
    %810 = vector.shape_cast %809 : vector<1x1x18x4xbf16> to vector<18x4xbf16>
    %c0_611 = arith.constant 0 : index
    %c7_612 = arith.constant 7 : index
    %c0_613 = arith.constant 0 : index
    %c0_614 = arith.constant 0 : index
    %811 = vector.load %arg2[%c0_611, %c7_612, %c0_613, %c0_614] : memref<1x8x18x4xbf16, #tpu.memory_space<vmem>>, vector<1x1x18x4xbf16>
    %812 = vector.shape_cast %811 : vector<1x1x18x4xbf16> to vector<18x4xbf16>
    %c0_615 = arith.constant 0 : index
    %c0_616 = arith.constant 0 : index
    %c0_617 = arith.constant 0 : index
    %c0_618 = arith.constant 0 : index
    %c0_619 = arith.constant 0 : index
    %813 = vector.load %arg3[%c0_615, %c0_616, %c0_617, %c0_618, %c0_619] : memref<1x1x2x18x4xbf16, #tpu.memory_space<vmem>>, vector<1x1x1x18x4xbf16>
    %814 = vector.shape_cast %813 : vector<1x1x1x18x4xbf16> to vector<18x4xbf16>
    %cst_620 = arith.constant 0.000000e+00 : f32
    %815 = vector.broadcast %cst_620 : f32 to vector<16x8xf32>
    %816 = vector.extract_strided_slice %810 {offsets = [0, 0], sizes = [16, 4], strides = [1, 1]} : vector<18x4xbf16> to vector<16x4xbf16>
    %c0_621 = arith.constant 0 : index
    %c0_622 = arith.constant 0 : index
    %c0_623 = arith.constant 0 : index
    %817 = vector.load %arg4[%c0_621, %c0_622, %c0_623] : memref<16x4x8xbf16, #tpu.memory_space<vmem>>, vector<1x4x8xbf16>
    %818 = vector.shape_cast %817 : vector<1x4x8xbf16> to vector<4x8xbf16>
    %cst_624 = arith.constant dense<0.000000e+00> : vector<16x8xf32>
    %819 = tpu.matmul %816, %818, %cst_624 {dimension_numbers = #tpu.dot_dimension_numbers<[1], [0], [0], [1], [0, 0, 1, 1], [], []>} : vector<16x4xbf16>, vector<4x8xbf16>, vector<16x8xf32> -> vector<16x8xf32>
    %820 = arith.addf %815, %819 : vector<16x8xf32>
    %821 = vector.extract_strided_slice %810 {offsets = [1, 0], sizes = [16, 4], strides = [1, 1]} : vector<18x4xbf16> to vector<16x4xbf16>
    %c1_625 = arith.constant 1 : index
    %c0_626 = arith.constant 0 : index
    %c0_627 = arith.constant 0 : index
    %822 = vector.load %arg4[%c1_625, %c0_626, %c0_627] : memref<16x4x8xbf16, #tpu.memory_space<vmem>>, vector<1x4x8xbf16>
    %823 = vector.shape_cast %822 : vector<1x4x8xbf16> to vector<4x8xbf16>
    %cst_628 = arith.constant dense<0.000000e+00> : vector<16x8xf32>
    %824 = tpu.matmul %821, %823, %cst_628 {dimension_numbers = #tpu.dot_dimension_numbers<[1], [0], [0], [1], [0, 0, 1, 1], [], []>} : vector<16x4xbf16>, vector<4x8xbf16>, vector<16x8xf32> -> vector<16x8xf32>
    %825 = arith.addf %820, %824 : vector<16x8xf32>
    %826 = vector.extract_strided_slice %812 {offsets = [0, 0], sizes = [16, 4], strides = [1, 1]} : vector<18x4xbf16> to vector<16x4xbf16>
    %c2_629 = arith.constant 2 : index
    %c0_630 = arith.constant 0 : index
    %c0_631 = arith.constant 0 : index
    %827 = vector.load %arg4[%c2_629, %c0_630, %c0_631] : memref<16x4x8xbf16, #tpu.memory_space<vmem>>, vector<1x4x8xbf16>
    %828 = vector.shape_cast %827 : vector<1x4x8xbf16> to vector<4x8xbf16>
    %cst_632 = arith.constant dense<0.000000e+00> : vector<16x8xf32>
    %829 = tpu.matmul %826, %828, %cst_632 {dimension_numbers = #tpu.dot_dimension_numbers<[1], [0], [0], [1], [0, 0, 1, 1], [], []>} : vector<16x4xbf16>, vector<4x8xbf16>, vector<16x8xf32> -> vector<16x8xf32>
    %830 = arith.addf %825, %829 : vector<16x8xf32>
    %831 = vector.extract_strided_slice %812 {offsets = [1, 0], sizes = [16, 4], strides = [1, 1]} : vector<18x4xbf16> to vector<16x4xbf16>
    %c3_633 = arith.constant 3 : index
    %c0_634 = arith.constant 0 : index
    %c0_635 = arith.constant 0 : index
    %832 = vector.load %arg4[%c3_633, %c0_634, %c0_635] : memref<16x4x8xbf16, #tpu.memory_space<vmem>>, vector<1x4x8xbf16>
    %833 = vector.shape_cast %832 : vector<1x4x8xbf16> to vector<4x8xbf16>
    %cst_636 = arith.constant dense<0.000000e+00> : vector<16x8xf32>
    %834 = tpu.matmul %831, %833, %cst_636 {dimension_numbers = #tpu.dot_dimension_numbers<[1], [0], [0], [1], [0, 0, 1, 1], [], []>} : vector<16x4xbf16>, vector<4x8xbf16>, vector<16x8xf32> -> vector<16x8xf32>
    %835 = arith.addf %830, %834 : vector<16x8xf32>
    %836 = arith.truncf %835 : vector<16x8xf32> to vector<16x8xbf16>
    %c0_637 = arith.constant 0 : index
    %c6_638 = arith.constant 6 : index
    %c0_639 = arith.constant 0 : index
    %c0_640 = arith.constant 0 : index
    %837 = vector.load %arg5[%c0_637, %c6_638, %c0_639, %c0_640] : memref<1x8x64x8xbf16, #tpu.memory_space<vmem>>, vector<1x1x16x8xbf16>
    %838 = vector.shape_cast %837 : vector<1x1x16x8xbf16> to vector<16x8xbf16>
    %839 = vector.shape_cast %836 : vector<16x8xbf16> to vector<1x1x16x8xbf16>
    tpu.vector_store %arg5[%c0_637, %c6_638, %c0_639, %c0_640], %839 {strides = array<i32>} : memref<1x8x64x8xbf16, #tpu.memory_space<vmem>>, vector<1x1x16x8xbf16>,
    %cst_641 = arith.constant dense<0.000000e+00> : vector<8xf32>
    %840 = vector.multi_reduction <add>, %835, %cst_641 [0] : vector<16x8xf32> to vector<8xf32>
    %841 = vector.shape_cast %840 : vector<8xf32> to vector<1x8xf32>
    %842 = arith.addf %804, %841 : vector<1x8xf32>
    %843 = arith.mulf %835, %835 : vector<16x8xf32>
    %cst_642 = arith.constant dense<0.000000e+00> : vector<8xf32>
    %844 = vector.multi_reduction <add>, %843, %cst_642 [0] : vector<16x8xf32> to vector<8xf32>
    %845 = vector.shape_cast %844 : vector<8xf32> to vector<1x8xf32>
    %846 = arith.addf %808, %845 : vector<1x8xf32>
    %cst_643 = arith.constant 0.000000e+00 : f32
    %847 = vector.broadcast %cst_643 : f32 to vector<16x8xf32>
    %848 = vector.extract_strided_slice %810 {offsets = [1, 0], sizes = [16, 4], strides = [1, 1]} : vector<18x4xbf16> to vector<16x4xbf16>
    %c4_644 = arith.constant 4 : index
    %c0_645 = arith.constant 0 : index
    %c0_646 = arith.constant 0 : index
    %849 = vector.load %arg4[%c4_644, %c0_645, %c0_646] : memref<16x4x8xbf16, #tpu.memory_space<vmem>>, vector<1x4x8xbf16>
    %850 = vector.shape_cast %849 : vector<1x4x8xbf16> to vector<4x8xbf16>
    %cst_647 = arith.constant dense<0.000000e+00> : vector<16x8xf32>
    %851 = tpu.matmul %848, %850, %cst_647 {dimension_numbers = #tpu.dot_dimension_numbers<[1], [0], [0], [1], [0, 0, 1, 1], [], []>} : vector<16x4xbf16>, vector<4x8xbf16>, vector<16x8xf32> -> vector<16x8xf32>
    %852 = arith.addf %847, %851 : vector<16x8xf32>
    %853 = vector.extract_strided_slice %810 {offsets = [2, 0], sizes = [16, 4], strides = [1, 1]} : vector<18x4xbf16> to vector<16x4xbf16>
    %c5_648 = arith.constant 5 : index
    %c0_649 = arith.constant 0 : index
    %c0_650 = arith.constant 0 : index
    %854 = vector.load %arg4[%c5_648, %c0_649, %c0_650] : memref<16x4x8xbf16, #tpu.memory_space<vmem>>, vector<1x4x8xbf16>
    %855 = vector.shape_cast %854 : vector<1x4x8xbf16> to vector<4x8xbf16>
    %cst_651 = arith.constant dense<0.000000e+00> : vector<16x8xf32>
    %856 = tpu.matmul %853, %855, %cst_651 {dimension_numbers = #tpu.dot_dimension_numbers<[1], [0], [0], [1], [0, 0, 1, 1], [], []>} : vector<16x4xbf16>, vector<4x8xbf16>, vector<16x8xf32> -> vector<16x8xf32>
    %857 = arith.addf %852, %856 : vector<16x8xf32>
    %858 = vector.extract_strided_slice %812 {offsets = [1, 0], sizes = [16, 4], strides = [1, 1]} : vector<18x4xbf16> to vector<16x4xbf16>
    %c6_652 = arith.constant 6 : index
    %c0_653 = arith.constant 0 : index
    %c0_654 = arith.constant 0 : index
    %859 = vector.load %arg4[%c6_652, %c0_653, %c0_654] : memref<16x4x8xbf16, #tpu.memory_space<vmem>>, vector<1x4x8xbf16>
    %860 = vector.shape_cast %859 : vector<1x4x8xbf16> to vector<4x8xbf16>
    %cst_655 = arith.constant dense<0.000000e+00> : vector<16x8xf32>
    %861 = tpu.matmul %858, %860, %cst_655 {dimension_numbers = #tpu.dot_dimension_numbers<[1], [0], [0], [1], [0, 0, 1, 1], [], []>} : vector<16x4xbf16>, vector<4x8xbf16>, vector<16x8xf32> -> vector<16x8xf32>
    %862 = arith.addf %857, %861 : vector<16x8xf32>
    %863 = vector.extract_strided_slice %812 {offsets = [2, 0], sizes = [16, 4], strides = [1, 1]} : vector<18x4xbf16> to vector<16x4xbf16>
    %c7_656 = arith.constant 7 : index
    %c0_657 = arith.constant 0 : index
    %c0_658 = arith.constant 0 : index
    %864 = vector.load %arg4[%c7_656, %c0_657, %c0_658] : memref<16x4x8xbf16, #tpu.memory_space<vmem>>, vector<1x4x8xbf16>
    %865 = vector.shape_cast %864 : vector<1x4x8xbf16> to vector<4x8xbf16>
    %cst_659 = arith.constant dense<0.000000e+00> : vector<16x8xf32>
    %866 = tpu.matmul %863, %865, %cst_659 {dimension_numbers = #tpu.dot_dimension_numbers<[1], [0], [0], [1], [0, 0, 1, 1], [], []>} : vector<16x4xbf16>, vector<4x8xbf16>, vector<16x8xf32> -> vector<16x8xf32>
    %867 = arith.addf %862, %866 : vector<16x8xf32>
    %868 = arith.truncf %867 : vector<16x8xf32> to vector<16x8xbf16>
    %c0_660 = arith.constant 0 : index
    %c6_661 = arith.constant 6 : index
    %c16_662 = arith.constant 16 : index
    %c0_663 = arith.constant 0 : index
    %869 = vector.load %arg5[%c0_660, %c6_661, %c16_662, %c0_663] : memref<1x8x64x8xbf16, #tpu.memory_space<vmem>>, vector<1x1x16x8xbf16>
    %870 = vector.shape_cast %869 : vector<1x1x16x8xbf16> to vector<16x8xbf16>
    %871 = vector.shape_cast %868 : vector<16x8xbf16> to vector<1x1x16x8xbf16>
    tpu.vector_store %arg5[%c0_660, %c6_661, %c16_662, %c0_663], %871 {strides = array<i32>} : memref<1x8x64x8xbf16, #tpu.memory_space<vmem>>, vector<1x1x16x8xbf16>,
    %cst_664 = arith.constant dense<0.000000e+00> : vector<8xf32>
    %872 = vector.multi_reduction <add>, %867, %cst_664 [0] : vector<16x8xf32> to vector<8xf32>
    %873 = vector.shape_cast %872 : vector<8xf32> to vector<1x8xf32>
    %874 = arith.addf %842, %873 : vector<1x8xf32>
    %875 = arith.mulf %867, %867 : vector<16x8xf32>
    %cst_665 = arith.constant dense<0.000000e+00> : vector<8xf32>
    %876 = vector.multi_reduction <add>, %875, %cst_665 [0] : vector<16x8xf32> to vector<8xf32>
    %877 = vector.shape_cast %876 : vector<8xf32> to vector<1x8xf32>
    %878 = arith.addf %846, %877 : vector<1x8xf32>
    %cst_666 = arith.constant 0.000000e+00 : f32
    %879 = vector.broadcast %cst_666 : f32 to vector<16x8xf32>
    %880 = vector.extract_strided_slice %812 {offsets = [0, 0], sizes = [16, 4], strides = [1, 1]} : vector<18x4xbf16> to vector<16x4xbf16>
    %c8_667 = arith.constant 8 : index
    %c0_668 = arith.constant 0 : index
    %c0_669 = arith.constant 0 : index
    %881 = vector.load %arg4[%c8_667, %c0_668, %c0_669] : memref<16x4x8xbf16, #tpu.memory_space<vmem>>, vector<1x4x8xbf16>
    %882 = vector.shape_cast %881 : vector<1x4x8xbf16> to vector<4x8xbf16>
    %cst_670 = arith.constant dense<0.000000e+00> : vector<16x8xf32>
    %883 = tpu.matmul %880, %882, %cst_670 {dimension_numbers = #tpu.dot_dimension_numbers<[1], [0], [0], [1], [0, 0, 1, 1], [], []>} : vector<16x4xbf16>, vector<4x8xbf16>, vector<16x8xf32> -> vector<16x8xf32>
    %884 = arith.addf %879, %883 : vector<16x8xf32>
    %885 = vector.extract_strided_slice %812 {offsets = [1, 0], sizes = [16, 4], strides = [1, 1]} : vector<18x4xbf16> to vector<16x4xbf16>
    %c9_671 = arith.constant 9 : index
    %c0_672 = arith.constant 0 : index
    %c0_673 = arith.constant 0 : index
    %886 = vector.load %arg4[%c9_671, %c0_672, %c0_673] : memref<16x4x8xbf16, #tpu.memory_space<vmem>>, vector<1x4x8xbf16>
    %887 = vector.shape_cast %886 : vector<1x4x8xbf16> to vector<4x8xbf16>
    %cst_674 = arith.constant dense<0.000000e+00> : vector<16x8xf32>
    %888 = tpu.matmul %885, %887, %cst_674 {dimension_numbers = #tpu.dot_dimension_numbers<[1], [0], [0], [1], [0, 0, 1, 1], [], []>} : vector<16x4xbf16>, vector<4x8xbf16>, vector<16x8xf32> -> vector<16x8xf32>
    %889 = arith.addf %884, %888 : vector<16x8xf32>
    %890 = vector.extract_strided_slice %814 {offsets = [0, 0], sizes = [16, 4], strides = [1, 1]} : vector<18x4xbf16> to vector<16x4xbf16>
    %c10_675 = arith.constant 10 : index
    %c0_676 = arith.constant 0 : index
    %c0_677 = arith.constant 0 : index
    %891 = vector.load %arg4[%c10_675, %c0_676, %c0_677] : memref<16x4x8xbf16, #tpu.memory_space<vmem>>, vector<1x4x8xbf16>
    %892 = vector.shape_cast %891 : vector<1x4x8xbf16> to vector<4x8xbf16>
    %cst_678 = arith.constant dense<0.000000e+00> : vector<16x8xf32>
    %893 = tpu.matmul %890, %892, %cst_678 {dimension_numbers = #tpu.dot_dimension_numbers<[1], [0], [0], [1], [0, 0, 1, 1], [], []>} : vector<16x4xbf16>, vector<4x8xbf16>, vector<16x8xf32> -> vector<16x8xf32>
    %894 = arith.addf %889, %893 : vector<16x8xf32>
    %895 = vector.extract_strided_slice %814 {offsets = [1, 0], sizes = [16, 4], strides = [1, 1]} : vector<18x4xbf16> to vector<16x4xbf16>
    %c11_679 = arith.constant 11 : index
    %c0_680 = arith.constant 0 : index
    %c0_681 = arith.constant 0 : index
    %896 = vector.load %arg4[%c11_679, %c0_680, %c0_681] : memref<16x4x8xbf16, #tpu.memory_space<vmem>>, vector<1x4x8xbf16>
    %897 = vector.shape_cast %896 : vector<1x4x8xbf16> to vector<4x8xbf16>
    %cst_682 = arith.constant dense<0.000000e+00> : vector<16x8xf32>
    %898 = tpu.matmul %895, %897, %cst_682 {dimension_numbers = #tpu.dot_dimension_numbers<[1], [0], [0], [1], [0, 0, 1, 1], [], []>} : vector<16x4xbf16>, vector<4x8xbf16>, vector<16x8xf32> -> vector<16x8xf32>
    %899 = arith.addf %894, %898 : vector<16x8xf32>
    %900 = arith.truncf %899 : vector<16x8xf32> to vector<16x8xbf16>
    %c0_683 = arith.constant 0 : index
    %c6_684 = arith.constant 6 : index
    %c32_685 = arith.constant 32 : index
    %c0_686 = arith.constant 0 : index
    %901 = vector.load %arg5[%c0_683, %c6_684, %c32_685, %c0_686] : memref<1x8x64x8xbf16, #tpu.memory_space<vmem>>, vector<1x1x16x8xbf16>
    %902 = vector.shape_cast %901 : vector<1x1x16x8xbf16> to vector<16x8xbf16>
    %903 = vector.shape_cast %900 : vector<16x8xbf16> to vector<1x1x16x8xbf16>
    tpu.vector_store %arg5[%c0_683, %c6_684, %c32_685, %c0_686], %903 {strides = array<i32>} : memref<1x8x64x8xbf16, #tpu.memory_space<vmem>>, vector<1x1x16x8xbf16>,
    %cst_687 = arith.constant dense<0.000000e+00> : vector<8xf32>
    %904 = vector.multi_reduction <add>, %899, %cst_687 [0] : vector<16x8xf32> to vector<8xf32>
    %905 = vector.shape_cast %904 : vector<8xf32> to vector<1x8xf32>
    %906 = arith.addf %874, %905 : vector<1x8xf32>
    %907 = arith.mulf %899, %899 : vector<16x8xf32>
    %cst_688 = arith.constant dense<0.000000e+00> : vector<8xf32>
    %908 = vector.multi_reduction <add>, %907, %cst_688 [0] : vector<16x8xf32> to vector<8xf32>
    %909 = vector.shape_cast %908 : vector<8xf32> to vector<1x8xf32>
    %910 = arith.addf %878, %909 : vector<1x8xf32>
    %cst_689 = arith.constant 0.000000e+00 : f32
    %911 = vector.broadcast %cst_689 : f32 to vector<16x8xf32>
    %912 = vector.extract_strided_slice %812 {offsets = [1, 0], sizes = [16, 4], strides = [1, 1]} : vector<18x4xbf16> to vector<16x4xbf16>
    %c12_690 = arith.constant 12 : index
    %c0_691 = arith.constant 0 : index
    %c0_692 = arith.constant 0 : index
    %913 = vector.load %arg4[%c12_690, %c0_691, %c0_692] : memref<16x4x8xbf16, #tpu.memory_space<vmem>>, vector<1x4x8xbf16>
    %914 = vector.shape_cast %913 : vector<1x4x8xbf16> to vector<4x8xbf16>
    %cst_693 = arith.constant dense<0.000000e+00> : vector<16x8xf32>
    %915 = tpu.matmul %912, %914, %cst_693 {dimension_numbers = #tpu.dot_dimension_numbers<[1], [0], [0], [1], [0, 0, 1, 1], [], []>} : vector<16x4xbf16>, vector<4x8xbf16>, vector<16x8xf32> -> vector<16x8xf32>
    %916 = arith.addf %911, %915 : vector<16x8xf32>
    %917 = vector.extract_strided_slice %812 {offsets = [2, 0], sizes = [16, 4], strides = [1, 1]} : vector<18x4xbf16> to vector<16x4xbf16>
    %c13_694 = arith.constant 13 : index
    %c0_695 = arith.constant 0 : index
    %c0_696 = arith.constant 0 : index
    %918 = vector.load %arg4[%c13_694, %c0_695, %c0_696] : memref<16x4x8xbf16, #tpu.memory_space<vmem>>, vector<1x4x8xbf16>
    %919 = vector.shape_cast %918 : vector<1x4x8xbf16> to vector<4x8xbf16>
    %cst_697 = arith.constant dense<0.000000e+00> : vector<16x8xf32>
    %920 = tpu.matmul %917, %919, %cst_697 {dimension_numbers = #tpu.dot_dimension_numbers<[1], [0], [0], [1], [0, 0, 1, 1], [], []>} : vector<16x4xbf16>, vector<4x8xbf16>, vector<16x8xf32> -> vector<16x8xf32>
    %921 = arith.addf %916, %920 : vector<16x8xf32>
    %922 = vector.extract_strided_slice %814 {offsets = [1, 0], sizes = [16, 4], strides = [1, 1]} : vector<18x4xbf16> to vector<16x4xbf16>
    %c14_698 = arith.constant 14 : index
    %c0_699 = arith.constant 0 : index
    %c0_700 = arith.constant 0 : index
    %923 = vector.load %arg4[%c14_698, %c0_699, %c0_700] : memref<16x4x8xbf16, #tpu.memory_space<vmem>>, vector<1x4x8xbf16>
    %924 = vector.shape_cast %923 : vector<1x4x8xbf16> to vector<4x8xbf16>
    %cst_701 = arith.constant dense<0.000000e+00> : vector<16x8xf32>
    %925 = tpu.matmul %922, %924, %cst_701 {dimension_numbers = #tpu.dot_dimension_numbers<[1], [0], [0], [1], [0, 0, 1, 1], [], []>} : vector<16x4xbf16>, vector<4x8xbf16>, vector<16x8xf32> -> vector<16x8xf32>
    %926 = arith.addf %921, %925 : vector<16x8xf32>
    %927 = vector.extract_strided_slice %814 {offsets = [2, 0], sizes = [16, 4], strides = [1, 1]} : vector<18x4xbf16> to vector<16x4xbf16>
    %c15_702 = arith.constant 15 : index
    %c0_703 = arith.constant 0 : index
    %c0_704 = arith.constant 0 : index
    %928 = vector.load %arg4[%c15_702, %c0_703, %c0_704] : memref<16x4x8xbf16, #tpu.memory_space<vmem>>, vector<1x4x8xbf16>
    %929 = vector.shape_cast %928 : vector<1x4x8xbf16> to vector<4x8xbf16>
    %cst_705 = arith.constant dense<0.000000e+00> : vector<16x8xf32>
    %930 = tpu.matmul %927, %929, %cst_705 {dimension_numbers = #tpu.dot_dimension_numbers<[1], [0], [0], [1], [0, 0, 1, 1], [], []>} : vector<16x4xbf16>, vector<4x8xbf16>, vector<16x8xf32> -> vector<16x8xf32>
    %931 = arith.addf %926, %930 : vector<16x8xf32>
    %932 = arith.truncf %931 : vector<16x8xf32> to vector<16x8xbf16>
    %c0_706 = arith.constant 0 : index
    %c6_707 = arith.constant 6 : index
    %c48_708 = arith.constant 48 : index
    %c0_709 = arith.constant 0 : index
    %933 = vector.load %arg5[%c0_706, %c6_707, %c48_708, %c0_709] : memref<1x8x64x8xbf16, #tpu.memory_space<vmem>>, vector<1x1x16x8xbf16>
    %934 = vector.shape_cast %933 : vector<1x1x16x8xbf16> to vector<16x8xbf16>
    %935 = vector.shape_cast %932 : vector<16x8xbf16> to vector<1x1x16x8xbf16>
    tpu.vector_store %arg5[%c0_706, %c6_707, %c48_708, %c0_709], %935 {strides = array<i32>} : memref<1x8x64x8xbf16, #tpu.memory_space<vmem>>, vector<1x1x16x8xbf16>,
    %cst_710 = arith.constant dense<0.000000e+00> : vector<8xf32>
    %936 = vector.multi_reduction <add>, %931, %cst_710 [0] : vector<16x8xf32> to vector<8xf32>
    %937 = vector.shape_cast %936 : vector<8xf32> to vector<1x8xf32>
    %938 = arith.addf %906, %937 : vector<1x8xf32>
    %939 = arith.mulf %931, %931 : vector<16x8xf32>
    %cst_711 = arith.constant dense<0.000000e+00> : vector<8xf32>
    %940 = vector.multi_reduction <add>, %939, %cst_711 [0] : vector<16x8xf32> to vector<8xf32>
    %941 = vector.shape_cast %940 : vector<8xf32> to vector<1x8xf32>
    %942 = arith.addf %910, %941 : vector<1x8xf32>
    %c0_712 = arith.constant 0 : index
    %c7_713 = arith.constant 7 : index
    %c0_714 = arith.constant 0 : index
    %c0_715 = arith.constant 0 : index
    %943 = vector.load %arg2[%c0_712, %c7_713, %c0_714, %c0_715] : memref<1x8x18x4xbf16, #tpu.memory_space<vmem>>, vector<1x1x18x4xbf16>
    %944 = vector.shape_cast %943 : vector<1x1x18x4xbf16> to vector<18x4xbf16>
    %c0_716 = arith.constant 0 : index
    %c0_717 = arith.constant 0 : index
    %c0_718 = arith.constant 0 : index
    %c0_719 = arith.constant 0 : index
    %c0_720 = arith.constant 0 : index
    %945 = vector.load %arg3[%c0_716, %c0_717, %c0_718, %c0_719, %c0_720] : memref<1x1x2x18x4xbf16, #tpu.memory_space<vmem>>, vector<1x1x1x18x4xbf16>
    %946 = vector.shape_cast %945 : vector<1x1x1x18x4xbf16> to vector<18x4xbf16>
    %c0_721 = arith.constant 0 : index
    %c0_722 = arith.constant 0 : index
    %c1_723 = arith.constant 1 : index
    %c0_724 = arith.constant 0 : index
    %c0_725 = arith.constant 0 : index
    %947 = vector.load %arg3[%c0_721, %c0_722, %c1_723, %c0_724, %c0_725] : memref<1x1x2x18x4xbf16, #tpu.memory_space<vmem>>, vector<1x1x1x18x4xbf16>
    %948 = vector.shape_cast %947 : vector<1x1x1x18x4xbf16> to vector<18x4xbf16>
    %cst_726 = arith.constant 0.000000e+00 : f32
    %949 = vector.broadcast %cst_726 : f32 to vector<16x8xf32>
    %950 = vector.extract_strided_slice %944 {offsets = [0, 0], sizes = [16, 4], strides = [1, 1]} : vector<18x4xbf16> to vector<16x4xbf16>
    %c0_727 = arith.constant 0 : index
    %c0_728 = arith.constant 0 : index
    %c0_729 = arith.constant 0 : index
    %951 = vector.load %arg4[%c0_727, %c0_728, %c0_729] : memref<16x4x8xbf16, #tpu.memory_space<vmem>>, vector<1x4x8xbf16>
    %952 = vector.shape_cast %951 : vector<1x4x8xbf16> to vector<4x8xbf16>
    %cst_730 = arith.constant dense<0.000000e+00> : vector<16x8xf32>
    %953 = tpu.matmul %950, %952, %cst_730 {dimension_numbers = #tpu.dot_dimension_numbers<[1], [0], [0], [1], [0, 0, 1, 1], [], []>} : vector<16x4xbf16>, vector<4x8xbf16>, vector<16x8xf32> -> vector<16x8xf32>
    %954 = arith.addf %949, %953 : vector<16x8xf32>
    %955 = vector.extract_strided_slice %944 {offsets = [1, 0], sizes = [16, 4], strides = [1, 1]} : vector<18x4xbf16> to vector<16x4xbf16>
    %c1_731 = arith.constant 1 : index
    %c0_732 = arith.constant 0 : index
    %c0_733 = arith.constant 0 : index
    %956 = vector.load %arg4[%c1_731, %c0_732, %c0_733] : memref<16x4x8xbf16, #tpu.memory_space<vmem>>, vector<1x4x8xbf16>
    %957 = vector.shape_cast %956 : vector<1x4x8xbf16> to vector<4x8xbf16>
    %cst_734 = arith.constant dense<0.000000e+00> : vector<16x8xf32>
    %958 = tpu.matmul %955, %957, %cst_734 {dimension_numbers = #tpu.dot_dimension_numbers<[1], [0], [0], [1], [0, 0, 1, 1], [], []>} : vector<16x4xbf16>, vector<4x8xbf16>, vector<16x8xf32> -> vector<16x8xf32>
    %959 = arith.addf %954, %958 : vector<16x8xf32>
    %960 = vector.extract_strided_slice %946 {offsets = [0, 0], sizes = [16, 4], strides = [1, 1]} : vector<18x4xbf16> to vector<16x4xbf16>
    %c2_735 = arith.constant 2 : index
    %c0_736 = arith.constant 0 : index
    %c0_737 = arith.constant 0 : index
    %961 = vector.load %arg4[%c2_735, %c0_736, %c0_737] : memref<16x4x8xbf16, #tpu.memory_space<vmem>>, vector<1x4x8xbf16>
    %962 = vector.shape_cast %961 : vector<1x4x8xbf16> to vector<4x8xbf16>
    %cst_738 = arith.constant dense<0.000000e+00> : vector<16x8xf32>
    %963 = tpu.matmul %960, %962, %cst_738 {dimension_numbers = #tpu.dot_dimension_numbers<[1], [0], [0], [1], [0, 0, 1, 1], [], []>} : vector<16x4xbf16>, vector<4x8xbf16>, vector<16x8xf32> -> vector<16x8xf32>
    %964 = arith.addf %959, %963 : vector<16x8xf32>
    %965 = vector.extract_strided_slice %946 {offsets = [1, 0], sizes = [16, 4], strides = [1, 1]} : vector<18x4xbf16> to vector<16x4xbf16>
    %c3_739 = arith.constant 3 : index
    %c0_740 = arith.constant 0 : index
    %c0_741 = arith.constant 0 : index
    %966 = vector.load %arg4[%c3_739, %c0_740, %c0_741] : memref<16x4x8xbf16, #tpu.memory_space<vmem>>, vector<1x4x8xbf16>
    %967 = vector.shape_cast %966 : vector<1x4x8xbf16> to vector<4x8xbf16>
    %cst_742 = arith.constant dense<0.000000e+00> : vector<16x8xf32>
    %968 = tpu.matmul %965, %967, %cst_742 {dimension_numbers = #tpu.dot_dimension_numbers<[1], [0], [0], [1], [0, 0, 1, 1], [], []>} : vector<16x4xbf16>, vector<4x8xbf16>, vector<16x8xf32> -> vector<16x8xf32>
    %969 = arith.addf %964, %968 : vector<16x8xf32>
    %970 = arith.truncf %969 : vector<16x8xf32> to vector<16x8xbf16>
    %c0_743 = arith.constant 0 : index
    %c7_744 = arith.constant 7 : index
    %c0_745 = arith.constant 0 : index
    %c0_746 = arith.constant 0 : index
    %971 = vector.load %arg5[%c0_743, %c7_744, %c0_745, %c0_746] : memref<1x8x64x8xbf16, #tpu.memory_space<vmem>>, vector<1x1x16x8xbf16>
    %972 = vector.shape_cast %971 : vector<1x1x16x8xbf16> to vector<16x8xbf16>
    %973 = vector.shape_cast %970 : vector<16x8xbf16> to vector<1x1x16x8xbf16>
    tpu.vector_store %arg5[%c0_743, %c7_744, %c0_745, %c0_746], %973 {strides = array<i32>} : memref<1x8x64x8xbf16, #tpu.memory_space<vmem>>, vector<1x1x16x8xbf16>,
    %cst_747 = arith.constant dense<0.000000e+00> : vector<8xf32>
    %974 = vector.multi_reduction <add>, %969, %cst_747 [0] : vector<16x8xf32> to vector<8xf32>
    %975 = vector.shape_cast %974 : vector<8xf32> to vector<1x8xf32>
    %976 = arith.addf %938, %975 : vector<1x8xf32>
    %977 = arith.mulf %969, %969 : vector<16x8xf32>
    %cst_748 = arith.constant dense<0.000000e+00> : vector<8xf32>
    %978 = vector.multi_reduction <add>, %977, %cst_748 [0] : vector<16x8xf32> to vector<8xf32>
    %979 = vector.shape_cast %978 : vector<8xf32> to vector<1x8xf32>
    %980 = arith.addf %942, %979 : vector<1x8xf32>
    %cst_749 = arith.constant 0.000000e+00 : f32
    %981 = vector.broadcast %cst_749 : f32 to vector<16x8xf32>
    %982 = vector.extract_strided_slice %944 {offsets = [1, 0], sizes = [16, 4], strides = [1, 1]} : vector<18x4xbf16> to vector<16x4xbf16>
    %c4_750 = arith.constant 4 : index
    %c0_751 = arith.constant 0 : index
    %c0_752 = arith.constant 0 : index
    %983 = vector.load %arg4[%c4_750, %c0_751, %c0_752] : memref<16x4x8xbf16, #tpu.memory_space<vmem>>, vector<1x4x8xbf16>
    %984 = vector.shape_cast %983 : vector<1x4x8xbf16> to vector<4x8xbf16>
    %cst_753 = arith.constant dense<0.000000e+00> : vector<16x8xf32>
    %985 = tpu.matmul %982, %984, %cst_753 {dimension_numbers = #tpu.dot_dimension_numbers<[1], [0], [0], [1], [0, 0, 1, 1], [], []>} : vector<16x4xbf16>, vector<4x8xbf16>, vector<16x8xf32> -> vector<16x8xf32>
    %986 = arith.addf %981, %985 : vector<16x8xf32>
    %987 = vector.extract_strided_slice %944 {offsets = [2, 0], sizes = [16, 4], strides = [1, 1]} : vector<18x4xbf16> to vector<16x4xbf16>
    %c5_754 = arith.constant 5 : index
    %c0_755 = arith.constant 0 : index
    %c0_756 = arith.constant 0 : index
    %988 = vector.load %arg4[%c5_754, %c0_755, %c0_756] : memref<16x4x8xbf16, #tpu.memory_space<vmem>>, vector<1x4x8xbf16>
    %989 = vector.shape_cast %988 : vector<1x4x8xbf16> to vector<4x8xbf16>
    %cst_757 = arith.constant dense<0.000000e+00> : vector<16x8xf32>
    %990 = tpu.matmul %987, %989, %cst_757 {dimension_numbers = #tpu.dot_dimension_numbers<[1], [0], [0], [1], [0, 0, 1, 1], [], []>} : vector<16x4xbf16>, vector<4x8xbf16>, vector<16x8xf32> -> vector<16x8xf32>
    %991 = arith.addf %986, %990 : vector<16x8xf32>
    %992 = vector.extract_strided_slice %946 {offsets = [1, 0], sizes = [16, 4], strides = [1, 1]} : vector<18x4xbf16> to vector<16x4xbf16>
    %c6_758 = arith.constant 6 : index
    %c0_759 = arith.constant 0 : index
    %c0_760 = arith.constant 0 : index
    %993 = vector.load %arg4[%c6_758, %c0_759, %c0_760] : memref<16x4x8xbf16, #tpu.memory_space<vmem>>, vector<1x4x8xbf16>
    %994 = vector.shape_cast %993 : vector<1x4x8xbf16> to vector<4x8xbf16>
    %cst_761 = arith.constant dense<0.000000e+00> : vector<16x8xf32>
    %995 = tpu.matmul %992, %994, %cst_761 {dimension_numbers = #tpu.dot_dimension_numbers<[1], [0], [0], [1], [0, 0, 1, 1], [], []>} : vector<16x4xbf16>, vector<4x8xbf16>, vector<16x8xf32> -> vector<16x8xf32>
    %996 = arith.addf %991, %995 : vector<16x8xf32>
    %997 = vector.extract_strided_slice %946 {offsets = [2, 0], sizes = [16, 4], strides = [1, 1]} : vector<18x4xbf16> to vector<16x4xbf16>
    %c7_762 = arith.constant 7 : index
    %c0_763 = arith.constant 0 : index
    %c0_764 = arith.constant 0 : index
    %998 = vector.load %arg4[%c7_762, %c0_763, %c0_764] : memref<16x4x8xbf16, #tpu.memory_space<vmem>>, vector<1x4x8xbf16>
    %999 = vector.shape_cast %998 : vector<1x4x8xbf16> to vector<4x8xbf16>
    %cst_765 = arith.constant dense<0.000000e+00> : vector<16x8xf32>
    %1000 = tpu.matmul %997, %999, %cst_765 {dimension_numbers = #tpu.dot_dimension_numbers<[1], [0], [0], [1], [0, 0, 1, 1], [], []>} : vector<16x4xbf16>, vector<4x8xbf16>, vector<16x8xf32> -> vector<16x8xf32>
    %1001 = arith.addf %996, %1000 : vector<16x8xf32>
    %1002 = arith.truncf %1001 : vector<16x8xf32> to vector<16x8xbf16>
    %c0_766 = arith.constant 0 : index
    %c7_767 = arith.constant 7 : index
    %c16_768 = arith.constant 16 : index
    %c0_769 = arith.constant 0 : index
    %1003 = vector.load %arg5[%c0_766, %c7_767, %c16_768, %c0_769] : memref<1x8x64x8xbf16, #tpu.memory_space<vmem>>, vector<1x1x16x8xbf16>
    %1004 = vector.shape_cast %1003 : vector<1x1x16x8xbf16> to vector<16x8xbf16>
    %1005 = vector.shape_cast %1002 : vector<16x8xbf16> to vector<1x1x16x8xbf16>
    tpu.vector_store %arg5[%c0_766, %c7_767, %c16_768, %c0_769], %1005 {strides = array<i32>} : memref<1x8x64x8xbf16, #tpu.memory_space<vmem>>, vector<1x1x16x8xbf16>,
    %cst_770 = arith.constant dense<0.000000e+00> : vector<8xf32>
    %1006 = vector.multi_reduction <add>, %1001, %cst_770 [0] : vector<16x8xf32> to vector<8xf32>
    %1007 = vector.shape_cast %1006 : vector<8xf32> to vector<1x8xf32>
    %1008 = arith.addf %976, %1007 : vector<1x8xf32>
    %1009 = arith.mulf %1001, %1001 : vector<16x8xf32>
    %cst_771 = arith.constant dense<0.000000e+00> : vector<8xf32>
    %1010 = vector.multi_reduction <add>, %1009, %cst_771 [0] : vector<16x8xf32> to vector<8xf32>
    %1011 = vector.shape_cast %1010 : vector<8xf32> to vector<1x8xf32>
    %1012 = arith.addf %980, %1011 : vector<1x8xf32>
    %cst_772 = arith.constant 0.000000e+00 : f32
    %1013 = vector.broadcast %cst_772 : f32 to vector<16x8xf32>
    %1014 = vector.extract_strided_slice %946 {offsets = [0, 0], sizes = [16, 4], strides = [1, 1]} : vector<18x4xbf16> to vector<16x4xbf16>
    %c8_773 = arith.constant 8 : index
    %c0_774 = arith.constant 0 : index
    %c0_775 = arith.constant 0 : index
    %1015 = vector.load %arg4[%c8_773, %c0_774, %c0_775] : memref<16x4x8xbf16, #tpu.memory_space<vmem>>, vector<1x4x8xbf16>
    %1016 = vector.shape_cast %1015 : vector<1x4x8xbf16> to vector<4x8xbf16>
    %cst_776 = arith.constant dense<0.000000e+00> : vector<16x8xf32>
    %1017 = tpu.matmul %1014, %1016, %cst_776 {dimension_numbers = #tpu.dot_dimension_numbers<[1], [0], [0], [1], [0, 0, 1, 1], [], []>} : vector<16x4xbf16>, vector<4x8xbf16>, vector<16x8xf32> -> vector<16x8xf32>
    %1018 = arith.addf %1013, %1017 : vector<16x8xf32>
    %1019 = vector.extract_strided_slice %946 {offsets = [1, 0], sizes = [16, 4], strides = [1, 1]} : vector<18x4xbf16> to vector<16x4xbf16>
    %c9_777 = arith.constant 9 : index
    %c0_778 = arith.constant 0 : index
    %c0_779 = arith.constant 0 : index
    %1020 = vector.load %arg4[%c9_777, %c0_778, %c0_779] : memref<16x4x8xbf16, #tpu.memory_space<vmem>>, vector<1x4x8xbf16>
    %1021 = vector.shape_cast %1020 : vector<1x4x8xbf16> to vector<4x8xbf16>
    %cst_780 = arith.constant dense<0.000000e+00> : vector<16x8xf32>
    %1022 = tpu.matmul %1019, %1021, %cst_780 {dimension_numbers = #tpu.dot_dimension_numbers<[1], [0], [0], [1], [0, 0, 1, 1], [], []>} : vector<16x4xbf16>, vector<4x8xbf16>, vector<16x8xf32> -> vector<16x8xf32>
    %1023 = arith.addf %1018, %1022 : vector<16x8xf32>
    %1024 = vector.extract_strided_slice %948 {offsets = [0, 0], sizes = [16, 4], strides = [1, 1]} : vector<18x4xbf16> to vector<16x4xbf16>
    %c10_781 = arith.constant 10 : index
    %c0_782 = arith.constant 0 : index
    %c0_783 = arith.constant 0 : index
    %1025 = vector.load %arg4[%c10_781, %c0_782, %c0_783] : memref<16x4x8xbf16, #tpu.memory_space<vmem>>, vector<1x4x8xbf16>
    %1026 = vector.shape_cast %1025 : vector<1x4x8xbf16> to vector<4x8xbf16>
    %cst_784 = arith.constant dense<0.000000e+00> : vector<16x8xf32>
    %1027 = tpu.matmul %1024, %1026, %cst_784 {dimension_numbers = #tpu.dot_dimension_numbers<[1], [0], [0], [1], [0, 0, 1, 1], [], []>} : vector<16x4xbf16>, vector<4x8xbf16>, vector<16x8xf32> -> vector<16x8xf32>
    %1028 = arith.addf %1023, %1027 : vector<16x8xf32>
    %1029 = vector.extract_strided_slice %948 {offsets = [1, 0], sizes = [16, 4], strides = [1, 1]} : vector<18x4xbf16> to vector<16x4xbf16>
    %c11_785 = arith.constant 11 : index
    %c0_786 = arith.constant 0 : index
    %c0_787 = arith.constant 0 : index
    %1030 = vector.load %arg4[%c11_785, %c0_786, %c0_787] : memref<16x4x8xbf16, #tpu.memory_space<vmem>>, vector<1x4x8xbf16>
    %1031 = vector.shape_cast %1030 : vector<1x4x8xbf16> to vector<4x8xbf16>
    %cst_788 = arith.constant dense<0.000000e+00> : vector<16x8xf32>
    %1032 = tpu.matmul %1029, %1031, %cst_788 {dimension_numbers = #tpu.dot_dimension_numbers<[1], [0], [0], [1], [0, 0, 1, 1], [], []>} : vector<16x4xbf16>, vector<4x8xbf16>, vector<16x8xf32> -> vector<16x8xf32>
    %1033 = arith.addf %1028, %1032 : vector<16x8xf32>
    %1034 = arith.truncf %1033 : vector<16x8xf32> to vector<16x8xbf16>
    %c0_789 = arith.constant 0 : index
    %c7_790 = arith.constant 7 : index
    %c32_791 = arith.constant 32 : index
    %c0_792 = arith.constant 0 : index
    %1035 = vector.load %arg5[%c0_789, %c7_790, %c32_791, %c0_792] : memref<1x8x64x8xbf16, #tpu.memory_space<vmem>>, vector<1x1x16x8xbf16>
    %1036 = vector.shape_cast %1035 : vector<1x1x16x8xbf16> to vector<16x8xbf16>
    %1037 = vector.shape_cast %1034 : vector<16x8xbf16> to vector<1x1x16x8xbf16>
    tpu.vector_store %arg5[%c0_789, %c7_790, %c32_791, %c0_792], %1037 {strides = array<i32>} : memref<1x8x64x8xbf16, #tpu.memory_space<vmem>>, vector<1x1x16x8xbf16>,
    %cst_793 = arith.constant dense<0.000000e+00> : vector<8xf32>
    %1038 = vector.multi_reduction <add>, %1033, %cst_793 [0] : vector<16x8xf32> to vector<8xf32>
    %1039 = vector.shape_cast %1038 : vector<8xf32> to vector<1x8xf32>
    %1040 = arith.addf %1008, %1039 : vector<1x8xf32>
    %1041 = arith.mulf %1033, %1033 : vector<16x8xf32>
    %cst_794 = arith.constant dense<0.000000e+00> : vector<8xf32>
    %1042 = vector.multi_reduction <add>, %1041, %cst_794 [0] : vector<16x8xf32> to vector<8xf32>
    %1043 = vector.shape_cast %1042 : vector<8xf32> to vector<1x8xf32>
    %1044 = arith.addf %1012, %1043 : vector<1x8xf32>
    %cst_795 = arith.constant 0.000000e+00 : f32
    %1045 = vector.broadcast %cst_795 : f32 to vector<16x8xf32>
    %1046 = vector.extract_strided_slice %946 {offsets = [1, 0], sizes = [16, 4], strides = [1, 1]} : vector<18x4xbf16> to vector<16x4xbf16>
    %c12_796 = arith.constant 12 : index
    %c0_797 = arith.constant 0 : index
    %c0_798 = arith.constant 0 : index
    %1047 = vector.load %arg4[%c12_796, %c0_797, %c0_798] : memref<16x4x8xbf16, #tpu.memory_space<vmem>>, vector<1x4x8xbf16>
    %1048 = vector.shape_cast %1047 : vector<1x4x8xbf16> to vector<4x8xbf16>
    %cst_799 = arith.constant dense<0.000000e+00> : vector<16x8xf32>
    %1049 = tpu.matmul %1046, %1048, %cst_799 {dimension_numbers = #tpu.dot_dimension_numbers<[1], [0], [0], [1], [0, 0, 1, 1], [], []>} : vector<16x4xbf16>, vector<4x8xbf16>, vector<16x8xf32> -> vector<16x8xf32>
    %1050 = arith.addf %1045, %1049 : vector<16x8xf32>
    %1051 = vector.extract_strided_slice %946 {offsets = [2, 0], sizes = [16, 4], strides = [1, 1]} : vector<18x4xbf16> to vector<16x4xbf16>
    %c13_800 = arith.constant 13 : index
    %c0_801 = arith.constant 0 : index
    %c0_802 = arith.constant 0 : index
    %1052 = vector.load %arg4[%c13_800, %c0_801, %c0_802] : memref<16x4x8xbf16, #tpu.memory_space<vmem>>, vector<1x4x8xbf16>
    %1053 = vector.shape_cast %1052 : vector<1x4x8xbf16> to vector<4x8xbf16>
    %cst_803 = arith.constant dense<0.000000e+00> : vector<16x8xf32>
    %1054 = tpu.matmul %1051, %1053, %cst_803 {dimension_numbers = #tpu.dot_dimension_numbers<[1], [0], [0], [1], [0, 0, 1, 1], [], []>} : vector<16x4xbf16>, vector<4x8xbf16>, vector<16x8xf32> -> vector<16x8xf32>
    %1055 = arith.addf %1050, %1054 : vector<16x8xf32>
    %1056 = vector.extract_strided_slice %948 {offsets = [1, 0], sizes = [16, 4], strides = [1, 1]} : vector<18x4xbf16> to vector<16x4xbf16>
    %c14_804 = arith.constant 14 : index
    %c0_805 = arith.constant 0 : index
    %c0_806 = arith.constant 0 : index
    %1057 = vector.load %arg4[%c14_804, %c0_805, %c0_806] : memref<16x4x8xbf16, #tpu.memory_space<vmem>>, vector<1x4x8xbf16>
    %1058 = vector.shape_cast %1057 : vector<1x4x8xbf16> to vector<4x8xbf16>
    %cst_807 = arith.constant dense<0.000000e+00> : vector<16x8xf32>
    %1059 = tpu.matmul %1056, %1058, %cst_807 {dimension_numbers = #tpu.dot_dimension_numbers<[1], [0], [0], [1], [0, 0, 1, 1], [], []>} : vector<16x4xbf16>, vector<4x8xbf16>, vector<16x8xf32> -> vector<16x8xf32>
    %1060 = arith.addf %1055, %1059 : vector<16x8xf32>
    %1061 = vector.extract_strided_slice %948 {offsets = [2, 0], sizes = [16, 4], strides = [1, 1]} : vector<18x4xbf16> to vector<16x4xbf16>
    %c15_808 = arith.constant 15 : index
    %c0_809 = arith.constant 0 : index
    %c0_810 = arith.constant 0 : index
    %1062 = vector.load %arg4[%c15_808, %c0_809, %c0_810] : memref<16x4x8xbf16, #tpu.memory_space<vmem>>, vector<1x4x8xbf16>
    %1063 = vector.shape_cast %1062 : vector<1x4x8xbf16> to vector<4x8xbf16>
    %cst_811 = arith.constant dense<0.000000e+00> : vector<16x8xf32>
    %1064 = tpu.matmul %1061, %1063, %cst_811 {dimension_numbers = #tpu.dot_dimension_numbers<[1], [0], [0], [1], [0, 0, 1, 1], [], []>} : vector<16x4xbf16>, vector<4x8xbf16>, vector<16x8xf32> -> vector<16x8xf32>
    %1065 = arith.addf %1060, %1064 : vector<16x8xf32>
    %1066 = arith.truncf %1065 : vector<16x8xf32> to vector<16x8xbf16>
    %c0_812 = arith.constant 0 : index
    %c7_813 = arith.constant 7 : index
    %c48_814 = arith.constant 48 : index
    %c0_815 = arith.constant 0 : index
    %1067 = vector.load %arg5[%c0_812, %c7_813, %c48_814, %c0_815] : memref<1x8x64x8xbf16, #tpu.memory_space<vmem>>, vector<1x1x16x8xbf16>
    %1068 = vector.shape_cast %1067 : vector<1x1x16x8xbf16> to vector<16x8xbf16>
    %1069 = vector.shape_cast %1066 : vector<16x8xbf16> to vector<1x1x16x8xbf16>
    tpu.vector_store %arg5[%c0_812, %c7_813, %c48_814, %c0_815], %1069 {strides = array<i32>} : memref<1x8x64x8xbf16, #tpu.memory_space<vmem>>, vector<1x1x16x8xbf16>,
    %cst_816 = arith.constant dense<0.000000e+00> : vector<8xf32>
    %1070 = vector.multi_reduction <add>, %1065, %cst_816 [0] : vector<16x8xf32> to vector<8xf32>
    %1071 = vector.shape_cast %1070 : vector<8xf32> to vector<1x8xf32>
    %1072 = arith.addf %1040, %1071 : vector<1x8xf32>
    %1073 = arith.mulf %1065, %1065 : vector<16x8xf32>
    %cst_817 = arith.constant dense<0.000000e+00> : vector<8xf32>
    %1074 = vector.multi_reduction <add>, %1073, %cst_817 [0] : vector<16x8xf32> to vector<8xf32>
    %1075 = vector.shape_cast %1074 : vector<8xf32> to vector<1x8xf32>
    %1076 = arith.addf %1044, %1075 : vector<1x8xf32>
    %c0_818 = arith.constant 0 : index
    %c0_819 = arith.constant 0 : index
    %c0_820 = arith.constant 0 : index
    %1077 = vector.load %arg6[%c0_818, %c0_819, %c0_820] : memref<1x2x8xf32, #tpu.memory_space<vmem>>, vector<1x1x8xf32>
    %1078 = vector.shape_cast %1077 : vector<1x1x8xf32> to vector<1x8xf32>
    %1079 = arith.addf %1078, %1072 : vector<1x8xf32>
    %c0_821 = arith.constant 0 : index
    %c0_822 = arith.constant 0 : index
    %c0_823 = arith.constant 0 : index
    %1080 = vector.load %arg6[%c0_821, %c0_822, %c0_823] : memref<1x2x8xf32, #tpu.memory_space<vmem>>, vector<1x1x8xf32>
    %1081 = vector.shape_cast %1080 : vector<1x1x8xf32> to vector<1x8xf32>
    %1082 = vector.shape_cast %1079 : vector<1x8xf32> to vector<1x1x8xf32>
    tpu.vector_store %arg6[%c0_821, %c0_822, %c0_823], %1082 {strides = array<i32>} : memref<1x2x8xf32, #tpu.memory_space<vmem>>, vector<1x1x8xf32>,
    %c0_824 = arith.constant 0 : index
    %c1_825 = arith.constant 1 : index
    %c0_826 = arith.constant 0 : index
    %1083 = vector.load %arg6[%c0_824, %c1_825, %c0_826] : memref<1x2x8xf32, #tpu.memory_space<vmem>>, vector<1x1x8xf32>
    %1084 = vector.shape_cast %1083 : vector<1x1x8xf32> to vector<1x8xf32>
    %1085 = arith.addf %1084, %1076 : vector<1x8xf32>
    %c0_827 = arith.constant 0 : index
    %c1_828 = arith.constant 1 : index
    %c0_829 = arith.constant 0 : index
    %1086 = vector.load %arg6[%c0_827, %c1_828, %c0_829] : memref<1x2x8xf32, #tpu.memory_space<vmem>>, vector<1x1x8xf32>
    %1087 = vector.shape_cast %1086 : vector<1x1x8xf32> to vector<1x8xf32>
    %1088 = vector.shape_cast %1085 : vector<1x8xf32> to vector<1x1x8xf32>
    tpu.vector_store %arg6[%c0_827, %c1_828, %c0_829], %1088 {strides = array<i32>} : memref<1x2x8xf32, #tpu.memory_space<vmem>>, vector<1x1x8xf32>,
    return
  }
  func.func @transform_0(%arg0: i32, %arg1: i32) -> (i32, i32, i32, i32) {
    %c0_i32 = arith.constant 0 : i32
    %c0_i32_0 = arith.constant 0 : i32
    %c0_i32_1 = arith.constant 0 : i32
    return %arg0, %arg1, %c0_i32, %c0_i32_0 : i32, i32, i32, i32
  }
  func.func @transform_1(%arg0: i32, %arg1: i32) -> (i32, i32, i32, i32, i32) {
    %c0_i32 = arith.constant 0 : i32
    %c0_i32_0 = arith.constant 0 : i32
    %c0_i32_1 = arith.constant 0 : i32
    %c0_i32_2 = arith.constant 0 : i32
    return %arg0, %arg1, %c0_i32, %c0_i32_0, %c0_i32_1 : i32, i32, i32, i32, i32
  }
  func.func @transform_2(%arg0: i32, %arg1: i32) -> (i32, i32, i32) {
    %c0_i32 = arith.constant 0 : i32
    %c0_i32_0 = arith.constant 0 : i32
    %c0_i32_1 = arith.constant 0 : i32
    %c0_i32_2 = arith.constant 0 : i32
    return %c0_i32, %c0_i32_0, %c0_i32_1 : i32, i32, i32
  }
  func.func @transform_3(%arg0: i32, %arg1: i32) -> (i32, i32, i32, i32) {
    %c0_i32 = arith.constant 0 : i32
    %c0_i32_0 = arith.constant 0 : i32
    %c0_i32_1 = arith.constant 0 : i32
    return %arg0, %arg1, %c0_i32, %c0_i32_0 : i32, i32, i32, i32
  }
  func.func @transform_4(%arg0: i32, %arg1: i32) -> (i32, i32, i32) {
    %c0_i32 = arith.constant 0 : i32
    %c0_i32_0 = arith.constant 0 : i32
    %c0_i32_1 = arith.constant 0 : i32
    return %arg0, %c0_i32, %c0_i32_0 : i32, i32, i32
  }
}

</mosaic_0001>

<bundles_post_ra>
// kernel: unet_up_pix.3
= control target key start
LH: loop header
LB: loop body
LE: loop exit
PB: predicated region body
PF: predicated region fallthrough
CT: control target
= control target key end

     0   :  { %s1498_s9 = smov 0   ;;  %s1500_s10 = smov 0   ;;  %s2439_s0 = inlined_call_operand.vmem [shape: f32[2,2,8], index: 0, kind: input, shape index: {}]   ;;  %s2440_s1 = inlined_call_operand.vmem [shape: bf16[2,16,64,8], index: 1, kind: input, shape index: {}]   ;;  %s2441_s2 = inlined_call_operand.vmem [shape: f32[2,16,64,8], index: 2, kind: output, shape index: {}]  }
   0x1   :  { %s1502_s11 = smov 0  }
   0x2 LB: > { %s24_s12 = sadd.s32 1, %s1477_s10  ;;  %p1104_p0 = scmp.ge.s32.totalorder %s1481_s11, 1  ;;  %s1481_s11 = sphi %s1502_s11, %s12_s11   ;;  %s1477_s10 = sphi %s1500_s10, %s2502_s10   ;;  %s1473_s9 = sphi %s1498_s9, %s2501_s9  }
   0x3   : > { %p26_p1 = scmp.ge.s32.totalorder %s24_s12, 2  ;;  %p143_p2 = scmp.lt.s32.totalorder %s1481_s11, 3 }
   0x5   : > { %s2504_s12 = smov (%p26_p1, %s24_s12), 0  ;;  %p144_p3 = pnand %p1104_p0, %p143_p2 }
   0x6   : > { %p179_p4 = scmp.lt.s32.totalorder (!%p144_p3), %s1473_s9, 1  ;;  %v471_v0 = vlaneseq (!%p144_p3)  ;;  %vm863_vm0 = vcmask (!%p144_p3), 64512  }
   0x7   : > { %147 = sbr.rel (%p144_p3) target bundleno = 167 (0xa7), region = 28 }
   0x8   : > { %v1518_v1 = vshrl.u32 (!%p144_p3), %v471_v0, 7 }
   0xa   : > { %v473_v5 = vsub.s32 (!%p144_p3), 0, %v1518_v1 }
   0xe   : > { %s2506_s9 = smov (!%p179_p4, %s1473_s9), 1 }
   0xf   : > { %s1105_s13 = sshll.u32 %s2506_s9, 1  ;;  %s1112_s14 = sshll.u32 %s2506_s9, 9 }
  0x10   : > { %s182_s17 = scalar_lea.vmem %s2439_s0, %s1105_s13  ;;  %s1528_s20 = scalar_lea.vmem %s2440_s1, %s1112_s14 }
  0x11   : > { %v205_v2 = vld [vmem:[%s182_s17] sm:$0x1]  ;;  %v207_v3 = vld [vmem:[%s182_s17 + $0x1] sm:$0x1]  ;;  %v1539_v10 = vld [vmem:[%s1528_s20 + $0x8] sm:$0xff]   ;;  %s1113_s21 = sshll.u32 %s2506_s9, 10 }
  0x12   : > { %v1531_v4 = vld [vmem:[%s1528_s20] sm:$0xff]   ;;  %v1534_v6 = vmul.f32 0.0009765625, %v205_v2  ;;  %v208_v7 = vmul.f32 0.0009765625, %v207_v3  ;;  %v1542_v11 = vld [vmem:[%s1528_s20 + $0x10] sm:$0xff]   ;;  %v1545_v12 = vld [vmem:[%s1528_s20 + $0x18] sm:$0xff]   ;;  %v1120_v13 = vunpack.c.l.bf16 %v1539_v10  ;;  %v1121_v14 = vunpack.c.h.bf16 %v1539_v10  ;;  %s1766_s24 = scalar_lea.vmem %s2441_s2, %s1113_s21 }
  0x13   : > { %v1116_v8 = vunpack.c.l.bf16 %v1531_v4  ;;  %v1117_v9 = vunpack.c.h.bf16 %v1531_v4  ;;  %v1124_v15 = vunpack.c.l.bf16 %v1542_v11  ;;  %v1125_v16 = vunpack.c.h.bf16 %v1542_v11  ;;  %v1552_v17 = vld [vmem:[%s1528_s20 + $0x20] sm:$0xff]   ;;  %v1555_v18 = vld [vmem:[%s1528_s20 + $0x28] sm:$0xff]   ;;  %v1558_v19 = vld [vmem:[%s1528_s20 + $0x30] sm:$0xff]  }
  0x14   : > { %v209_v20 = vmul.f32 %v1534_v6, %v1534_v6  ;;  %v213_v21 = vsub.f32 0.0, %v1534_v6  ;;  %v1128_v22 = vunpack.c.l.bf16 %v1545_v12  ;;  %v1129_v23 = vunpack.c.h.bf16 %v1545_v12  ;;  %v1566_v24 = vld [vmem:[%s1528_s20 + $0x38] sm:$0xff]   ;;  %v1569_v25 = vld [vmem:[%s1528_s20 + $0x40] sm:$0xff]   ;;  %v1572_v26 = vld [vmem:[%s1528_s20 + $0x48] sm:$0xff]  }
  0x15   : > { %v1132_v27 = vunpack.c.l.bf16 %v1552_v17  ;;  %v1133_v28 = vunpack.c.h.bf16 %v1552_v17  ;;  %v1136_v29 = vunpack.c.l.bf16 %v1555_v18  ;;  %v1137_v30 = vunpack.c.h.bf16 %v1555_v18  ;;  %v1579_v31 = vld [vmem:[%s1528_s20 + $0x50] sm:$0xff]   ;;  %v1585_v36 = vld [vmem:[%s1528_s20 + $0x58] sm:$0xff]   ;;  %v1588_v37 = vld [vmem:[%s1528_s20 + $0x60] sm:$0xff]  }
  0x16   : > { %v210_v32 = vsub.f32 %v208_v7, %v209_v20  ;;  %v1595_v42 = vld [vmem:[%s1528_s20 + $0x68] sm:$0xff]   ;;  %v1598_v43 = vld [vmem:[%s1528_s20 + $0x70] sm:$0xff]   ;;  %v1604_v48 = vld [vmem:[%s1528_s20 + $0x78] sm:$0xff]   ;;  %v2442_v17 = vunpack.c.l.bf16 %v1558_v19 }
  0x17   : > { %v1607_v49 = vld [vmem:[%s1528_s20 + $0x80] sm:$0xff]   ;;  %v1614_v54 = vld [vmem:[%s1528_s20 + $0x88] sm:$0xff]   ;;  %v1617_v55 = vld [vmem:[%s1528_s20 + $0x90] sm:$0xff]  }
  0x18   : > { %v211_v44 = vadd.f32 1e-05, %v210_v32  ;;  %v1623_v59 = vld [vmem:[%s1528_s20 + $0x98] sm:$0xff]   ;;  %v1626_v60 = vld [vmem:[%s1528_s20 + $0xa0] sm:$0xff]   ;;  %v1633_v2 = vld [vmem:[%s1528_s20 + $0xa8] sm:$0xff]  }
  0x19   : > { %v1636_v3 = vld [vmem:[%s1528_s20 + $0xb0] sm:$0xff]   ;;  %v1643_v62 = vld [vmem:[%s1528_s20 + $0xb8] sm:$0xff]   ;;  %v1646_v61 = vld [vmem:[%s1528_s20 + $0xc0] sm:$0xff]  }
  0x1a   : > { %1457 = vrsqrt.f32 %v211_v44  ;;  %v1653_v20 = vld [vmem:[%s1528_s20 + $0xc8] sm:$0xff]   ;;  %v1656_v57 = vld [vmem:[%s1528_s20 + $0xd0] sm:$0xff]   ;;  %v1663_v63 = vld [vmem:[%s1528_s20 + $0xd8] sm:$0xff]  }
  0x1b   : > { %v1666_v53 = vld [vmem:[%s1528_s20 + $0xe0] sm:$0xff]   ;;  %v1673_v32 = vld [vmem:[%s1528_s20 + $0xe8] sm:$0xff]   ;;  %v1676_v51 = vld [vmem:[%s1528_s20 + $0xf0] sm:$0xff]  }
  0x1c   : > { %v1683_v47 = vld [vmem:[%s1528_s20 + $0xf8] sm:$0xff]   ;;  %v1686_v7 = vld [vmem:[%s1528_s20 + $0x100] sm:$0xff]   ;;  %v1693_v0 = vld [vmem:[%s1528_s20 + $0x108] sm:$0xff]  }
  0x1d   : > { %v1696_v45 = vld [vmem:[%s1528_s20 + $0x110] sm:$0xff]   ;;  %v1703_v40 = vld [vmem:[%s1528_s20 + $0x118] sm:$0xff]   ;;  %v1710_v38 = vld [vmem:[%s1528_s20 + $0x120] sm:$0xff]  }
  0x1e   : > { %v1713_v58 = vld [vmem:[%s1528_s20 + $0x128] sm:$0xff]   ;;  %v1252_v52 = vunpack.c.l.bf16 %v1696_v45  ;;  %v1253_v56 = vunpack.c.h.bf16 %v1696_v45  ;;  %v1256_v34 = vunpack.c.l.bf16 %v1703_v40  ;;  %v1257_v33 = vunpack.c.h.bf16 %v1703_v40  ;;  %v1407_v40 = vld [vmem:[%s1528_s20 + $0x130] sm:$0xff]  }
  0x24   : > { %v1458_v50 = vpop.eup %1457 }
  0x25   : > { %v214_v46 = vmul.f32 %v1458_v50, %v213_v21  ;;  %v1723_v39 = vrot.slane %v1458_v50, %v473_v5 }
  0x27   : > { %v475_v6 = vmul.f32 %v1116_v8, %v1723_v39  ;;  %v1737_v21 = vrot.slane %v214_v46, %v473_v5  ;;  %v476_v50 = vmul.f32 %v1117_v9, %v1723_v39  ;;  %v477_v41 = vmul.f32 %v1120_v13, %v1723_v39 }
  0x28   : > { %v478_v35 = vmul.f32 %v1121_v14, %v1723_v39  ;;  %v479_v8 = vmul.f32 %v1124_v15, %v1723_v39  ;;  %v480_v1 = vmul.f32 %v1125_v16, %v1723_v39  ;;  %v481_v4 = vmul.f32 %v1128_v22, %v1723_v39 }
  0x29   : > { %v607_v5 = vadd.f32 %v1737_v21, %v475_v6  ;;  %v608_v9 = vadd.f32 %v1737_v21, %v476_v50  ;;  %v609_v13 = vadd.f32 %v1737_v21, %v477_v41  ;;  %v482_v10 = vmul.f32 %v1129_v23, %v1723_v39 }
  0x2a   : > { %v610_v11 = vadd.f32 %v1737_v21, %v478_v35  ;;  %v611_v14 = vadd.f32 %v1737_v21, %v479_v8  ;;  %v612_v15 = vadd.f32 %v1737_v21, %v480_v1  ;;  %v613_v16 = vadd.f32 %v1737_v21, %v481_v4 }
  0x2b   : > { %v735_v22 = vmax.f32 %v607_v5, 0.0  ;;  %v736_v12 = vmax.f32 %v608_v9, 0.0  ;;  %v737_v23 = vmax.f32 %v609_v13, 0.0  ;;  %v614_v41 = vadd.f32 %v1737_v21, %v482_v10 }
  0x2c   : > { %v738_v46 = vmax.f32 %v610_v11, 0.0  ;;  %v739_v6 = vmax.f32 %v611_v14, 0.0  ;;  %v740_v50 = vmax.f32 %v612_v15, 0.0  ;;  %v741_v44 = vmax.f32 %v613_v16, 0.0 }
  0x2d   : > { %864 = vst.msk [vmem:[%s1766_s24] sm:$0xff] %vm863_vm0, %v735_v22  ;;  %865 = vst.msk [vmem:[%s1766_s24 + $0x8] sm:$0xff] %vm863_vm0, %v736_v12  ;;  %v742_v35 = vmax.f32 %v614_v41, 0.0  ;;  %v483_v8 = vmul.f32 %v1132_v27, %v1723_v39  ;;  %v484_v1 = vmul.f32 %v1133_v28, %v1723_v39  ;;  %v485_v4 = vmul.f32 %v1136_v29, %v1723_v39 }
  0x2e   : > { %866 = vst.msk [vmem:[%s1766_s24 + $0x10] sm:$0xff] %vm863_vm0, %v737_v23  ;;  %867 = vst.msk [vmem:[%s1766_s24 + $0x18] sm:$0xff] %vm863_vm0, %v738_v46  ;;  %v486_v27 = vmul.f32 %v1137_v30, %v1723_v39  ;;  %v487_v28 = vmul.f32 %v2442_v17, %v1723_v39  ;;  %v2443_v5 = vunpack.c.h.bf16 %v1558_v19  ;;  %v2444_v9 = vunpack.c.l.bf16 %v1566_v24 }
  0x2f   : > { %868 = vst.msk [vmem:[%s1766_s24 + $0x20] sm:$0xff] %vm863_vm0, %v739_v6  ;;  %869 = vst.msk [vmem:[%s1766_s24 + $0x28] sm:$0xff] %vm863_vm0, %v740_v50  ;;  %v616_v18 = vadd.f32 %v1737_v21, %v484_v1  ;;  %v617_v30 = vadd.f32 %v1737_v21, %v485_v4  ;;  %v2445_v10 = vunpack.c.h.bf16 %v1566_v24  ;;  %v2447_v4 = vunpack.c.h.bf16 %v1569_v25 }
  0x30   : > { %870 = vst.msk [vmem:[%s1766_s24 + $0x30] sm:$0xff] %vm863_vm0, %v741_v44  ;;  %v488_v29 = vmul.f32 %v2443_v5, %v1723_v39  ;;  %v489_v13 = vmul.f32 %v2444_v9, %v1723_v39  ;;  %871 = vst.msk [vmem:[%s1766_s24 + $0x38] sm:$0xff] %vm863_vm0, %v742_v35  ;;  %v615_v44 = vadd.f32 %v1737_v21, %v483_v8  ;;  %v2446_v8 = vunpack.c.l.bf16 %v1569_v25 }
  0x31   : > { %v490_v19 = vmul.f32 %v2445_v10, %v1723_v39  ;;  %v618_v11 = vadd.f32 %v1737_v21, %v486_v27  ;;  %v619_v14 = vadd.f32 %v1737_v21, %v487_v28  ;;  %v744_v12 = vmax.f32 %v616_v18, 0.0 }
  0x32   : > { %v620_v15 = vadd.f32 %v1737_v21, %v488_v29  ;;  %v621_v16 = vadd.f32 %v1737_v21, %v489_v13  ;;  %v743_v22 = vmax.f32 %v615_v44, 0.0  ;;  %v745_v23 = vmax.f32 %v617_v30, 0.0 }
  0x33   : > { %v622_v41 = vadd.f32 %v1737_v21, %v490_v19  ;;  %v746_v24 = vmax.f32 %v618_v11, 0.0  ;;  %v747_v46 = vmax.f32 %v619_v14, 0.0  ;;  %873 = vst.msk [vmem:[%s1766_s24 + $0x48] sm:$0xff] %vm863_vm0, %v744_v12  ;;  %v491_v1 = vmul.f32 %v2446_v8, %v1723_v39 }
  0x34   : > { %v748_v6 = vmax.f32 %v620_v15, 0.0  ;;  %v749_v50 = vmax.f32 %v621_v16, 0.0  ;;  %872 = vst.msk [vmem:[%s1766_s24 + $0x40] sm:$0xff] %vm863_vm0, %v743_v22  ;;  %874 = vst.msk [vmem:[%s1766_s24 + $0x50] sm:$0xff] %vm863_vm0, %v745_v23  ;;  %v492_v27 = vmul.f32 %v2447_v4, %v1723_v39  ;;  %v2448_v17 = vunpack.c.l.bf16 %v1572_v26 }
  0x35   : > { %v750_v35 = vmax.f32 %v622_v41, 0.0  ;;  %875 = vst.msk [vmem:[%s1766_s24 + $0x58] sm:$0xff] %vm863_vm0, %v746_v24  ;;  %876 = vst.msk [vmem:[%s1766_s24 + $0x60] sm:$0xff] %vm863_vm0, %v747_v46  ;;  %v2449_v5 = vunpack.c.h.bf16 %v1572_v26  ;;  %v2450_v25 = vunpack.c.l.bf16 %v1579_v31  ;;  %v2451_v13 = vunpack.c.h.bf16 %v1579_v31 }
  0x36   : > { %v493_v28 = vmul.f32 %v2448_v17, %v1723_v39  ;;  %877 = vst.msk [vmem:[%s1766_s24 + $0x68] sm:$0xff] %vm863_vm0, %v748_v6  ;;  %878 = vst.msk [vmem:[%s1766_s24 + $0x70] sm:$0xff] %vm863_vm0, %v749_v50  ;;  %v2452_v18 = vunpack.c.l.bf16 %v1585_v36  ;;  %v623_v10 = vadd.f32 %v1737_v21, %v491_v1  ;;  %v624_v26 = vadd.f32 %v1737_v21, %v492_v27 }
  0x37   : > { %v494_v29 = vmul.f32 %v2449_v5, %v1723_v39  ;;  %v495_v9 = vmul.f32 %v2450_v25, %v1723_v39  ;;  %v496_v44 = vmul.f32 %v2451_v13, %v1723_v39  ;;  %879 = vst.msk [vmem:[%s1766_s24 + $0x78] sm:$0xff] %vm863_vm0, %v750_v35  ;;  %v2453_v11 = vunpack.c.h.bf16 %v1585_v36 }
  0x38   : > { %v497_v30 = vmul.f32 %v2452_v18, %v1723_v39  ;;  %v625_v19 = vadd.f32 %v1737_v21, %v493_v28  ;;  %v751_v12 = vmax.f32 %v623_v10, 0.0  ;;  %v752_v23 = vmax.f32 %v624_v26, 0.0 }
  0x39   : > { %v498_v31 = vmul.f32 %v2453_v11, %v1723_v39  ;;  %v626_v14 = vadd.f32 %v1737_v21, %v494_v29  ;;  %v627_v15 = vadd.f32 %v1737_v21, %v495_v9  ;;  %v628_v16 = vadd.f32 %v1737_v21, %v496_v44 }
  0x3a   : > { %v629_v22 = vadd.f32 %v1737_v21, %v497_v30  ;;  %v753_v41 = vmax.f32 %v625_v19, 0.0  ;;  %880 = vst.msk [vmem:[%s1766_s24 + $0x80] sm:$0xff] %vm863_vm0, %v751_v12  ;;  %881 = vst.msk [vmem:[%s1766_s24 + $0x88] sm:$0xff] %vm863_vm0, %v752_v23  ;;  %v2454_v8 = vunpack.c.l.bf16 %v1588_v37  ;;  %v2455_v4 = vunpack.c.h.bf16 %v1588_v37 }
  0x3b   : > { %v630_v24 = vadd.f32 %v1737_v21, %v498_v31  ;;  %v754_v36 = vmax.f32 %v626_v14, 0.0  ;;  %v755_v46 = vmax.f32 %v627_v15, 0.0  ;;  %v756_v6 = vmax.f32 %v628_v16, 0.0 }
  0x3c   : > { %v757_v50 = vmax.f32 %v629_v22, 0.0  ;;  %882 = vst.msk [vmem:[%s1766_s24 + $0x90] sm:$0xff] %vm863_vm0, %v753_v41  ;;  %v499_v1 = vmul.f32 %v2454_v8, %v1723_v39  ;;  %v500_v27 = vmul.f32 %v2455_v4, %v1723_v39  ;;  %v2456_v17 = vunpack.c.l.bf16 %v1595_v42 }
  0x3d   : > { %v758_v35 = vmax.f32 %v630_v24, 0.0  ;;  %883 = vst.msk [vmem:[%s1766_s24 + $0x98] sm:$0xff] %vm863_vm0, %v754_v36  ;;  %884 = vst.msk [vmem:[%s1766_s24 + $0xa0] sm:$0xff] %vm863_vm0, %v755_v46  ;;  %v2457_v5 = vunpack.c.h.bf16 %v1595_v42  ;;  %v2458_v37 = vunpack.c.l.bf16 %v1598_v43  ;;  %v2459_v9 = vunpack.c.h.bf16 %v1598_v43 }
  0x3e   : > { %v501_v28 = vmul.f32 %v2456_v17, %v1723_v39  ;;  %885 = vst.msk [vmem:[%s1766_s24 + $0xa8] sm:$0xff] %vm863_vm0, %v756_v6  ;;  %886 = vst.msk [vmem:[%s1766_s24 + $0xb0] sm:$0xff] %vm863_vm0, %v757_v50  ;;  %v2460_v44 = vunpack.c.l.bf16 %v1604_v48  ;;  %v631_v30 = vadd.f32 %v1737_v21, %v499_v1  ;;  %v632_v42 = vadd.f32 %v1737_v21, %v500_v27 }
  0x3f   : > { %v502_v29 = vmul.f32 %v2457_v5, %v1723_v39  ;;  %v503_v25 = vmul.f32 %v2458_v37, %v1723_v39  ;;  %v504_v13 = vmul.f32 %v2459_v9, %v1723_v39  ;;  %887 = vst.msk [vmem:[%s1766_s24 + $0xb8] sm:$0xff] %vm863_vm0, %v758_v35  ;;  %v2461_v26 = vunpack.c.h.bf16 %v1604_v48 }
  0x40   : > { %v505_v18 = vmul.f32 %v2460_v44, %v1723_v39  ;;  %v633_v10 = vadd.f32 %v1737_v21, %v501_v28  ;;  %v759_v15 = vmax.f32 %v631_v30, 0.0  ;;  %v760_v16 = vmax.f32 %v632_v42, 0.0 }
  0x41   : > { %v506_v43 = vmul.f32 %v2461_v26, %v1723_v39  ;;  %v634_v19 = vadd.f32 %v1737_v21, %v502_v29  ;;  %v635_v11 = vadd.f32 %v1737_v21, %v503_v25  ;;  %v636_v31 = vadd.f32 %v1737_v21, %v504_v13 }
  0x42   : > { %v637_v14 = vadd.f32 %v1737_v21, %v505_v18  ;;  %v761_v22 = vmax.f32 %v633_v10, 0.0  ;;  %888 = vst.msk [vmem:[%s1766_s24 + $0xc0] sm:$0xff] %vm863_vm0, %v759_v15  ;;  %889 = vst.msk [vmem:[%s1766_s24 + $0xc8] sm:$0xff] %vm863_vm0, %v760_v16  ;;  %v2462_v46 = vunpack.c.l.bf16 %v1607_v49  ;;  %v2463_v50 = vunpack.c.h.bf16 %v1607_v49 }
  0x43   : > { %v638_v12 = vadd.f32 %v1737_v21, %v506_v43  ;;  %v762_v48 = vmax.f32 %v634_v19, 0.0  ;;  %v763_v23 = vmax.f32 %v635_v11, 0.0  ;;  %v764_v41 = vmax.f32 %v636_v31, 0.0 }
  0x44   : > { %v765_v24 = vmax.f32 %v637_v14, 0.0  ;;  %890 = vst.msk [vmem:[%s1766_s24 + $0xd0] sm:$0xff] %vm863_vm0, %v761_v22  ;;  %v507_v6 = vmul.f32 %v2462_v46, %v1723_v39  ;;  %v508_v35 = vmul.f32 %v2463_v50, %v1723_v39  ;;  %v2464_v8 = vunpack.c.l.bf16 %v1614_v54 }
  0x45   : > { %v766_v36 = vmax.f32 %v638_v12, 0.0  ;;  %891 = vst.msk [vmem:[%s1766_s24 + $0xd8] sm:$0xff] %vm863_vm0, %v762_v48  ;;  %892 = vst.msk [vmem:[%s1766_s24 + $0xe0] sm:$0xff] %vm863_vm0, %v763_v23  ;;  %v2465_v4 = vunpack.c.h.bf16 %v1614_v54  ;;  %v2466_v49 = vunpack.c.l.bf16 %v1617_v55  ;;  %v2467_v28 = vunpack.c.h.bf16 %v1617_v55 }
  0x46   : > { %v509_v1 = vmul.f32 %v2464_v8, %v1723_v39  ;;  %893 = vst.msk [vmem:[%s1766_s24 + $0xe8] sm:$0xff] %vm863_vm0, %v764_v41  ;;  %894 = vst.msk [vmem:[%s1766_s24 + $0xf0] sm:$0xff] %vm863_vm0, %v765_v24  ;;  %v2468_v29 = vunpack.c.l.bf16 %v1623_v59  ;;  %v639_v25 = vadd.f32 %v1737_v21, %v507_v6  ;;  %v640_v54 = vadd.f32 %v1737_v21, %v508_v35 }
  0x47   : > { %v510_v27 = vmul.f32 %v2465_v4, %v1723_v39  ;;  %v511_v17 = vmul.f32 %v2466_v49, %v1723_v39  ;;  %v512_v5 = vmul.f32 %v2467_v28, %v1723_v39  ;;  %895 = vst.msk [vmem:[%s1766_s24 + $0xf8] sm:$0xff] %vm863_vm0, %v766_v36  ;;  %v2469_v13 = vunpack.c.h.bf16 %v1623_v59 }
  0x48   : > { %v513_v37 = vmul.f32 %v2468_v29, %v1723_v39  ;;  %v641_v9 = vadd.f32 %v1737_v21, %v509_v1  ;;  %v767_v10 = vmax.f32 %v639_v25, 0.0  ;;  %v768_v26 = vmax.f32 %v640_v54, 0.0 }
  0x49   : > { %v514_v55 = vmul.f32 %v2469_v13, %v1723_v39  ;;  %v642_v44 = vadd.f32 %v1737_v21, %v510_v27  ;;  %v643_v18 = vadd.f32 %v1737_v21, %v511_v17  ;;  %v644_v30 = vadd.f32 %v1737_v21, %v512_v5 }
  0x4a   : > { %v645_v42 = vadd.f32 %v1737_v21, %v513_v37  ;;  %v769_v43 = vmax.f32 %v641_v9, 0.0  ;;  %896 = vst.msk [vmem:[%s1766_s24 + $0x100] sm:$0xff] %vm863_vm0, %v767_v10  ;;  %897 = vst.msk [vmem:[%s1766_s24 + $0x108] sm:$0xff] %vm863_vm0, %v768_v26  ;;  %v2470_v16 = vunpack.c.l.bf16 %v1626_v60  ;;  %v2471_v12 = vunpack.c.h.bf16 %v1626_v60 }
  0x4b   : > { %v646_v19 = vadd.f32 %v1737_v21, %v514_v55  ;;  %v770_v59 = vmax.f32 %v642_v44, 0.0  ;;  %v771_v11 = vmax.f32 %v643_v18, 0.0  ;;  %v772_v31 = vmax.f32 %v644_v30, 0.0 }
  0x4c   : > { %v773_v14 = vmax.f32 %v645_v42, 0.0  ;;  %898 = vst.msk [vmem:[%s1766_s24 + $0x110] sm:$0xff] %vm863_vm0, %v769_v43  ;;  %v515_v22 = vmul.f32 %v2470_v16, %v1723_v39  ;;  %v516_v48 = vmul.f32 %v2471_v12, %v1723_v39  ;;  %v2472_v23 = vunpack.c.l.bf16 %v1633_v2 }
  0x4d   : > { %v774_v15 = vmax.f32 %v646_v19, 0.0  ;;  %899 = vst.msk [vmem:[%s1766_s24 + $0x118] sm:$0xff] %vm863_vm0, %v770_v59  ;;  %900 = vst.msk [vmem:[%s1766_s24 + $0x120] sm:$0xff] %vm863_vm0, %v771_v11  ;;  %v2473_v24 = vunpack.c.h.bf16 %v1633_v2  ;;  %v2474_v60 = vunpack.c.l.bf16 %v1636_v3  ;;  %v2475_v6 = vunpack.c.h.bf16 %v1636_v3 }
  0x4e   : > { %v517_v41 = vmul.f32 %v2472_v23, %v1723_v39  ;;  %901 = vst.msk [vmem:[%s1766_s24 + $0x128] sm:$0xff] %vm863_vm0, %v772_v31  ;;  %902 = vst.msk [vmem:[%s1766_s24 + $0x130] sm:$0xff] %vm863_vm0, %v773_v14  ;;  %v2476_v35 = vunpack.c.l.bf16 %v1643_v62  ;;  %v647_v1 = vadd.f32 %v1737_v21, %v515_v22  ;;  %v648_v2 = vadd.f32 %v1737_v21, %v516_v48 }
  0x4f   : > { %v518_v36 = vmul.f32 %v2473_v24, %v1723_v39  ;;  %v519_v46 = vmul.f32 %v2474_v60, %v1723_v39  ;;  %v520_v50 = vmul.f32 %v2475_v6, %v1723_v39  ;;  %903 = vst.msk [vmem:[%s1766_s24 + $0x138] sm:$0xff] %vm863_vm0, %v774_v15  ;;  %v2477_v27 = vunpack.c.h.bf16 %v1643_v62 }
  0x50   : > { %v521_v8 = vmul.f32 %v2476_v35, %v1723_v39  ;;  %v649_v4 = vadd.f32 %v1737_v21, %v517_v41  ;;  %v775_v29 = vmax.f32 %v647_v1, 0.0  ;;  %v776_v37 = vmax.f32 %v648_v2, 0.0 }
  0x51   : > { %v522_v3 = vmul.f32 %v2477_v27, %v1723_v39  ;;  %v650_v49 = vadd.f32 %v1737_v21, %v518_v36  ;;  %v651_v17 = vadd.f32 %v1737_v21, %v519_v46  ;;  %v652_v28 = vadd.f32 %v1737_v21, %v520_v50 }
  0x52   : > { %v653_v5 = vadd.f32 %v1737_v21, %v521_v8  ;;  %v777_v25 = vmax.f32 %v649_v4, 0.0  ;;  %904 = vst.msk [vmem:[%s1766_s24 + $0x140] sm:$0xff] %vm863_vm0, %v775_v29  ;;  %905 = vst.msk [vmem:[%s1766_s24 + $0x148] sm:$0xff] %vm863_vm0, %v776_v37  ;;  %v2478_v18 = vunpack.c.l.bf16 %v1646_v61  ;;  %v2479_v42 = vunpack.c.h.bf16 %v1646_v61 }
  0x53   : > { %v654_v54 = vadd.f32 %v1737_v21, %v522_v3  ;;  %v778_v62 = vmax.f32 %v650_v49, 0.0  ;;  %v779_v9 = vmax.f32 %v651_v17, 0.0  ;;  %v780_v13 = vmax.f32 %v652_v28, 0.0 }
  0x54   : > { %v781_v55 = vmax.f32 %v653_v5, 0.0  ;;  %906 = vst.msk [vmem:[%s1766_s24 + $0x150] sm:$0xff] %vm863_vm0, %v777_v25  ;;  %v523_v30 = vmul.f32 %v2478_v18, %v1723_v39  ;;  %v524_v10 = vmul.f32 %v2479_v42, %v1723_v39  ;;  %v2480_v26 = vunpack.c.l.bf16 %v1653_v20 }
  0x55   : > { %v782_v44 = vmax.f32 %v654_v54, 0.0  ;;  %907 = vst.msk [vmem:[%s1766_s24 + $0x158] sm:$0xff] %vm863_vm0, %v778_v62  ;;  %908 = vst.msk [vmem:[%s1766_s24 + $0x160] sm:$0xff] %vm863_vm0, %v779_v9  ;;  %v2481_v19 = vunpack.c.h.bf16 %v1653_v20  ;;  %v2482_v61 = vunpack.c.l.bf16 %v1656_v57  ;;  %v2483_v31 = vunpack.c.h.bf16 %v1656_v57 }
  0x56   : > { %v525_v43 = vmul.f32 %v2480_v26, %v1723_v39  ;;  %909 = vst.msk [vmem:[%s1766_s24 + $0x168] sm:$0xff] %vm863_vm0, %v780_v13  ;;  %910 = vst.msk [vmem:[%s1766_s24 + $0x170] sm:$0xff] %vm863_vm0, %v781_v55  ;;  %v2484_v15 = vunpack.c.l.bf16 %v1663_v63  ;;  %v655_v22 = vadd.f32 %v1737_v21, %v523_v30  ;;  %v656_v20 = vadd.f32 %v1737_v21, %v524_v10 }
  0x57   : > { %v526_v59 = vmul.f32 %v2481_v19, %v1723_v39  ;;  %v527_v11 = vmul.f32 %v2482_v61, %v1723_v39  ;;  %v528_v14 = vmul.f32 %v2483_v31, %v1723_v39  ;;  %911 = vst.msk [vmem:[%s1766_s24 + $0x178] sm:$0xff] %vm863_vm0, %v782_v44  ;;  %v2485_v48 = vunpack.c.h.bf16 %v1663_v63 }
  0x58   : > { %v529_v16 = vmul.f32 %v2484_v15, %v1723_v39  ;;  %v657_v12 = vadd.f32 %v1737_v21, %v525_v43  ;;  %v783_v60 = vmax.f32 %v655_v22, 0.0  ;;  %v784_v46 = vmax.f32 %v656_v20, 0.0 }
  0x59   : > { %v530_v57 = vmul.f32 %v2485_v48, %v1723_v39  ;;  %v658_v23 = vadd.f32 %v1737_v21, %v526_v59  ;;  %v659_v41 = vadd.f32 %v1737_v21, %v527_v11  ;;  %v660_v24 = vadd.f32 %v1737_v21, %v528_v14 }
  0x5a   : > { %v661_v36 = vadd.f32 %v1737_v21, %v529_v16  ;;  %v785_v6 = vmax.f32 %v657_v12, 0.0  ;;  %912 = vst.msk [vmem:[%s1766_s24 + $0x180] sm:$0xff] %vm863_vm0, %v783_v60  ;;  %913 = vst.msk [vmem:[%s1766_s24 + $0x188] sm:$0xff] %vm863_vm0, %v784_v46  ;;  %v2486_v4 = vunpack.c.l.bf16 %v1666_v53  ;;  %v2487_v3 = vunpack.c.h.bf16 %v1666_v53 }
  0x5b   : > { %v662_v50 = vadd.f32 %v1737_v21, %v530_v57  ;;  %v786_v63 = vmax.f32 %v658_v23, 0.0  ;;  %v787_v35 = vmax.f32 %v659_v41, 0.0  ;;  %v788_v8 = vmax.f32 %v660_v24, 0.0 }
  0x5c   : > { %v789_v1 = vmax.f32 %v661_v36, 0.0  ;;  %914 = vst.msk [vmem:[%s1766_s24 + $0x190] sm:$0xff] %vm863_vm0, %v785_v6  ;;  %v531_v27 = vmul.f32 %v2486_v4, %v1723_v39  ;;  %v532_v49 = vmul.f32 %v2487_v3, %v1723_v39  ;;  %v2488_v17 = vunpack.c.l.bf16 %v1673_v32 }
  0x5d   : > { %v790_v2 = vmax.f32 %v662_v50, 0.0  ;;  %915 = vst.msk [vmem:[%s1766_s24 + $0x198] sm:$0xff] %vm863_vm0, %v786_v63  ;;  %916 = vst.msk [vmem:[%s1766_s24 + $0x1a0] sm:$0xff] %vm863_vm0, %v787_v35  ;;  %v2489_v5 = vunpack.c.h.bf16 %v1673_v32  ;;  %v2490_v53 = vunpack.c.l.bf16 %v1676_v51  ;;  %v2491_v25 = vunpack.c.h.bf16 %v1676_v51 }
  0x5e   : > { %v533_v28 = vmul.f32 %v2488_v17, %v1723_v39  ;;  %917 = vst.msk [vmem:[%s1766_s24 + $0x1a8] sm:$0xff] %vm863_vm0, %v788_v8  ;;  %918 = vst.msk [vmem:[%s1766_s24 + $0x1b0] sm:$0xff] %vm863_vm0, %v789_v1  ;;  %v2492_v62 = vunpack.c.l.bf16 %v1683_v47  ;;  %v663_v13 = vadd.f32 %v1737_v21, %v531_v27  ;;  %v664_v32 = vadd.f32 %v1737_v21, %v532_v49 }
  0x5f   : > { %v534_v29 = vmul.f32 %v2489_v5, %v1723_v39  ;;  %v535_v37 = vmul.f32 %v2490_v53, %v1723_v39  ;;  %v536_v54 = vmul.f32 %v2491_v25, %v1723_v39  ;;  %919 = vst.msk [vmem:[%s1766_s24 + $0x1b8] sm:$0xff] %vm863_vm0, %v790_v2  ;;  %v2493_v44 = vunpack.c.h.bf16 %v1683_v47 }
  0x60   : > { %v537_v9 = vmul.f32 %v2492_v62, %v1723_v39  ;;  %v665_v55 = vadd.f32 %v1737_v21, %v533_v28  ;;  %v791_v26 = vmax.f32 %v663_v13, 0.0  ;;  %v792_v43 = vmax.f32 %v664_v32, 0.0 }
  0x61   : > { %v538_v51 = vmul.f32 %v2493_v44, %v1723_v39  ;;  %v666_v18 = vadd.f32 %v1737_v21, %v534_v29  ;;  %v667_v30 = vadd.f32 %v1737_v21, %v535_v37  ;;  %v668_v42 = vadd.f32 %v1737_v21, %v536_v54 }
  0x62   : > { %v669_v10 = vadd.f32 %v1737_v21, %v537_v9  ;;  %v793_v19 = vmax.f32 %v665_v55, 0.0  ;;  %920 = vst.msk [vmem:[%s1766_s24 + $0x1c0] sm:$0xff] %vm863_vm0, %v791_v26  ;;  %921 = vst.msk [vmem:[%s1766_s24 + $0x1c8] sm:$0xff] %vm863_vm0, %v792_v43  ;;  %v2494_v15 = vunpack.c.l.bf16 %v1686_v7  ;;  %v2495_v22 = vunpack.c.h.bf16 %v1686_v7 }
  0x63   : > { %v670_v59 = vadd.f32 %v1737_v21, %v538_v51  ;;  %v794_v47 = vmax.f32 %v666_v18, 0.0  ;;  %v795_v61 = vmax.f32 %v667_v30, 0.0  ;;  %v796_v11 = vmax.f32 %v668_v42, 0.0  ;;  %v1409_v51 = vld [vmem:[%s1528_s20 + $0x140] sm:$0xff]   ;;  %v1410_v18 = vld [vmem:[%s1528_s20 + $0x148] sm:$0xff]  }
  0x64   : > { %v797_v31 = vmax.f32 %v669_v10, 0.0  ;;  %922 = vst.msk [vmem:[%s1766_s24 + $0x1d0] sm:$0xff] %vm863_vm0, %v793_v19  ;;  %v539_v16 = vmul.f32 %v2494_v15, %v1723_v39  ;;  %v540_v20 = vmul.f32 %v2495_v22, %v1723_v39  ;;  %v2496_v12 = vunpack.c.l.bf16 %v1693_v0  ;;  %v1411_v15 = vld [vmem:[%s1528_s20 + $0x150] sm:$0xff]  }
  0x65   : > { %v798_v14 = vmax.f32 %v670_v59, 0.0  ;;  %923 = vst.msk [vmem:[%s1766_s24 + $0x1d8] sm:$0xff] %vm863_vm0, %v794_v47  ;;  %924 = vst.msk [vmem:[%s1766_s24 + $0x1e0] sm:$0xff] %vm863_vm0, %v795_v61  ;;  %v2497_v57 = vunpack.c.h.bf16 %v1693_v0  ;;  %v543_v7 = vmul.f32 %v1252_v52, %v1723_v39  ;;  %v544_v41 = vmul.f32 %v1253_v56, %v1723_v39 }
  0x66   : > { %v541_v48 = vmul.f32 %v2496_v12, %v1723_v39  ;;  %925 = vst.msk [vmem:[%s1766_s24 + $0x1e8] sm:$0xff] %vm863_vm0, %v796_v11  ;;  %926 = vst.msk [vmem:[%s1766_s24 + $0x1f0] sm:$0xff] %vm863_vm0, %v797_v31  ;;  %v545_v24 = vmul.f32 %v1256_v34, %v1723_v39  ;;  %v671_v36 = vadd.f32 %v1737_v21, %v539_v16  ;;  %v2498_v3 = vunpack.c.l.bf16 %v1710_v38  ;;  %v1412_v16 = vld [vmem:[%s1528_s20 + $0x158] sm:$0xff]  }
  0x67   : > { %v542_v23 = vmul.f32 %v2497_v57, %v1723_v39  ;;  %927 = vst.msk [vmem:[%s1766_s24 + $0x1f8] sm:$0xff] %vm863_vm0, %v798_v14  ;;  %v672_v0 = vadd.f32 %v1737_v21, %v540_v20  ;;  %v546_v45 = vmul.f32 %v1257_v33, %v1723_v39  ;;  %v675_v56 = vadd.f32 %v1737_v21, %v543_v7  ;;  %v1408_v33 = vld [vmem:[%s1528_s20 + $0x138] sm:$0xff]  }
  0x68   : > { %v673_v60 = vadd.f32 %v1737_v21, %v541_v48  ;;  %v676_v34 = vadd.f32 %v1737_v21, %v544_v41  ;;  %v677_v46 = vadd.f32 %v1737_v21, %v545_v24  ;;  %v799_v6 = vmax.f32 %v671_v36, 0.0 }
  0x69   : > { %v674_v52 = vadd.f32 %v1737_v21, %v542_v23  ;;  %v800_v50 = vmax.f32 %v672_v0, 0.0  ;;  %v678_v35 = vadd.f32 %v1737_v21, %v546_v45  ;;  %v803_v1 = vmax.f32 %v675_v56, 0.0 }
  0x6a   : > { %v801_v63 = vmax.f32 %v673_v60, 0.0  ;;  %v804_v2 = vmax.f32 %v676_v34, 0.0  ;;  %v805_v4 = vmax.f32 %v677_v46, 0.0  ;;  %928 = vst.msk [vmem:[%s1766_s24 + $0x200] sm:$0xff] %vm863_vm0, %v799_v6  ;;  %v547_v49 = vmul.f32 %v2498_v3, %v1723_v39 }
  0x6b   : > { %v802_v8 = vmax.f32 %v674_v52, 0.0  ;;  %929 = vst.msk [vmem:[%s1766_s24 + $0x208] sm:$0xff] %vm863_vm0, %v800_v50  ;;  %v806_v27 = vmax.f32 %v678_v35, 0.0  ;;  %v2499_v17 = vunpack.c.h.bf16 %v1710_v38  ;;  %v2500_v5 = vunpack.c.l.bf16 %v1713_v58  ;;  %932 = vst.msk [vmem:[%s1766_s24 + $0x220] sm:$0xff] %vm863_vm0, %v803_v1  ;;  %v1413_v35 = vld [vmem:[%s1528_s20 + $0x160] sm:$0xff]  }
  0x6c   : > { %930 = vst.msk [vmem:[%s1766_s24 + $0x210] sm:$0xff] %vm863_vm0, %v801_v63  ;;  %933 = vst.msk [vmem:[%s1766_s24 + $0x228] sm:$0xff] %vm863_vm0, %v804_v2  ;;  %v1265_v53 = vunpack.c.h.bf16 %v1713_v58  ;;  %v1268_v37 = vunpack.c.l.bf16 %v1407_v40  ;;  %v1269_v25 = vunpack.c.h.bf16 %v1407_v40  ;;  %v1272_v38 = vunpack.c.l.bf16 %v1408_v33  ;;  %v1414_v40 = vld [vmem:[%s1528_s20 + $0x168] sm:$0xff]  }
  0x6d   : > { %v548_v28 = vmul.f32 %v2499_v17, %v1723_v39  ;;  %v549_v29 = vmul.f32 %v2500_v5, %v1723_v39  ;;  %931 = vst.msk [vmem:[%s1766_s24 + $0x218] sm:$0xff] %vm863_vm0, %v802_v8  ;;  %934 = vst.msk [vmem:[%s1766_s24 + $0x230] sm:$0xff] %vm863_vm0, %v805_v4  ;;  %v679_v54 = vadd.f32 %v1737_v21, %v547_v49  ;;  %v1273_v13 = vunpack.c.h.bf16 %v1408_v33 }
  0x6e   : > { %935 = vst.msk [vmem:[%s1766_s24 + $0x238] sm:$0xff] %vm863_vm0, %v806_v27  ;;  %v550_v32 = vmul.f32 %v1265_v53, %v1723_v39  ;;  %v551_v55 = vmul.f32 %v1268_v37, %v1723_v39  ;;  %v552_v58 = vmul.f32 %v1269_v25, %v1723_v39  ;;  %v553_v44 = vmul.f32 %v1272_v38, %v1723_v39  ;;  %v1415_v53 = vld [vmem:[%s1528_s20 + $0x170] sm:$0xff]   ;;  %v1416_v37 = vld [vmem:[%s1528_s20 + $0x178] sm:$0xff]  }
  0x6f   : > { %v680_v62 = vadd.f32 %v1737_v21, %v548_v28  ;;  %v681_v9 = vadd.f32 %v1737_v21, %v549_v29  ;;  %v807_v30 = vmax.f32 %v679_v54, 0.0  ;;  %v554_v26 = vmul.f32 %v1273_v13, %v1723_v39 }
  0x70   : > { %v682_v43 = vadd.f32 %v1737_v21, %v550_v32  ;;  %v683_v19 = vadd.f32 %v1737_v21, %v551_v55  ;;  %v684_v59 = vadd.f32 %v1737_v21, %v552_v58  ;;  %v685_v47 = vadd.f32 %v1737_v21, %v553_v44 }
  0x71   : > { %v808_v42 = vmax.f32 %v680_v62, 0.0  ;;  %v809_v10 = vmax.f32 %v681_v9, 0.0  ;;  %936 = vst.msk [vmem:[%s1766_s24 + $0x240] sm:$0xff] %vm863_vm0, %v807_v30  ;;  %v686_v61 = vadd.f32 %v1737_v21, %v554_v26  ;;  %v1276_v11 = vunpack.c.l.bf16 %v1409_v51 }
  0x72   : > { %v1277_v31 = vunpack.c.h.bf16 %v1409_v51  ;;  %v1280_v14 = vunpack.c.l.bf16 %v1410_v18  ;;  %v810_v22 = vmax.f32 %v682_v43, 0.0  ;;  %v811_v20 = vmax.f32 %v683_v19, 0.0 }
  0x73   : > { %937 = vst.msk [vmem:[%s1766_s24 + $0x248] sm:$0xff] %vm863_vm0, %v808_v42  ;;  %938 = vst.msk [vmem:[%s1766_s24 + $0x250] sm:$0xff] %vm863_vm0, %v809_v10  ;;  %v812_v12 = vmax.f32 %v684_v59, 0.0  ;;  %v813_v48 = vmax.f32 %v685_v47, 0.0  ;;  %v814_v57 = vmax.f32 %v686_v61, 0.0  ;;  %v555_v23 = vmul.f32 %v1276_v11, %v1723_v39  ;;  %v1417_v61 = vld [vmem:[%s1528_s20 + $0x180] sm:$0xff]  }
  0x74   : > { %v556_v7 = vmul.f32 %v1277_v31, %v1723_v39  ;;  %v557_v41 = vmul.f32 %v1280_v14, %v1723_v39  ;;  %939 = vst.msk [vmem:[%s1766_s24 + $0x258] sm:$0xff] %vm863_vm0, %v810_v22  ;;  %940 = vst.msk [vmem:[%s1766_s24 + $0x260] sm:$0xff] %vm863_vm0, %v811_v20  ;;  %v1281_v24 = vunpack.c.h.bf16 %v1410_v18  ;;  %v1284_v36 = vunpack.c.l.bf16 %v1411_v15  ;;  %v1418_v11 = vld [vmem:[%s1528_s20 + $0x188] sm:$0xff]  }
  0x75   : > { %941 = vst.msk [vmem:[%s1766_s24 + $0x268] sm:$0xff] %vm863_vm0, %v812_v12  ;;  %942 = vst.msk [vmem:[%s1766_s24 + $0x270] sm:$0xff] %vm863_vm0, %v813_v48  ;;  %v1285_v0 = vunpack.c.h.bf16 %v1411_v15  ;;  %v1288_v60 = vunpack.c.l.bf16 %v1412_v16  ;;  %v687_v45 = vadd.f32 %v1737_v21, %v555_v23  ;;  %v1289_v34 = vunpack.c.h.bf16 %v1412_v16 }
  0x76   : > { %943 = vst.msk [vmem:[%s1766_s24 + $0x278] sm:$0xff] %vm863_vm0, %v814_v57  ;;  %v688_v52 = vadd.f32 %v1737_v21, %v556_v7  ;;  %v689_v56 = vadd.f32 %v1737_v21, %v557_v41  ;;  %v558_v46 = vmul.f32 %v1281_v24, %v1723_v39  ;;  %v559_v6 = vmul.f32 %v1284_v36, %v1723_v39  ;;  %v1419_v24 = vld [vmem:[%s1528_s20 + $0x190] sm:$0xff]   ;;  %v1420_v36 = vld [vmem:[%s1528_s20 + $0x198] sm:$0xff]  }
  0x77   : > { %v560_v50 = vmul.f32 %v1285_v0, %v1723_v39  ;;  %v561_v63 = vmul.f32 %v1288_v60, %v1723_v39  ;;  %v815_v33 = vmax.f32 %v687_v45, 0.0  ;;  %v562_v2 = vmul.f32 %v1289_v34, %v1723_v39 }
  0x78   : > { %v816_v8 = vmax.f32 %v688_v52, 0.0  ;;  %v817_v1 = vmax.f32 %v689_v56, 0.0  ;;  %v690_v4 = vadd.f32 %v1737_v21, %v558_v46  ;;  %v691_v27 = vadd.f32 %v1737_v21, %v559_v6 }
  0x79   : > { %v692_v3 = vadd.f32 %v1737_v21, %v560_v50  ;;  %v693_v49 = vadd.f32 %v1737_v21, %v561_v63  ;;  %944 = vst.msk [vmem:[%s1766_s24 + $0x280] sm:$0xff] %vm863_vm0, %v815_v33  ;;  %v694_v17 = vadd.f32 %v1737_v21, %v562_v2  ;;  %v1292_v28 = vunpack.c.l.bf16 %v1413_v35 }
  0x7a   : > { %945 = vst.msk [vmem:[%s1766_s24 + $0x288] sm:$0xff] %vm863_vm0, %v816_v8  ;;  %946 = vst.msk [vmem:[%s1766_s24 + $0x290] sm:$0xff] %vm863_vm0, %v817_v1  ;;  %v1293_v5 = vunpack.c.h.bf16 %v1413_v35  ;;  %v1296_v29 = vunpack.c.l.bf16 %v1414_v40  ;;  %v818_v25 = vmax.f32 %v690_v4, 0.0  ;;  %v819_v38 = vmax.f32 %v691_v27, 0.0 }
  0x7b   : > { %v820_v54 = vmax.f32 %v692_v3, 0.0  ;;  %v821_v62 = vmax.f32 %v693_v49, 0.0  ;;  %v822_v9 = vmax.f32 %v694_v17, 0.0  ;;  %v563_v13 = vmul.f32 %v1292_v28, %v1723_v39  ;;  %v1421_v17 = vld [vmem:[%s1528_s20 + $0x1a0] sm:$0xff]   ;;  %v1422_v28 = vld [vmem:[%s1528_s20 + $0x1a8] sm:$0xff]  }
  0x7c   : > { %v564_v32 = vmul.f32 %v1293_v5, %v1723_v39  ;;  %v565_v55 = vmul.f32 %v1296_v29, %v1723_v39  ;;  %947 = vst.msk [vmem:[%s1766_s24 + $0x298] sm:$0xff] %vm863_vm0, %v818_v25  ;;  %948 = vst.msk [vmem:[%s1766_s24 + $0x2a0] sm:$0xff] %vm863_vm0, %v819_v38  ;;  %v1297_v58 = vunpack.c.h.bf16 %v1414_v40  ;;  %v1300_v44 = vunpack.c.l.bf16 %v1415_v53 }
  0x7d   : > { %949 = vst.msk [vmem:[%s1766_s24 + $0x2a8] sm:$0xff] %vm863_vm0, %v820_v54  ;;  %950 = vst.msk [vmem:[%s1766_s24 + $0x2b0] sm:$0xff] %vm863_vm0, %v821_v62  ;;  %v1301_v51 = vunpack.c.h.bf16 %v1415_v53  ;;  %v1304_v18 = vunpack.c.l.bf16 %v1416_v37  ;;  %v695_v30 = vadd.f32 %v1737_v21, %v563_v13  ;;  %v1305_v26 = vunpack.c.h.bf16 %v1416_v37 }
  0x7e   : > { %951 = vst.msk [vmem:[%s1766_s24 + $0x2b8] sm:$0xff] %vm863_vm0, %v822_v9  ;;  %v696_v42 = vadd.f32 %v1737_v21, %v564_v32  ;;  %v697_v10 = vadd.f32 %v1737_v21, %v565_v55  ;;  %v566_v43 = vmul.f32 %v1297_v58, %v1723_v39  ;;  %v567_v19 = vmul.f32 %v1300_v44, %v1723_v39  ;;  %v1423_v58 = vld [vmem:[%s1528_s20 + $0x1b0] sm:$0xff]   ;;  %v1424_v44 = vld [vmem:[%s1528_s20 + $0x1b8] sm:$0xff]  }
  0x7f   : > { %v568_v59 = vmul.f32 %v1301_v51, %v1723_v39  ;;  %v569_v47 = vmul.f32 %v1304_v18, %v1723_v39  ;;  %v823_v31 = vmax.f32 %v695_v30, 0.0  ;;  %v570_v16 = vmul.f32 %v1305_v26, %v1723_v39 }
  0x80   : > { %v824_v14 = vmax.f32 %v696_v42, 0.0  ;;  %v825_v15 = vmax.f32 %v697_v10, 0.0  ;;  %v698_v22 = vadd.f32 %v1737_v21, %v566_v43  ;;  %v699_v20 = vadd.f32 %v1737_v21, %v567_v19 }
  0x81   : > { %v700_v12 = vadd.f32 %v1737_v21, %v568_v59  ;;  %v701_v48 = vadd.f32 %v1737_v21, %v569_v47  ;;  %952 = vst.msk [vmem:[%s1766_s24 + $0x2c0] sm:$0xff] %vm863_vm0, %v823_v31  ;;  %v702_v57 = vadd.f32 %v1737_v21, %v570_v16  ;;  %v1308_v23 = vunpack.c.l.bf16 %v1417_v61 }
  0x82   : > { %953 = vst.msk [vmem:[%s1766_s24 + $0x2c8] sm:$0xff] %vm863_vm0, %v824_v14  ;;  %954 = vst.msk [vmem:[%s1766_s24 + $0x2d0] sm:$0xff] %vm863_vm0, %v825_v15  ;;  %v1309_v7 = vunpack.c.h.bf16 %v1417_v61  ;;  %v1312_v41 = vunpack.c.l.bf16 %v1418_v11  ;;  %v826_v0 = vmax.f32 %v698_v22, 0.0  ;;  %v827_v60 = vmax.f32 %v699_v20, 0.0 }
  0x83   : > { %v828_v45 = vmax.f32 %v700_v12, 0.0  ;;  %v829_v52 = vmax.f32 %v701_v48, 0.0  ;;  %v830_v56 = vmax.f32 %v702_v57, 0.0  ;;  %v571_v34 = vmul.f32 %v1308_v23, %v1723_v39  ;;  %v1425_v57 = vld [vmem:[%s1528_s20 + $0x1c0] sm:$0xff]   ;;  %v1426_v23 = vld [vmem:[%s1528_s20 + $0x1c8] sm:$0xff]  }
  0x84   : > { %v572_v46 = vmul.f32 %v1309_v7, %v1723_v39  ;;  %v573_v6 = vmul.f32 %v1312_v41, %v1723_v39  ;;  %955 = vst.msk [vmem:[%s1766_s24 + $0x2d8] sm:$0xff] %vm863_vm0, %v826_v0  ;;  %956 = vst.msk [vmem:[%s1766_s24 + $0x2e0] sm:$0xff] %vm863_vm0, %v827_v60  ;;  %v1313_v50 = vunpack.c.h.bf16 %v1418_v11  ;;  %v1316_v63 = vunpack.c.l.bf16 %v1419_v24 }
  0x85   : > { %957 = vst.msk [vmem:[%s1766_s24 + $0x2e8] sm:$0xff] %vm863_vm0, %v828_v45  ;;  %958 = vst.msk [vmem:[%s1766_s24 + $0x2f0] sm:$0xff] %vm863_vm0, %v829_v52  ;;  %v1317_v35 = vunpack.c.h.bf16 %v1419_v24  ;;  %v1320_v40 = vunpack.c.l.bf16 %v1420_v36  ;;  %v703_v33 = vadd.f32 %v1737_v21, %v571_v34  ;;  %v1321_v2 = vunpack.c.h.bf16 %v1420_v36 }
  0x86   : > { %959 = vst.msk [vmem:[%s1766_s24 + $0x2f8] sm:$0xff] %vm863_vm0, %v830_v56  ;;  %v704_v8 = vadd.f32 %v1737_v21, %v572_v46  ;;  %v705_v1 = vadd.f32 %v1737_v21, %v573_v6  ;;  %v574_v4 = vmul.f32 %v1313_v50, %v1723_v39  ;;  %v575_v27 = vmul.f32 %v1316_v63, %v1723_v39  ;;  %v1427_v50 = vld [vmem:[%s1528_s20 + $0x1d0] sm:$0xff]   ;;  %v1428_v63 = vld [vmem:[%s1528_s20 + $0x1d8] sm:$0xff]  }
  0x87   : > { %v576_v3 = vmul.f32 %v1317_v35, %v1723_v39  ;;  %v577_v49 = vmul.f32 %v1320_v40, %v1723_v39  ;;  %v831_v5 = vmax.f32 %v703_v33, 0.0  ;;  %v578_v37 = vmul.f32 %v1321_v2, %v1723_v39 }
  0x88   : > { %v832_v29 = vmax.f32 %v704_v8, 0.0  ;;  %v833_v53 = vmax.f32 %v705_v1, 0.0  ;;  %v706_v25 = vadd.f32 %v1737_v21, %v574_v4  ;;  %v707_v38 = vadd.f32 %v1737_v21, %v575_v27 }
  0x89   : > { %v708_v54 = vadd.f32 %v1737_v21, %v576_v3  ;;  %v709_v62 = vadd.f32 %v1737_v21, %v577_v49  ;;  %960 = vst.msk [vmem:[%s1766_s24 + $0x300] sm:$0xff] %vm863_vm0, %v831_v5  ;;  %v710_v9 = vadd.f32 %v1737_v21, %v578_v37  ;;  %v1324_v13 = vunpack.c.l.bf16 %v1421_v17 }
  0x8a   : > { %961 = vst.msk [vmem:[%s1766_s24 + $0x308] sm:$0xff] %vm863_vm0, %v832_v29  ;;  %962 = vst.msk [vmem:[%s1766_s24 + $0x310] sm:$0xff] %vm863_vm0, %v833_v53  ;;  %v1325_v32 = vunpack.c.h.bf16 %v1421_v17  ;;  %v1328_v55 = vunpack.c.l.bf16 %v1422_v28  ;;  %v834_v51 = vmax.f32 %v706_v25, 0.0  ;;  %v835_v18 = vmax.f32 %v707_v38, 0.0 }
  0x8b   : > { %v836_v30 = vmax.f32 %v708_v54, 0.0  ;;  %v837_v42 = vmax.f32 %v709_v62, 0.0  ;;  %v838_v10 = vmax.f32 %v710_v9, 0.0  ;;  %v579_v26 = vmul.f32 %v1324_v13, %v1723_v39  ;;  %v1429_v9 = vld [vmem:[%s1528_s20 + $0x1e0] sm:$0xff]   ;;  %v1430_v13 = vld [vmem:[%s1528_s20 + $0x1e8] sm:$0xff]  }
  0x8c   : > { %v580_v43 = vmul.f32 %v1325_v32, %v1723_v39  ;;  %v581_v19 = vmul.f32 %v1328_v55, %v1723_v39  ;;  %963 = vst.msk [vmem:[%s1766_s24 + $0x318] sm:$0xff] %vm863_vm0, %v834_v51  ;;  %964 = vst.msk [vmem:[%s1766_s24 + $0x320] sm:$0xff] %vm863_vm0, %v835_v18  ;;  %v1329_v59 = vunpack.c.h.bf16 %v1422_v28  ;;  %v1332_v47 = vunpack.c.l.bf16 %v1423_v58 }
  0x8d   : > { %965 = vst.msk [vmem:[%s1766_s24 + $0x328] sm:$0xff] %vm863_vm0, %v836_v30  ;;  %966 = vst.msk [vmem:[%s1766_s24 + $0x330] sm:$0xff] %vm863_vm0, %v837_v42  ;;  %v1333_v61 = vunpack.c.h.bf16 %v1423_v58  ;;  %v1336_v11 = vunpack.c.l.bf16 %v1424_v44  ;;  %v711_v31 = vadd.f32 %v1737_v21, %v579_v26  ;;  %v1337_v16 = vunpack.c.h.bf16 %v1424_v44 }
  0x8e   : > { %967 = vst.msk [vmem:[%s1766_s24 + $0x338] sm:$0xff] %vm863_vm0, %v838_v10  ;;  %v712_v14 = vadd.f32 %v1737_v21, %v580_v43  ;;  %v713_v15 = vadd.f32 %v1737_v21, %v581_v19  ;;  %v582_v22 = vmul.f32 %v1329_v59, %v1723_v39  ;;  %v583_v20 = vmul.f32 %v1332_v47, %v1723_v39  ;;  %v1431_v59 = vld [vmem:[%s1528_s20 + $0x1f0] sm:$0xff]   ;;  %v1432_v47 = vld [vmem:[%s1528_s20 + $0x1f8] sm:$0xff]  }
  0x8f   : > { %v584_v12 = vmul.f32 %v1333_v61, %v1723_v39  ;;  %v585_v48 = vmul.f32 %v1336_v11, %v1723_v39  ;;  %v839_v7 = vmax.f32 %v711_v31, 0.0  ;;  %v586_v36 = vmul.f32 %v1337_v16, %v1723_v39 }
  0x90   : > { %v840_v41 = vmax.f32 %v712_v14, 0.0  ;;  %v841_v24 = vmax.f32 %v713_v15, 0.0  ;;  %v714_v0 = vadd.f32 %v1737_v21, %v582_v22  ;;  %v715_v60 = vadd.f32 %v1737_v21, %v583_v20 }
  0x91   : > { %v716_v45 = vadd.f32 %v1737_v21, %v584_v12  ;;  %v717_v52 = vadd.f32 %v1737_v21, %v585_v48  ;;  %968 = vst.msk [vmem:[%s1766_s24 + $0x340] sm:$0xff] %vm863_vm0, %v839_v7  ;;  %v718_v56 = vadd.f32 %v1737_v21, %v586_v36  ;;  %v1340_v34 = vunpack.c.l.bf16 %v1425_v57 }
  0x92   : > { %969 = vst.msk [vmem:[%s1766_s24 + $0x348] sm:$0xff] %vm863_vm0, %v840_v41  ;;  %970 = vst.msk [vmem:[%s1766_s24 + $0x350] sm:$0xff] %vm863_vm0, %v841_v24  ;;  %v1341_v46 = vunpack.c.h.bf16 %v1425_v57  ;;  %v1344_v6 = vunpack.c.l.bf16 %v1426_v23  ;;  %v842_v35 = vmax.f32 %v714_v0, 0.0  ;;  %v843_v40 = vmax.f32 %v715_v60, 0.0 }
  0x93   : > { %v844_v33 = vmax.f32 %v716_v45, 0.0  ;;  %v845_v8 = vmax.f32 %v717_v52, 0.0  ;;  %v846_v1 = vmax.f32 %v718_v56, 0.0  ;;  %v587_v2 = vmul.f32 %v1340_v34, %v1723_v39 }
  0x94   : > { %v588_v4 = vmul.f32 %v1341_v46, %v1723_v39  ;;  %v589_v27 = vmul.f32 %v1344_v6, %v1723_v39  ;;  %971 = vst.msk [vmem:[%s1766_s24 + $0x358] sm:$0xff] %vm863_vm0, %v842_v35  ;;  %972 = vst.msk [vmem:[%s1766_s24 + $0x360] sm:$0xff] %vm863_vm0, %v843_v40  ;;  %v1345_v3 = vunpack.c.h.bf16 %v1426_v23  ;;  %v1348_v49 = vunpack.c.l.bf16 %v1427_v50 }
  0x95   : > { %973 = vst.msk [vmem:[%s1766_s24 + $0x368] sm:$0xff] %vm863_vm0, %v844_v33  ;;  %974 = vst.msk [vmem:[%s1766_s24 + $0x370] sm:$0xff] %vm863_vm0, %v845_v8  ;;  %v1349_v17 = vunpack.c.h.bf16 %v1427_v50  ;;  %v1352_v28 = vunpack.c.l.bf16 %v1428_v63  ;;  %v719_v5 = vadd.f32 %v1737_v21, %v587_v2  ;;  %v1353_v37 = vunpack.c.h.bf16 %v1428_v63 }
  0x96   : > { %975 = vst.msk [vmem:[%s1766_s24 + $0x378] sm:$0xff] %vm863_vm0, %v846_v1  ;;  %v720_v29 = vadd.f32 %v1737_v21, %v588_v4  ;;  %v721_v53 = vadd.f32 %v1737_v21, %v589_v27  ;;  %v590_v25 = vmul.f32 %v1345_v3, %v1723_v39  ;;  %v591_v38 = vmul.f32 %v1348_v49, %v1723_v39 }
  0x97   : > { %v592_v54 = vmul.f32 %v1349_v17, %v1723_v39  ;;  %v593_v62 = vmul.f32 %v1352_v28, %v1723_v39  ;;  %v847_v32 = vmax.f32 %v719_v5, 0.0  ;;  %v594_v44 = vmul.f32 %v1353_v37, %v1723_v39 }
  0x98   : > { %v848_v55 = vmax.f32 %v720_v29, 0.0  ;;  %v849_v58 = vmax.f32 %v721_v53, 0.0  ;;  %v722_v51 = vadd.f32 %v1737_v21, %v590_v25  ;;  %v723_v18 = vadd.f32 %v1737_v21, %v591_v38 }
  0x99   : > { %v724_v30 = vadd.f32 %v1737_v21, %v592_v54  ;;  %v725_v42 = vadd.f32 %v1737_v21, %v593_v62  ;;  %976 = vst.msk [vmem:[%s1766_s24 + $0x380] sm:$0xff] %vm863_vm0, %v847_v32  ;;  %v726_v10 = vadd.f32 %v1737_v21, %v594_v44  ;;  %v1356_v26 = vunpack.c.l.bf16 %v1429_v9 }
  0x9a   : > { %977 = vst.msk [vmem:[%s1766_s24 + $0x388] sm:$0xff] %vm863_vm0, %v848_v55  ;;  %978 = vst.msk [vmem:[%s1766_s24 + $0x390] sm:$0xff] %vm863_vm0, %v849_v58  ;;  %v1357_v43 = vunpack.c.h.bf16 %v1429_v9  ;;  %v1360_v19 = vunpack.c.l.bf16 %v1430_v13  ;;  %v850_v61 = vmax.f32 %v722_v51, 0.0  ;;  %v851_v11 = vmax.f32 %v723_v18, 0.0 }
  0x9b   : > { %v852_v31 = vmax.f32 %v724_v30, 0.0  ;;  %v853_v14 = vmax.f32 %v725_v42, 0.0  ;;  %v854_v15 = vmax.f32 %v726_v10, 0.0  ;;  %v595_v16 = vmul.f32 %v1356_v26, %v1723_v39 }
  0x9c   : > { %v596_v22 = vmul.f32 %v1357_v43, %v1723_v39  ;;  %v597_v20 = vmul.f32 %v1360_v19, %v1723_v39  ;;  %979 = vst.msk [vmem:[%s1766_s24 + $0x398] sm:$0xff] %vm863_vm0, %v850_v61  ;;  %980 = vst.msk [vmem:[%s1766_s24 + $0x3a0] sm:$0xff] %vm863_vm0, %v851_v11  ;;  %v1361_v12 = vunpack.c.h.bf16 %v1430_v13  ;;  %v1364_v48 = vunpack.c.l.bf16 %v1431_v59 }
  0x9d   : > { %981 = vst.msk [vmem:[%s1766_s24 + $0x3a8] sm:$0xff] %vm863_vm0, %v852_v31  ;;  %982 = vst.msk [vmem:[%s1766_s24 + $0x3b0] sm:$0xff] %vm863_vm0, %v853_v14  ;;  %v1365_v57 = vunpack.c.h.bf16 %v1431_v59  ;;  %v1368_v23 = vunpack.c.l.bf16 %v1432_v47  ;;  %v727_v7 = vadd.f32 %v1737_v21, %v595_v16  ;;  %v1369_v36 = vunpack.c.h.bf16 %v1432_v47 }
  0x9e   : > { %983 = vst.msk [vmem:[%s1766_s24 + $0x3b8] sm:$0xff] %vm863_vm0, %v854_v15  ;;  %v728_v41 = vadd.f32 %v1737_v21, %v596_v22  ;;  %v729_v24 = vadd.f32 %v1737_v21, %v597_v20  ;;  %v598_v0 = vmul.f32 %v1361_v12, %v1723_v39  ;;  %v599_v60 = vmul.f32 %v1364_v48, %v1723_v39 }
  0x9f   : > { %v600_v45 = vmul.f32 %v1365_v57, %v1723_v39  ;;  %v601_v52 = vmul.f32 %v1368_v23, %v1723_v39  ;;  %v855_v56 = vmax.f32 %v727_v7, 0.0  ;;  %v602_v6 = vmul.f32 %v1369_v36, %v1723_v39 }
  0xa0   : > { %v856_v34 = vmax.f32 %v728_v41, 0.0  ;;  %v857_v46 = vmax.f32 %v729_v24, 0.0  ;;  %v730_v50 = vadd.f32 %v1737_v21, %v598_v0  ;;  %v731_v63 = vadd.f32 %v1737_v21, %v599_v60 }
  0xa1   : > { %v732_v35 = vadd.f32 %v1737_v21, %v600_v45  ;;  %v733_v40 = vadd.f32 %v1737_v21, %v601_v52  ;;  %984 = vst.msk [vmem:[%s1766_s24 + $0x3c0] sm:$0xff] %vm863_vm0, %v855_v56  ;;  %v734_v33 = vadd.f32 %v1737_v21, %v602_v6 }
  0xa2   : > { %985 = vst.msk [vmem:[%s1766_s24 + $0x3c8] sm:$0xff] %vm863_vm0, %v856_v34  ;;  %986 = vst.msk [vmem:[%s1766_s24 + $0x3d0] sm:$0xff] %vm863_vm0, %v857_v46  ;;  %v858_v39 = vmax.f32 %v730_v50, 0.0  ;;  %v859_v8 = vmax.f32 %v731_v63, 0.0 }
  0xa3   : > { %v860_v1 = vmax.f32 %v732_v35, 0.0  ;;  %v861_v2 = vmax.f32 %v733_v40, 0.0  ;;  %v862_v4 = vmax.f32 %v734_v33, 0.0 }
  0xa4   : > { %987 = vst.msk [vmem:[%s1766_s24 + $0x3d8] sm:$0xff] %vm863_vm0, %v858_v39  ;;  %988 = vst.msk [vmem:[%s1766_s24 + $0x3e0] sm:$0xff] %vm863_vm0, %v859_v8 }
  0xa5   : > { %989 = vst.msk [vmem:[%s1766_s24 + $0x3e8] sm:$0xff] %vm863_vm0, %v860_v1  ;;  %990 = vst.msk [vmem:[%s1766_s24 + $0x3f0] sm:$0xff] %vm863_vm0, %v861_v2 }
  0xa6   : > { %991 = vst.msk [vmem:[%s1766_s24 + $0x3f8] sm:$0xff] %vm863_vm0, %v862_v4 }
  0xa7 PF: > { %s12_s11 = sadd.s32 1, %s1481_s11   ;;  %s2501_s9 = smov %s1477_s10 }
  0xa8   : > { %p9_p5 = scmp.ge.s32.totalorder %s12_s11, 4   ;;  %s2502_s10 = smov %s2504_s12 }
  0xaa   :  { %11 = sbr.rel (!%p9_p5) target bundleno = 2 (0x2), region = 61 }

// kernel: unet_up_pix.2
= control target key start
LH: loop header
LB: loop body
LE: loop exit
PB: predicated region body
PF: predicated region fallthrough
CT: control target
= control target key end

     0   :  { %s10371_s15 = smov 0   ;;  %s10373_s16 = smov 0   ;;  %s12025_s0 = inlined_call_operand.vmem [shape: bf16[2,18,18,4], index: 0, kind: input, shape index: {}]   ;;  %s12026_s1 = inlined_call_operand.vmem [shape: bf16[2,2,2,18,4], index: 1, kind: input, shape index: {}]   ;;  %s12027_s2 = inlined_call_operand.vmem [shape: bf16[16,4,8], index: 2, kind: input, shape index: {}]   ;;  %s12028_s3 = inlined_call_operand.vmem [shape: bf16[2,16,64,8], index: 3, kind: output, shape index: {0}]   ;;  %s12029_s4 = inlined_call_operand.vmem [shape: f32[2,2,8], index: 4, kind: output, shape index: {1}]  }
   0x1   :  { %s10375_s17 = smov 0   ;;  %s10377_s18 = smov 0  }
   0x2   :  { %s10379_s19 = smov 0  }
   0x3 LB: > { %s24_s20 = sadd.s32 1, %s10333_s17  ;;  %s27_s21 = sadd.s32 1, %s10337_s18  ;;  %s10341_s19 = sphi %s10379_s19, %s15_s19   ;;  %s10337_s18 = sphi %s10377_s18, %s12033_s18   ;;  %s10333_s17 = sphi %s10375_s17, %s12032_s17   ;;  %s10329_s16 = sphi %s10373_s16, %s12031_s16   ;;  %s10325_s15 = sphi %s10371_s15, %s12030_s15  }
   0x4   : > { %p25_p0 = scmp.ge.s32.totalorder %s24_s20, 2  ;;  %p8245_p1 = scmp.ge.s32.totalorder %s10341_s19, 1 }
   0x5   : > { %p213_p2 = scmp.lt.s32.totalorder %s10341_s19, 5 }
   0x6   : > { %s12035_s20 = smov (%p25_p0, %s24_s20), 0  ;;  %s12037_s21 = smov (!%p25_p0, %s27_s21), %s10337_s18 }
   0x7   : > { %p214_p3 = pnand %p8245_p1, %p213_p2  ;;  %p29_p4 = scmp.ge.s32.totalorder %s12037_s21, 2 }
   0x8   : > { %s8246_s22 = sshll.u32 (!%p214_p3), %s10325_s15, 3  ;;  %p273_p5 = scmp.lt.s32.totalorder (!%p214_p3), %s10329_s16, 1 }
   0x9   : > { %s12039_s21 = smov (%p29_p4, %s12037_s21), 0  ;;  %217 = sbr.rel (%p214_p3) target bundleno = 978 (0x3d2), region = 32 }
   0xa   : > { %p275_p6 = scmp.lt.s32.totalorder (!%p214_p3), %s8246_s22, 17  ;;  %p290_p7 = scmp.lt.s32.totalorder (!%p214_p3), %s10325_s15, 1 }
   0xb   : > { %p300_p8 = scmp.lt.s32.totalorder (!%p214_p3), %s8246_s22, 15  ;;  %p8254_p9 = scmp.ne.s32.totalorder (!%p214_p3), %s10325_s15, 0 }
  0x10   : > { %s12041_s16 = smov (!%p273_p5, %s10329_s16), 1  ;;  %vm317_vm0 = vcmask (!%p8254_p9), 58368   ;;  %v10343_v0 = vmov (!%p8254_p9), 0.0  }
  0x11   : > { %s276_s23 = scalar_select %p275_p6, %s8246_s22, 17 }
  0x12   : > { %s10209_s24 = smul.u32 54, %s12041_s16  ;;  %s8253_s8 = sshll.u32 %s12041_s16, 1 }
  0x13   : > { %s10208_s25 = smul.u32 3, %s276_s23  ;;  %s10414_s12 = scalar_lea.vmem %s12029_s4, %s8253_s8 }
  0x14   : > { %s291_s26 = scalar_select %p290_p7, %s10325_s15, 1 }
  0x15   : > { %s279_s27 = sadd.s32 %s10209_s24, %s10208_s25  ;;  %s10211_s28 = smul.u32 12, %s12041_s16  ;;  %318 = vst.msk [vmem:[%s10414_s12] sm:$0x3] (!%p8254_p9), %vm317_vm0, %v10343_v0 }
  0x16   : > { %s8247_s29 = sshll.u32 %s279_s27, 2  ;;  %s10210_s30 = smul.u32 6, %s291_s26 }
  0x17   : > { %s10409_s7 = scalar_lea.vmem %s12025_s0, %s8247_s29  ;;  %s8251_s25 = sshll.u32 %s12041_s16, 7 }
  0x18   : > { %s294_s9 = sadd.s32 %s10211_s28, %s10210_s30  ;;  %s12043_s22 = smov (!%p300_p8, %s8246_s22), 15 }
  0x19   : > { %s8248_s13 = sshll.u32 %s294_s9, 2  ;;  %s8250_s26 = sshll.u32 %s12043_s22, 3 }
  0x1a   : > { %s10419_s24 = scalar_lea.vmem %s12026_s1, %s8248_s13  ;;  %s304_s27 = sadd.s32 %s8251_s25, %s8250_s26 }
  0x1b   : > { %s8252_s5 = sshll.u32 %s304_s27, 2  ;;  %316 = sbr.rel (%p8254_p9) target bundleno = 34 (0x22), region = 36 }
  0x1c   : > { %s10424_s28 = scalar_lea.vmem %s12028_s3, %s8252_s5 }
  0x22 PF: > { %vm358_vm1 = vcmask 1041408   ;;  %v8275_v1 = vld [vmem:[%s12027_s2 + $0xa] sm:$0x3]  ;;  %v10255_v2 = vld [vmem:[%s10409_s7] sm:$0xff]   ;;  %v10344_v3 = vmov 0.0   ;;  %vm10345_vm2 = vmmov 0  }
  0x23   : > { %9080 = vmatprep.subr.bf16.mxu1 %v10344_v3  ;;  %v616_v4 = vsel %vm358_vm1, %v8275_v1, 0  ;;  %9056 = vmatprep.subr.bf16.mxu0 %v10344_v3  ;;  %v8261_v5 = vld [vmem:[%s12027_s2 + $0x2] sm:$0x3]  ;;  %v10256_v7 = vld [vmem:[%s10409_s7 + $0x8] ss:$0 sps:$4 sm:$0x11]  }
  0x24   : > { %9081 = vmatpush3.bf16.msra.mxu1 %v616_v4  ;;  %9082 = vmatprep.mubr.msk.bf16.mxu1 %vm10345_vm2, %v10344_v3  ;;  %v360_v6 = vsel %vm358_vm1, %v8261_v5, 0  ;;  %v609_v8 = vrot.slane %v10255_v2, 1  ;;  %vm608_vm3 = vcmask 1046528   ;;  %v343_v9 = vshrl.u32 %v10255_v2, 16  ;;  %v8274_v11 = vld [vmem:[%s12027_s2 + $0x8] sm:$0x3] }
  0x25   : > { %9057 = vmatpush3.bf16.msra.mxu0 %v360_v6  ;;  %9058 = vmatprep.mubr.msk.bf16.mxu0 %vm10345_vm2, %v10344_v3  ;;  %v345_v10 = vshll.u32 %v10255_v2, 16  ;;  %vm354_vm4 = vcmask 31744   ;;  %v610_v12 = vrot.slane %v10256_v7, 1  ;;  %vm341_vm5 = vsmask.f32 7424  ;;  %v10465_v22 = vld [vmem:[%s10409_s7 + $0xc] sm:$0xff]  }
  0x26   : > { %9062 = vmatprep.subr.bf16.mxu0 %v10344_v3  ;;  %9086 = vmatprep.subr.bf16.mxu1 %v10344_v3  ;;  %v350_v13 = vshll.u32 %v10256_v7, 16  ;;  %v330_v15 = vld [vmem:[%s12027_s2] sm:$0x3]  ;;  %v660_v16 = vsel %vm358_vm1, %v8274_v11, 0  ;;  %v8278_v23 = vld [vmem:[%s12027_s2 + $0xc] sm:$0x3] }
  0x27   : > { %v347_v14 = vrot.slane %v345_v10, 1  ;;  %v611_v17 = vsel %vm608_vm3, %v609_v8, %v610_v12  ;;  %v406_v20 = vsel %vm358_vm1, %v330_v15, 0  ;;  %v10258_v24 = vld [vmem:[%s10409_s7 + $0x14] ss:$0 sps:$4 sm:$0x11]   ;;  %v512_v25 = vshll.u32 %v10465_v22, 16 }
  0x28   : > { %v352_v18 = vrot.slane %v350_v13, 1  ;;  %9083 = vmatmul.mubr.msk.bf16.vlgmr.msra.gmra.mrb[0].mxu1 %vm354_vm4, %v611_v17  ;;  %v8266_v26 = vld [vmem:[%s12027_s2 + $0x4] sm:$0x3]  ;;  %v706_v27 = vsel %vm358_vm1, %v8278_v23, 0  ;;  %v510_v29 = vshrl.u32 %v10465_v22, 16  ;;  %v517_v31 = vshll.u32 %v10258_v24, 16 }
  0x29   : > { %v348_v19 = vor.u32 %v347_v14, %v343_v9  ;;  %9087 = vmatpush3.bf16.msra.mxu1 %v660_v16  ;;  %9088 = vmatprep.mubr.msk.bf16.mxu1 %vm10345_vm2, %v10344_v3  ;;  %v460_v28 = vsel %vm358_vm1, %v8266_v26, 0  ;;  %v514_v30 = vrot.slane %v512_v25, 1  ;;  %v8280_v34 = vld [vmem:[%s12027_s2 + $0xe] sm:$0x3]  ;;  %v8269_v36 = vld [vmem:[%s12027_s2 + $0x6] sm:$0x3] }
  0x2a   : > { %9092 = vmatprep.subr.bf16.mxu1 %v10344_v3  ;;  %v519_v33 = vrot.slane %v517_v31, 1  ;;  %v760_v37 = vsel %vm358_vm1, %v8280_v34, 0  ;;  %v525_v38 = vsel %vm358_vm1, %v8269_v36, 0  ;;  %v753_v39 = vrot.slane %v10465_v22, 1  ;;  %v8285_v41 = vld [vmem:[%s12027_s2 + $0x12] sm:$0x3] }
  0x2b   : > { %v353_v21 = vsel %vm341_vm5, %v348_v19, %v352_v18  ;;  %v515_v32 = vor.u32 %v514_v30, %v510_v29  ;;  %v754_v40 = vrot.slane %v10258_v24, 1  ;;  %v8297_v42 = vld [vmem:[%s12027_s2 + $0x1a] sm:$0x3]  ;;  %v8296_v43 = vld [vmem:[%s12027_s2 + $0x18] sm:$0x3]  ;;  %v842_v44 = vsel %vm358_vm1, %v8285_v41, 0 }
  0x2c   : > { %9059 = vmatmul.mubr.msk.bf16.vlgmr.msra.gmra.mrb[0].mxu0 %vm354_vm4, %v353_v21  ;;  %v1087_v46 = vsel %vm358_vm1, %v8297_v42, 0  ;;  %v1131_v47 = vsel %vm358_vm1, %v8296_v43, 0  ;;  %v8284_v48 = vld [vmem:[%s12027_s2 + $0x10] sm:$0x3]  ;;  %v10259_v50 = vld [vmem:[%s10409_s7 + $0x18] sm:$0xff]   ;;  %vm578_vm6 = vcmask 60416  }
  0x2d   : > { %9063 = vmatpush3.bf16.msra.mxu0 %v406_v20  ;;  %9064 = vmatprep.mubr.msk.bf16.mxu0 %vm10345_vm2, %v10344_v3  ;;  %v520_v35 = vsel %vm341_vm5, %v515_v32, %v519_v33  ;;  %v755_v45 = vsel %vm608_vm3, %v753_v39, %v754_v40  ;;  %v886_v49 = vsel %vm358_vm1, %v8284_v48, 0  ;;  %v8300_v51 = vld [vmem:[%s12027_s2 + $0x1c] sm:$0x3]  ;;  %v10260_v52 = vld [vmem:[%s10409_s7 + $0x20] ss:$0 sps:$4 sm:$0x11]  }
  0x2e   : > { %9068 = vmatprep.subr.bf16.mxu0 %v10344_v3  ;;  %v992_v53 = vshll.u32 %v10259_v50, 16  ;;  %v8288_v54 = vld [vmem:[%s12027_s2 + $0x14] sm:$0x3]  ;;  %v1177_v55 = vsel %vm358_vm1, %v8300_v51, 0  ;;  %v990_v57 = vshrl.u32 %v10259_v50, 16  ;;  %v997_v59 = vshll.u32 %v10260_v52, 16 }
  0x2f   : > { %v940_v56 = vsel %vm358_vm1, %v8288_v54, 0  ;;  %v8302_v62 = vld [vmem:[%s12027_s2 + $0x1e] sm:$0x3]  ;;  %v8291_v0 = vld [vmem:[%s12027_s2 + $0x16] sm:$0x3]  ;;  %v10261_v4 = vld [vmem:[%s10409_s7 + $0xc] sm:$0xff]  }
  0x30   : > { %v994_v58 = vrot.slane %v992_v53, 1  ;;  %v999_v61 = vrot.slane %v997_v59, 1  ;;  %v1231_v1 = vsel %vm358_vm1, %v8302_v62, 0  ;;  %v1224_v5 = vrot.slane %v10259_v50, 1  ;;  %v8331_v7 = vld [vmem:[%s12027_s2 + $0xa] sm:$0x3] }
  0x31   : > { %v1225_v6 = vrot.slane %v10260_v52, 1  ;;  %v1331_v8 = vshll.u32 %v10261_v4, 16  ;;  %v10262_v10 = vld [vmem:[%s10409_s7 + $0x14] ss:$0 sps:$4 sm:$0x11]   ;;  %v1594_v12 = vsel %vm358_vm1, %v8331_v7, 0 }
  0x32   : > { %v995_v60 = vor.u32 %v994_v58, %v990_v57  ;;  %v8315_v11 = vld [vmem:[%s12027_s2 + $0x2] sm:$0x3]  ;;  %v1329_v13 = vshrl.u32 %v10261_v4, 16  ;;  %v1336_v15 = vshll.u32 %v10262_v10, 16  ;;  %v1587_v17 = vrot.slane %v10261_v4, 1 }
  0x33   : > { %v1226_v9 = vsel %vm608_vm3, %v1224_v5, %v1225_v6  ;;  %v1333_v14 = vrot.slane %v1331_v8, 1  ;;  %v1344_v16 = vsel %vm358_vm1, %v8315_v11, 0  ;;  %v1588_v18 = vrot.slane %v10262_v10, 1  ;;  %v8330_v19 = vld [vmem:[%s12027_s2 + $0x8] sm:$0x3] }
  0x34   : > { %9089 = vmatmul.mubr.msk.bf16.vlgmr.msra.gmra.mrb[0].mxu1 %vm354_vm4, %v353_v21  ;;  %v1000_v63 = vsel %vm341_vm5, %v995_v60, %v999_v61  ;;  %v1338_v21 = vrot.slane %v1336_v15, 1  ;;  %v1318_v23 = vld [vmem:[%s12027_s2] sm:$0x3]  ;;  %v1638_v24 = vsel %vm358_vm1, %v8330_v19, 0  ;;  %v8320_v31 = vld [vmem:[%s12027_s2 + $0x4] sm:$0x3] }
  0x35   : > { %9093 = vmatpush3.bf16.msra.mxu1 %v706_v27  ;;  %9094 = vmatprep.mubr.msk.bf16.mxu1 %vm10345_vm2, %v10344_v3  ;;  %v1334_v20 = vor.u32 %v1333_v14, %v1329_v13  ;;  %v1390_v26 = vsel %vm358_vm1, %v1318_v23, 0  ;;  %v10612_v27 = vld [vmem:[%s10409_s7 + $0x18] sm:$0xff]   ;;  %v10264_v29 = vld [vmem:[%s10409_s7 + $0x20] ss:$0 sps:$4 sm:$0x11]   ;;  %v1443_v33 = vsel %vm358_vm1, %v8320_v31, 0 }
  0x36   : > { %9098 = vmatprep.subr.bf16.mxu1 %v10344_v3  ;;  %v1494_v30 = vshll.u32 %v10612_v27, 16  ;;  %v1492_v34 = vshrl.u32 %v10612_v27, 16  ;;  %v1499_v36 = vshll.u32 %v10264_v29, 16  ;;  %v8336_v39 = vld [vmem:[%s12027_s2 + $0xe] sm:$0x3]  ;;  %vm581_vm7 = vcmask 64512  }
  0x37   : > { %v1339_v25 = vsel %vm341_vm5, %v1334_v20, %v1338_v21  ;;  %v8323_v41 = vld [vmem:[%s12027_s2 + $0x6] sm:$0x3]  ;;  %v1736_v42 = vsel %vm358_vm1, %v8336_v39, 0  ;;  %v8343_v48 = vld [vmem:[%s12027_s2 + $0x12] sm:$0x3]  ;;  %vm8085_vm8 = vcmask 57344  }
  0x38   : > { %9065 = vmatmul.mubr.msk.bf16.vlgmr.msra.gmra.mrb[0].mxu0 %vm354_vm4, %v10255_v2  ;;  %v1005_v2 = vsel %vm358_vm1, %v8291_v0, 0  ;;  %v1507_v43 = vsel %vm358_vm1, %v8323_v41, 0  ;;  %v8356_v51 = vld [vmem:[%s12027_s2 + $0x18] sm:$0x3]  ;;  %v8342_v52 = vld [vmem:[%s12027_s2 + $0x10] sm:$0x3] }
  0x39   : > { %9069 = vmatpush3.bf16.msra.mxu0 %v460_v28  ;;  %9070 = vmatprep.mubr.msk.bf16.mxu0 %vm10345_vm2, %v10344_v3  ;;  %v8334_v28 = vld [vmem:[%s12027_s2 + $0xc] sm:$0x3]  ;;  %v2101_v53 = vsel %vm358_vm1, %v8356_v51, 0  ;;  %v1860_v54 = vsel %vm358_vm1, %v8342_v52, 0  ;;  %v8346_v59 = vld [vmem:[%s12027_s2 + $0x14] sm:$0x3] }
  0x3a   : > { %9074 = vmatprep.subr.bf16.mxu0 %v10344_v3  ;;  %v1683_v32 = vsel %vm358_vm1, %v8334_v28, 0  ;;  %v10266_v57 = vld [vmem:[%s10409_s7 + $0x2c] ss:$0 sps:$4 sm:$0x11]   ;;  %v1913_v61 = vsel %vm358_vm1, %v8346_v59, 0 }
  0x3b   : > { %v1969_v0 = vshll.u32 %v10266_v57, 16  ;;  %v8349_v6 = vld [vmem:[%s12027_s2 + $0x16] sm:$0x3]  ;;  %v2193_v11 = vrot.slane %v10266_v57, 1  ;;  %v2286_v28 = vld [vmem:[%s12027_s2] sm:$0x3] }
  0x3c   : > { %v1977_v8 = vsel %vm358_vm1, %v8349_v6, 0  ;;  %v10268_v15 = vld [vmem:[%s10409_s7 + $0x20] ss:$0 sps:$4 sm:$0x11]   ;;  %v2358_v31 = vsel %vm358_vm1, %v2286_v28, 0 }
  0x3d   : > { %v2304_v20 = vshll.u32 %v10268_v15, 16  ;;  %v2556_v23 = vrot.slane %v10268_v15, 1  ;;  %v8419_v51 = vld [vmem:[%s12027_s2 + $0x1a] sm:$0x3]  ;;  %v8404_v57 = vld [vmem:[%s12027_s2 + $0x10] sm:$0x3] }
  0x3e   : > { %v2828_v59 = vsel %vm358_vm1, %v8404_v57, 0 }
  0x40   : > { %9095 = vmatmul.mubr.msk.bf16.vlgmr.msra.gmra.mrb[0].mxu1 %vm354_vm4, %v520_v35 }
  0x41   : > { %9099 = vmatpush3.bf16.msra.mxu1 %v760_v37  ;;  %9100 = vmatprep.mubr.msk.bf16.mxu1 %vm10345_vm2, %v10344_v3 }
  0x42   : > { %9128 = vmatprep.subr.bf16.mxu1 %v10344_v3 }
  0x44   : > { %9071 = vmatmul.mubr.msk.bf16.vlgmr.msra.gmra.mrb[0].mxu0 %vm354_vm4, %v10465_v22 }
  0x45   : > { %9075 = vmatpush3.bf16.msra.mxu0 %v525_v38  ;;  %9076 = vmatprep.mubr.msk.bf16.mxu0 %vm10345_vm2, %v10344_v3  ;;  %v1501_v38 = vrot.slane %v1499_v36, 1  ;;  %v8382_v36 = vld [vmem:[%s12027_s2 + $0x4] sm:$0x3] }
  0x46   : > { %9104 = vmatprep.subr.bf16.mxu0 %v10344_v3 }
  0x4c   : > { %9101 = vmatmul.mubr.msk.bf16.vlgmr.msra.gmra.mrb[0].mxu1 %vm354_vm4, %v755_v45 }
  0x4d   : > { %9129 = vmatpush3.bf16.msra.mxu1 %v1087_v46  ;;  %9130 = vmatprep.mubr.msk.bf16.mxu1 %vm10345_vm2, %v10344_v3  ;;  %v8357_v46 = vld [vmem:[%s12027_s2 + $0x1a] sm:$0x3] }
  0x4e   : > { %9134 = vmatprep.subr.bf16.mxu1 %v10344_v3 }
  0x50   : > { %9077 = vmatmul.mubr.msk.bf16.vlgmr.msra.gmra.mrb[0].mxu0 %vm354_vm4, %v520_v35 }
  0x51   : > { %9105 = vmatpush3.bf16.msra.mxu0 %v842_v44  ;;  %9106 = vmatprep.mubr.msk.bf16.mxu0 %vm10345_vm2, %v10344_v3  ;;  %v1729_v44 = vrot.slane %v10612_v27, 1 }
  0x52   : > { %9110 = vmatprep.subr.bf16.mxu0 %v10344_v3 }
  0x54   : > { %9131 = vmatmul.mubr.msk.bf16.vlgmr.msra.gmra.mrb[4].mxu1 %vm354_vm4, %v755_v45  ;;  %v1730_v45 = vrot.slane %v10264_v29, 1 }
  0x55   : > { %9135 = vmatpush3.bf16.msra.mxu1 %v1131_v47  ;;  %9136 = vmatprep.mubr.msk.bf16.mxu1 %vm10345_vm2, %v10344_v3 }
  0x56   : > { %9140 = vmatprep.subr.bf16.mxu1 %v10344_v3  ;;  %v1731_v47 = vsel %vm608_vm3, %v1729_v44, %v1730_v45  ;;  %v8398_v44 = vld [vmem:[%s12027_s2 + $0xe] sm:$0x3] }
  0x58   : > { %9107 = vmatmul.mubr.msk.bf16.vlgmr.msra.gmra.mrb[4].mxu0 %vm354_vm4, %v520_v35 }
  0x59   : > { %9111 = vmatpush3.bf16.msra.mxu0 %v886_v49  ;;  %9112 = vmatprep.mubr.msk.bf16.mxu0 %vm10345_vm2, %v10344_v3  ;;  %v2057_v49 = vsel %vm358_vm1, %v8357_v46, 0  ;;  %v8385_v46 = vld [vmem:[%s12027_s2 + $0x6] sm:$0x3] }
  0x5a   : > { %9116 = vmatprep.subr.bf16.mxu0 %v10344_v3 }
  0x60   : > { %9137 = vmatmul.mubr.msk.bf16.vlgmr.msra.gmra.mrb[4].mxu1 %vm354_vm4, %v520_v35  ;;  %v1496_v35 = vrot.slane %v1494_v30, 1 }
  0x61   : > { %9141 = vmatpush3.bf16.msra.mxu1 %v1177_v55  ;;  %9142 = vmatprep.mubr.msk.bf16.mxu1 %vm10345_vm2, %v10344_v3  ;;  %v10265_v55 = vld [vmem:[%s10409_s7 + $0x24] sm:$0xff]  }
  0x62   : > { %9146 = vmatprep.subr.bf16.mxu1 %v10344_v3  ;;  %v1497_v37 = vor.u32 %v1496_v35, %v1492_v34  ;;  %v1964_v58 = vshll.u32 %v10265_v55, 16  ;;  %v1962_v62 = vshrl.u32 %v10265_v55, 16  ;;  %v2192_v10 = vrot.slane %v10265_v55, 1  ;;  %v10270_v34 = vld [vmem:[%s10409_s7 + $0x2c] ss:$0 sps:$4 sm:$0x11]  }
  0x63   : > { %v2467_v41 = vshll.u32 %v10270_v34, 16 }
  0x64   : > { %9113 = vmatmul.mubr.msk.bf16.vlgmr.msra.gmra.mrb[4].mxu0 %vm354_vm4, %v10465_v22  ;;  %v1589_v22 = vsel %vm608_vm3, %v1587_v17, %v1588_v18  ;;  %v1502_v40 = vsel %vm341_vm5, %v1497_v37, %v1501_v38  ;;  %v2194_v14 = vsel %vm608_vm3, %v2192_v10, %v2193_v11  ;;  %v2411_v38 = vsel %vm358_vm1, %v8382_v36, 0  ;;  %v8411_v11 = vld [vmem:[%s12027_s2 + $0x16] sm:$0x3] }
  0x65   : > { %9117 = vmatpush3.bf16.msra.mxu0 %v940_v56  ;;  %9118 = vmatprep.mubr.msk.bf16.mxu0 %vm10345_vm2, %v10344_v3  ;;  %v8360_v56 = vld [vmem:[%s12027_s2 + $0x1c] sm:$0x3] }
  0x66   : > { %9122 = vmatprep.subr.bf16.mxu0 %v10344_v3  ;;  %v2146_v60 = vsel %vm358_vm1, %v8360_v56, 0  ;;  %v8418_v56 = vld [vmem:[%s12027_s2 + $0x18] sm:$0x3] }
  0x6c   : > { %9143 = vmatmul.mubr.msk.bf16.vlgmr.msra.gmra.mrb[4].mxu1 %vm354_vm4, %v1000_v63 }
  0x6d   : > { %9147 = vmatpush3.bf16.msra.mxu1 %v1231_v1  ;;  %9148 = vmatprep.mubr.msk.bf16.mxu1 %vm10345_vm2, %v10344_v3 }
  0x6e   : > { %9176 = vmatprep.subr.bf16.mxu1 %v10344_v3 }
  0x70   : > { %9119 = vmatmul.mubr.msk.bf16.vlgmr.msra.gmra.mrb[4].mxu0 %vm354_vm4, %v10259_v50  ;;  %v1816_v50 = vsel %vm358_vm1, %v8343_v48, 0  ;;  %v2475_v48 = vsel %vm358_vm1, %v8385_v46, 0 }
  0x71   : > { %9123 = vmatpush3.bf16.msra.mxu0 %v1005_v2  ;;  %9124 = vmatprep.mubr.msk.bf16.mxu0 %vm10345_vm2, %v10344_v3  ;;  %v1971_v2 = vrot.slane %v1969_v0, 1  ;;  %v8408_v0 = vld [vmem:[%s12027_s2 + $0x14] sm:$0x3] }
  0x72   : > { %9152 = vmatprep.subr.bf16.mxu0 %v10344_v3 }
  0x78   : > { %9149 = vmatmul.mubr.msk.bf16.vlgmr.msra.gmra.mrb[4].mxu1 %vm354_vm4, %v1226_v9  ;;  %v10267_v9 = vld [vmem:[%s10409_s7 + $0x18] sm:$0xff]  }
  0x79   : > { %9177 = vmatpush3.bf16.msra.mxu1 %v1594_v12  ;;  %9178 = vmatprep.mubr.msk.bf16.mxu1 %vm10345_vm2, %v10344_v3  ;;  %v8393_v12 = vld [vmem:[%s12027_s2 + $0xa] sm:$0x3]  ;;  %v2299_v13 = vshll.u32 %v10267_v9, 16  ;;  %v2297_v18 = vshrl.u32 %v10267_v9, 16 }
  0x7a   : > { %9182 = vmatprep.subr.bf16.mxu1 %v10344_v3  ;;  %v2562_v17 = vsel %vm358_vm1, %v8393_v12, 0 }
  0x7b   : > { %v2301_v19 = vrot.slane %v2299_v13, 1  ;;  %v2945_v13 = vsel %vm358_vm1, %v8411_v11, 0 }
  0x7c   : > { %9125 = vmatmul.mubr.msk.bf16.vlgmr.msra.gmra.mrb[4].mxu0 %vm354_vm4, %v1000_v63  ;;  %v1966_v63 = vrot.slane %v1964_v58, 1  ;;  %v3069_v58 = vsel %vm358_vm1, %v8418_v56, 0 }
  0x7d   : > { %9153 = vmatpush3.bf16.msra.mxu0 %v1344_v16  ;;  %9154 = vmatprep.mubr.msk.bf16.mxu0 %vm10345_vm2, %v10344_v3  ;;  %v8377_v16 = vld [vmem:[%s12027_s2 + $0x2] sm:$0x3] }
  0x7e   : > { %9158 = vmatprep.subr.bf16.mxu0 %v10344_v3  ;;  %v1967_v1 = vor.u32 %v1966_v63, %v1962_v62  ;;  %v2312_v21 = vsel %vm358_vm1, %v8377_v16, 0  ;;  %v10272_v62 = vld [vmem:[%s10409_s7 + $0x38] ss:$0 sps:$4 sm:$0x11]  }
  0x7f   : > { %v2937_v6 = vshll.u32 %v10272_v62, 16  ;;  %v3161_v15 = vrot.slane %v10272_v62, 1 }
  0x80   : > { %9179 = vmatmul.mubr.msk.bf16.vlgmr.msra.gmra.mrb[8].mxu1 %vm354_vm4, %v1589_v22  ;;  %v1972_v5 = vsel %vm341_vm5, %v1967_v1, %v1971_v2  ;;  %v2555_v22 = vrot.slane %v10267_v9, 1  ;;  %v2881_v2 = vsel %vm358_vm1, %v8408_v0, 0 }
  0x81   : > { %9183 = vmatpush3.bf16.msra.mxu1 %v1638_v24  ;;  %9184 = vmatprep.mubr.msk.bf16.mxu1 %vm10345_vm2, %v10344_v3  ;;  %v8392_v24 = vld [vmem:[%s12027_s2 + $0x8] sm:$0x3] }
  0x82   : > { %9188 = vmatprep.subr.bf16.mxu1 %v10344_v3  ;;  %v2606_v29 = vsel %vm358_vm1, %v8392_v24, 0  ;;  %v10274_v24 = vld [vmem:[%s10409_s7 + $0x2c] ss:$0 sps:$4 sm:$0x11]  }
  0x83   : > { %v3524_v46 = vrot.slane %v10274_v24, 1 }
  0x84   : > { %9155 = vmatmul.mubr.msk.bf16.vlgmr.msra.gmra.mrb[8].mxu0 %vm354_vm4, %v1339_v25 }
  0x85   : > { %9159 = vmatpush3.bf16.msra.mxu0 %v1390_v26  ;;  %9160 = vmatprep.mubr.msk.bf16.mxu0 %vm10345_vm2, %v10344_v3  ;;  %v2306_v26 = vrot.slane %v2304_v20, 1 }
  0x86   : > { %9164 = vmatprep.subr.bf16.mxu0 %v10344_v3 }
  0x8c   : > { %9185 = vmatmul.mubr.msk.bf16.vlgmr.msra.gmra.mrb[8].mxu1 %vm354_vm4, %v1339_v25  ;;  %v2302_v25 = vor.u32 %v2301_v19, %v2297_v18 }
  0x8d   : > { %9189 = vmatpush3.bf16.msra.mxu1 %v1683_v32  ;;  %9190 = vmatprep.mubr.msk.bf16.mxu1 %vm10345_vm2, %v10344_v3  ;;  %v10759_v32 = vld [vmem:[%s10409_s7 + $0x24] sm:$0xff]  }
  0x8e   : > { %9194 = vmatprep.subr.bf16.mxu1 %v10344_v3  ;;  %v2307_v30 = vsel %vm341_vm5, %v2302_v25, %v2306_v26  ;;  %v2462_v35 = vshll.u32 %v10759_v32, 16  ;;  %v2460_v39 = vshrl.u32 %v10759_v32, 16 }
  0x90   : > { %9161 = vmatmul.mubr.msk.bf16.vlgmr.msra.gmra.mrb[8].mxu0 %vm354_vm4, %v10261_v4  ;;  %v8362_v4 = vld [vmem:[%s12027_s2 + $0x1e] sm:$0x3] }
  0x91   : > { %9165 = vmatpush3.bf16.msra.mxu0 %v1443_v33  ;;  %9166 = vmatprep.mubr.msk.bf16.mxu0 %vm10345_vm2, %v10344_v3  ;;  %v2199_v7 = vsel %vm358_vm1, %v8362_v4, 0  ;;  %v8396_v33 = vld [vmem:[%s12027_s2 + $0xc] sm:$0x3] }
  0x92   : > { %9170 = vmatprep.subr.bf16.mxu0 %v10344_v3  ;;  %v2651_v37 = vsel %vm358_vm1, %v8396_v33, 0 }
  0x98   : > { %9191 = vmatmul.mubr.msk.bf16.vlgmr.msra.gmra.mrb[8].mxu1 %vm354_vm4, %v1502_v40 }
  0x99   : > { %9195 = vmatpush3.bf16.msra.mxu1 %v1736_v42  ;;  %9196 = vmatprep.mubr.msk.bf16.mxu1 %vm10345_vm2, %v10344_v3 }
  0x9a   : > { %9224 = vmatprep.subr.bf16.mxu1 %v10344_v3 }
  0x9c   : > { %9167 = vmatmul.mubr.msk.bf16.vlgmr.msra.gmra.mrb[8].mxu0 %vm354_vm4, %v10612_v27 }
  0x9d   : > { %9171 = vmatpush3.bf16.msra.mxu0 %v1507_v43  ;;  %9172 = vmatprep.mubr.msk.bf16.mxu0 %vm10345_vm2, %v10344_v3  ;;  %v2469_v43 = vrot.slane %v2467_v41, 1 }
  0x9e   : > { %9200 = vmatprep.subr.bf16.mxu0 %v10344_v3 }
  0xa4   : > { %9197 = vmatmul.mubr.msk.bf16.vlgmr.msra.gmra.mrb[8].mxu1 %vm354_vm4, %v1731_v47 }
  0xa5   : > { %9225 = vmatpush3.bf16.msra.mxu1 %v2057_v49  ;;  %9226 = vmatprep.mubr.msk.bf16.mxu1 %vm10345_vm2, %v10344_v3  ;;  %v2697_v49 = vrot.slane %v10759_v32, 1 }
  0xa6   : > { %9230 = vmatprep.subr.bf16.mxu1 %v10344_v3 }
  0xa8   : > { %9173 = vmatmul.mubr.msk.bf16.vlgmr.msra.gmra.mrb[8].mxu0 %vm354_vm4, %v1502_v40 }
  0xa9   : > { %9201 = vmatpush3.bf16.msra.mxu0 %v1816_v50  ;;  %9202 = vmatprep.mubr.msk.bf16.mxu0 %vm10345_vm2, %v10344_v3  ;;  %v2698_v50 = vrot.slane %v10270_v34, 1 }
  0xaa   : > { %9206 = vmatprep.subr.bf16.mxu0 %v10344_v3 }
  0xab   : > { %v2699_v52 = vsel %vm608_vm3, %v2697_v49, %v2698_v50 }
  0xac   : > { %9227 = vmatmul.mubr.msk.bf16.vlgmr.msra.gmra.mrb[12].mxu1 %vm354_vm4, %v1731_v47  ;;  %v2704_v47 = vsel %vm358_vm1, %v8398_v44, 0 }
  0xad   : > { %9231 = vmatpush3.bf16.msra.mxu1 %v2101_v53  ;;  %9232 = vmatprep.mubr.msk.bf16.mxu1 %vm10345_vm2, %v10344_v3  ;;  %v8405_v53 = vld [vmem:[%s12027_s2 + $0x12] sm:$0x3] }
  0xae   : > { %9236 = vmatprep.subr.bf16.mxu1 %v10344_v3 }
  0xb0   : > { %9203 = vmatmul.mubr.msk.bf16.vlgmr.msra.gmra.mrb[12].mxu0 %vm354_vm4, %v1502_v40 }
  0xb1   : > { %9207 = vmatpush3.bf16.msra.mxu0 %v1860_v54  ;;  %9208 = vmatprep.mubr.msk.bf16.mxu0 %vm10345_vm2, %v10344_v3  ;;  %v3025_v54 = vsel %vm358_vm1, %v8419_v51, 0 }
  0xb2   : > { %9212 = vmatprep.subr.bf16.mxu0 %v10344_v3 }
  0xb8   : > { %9233 = vmatmul.mubr.msk.bf16.vlgmr.msra.gmra.mrb[12].mxu1 %vm354_vm4, %v1502_v40  ;;  %v2464_v40 = vrot.slane %v2462_v35, 1 }
  0xb9   : > { %9237 = vmatpush3.bf16.msra.mxu1 %v2146_v60  ;;  %9238 = vmatprep.mubr.msk.bf16.mxu1 %vm10345_vm2, %v10344_v3  ;;  %v10271_v60 = vld [vmem:[%s10409_s7 + $0x30] sm:$0xff]  }
  0xba   : > { %9242 = vmatprep.subr.bf16.mxu1 %v10344_v3  ;;  %v2465_v42 = vor.u32 %v2464_v40, %v2460_v39  ;;  %v2932_v63 = vshll.u32 %v10271_v60, 16  ;;  %v2930_v4 = vshrl.u32 %v10271_v60, 16 }
  0xbc   : > { %9209 = vmatmul.mubr.msk.bf16.vlgmr.msra.gmra.mrb[12].mxu0 %vm354_vm4, %v10612_v27  ;;  %v2557_v27 = vsel %vm608_vm3, %v2555_v22, %v2556_v23  ;;  %v2470_v45 = vsel %vm341_vm5, %v2465_v42, %v2469_v43 }
  0xbd   : > { %9213 = vmatpush3.bf16.msra.mxu0 %v1913_v61  ;;  %9214 = vmatprep.mubr.msk.bf16.mxu0 %vm10345_vm2, %v10344_v3  ;;  %v8422_v61 = vld [vmem:[%s12027_s2 + $0x1c] sm:$0x3] }
  0xbe   : > { %9218 = vmatprep.subr.bf16.mxu0 %v10344_v3  ;;  %v3114_v1 = vsel %vm358_vm1, %v8422_v61, 0 }
  0xc4   : > { %9239 = vmatmul.mubr.msk.bf16.vlgmr.msra.gmra.mrb[12].mxu1 %vm354_vm4, %v1972_v5 }
  0xc5   : > { %9243 = vmatpush3.bf16.msra.mxu1 %v2199_v7  ;;  %9244 = vmatprep.mubr.msk.bf16.mxu1 %vm10345_vm2, %v10344_v3 }
  0xc6   : > { %9272 = vmatprep.subr.bf16.mxu1 %v10344_v3 }
  0xc8   : > { %9215 = vmatmul.mubr.msk.bf16.vlgmr.msra.gmra.mrb[12].mxu0 %vm354_vm4, %v10265_v55  ;;  %v2784_v55 = vsel %vm358_vm1, %v8405_v53, 0 }
  0xc9   : > { %9219 = vmatpush3.bf16.msra.mxu0 %v1977_v8  ;;  %9220 = vmatprep.mubr.msk.bf16.mxu0 %vm10345_vm2, %v10344_v3  ;;  %v2939_v8 = vrot.slane %v2937_v6, 1 }
  0xca   : > { %9248 = vmatprep.subr.bf16.mxu0 %v10344_v3 }
  0xd0   : > { %9245 = vmatmul.mubr.msk.bf16.vlgmr.msra.gmra.mrb[12].mxu1 %vm354_vm4, %v2194_v14  ;;  %v3160_v14 = vrot.slane %v10271_v60, 1 }
  0xd1   : > { %9273 = vmatpush3.bf16.msra.mxu1 %v2562_v17  ;;  %9274 = vmatprep.mubr.msk.bf16.mxu1 %vm10345_vm2, %v10344_v3  ;;  %v10869_v17 = vld [vmem:[%s10409_s7 + $0x24] sm:$0xff]  }
  0xd2   : > { %9278 = vmatprep.subr.bf16.mxu1 %v10344_v3  ;;  %v3162_v23 = vsel %vm608_vm3, %v3160_v14, %v3161_v15  ;;  %v3267_v35 = vshll.u32 %v10869_v17, 16  ;;  %v3523_v40 = vrot.slane %v10869_v17, 1  ;;  %v3265_v50 = vshrl.u32 %v10869_v17, 16 }
  0xd4   : > { %9221 = vmatmul.mubr.msk.bf16.vlgmr.msra.gmra.mrb[12].mxu0 %vm354_vm4, %v1972_v5  ;;  %v2934_v5 = vrot.slane %v2932_v63, 1  ;;  %v3525_v11 = vsel %vm608_vm3, %v3523_v40, %v3524_v46 }
  0xd5   : > { %9249 = vmatpush3.bf16.msra.mxu0 %v2312_v21  ;;  %9250 = vmatprep.mubr.msk.bf16.mxu0 %vm10345_vm2, %v10344_v3  ;;  %v8455_v21 = vld [vmem:[%s12027_s2 + $0xa] sm:$0x3] }
  0xd6   : > { %9254 = vmatprep.subr.bf16.mxu0 %v10344_v3  ;;  %v2935_v7 = vor.u32 %v2934_v5, %v2930_v4  ;;  %v3530_v34 = vsel %vm358_vm1, %v8455_v21, 0  ;;  %v8454_v4 = vld [vmem:[%s12027_s2 + $0x8] sm:$0x3] }
  0xd8   : > { %9275 = vmatmul.mubr.msk.bf16.vlgmr.msra.gmra.mrb[16].mxu1 %vm354_vm4, %v2557_v27  ;;  %v10855_v10 = vsel %vm341_vm5, %v2935_v7, %v2939_v8 }
  0xd9   : > { %9279 = vmatpush3.bf16.msra.mxu1 %v2606_v29  ;;  %9280 = vmatprep.mubr.msk.bf16.mxu1 %vm10345_vm2, %v10344_v3 }
  0xda   : > { %9284 = vmatprep.subr.bf16.mxu1 %v10344_v3 }
  0xdc   : > { %9251 = vmatmul.mubr.msk.bf16.vlgmr.msra.gmra.mrb[16].mxu0 %vm354_vm4, %v2307_v30 }
  0xdd   : > { %9255 = vmatpush3.bf16.msra.mxu0 %v2358_v31  ;;  %9256 = vmatprep.mubr.msk.bf16.mxu0 %vm10345_vm2, %v10344_v3 }
  0xde   : > { %9260 = vmatprep.subr.bf16.mxu0 %v10344_v3 }
  0xe4   : > { %9281 = vmatmul.mubr.msk.bf16.vlgmr.msra.gmra.mrb[16].mxu1 %vm354_vm4, %v2307_v30 }
  0xe5   : > { %9285 = vmatpush3.bf16.msra.mxu1 %v2651_v37  ;;  %9286 = vmatprep.mubr.msk.bf16.mxu1 %vm10345_vm2, %v10344_v3 }
  0xe6   : > { %9290 = vmatprep.subr.bf16.mxu1 %v10344_v3 }
  0xe8   : > { %9257 = vmatmul.mubr.msk.bf16.vlgmr.msra.gmra.mrb[16].mxu0 %vm354_vm4, %v10267_v9  ;;  %v8424_v9 = vld [vmem:[%s12027_s2 + $0x1e] sm:$0x3] }
  0xe9   : > { %9261 = vmatpush3.bf16.msra.mxu0 %v2411_v38  ;;  %9262 = vmatprep.mubr.msk.bf16.mxu0 %vm10345_vm2, %v10344_v3  ;;  %v3167_v12 = vsel %vm358_vm1, %v8424_v9, 0 }
  0xea   : > { %9266 = vmatprep.subr.bf16.mxu0 %v10344_v3 }
  0xf0   : > { %9287 = vmatmul.mubr.msk.bf16.vlgmr.msra.gmra.mrb[16].mxu1 %vm354_vm4, %v2470_v45 }
  0xf1   : > { %9291 = vmatpush3.bf16.msra.mxu1 %v2704_v47  ;;  %9292 = vmatprep.mubr.msk.bf16.mxu1 %vm10345_vm2, %v10344_v3 }
  0xf2   : > { %9320 = vmatprep.subr.bf16.mxu1 %v10344_v3 }
  0xf4   : > { %9263 = vmatmul.mubr.msk.bf16.vlgmr.msra.gmra.mrb[16].mxu0 %vm354_vm4, %v10759_v32 }
  0xf5   : > { %9267 = vmatpush3.bf16.msra.mxu0 %v2475_v48  ;;  %9268 = vmatprep.mubr.msk.bf16.mxu0 %vm10345_vm2, %v10344_v3 }
  0xf6   : > { %9296 = vmatprep.subr.bf16.mxu0 %v10344_v3 }
  0xfc   : > { %9293 = vmatmul.mubr.msk.bf16.vlgmr.msra.gmra.mrb[16].mxu1 %vm354_vm4, %v2699_v52 }
  0xfd   : > { %9321 = vmatpush3.bf16.msra.mxu1 %v3025_v54  ;;  %9322 = vmatprep.mubr.msk.bf16.mxu1 %vm10345_vm2, %v10344_v3  ;;  %v3269_v54 = vrot.slane %v3267_v35, 1 }
  0xfe   : > { %9326 = vmatprep.subr.bf16.mxu1 %v10344_v3 }
  0xff   : > { %v3270_v5 = vor.u32 %v3269_v54, %v3265_v50 }
 0x100   : > { %9269 = vmatmul.mubr.msk.bf16.vlgmr.msra.gmra.mrb[16].mxu0 %vm354_vm4, %v2470_v45 }
 0x101   : > { %9297 = vmatpush3.bf16.msra.mxu0 %v2784_v55  ;;  %9298 = vmatprep.mubr.msk.bf16.mxu0 %vm10345_vm2, %v10344_v3 }
 0x102   : > { %9302 = vmatprep.subr.bf16.mxu0 %v10344_v3 }
 0x104   : > { %9323 = vmatmul.mubr.msk.bf16.vlgmr.msra.gmra.mrb[20].mxu1 %vm354_vm4, %v2699_v52 }
 0x105   : > { %9327 = vmatpush3.bf16.msra.mxu1 %v3069_v58  ;;  %9328 = vmatprep.mubr.msk.bf16.mxu1 %vm10345_vm2, %v10344_v3  ;;  %v3272_v58 = vshll.u32 %v10274_v24, 16 }
 0x106   : > { %9332 = vmatprep.subr.bf16.mxu1 %v10344_v3 }
 0x107   : > { %v3274_v6 = vrot.slane %v3272_v58, 1 }
 0x108   : > { %9299 = vmatmul.mubr.msk.bf16.vlgmr.msra.gmra.mrb[20].mxu0 %vm354_vm4, %v2470_v45 }
 0x109   : > { %9303 = vmatpush3.bf16.msra.mxu0 %v2828_v59  ;;  %9304 = vmatprep.mubr.msk.bf16.mxu0 %vm10345_vm2, %v10344_v3 }
 0x10a   : > { %9308 = vmatprep.subr.bf16.mxu0 %v10344_v3 }
 0x110   : > { %9329 = vmatmul.mubr.msk.bf16.vlgmr.msra.gmra.mrb[20].mxu1 %vm354_vm4, %v2470_v45  ;;  %v8439_v45 = vld [vmem:[%s12027_s2 + $0x2] sm:$0x3] }
 0x111   : > { %9333 = vmatpush3.bf16.msra.mxu1 %v3114_v1  ;;  %9334 = vmatprep.mubr.msk.bf16.mxu1 %vm10345_vm2, %v10344_v3  ;;  %v3280_v57 = vsel %vm358_vm1, %v8439_v45, 0 }
 0x112   : > { %9338 = vmatprep.subr.bf16.mxu1 %v10344_v3 }
 0x114   : > { %9305 = vmatmul.mubr.msk.bf16.vlgmr.msra.gmra.mrb[20].mxu0 %vm354_vm4, %v10759_v32 }
 0x115   : > { %9309 = vmatpush3.bf16.msra.mxu0 %v2881_v2  ;;  %9310 = vmatprep.mubr.msk.bf16.mxu0 %vm10345_vm2, %v10344_v3 }
 0x116   : > { %9314 = vmatprep.subr.bf16.mxu0 %v10344_v3 }
 0x11c   : > { %9335 = vmatmul.mubr.msk.bf16.vlgmr.msra.gmra.mrb[20].mxu1 %vm354_vm4, %v10855_v10 }
 0x11d   : > { %9339 = vmatpush3.bf16.msra.mxu1 %v3167_v12  ;;  %9340 = vmatprep.mubr.msk.bf16.mxu1 %vm10345_vm2, %v10344_v3  ;;  %v3574_v12 = vsel %vm358_vm1, %v8454_v4, 0 }
 0x11e   : > { %9368 = vmatprep.subr.bf16.mxu1 %v10344_v3 }
 0x11f   : > { %v796_v16 = vpop.f32.mrb[0].mxu1 }
 0x120   : > { %9311 = vmatmul.mubr.msk.bf16.vlgmr.msra.gmra.mrb[20].mxu0 %vm354_vm4, %v10271_v60  ;;  %v8738_v18 = vpack.c.bf16 %v796_v16, %v796_v16  ;;  %v825_v19 = vmul.f32 %v796_v16, %v796_v16  ;;  %v9102_v20 = vpop.f32.mrb[1].mxu1  ;;  %v815_v25 = vsel %vm581_vm7, %v796_v16, 0.0  ;;  %v3275_v16 = vsel %vm341_vm5, %v3270_v5, %v3274_v6 }
 0x121   : > { %9315 = vmatpush3.bf16.msra.mxu0 %v2945_v13  ;;  %9316 = vmatprep.mubr.msk.bf16.mxu0 %vm10345_vm2, %v10344_v3  ;;  %v799_v22 = vpop.f32.mrb[2].mxu1 }
 0x122   : > { %9344 = vmatprep.subr.bf16.mxu0 %v10344_v3  ;;  %813 = vst.msk [vmem:[%s10424_s28 + $0x8] sm:$0xf] %vm578_vm6, %v8738_v18  ;;  %v8739_v26 = vpack.c.bf16 %v799_v22, %v799_v22  ;;  %v816_v27 = vsel %vm581_vm7, %v799_v22, 0.0  ;;  %v826_v28 = vmul.f32 %v799_v22, %v799_v22  ;;  %v9103_v29 = vpop.f32.mrb[3].mxu1  ;;  %v827_v36 = vsel %vm581_vm7, %v825_v19, 0.0 }
 0x123   : > { %v561_v30 = vpop.f32.mrb[0].mxu0  ;;  %v817_v31 = vadd.f32 %v816_v27, %v815_v25 }
 0x124   : > { %v8736_v32 = vpack.c.bf16 %v561_v30, %v561_v30  ;;  %v9078_v33 = vpop.f32.mrb[1].mxu0  ;;  %814 = vst.msk [vmem:[%s10424_s28 + $0xc] sm:$0xf] %vm578_vm6, %v8739_v26  ;;  %v828_v37 = vsel %vm581_vm7, %v826_v28, 0.0  ;;  %v592_v38 = vmul.f32 %v561_v30, %v561_v30  ;;  %v582_v47 = vsel %vm581_vm7, %v561_v30, 0.0  ;;  %v10933_v28 = vld [vmem:[%s10409_s7 + $0x30] sm:$0xff]  }
 0x125   : > { %v564_v39 = vpop.f32.mrb[2].mxu0  ;;  %v818_v41 = vrot.slane %v817_v31, 4  ;;  %v829_v42 = vadd.f32 %v828_v37, %v827_v36  ;;  %v8458_v30 = vld [vmem:[%s12027_s2 + $0xc] sm:$0x3]  ;;  %v8444_v33 = vld [vmem:[%s12027_s2 + $0x4] sm:$0x3] }
 0x126   : > { %579 = vst.msk [vmem:[%s10424_s28] sm:$0xf] %vm578_vm6, %v8736_v32  ;;  %v8737_v43 = vpack.c.bf16 %v564_v39, %v564_v39  ;;  %v9079_v44 = vpop.f32.mrb[3].mxu0  ;;  %v583_v48 = vsel %vm581_vm7, %v564_v39, 0.0  ;;  %v593_v49 = vmul.f32 %v564_v39, %v564_v39  ;;  %v594_v55 = vsel %vm581_vm7, %v592_v38, 0.0 }
 0x127   : > { %v819_v51 = vadd.f32 %v818_v41, %v817_v31  ;;  %v830_v52 = vrot.slane %v829_v42, 4  ;;  %v584_v53 = vadd.f32 %v583_v48, %v582_v47  ;;  %v10276_v31 = vld [vmem:[%s10409_s7 + $0x38] ss:$0 sps:$4 sm:$0x11]   ;;  %v3430_v32 = vshll.u32 %v10933_v28, 16 }
 0x128   : > { %580 = vst.msk [vmem:[%s10424_s28 + $0x4] sm:$0xf] %vm578_vm6, %v8737_v43  ;;  %v595_v56 = vsel %vm581_vm7, %v593_v49, 0.0  ;;  %9341 = vmatmul.mubr.msk.bf16.vlgmr.msra.gmra.mrb[20].mxu1 %vm354_vm4, %v3162_v23  ;;  %v3379_v35 = vsel %vm358_vm1, %v8444_v33, 0  ;;  %v3428_v36 = vshrl.u32 %v10933_v28, 16  ;;  %v3435_v38 = vshll.u32 %v10276_v31, 16 }
 0x129   : > { %v820_v59 = vrot.slane %v819_v51, 2  ;;  %v831_v60 = vadd.f32 %v830_v52, %v829_v42  ;;  %v585_v61 = vrot.slane %v584_v53, 4  ;;  %v596_v62 = vadd.f32 %v595_v56, %v594_v55  ;;  %9369 = vmatpush3.bf16.msra.mxu1 %v3530_v34  ;;  %9370 = vmatprep.mubr.msk.bf16.mxu1 %vm10345_vm2, %v10344_v3  ;;  %v8460_v41 = vld [vmem:[%s12027_s2 + $0xe] sm:$0x3]  ;;  %v8447_v43 = vld [vmem:[%s12027_s2 + $0x6] sm:$0x3] }
 0x12a   : > { %9374 = vmatprep.subr.bf16.mxu1 %v10344_v3  ;;  %v3619_v34 = vsel %vm358_vm1, %v8458_v30, 0  ;;  %v3432_v37 = vrot.slane %v3430_v32, 1  ;;  %v3437_v40 = vrot.slane %v3435_v38, 1  ;;  %v3443_v44 = vsel %vm358_vm1, %v8447_v43, 0  ;;  %v8480_v30 = vld [vmem:[%s12027_s2 + $0x18] sm:$0x3] }
 0x12b   : > { %v821_v63 = vadd.f32 %v820_v59, %v819_v51  ;;  %v832_v0 = vrot.slane %v831_v60, 2  ;;  %v586_v1 = vadd.f32 %v585_v61, %v584_v53  ;;  %v597_v2 = vrot.slane %v596_v62, 4  ;;  %v8481_v61 = vld [vmem:[%s12027_s2 + $0x1a] sm:$0x3] }
 0x12c   : > { %9317 = vmatmul.mubr.msk.bf16.vlgmr.msra.gmra.mrb[20].mxu0 %vm354_vm4, %v10855_v10  ;;  %v3254_v10 = vld [vmem:[%s12027_s2] sm:$0x3]  ;;  %v3433_v39 = vor.u32 %v3432_v37, %v3428_v36  ;;  %v3665_v50 = vrot.slane %v10933_v28, 1  ;;  %v3666_v51 = vrot.slane %v10276_v31, 1 }
 0x12d   : > { %9345 = vmatpush3.bf16.msra.mxu0 %v3280_v57  ;;  %9346 = vmatprep.mubr.msk.bf16.mxu0 %vm10345_vm2, %v10344_v3  ;;  %v833_v7 = vadd.f32 %v832_v0, %v831_v60  ;;  %v587_v8 = vrot.slane %v586_v1, 2  ;;  %v598_v9 = vadd.f32 %v597_v2, %v596_v62  ;;  %v822_v13 = vrot.slane %v821_v63, 1 }
 0x12e   : > { %9350 = vmatprep.subr.bf16.mxu0 %v10344_v3  ;;  %v3326_v21 = vsel %vm358_vm1, %v3254_v10, 0  ;;  %v10961_v42 = vsel %vm341_vm5, %v3433_v39, %v3437_v40 }
 0x12f   : > { %v588_v14 = vadd.f32 %v587_v8, %v586_v1  ;;  %v599_v15 = vrot.slane %v598_v9, 2  ;;  %v834_v18 = vrot.slane %v833_v7, 1  ;;  %v823_v22 = vadd.f32 %v822_v13, %v821_v63  ;;  %v8467_v8 = vld [vmem:[%s12027_s2 + $0x12] sm:$0x3] }
 0x130   : > { %9371 = vmatmul.mubr.msk.bf16.vlgmr.msra.gmra.mrb[24].mxu1 %vm354_vm4, %v3525_v11 }
 0x131   : > { %v589_v19 = vrot.slane %v588_v14, 1  ;;  %v600_v20 = vadd.f32 %v599_v15, %v598_v9  ;;  %9375 = vmatpush3.bf16.msra.mxu1 %v3574_v12  ;;  %9376 = vmatprep.mubr.msk.bf16.mxu1 %vm10345_vm2, %v10344_v3  ;;  %v835_v25 = vadd.f32 %v834_v18, %v833_v7  ;;  %v3667_v7 = vsel %vm608_vm3, %v3665_v50, %v3666_v51 }
 0x132   : > { %9380 = vmatprep.subr.bf16.mxu1 %v10344_v3  ;;  %v3993_v12 = vsel %vm358_vm1, %v8481_v61, 0 }
 0x133   : > { %v590_v23 = vadd.f32 %v589_v19, %v588_v14  ;;  %v601_v24 = vrot.slane %v600_v20, 1  ;;  %v3752_v19 = vsel %vm358_vm1, %v8467_v8, 0 }
 0x134   : > { %9347 = vmatmul.mubr.msk.bf16.vlgmr.msra.gmra.mrb[24].mxu0 %vm354_vm4, %v3275_v16 }
 0x135   : > { %9351 = vmatpush3.bf16.msra.mxu0 %v3326_v21  ;;  %9352 = vmatprep.mubr.msk.bf16.mxu0 %vm10345_vm2, %v10344_v3  ;;  %v602_v26 = vadd.f32 %v601_v24, %v600_v20  ;;  %v10929_v27 = vadd.f32 %v823_v22, %v590_v23 }
 0x136   : > { %9356 = vmatprep.subr.bf16.mxu0 %v10344_v3 }
 0x137   : > { %v10935_v29 = vadd.f32 %v835_v25, %v602_v26 }
 0x13c   : > { %9377 = vmatmul.mubr.msk.bf16.vlgmr.msra.gmra.mrb[24].mxu1 %vm354_vm4, %v3275_v16 }
 0x13d   : > { %9381 = vmatpush3.bf16.msra.mxu1 %v3619_v34  ;;  %9382 = vmatprep.mubr.msk.bf16.mxu1 %vm10345_vm2, %v10344_v3  ;;  %v8466_v34 = vld [vmem:[%s12027_s2 + $0x10] sm:$0x3] }
 0x13e   : > { %9386 = vmatprep.subr.bf16.mxu1 %v10344_v3  ;;  %v3796_v43 = vsel %vm358_vm1, %v8466_v34, 0 }
 0x140   : > { %9353 = vmatmul.mubr.msk.bf16.vlgmr.msra.gmra.mrb[24].mxu0 %vm354_vm4, %v10869_v17  ;;  %v3672_v17 = vsel %vm358_vm1, %v8460_v41, 0 }
 0x141   : > { %9357 = vmatpush3.bf16.msra.mxu0 %v3379_v35  ;;  %9358 = vmatprep.mubr.msk.bf16.mxu0 %vm10345_vm2, %v10344_v3  ;;  %v4037_v35 = vsel %vm358_vm1, %v8480_v30, 0 }
 0x142   : > { %9362 = vmatprep.subr.bf16.mxu0 %v10344_v3 }
 0x148   : > { %9383 = vmatmul.mubr.msk.bf16.vlgmr.msra.gmra.mrb[24].mxu1 %vm354_vm4, %v10961_v42 }
 0x149   : > { %9387 = vmatpush3.bf16.msra.mxu1 %v3672_v17  ;;  %9388 = vmatprep.mubr.msk.bf16.mxu1 %vm10345_vm2, %v10344_v3 }
 0x14a   : > { %9416 = vmatprep.subr.bf16.mxu1 %v10344_v3 }
 0x14b   : > { %v1267_v45 = vpop.f32.mrb[4].mxu1 }
 0x14c   : > { %9359 = vmatmul.mubr.msk.bf16.vlgmr.msra.gmra.mrb[24].mxu0 %vm354_vm4, %v10933_v28  ;;  %v8742_v46 = vpack.c.bf16 %v1267_v45, %v1267_v45  ;;  %v1296_v47 = vmul.f32 %v1267_v45, %v1267_v45  ;;  %v9150_v48 = vpop.f32.mrb[5].mxu1  ;;  %v1286_v52 = vsel %vm581_vm7, %v1267_v45, 0.0 }
 0x14d   : > { %9363 = vmatpush3.bf16.msra.mxu0 %v3443_v44  ;;  %9364 = vmatprep.mubr.msk.bf16.mxu0 %vm10345_vm2, %v10344_v3  ;;  %v1270_v49 = vpop.f32.mrb[6].mxu1 }
 0x14e   : > { %9392 = vmatprep.subr.bf16.mxu0 %v10344_v3  ;;  %1284 = vst.msk [vmem:[%s10424_s28 + $0x18] sm:$0xf] %vm578_vm6, %v8742_v46  ;;  %v8743_v53 = vpack.c.bf16 %v1270_v49, %v1270_v49  ;;  %v1287_v54 = vsel %vm581_vm7, %v1270_v49, 0.0  ;;  %v1297_v55 = vmul.f32 %v1270_v49, %v1270_v49  ;;  %v9151_v56 = vpop.f32.mrb[7].mxu1  ;;  %v1298_v62 = vsel %vm581_vm7, %v1296_v47, 0.0  ;;  %v10277_v49 = vld [vmem:[%s10409_s7 + $0x3c] sm:$0xff]  }
 0x14f   : > { %v1041_v57 = vpop.f32.mrb[4].mxu0  ;;  %v1288_v58 = vadd.f32 %v1287_v54, %v1286_v52  ;;  %v8484_v52 = vld [vmem:[%s12027_s2 + $0x1c] sm:$0x3]  ;;  %v10278_v54 = vld [vmem:[%s10409_s7 + $0x44] ss:$0 sps:$4 sm:$0x11]  }
 0x150   : > { %v8740_v59 = vpack.c.bf16 %v1041_v57, %v1041_v57  ;;  %v9126_v60 = vpop.f32.mrb[5].mxu0  ;;  %1285 = vst.msk [vmem:[%s10424_s28 + $0x1c] sm:$0xf] %vm578_vm6, %v8743_v53  ;;  %v1299_v63 = vsel %vm581_vm7, %v1297_v55, 0.0  ;;  %v1070_v0 = vmul.f32 %v1041_v57, %v1041_v57  ;;  %v1060_v9 = vsel %vm581_vm7, %v1041_v57, 0.0 }
 0x151   : > { %v1044_v1 = vpop.f32.mrb[6].mxu0  ;;  %v1289_v2 = vrot.slane %v1288_v58, 4  ;;  %v1300_v4 = vadd.f32 %v1299_v63, %v1298_v62  ;;  %v3900_v55 = vshll.u32 %v10277_v49, 16  ;;  %v4082_v57 = vsel %vm358_vm1, %v8484_v52, 0  ;;  %v8486_v62 = vld [vmem:[%s12027_s2 + $0x1e] sm:$0x3] }
 0x152   : > { %1058 = vst.msk [vmem:[%s10424_s28 + $0x10] sm:$0xf] %vm578_vm6, %v8740_v59  ;;  %v8741_v5 = vpack.c.bf16 %v1044_v1, %v1044_v1  ;;  %v9127_v6 = vpop.f32.mrb[7].mxu0  ;;  %v1061_v11 = vsel %vm581_vm7, %v1044_v1, 0.0  ;;  %v1071_v10 = vmul.f32 %v1044_v1, %v1044_v1  ;;  %v1072_v16 = vsel %vm581_vm7, %v1070_v0, 0.0 }
 0x153   : > { %v1290_v13 = vadd.f32 %v1289_v2, %v1288_v58  ;;  %v1301_v14 = vrot.slane %v1300_v4, 4  ;;  %v1062_v15 = vadd.f32 %v1061_v11, %v1060_v9  ;;  %v3898_v58 = vshrl.u32 %v10277_v49, 16  ;;  %v11074_v6 = vld [vmem:[%s10409_s7 + $0x30] sm:$0xff]   ;;  %v8517_v11 = vld [vmem:[%s12027_s2 + $0xa] sm:$0x3] }
 0x154   : > { %1059 = vst.msk [vmem:[%s10424_s28 + $0x14] sm:$0xf] %vm578_vm6, %v8741_v5  ;;  %v1073_v18 = vsel %vm581_vm7, %v1071_v10, 0.0  ;;  %9389 = vmatmul.mubr.msk.bf16.vlgmr.msra.gmra.mrb[24].mxu1 %vm354_vm4, %v3667_v7  ;;  %v3902_v59 = vrot.slane %v3900_v55, 1  ;;  %v3905_v60 = vshll.u32 %v10278_v54, 16  ;;  %v4135_v0 = vsel %vm358_vm1, %v8486_v62, 0 }
 0x155   : > { %v1291_v20 = vrot.slane %v1290_v13, 2  ;;  %v1302_v21 = vadd.f32 %v1301_v14, %v1300_v4  ;;  %v1063_v22 = vrot.slane %v1062_v15, 4  ;;  %v1074_v23 = vadd.f32 %v1073_v18, %v1072_v16  ;;  %9417 = vmatpush3.bf16.msra.mxu1 %v3993_v12  ;;  %9418 = vmatprep.mubr.msk.bf16.mxu1 %vm10345_vm2, %v10344_v3 }
 0x156   : > { %9422 = vmatprep.subr.bf16.mxu1 %v10344_v3  ;;  %v3903_v61 = vor.u32 %v3902_v59, %v3898_v58  ;;  %v4128_v2 = vrot.slane %v10277_v49, 1  ;;  %v4129_v4 = vrot.slane %v10278_v54, 1  ;;  %v8516_v59 = vld [vmem:[%s12027_s2 + $0x8] sm:$0x3] }
 0x157   : > { %v1303_v24 = vrot.slane %v1302_v21, 2  ;;  %v1064_v25 = vadd.f32 %v1063_v22, %v1062_v15  ;;  %v1075_v26 = vrot.slane %v1074_v23, 4  ;;  %v1292_v31 = vadd.f32 %v1291_v20, %v1290_v13  ;;  %v10280_v13 = vld [vmem:[%s10409_s7 + $0x38] ss:$0 sps:$4 sm:$0x11]  }
 0x158   : > { %9365 = vmatmul.mubr.msk.bf16.vlgmr.msra.gmra.mrb[24].mxu0 %vm354_vm4, %v10961_v42  ;;  %v4130_v12 = vsel %vm608_vm3, %v4128_v2, %v4129_v4 }
 0x159   : > { %9393 = vmatpush3.bf16.msra.mxu0 %v3752_v19  ;;  %9394 = vmatprep.mubr.msk.bf16.mxu0 %vm10345_vm2, %v10344_v3  ;;  %v1065_v32 = vrot.slane %v1064_v25, 2  ;;  %v1076_v33 = vadd.f32 %v1075_v26, %v1074_v23  ;;  %v1304_v36 = vadd.f32 %v1303_v24, %v1302_v21  ;;  %v1293_v39 = vrot.slane %v1292_v31, 1 }
 0x15a   : > { %9398 = vmatprep.subr.bf16.mxu0 %v10344_v3  ;;  %v4498_v24 = vsel %vm358_vm1, %v8517_v11, 0 }
 0x15b   : > { %v1066_v37 = vadd.f32 %v1065_v32, %v1064_v25  ;;  %v1077_v38 = vrot.slane %v1076_v33, 2  ;;  %v1305_v17 = vrot.slane %v1304_v36, 1  ;;  %v1294_v46 = vadd.f32 %v1293_v39, %v1292_v31 }
 0x15c   : > { %9419 = vmatmul.mubr.msk.bf16.vlgmr.msra.gmra.mrb[28].mxu1 %vm354_vm4, %v3667_v7  ;;  %v4235_v25 = vshll.u32 %v11074_v6, 16  ;;  %v4492_v39 = vrot.slane %v10280_v13, 1 }
 0x15d   : > { %v1067_v40 = vrot.slane %v1066_v37, 1  ;;  %v1078_v41 = vadd.f32 %v1077_v38, %v1076_v33  ;;  %9423 = vmatpush3.bf16.msra.mxu1 %v4037_v35  ;;  %9424 = vmatprep.mubr.msk.bf16.mxu1 %vm10345_vm2, %v10344_v3  ;;  %v1306_v50 = vadd.f32 %v1305_v17, %v1304_v36  ;;  %v4491_v33 = vrot.slane %v11074_v6, 1  ;;  %v8501_v38 = vld [vmem:[%s12027_s2 + $0x2] sm:$0x3] }
 0x15e   : > { %9428 = vmatprep.subr.bf16.mxu1 %v10344_v3  ;;  %v4233_v17 = vshrl.u32 %v11074_v6, 16 }
 0x15f   : > { %v1068_v44 = vadd.f32 %v1067_v40, %v1066_v37  ;;  %v1079_v45 = vrot.slane %v1078_v41, 1 }
 0x160   : > { %9395 = vmatmul.mubr.msk.bf16.vlgmr.msra.gmra.mrb[28].mxu0 %vm354_vm4, %v10961_v42 }
 0x161   : > { %9399 = vmatpush3.bf16.msra.mxu0 %v3796_v43  ;;  %9400 = vmatprep.mubr.msk.bf16.mxu0 %vm10345_vm2, %v10344_v3  ;;  %v1069_v47 = vadd.f32 %v1068_v44, %v10929_v27  ;;  %v1080_v48 = vadd.f32 %v1079_v45, %v1078_v41  ;;  %v8470_v27 = vld [vmem:[%s12027_s2 + $0x14] sm:$0x3] }
 0x162   : > { %9404 = vmatprep.subr.bf16.mxu0 %v10344_v3 }
 0x163   : > { %v1081_v51 = vadd.f32 %v1080_v48, %v10935_v29  ;;  %v11036_v53 = vadd.f32 %v1294_v46, %v1069_v47  ;;  %v3849_v29 = vsel %vm358_vm1, %v8470_v27, 0  ;;  %v4237_v47 = vrot.slane %v4235_v25, 1 }
 0x165   : > { %v11039_v56 = vadd.f32 %v1306_v50, %v1081_v51  ;;  %v4248_v50 = vsel %vm358_vm1, %v8501_v38, 0  ;;  %v4240_v51 = vshll.u32 %v10280_v13, 16  ;;  %v8509_v38 = vld [vmem:[%s12027_s2 + $0x6] sm:$0x3] }
 0x168   : > { %9425 = vmatmul.mubr.msk.bf16.vlgmr.msra.gmra.mrb[28].mxu1 %vm354_vm4, %v10961_v42  ;;  %v3907_v42 = vrot.slane %v3905_v60, 1  ;;  %v4238_v60 = vor.u32 %v4237_v47, %v4233_v17 }
 0x169   : > { %9429 = vmatpush3.bf16.msra.mxu1 %v4082_v57  ;;  %9430 = vmatprep.mubr.msk.bf16.mxu1 %vm10345_vm2, %v10344_v3 }
 0x16a   : > { %9434 = vmatprep.subr.bf16.mxu1 %v10344_v3  ;;  %v11060_v63 = vsel %vm341_vm5, %v3903_v61, %v3907_v42  ;;  %v4242_v61 = vrot.slane %v4240_v51, 1 }
 0x16c   : > { %9401 = vmatmul.mubr.msk.bf16.vlgmr.msra.gmra.mrb[28].mxu0 %vm354_vm4, %v10933_v28  ;;  %v8473_v28 = vld [vmem:[%s12027_s2 + $0x16] sm:$0x3] }
 0x16d   : > { %9405 = vmatpush3.bf16.msra.mxu0 %v3849_v29  ;;  %9406 = vmatprep.mubr.msk.bf16.mxu0 %vm10345_vm2, %v10344_v3  ;;  %v3913_v1 = vsel %vm358_vm1, %v8473_v28, 0 }
 0x16e   : > { %9410 = vmatprep.subr.bf16.mxu0 %v10344_v3 }
 0x174   : > { %9431 = vmatmul.mubr.msk.bf16.vlgmr.msra.gmra.mrb[28].mxu1 %vm354_vm4, %v11060_v63 }
 0x175   : > { %9435 = vmatpush3.bf16.msra.mxu1 %v4135_v0  ;;  %9436 = vmatprep.mubr.msk.bf16.mxu1 %vm10345_vm2, %v10344_v3  ;;  %v4493_v0 = vsel %vm608_vm3, %v4491_v33, %v4492_v39  ;;  %v4411_v39 = vsel %vm358_vm1, %v8509_v38, 0 }
 0x176   : > { %9464 = vmatprep.subr.bf16.mxu1 %v10344_v3 }
 0x177   : > { %v1772_v5 = vpop.f32.mrb[8].mxu1 }
 0x178   : > { %9407 = vmatmul.mubr.msk.bf16.vlgmr.msra.gmra.mrb[28].mxu0 %vm354_vm4, %v10277_v49  ;;  %v8746_v7 = vpack.c.bf16 %v1772_v5, %v1772_v5  ;;  %v1801_v8 = vmul.f32 %v1772_v5, %v1772_v5  ;;  %v9198_v9 = vpop.f32.mrb[9].mxu1  ;;  %v1791_v14 = vsel %vm581_vm7, %v1772_v5, 0.0 }
 0x179   : > { %9411 = vmatpush3.bf16.msra.mxu0 %v3913_v1  ;;  %9412 = vmatprep.mubr.msk.bf16.mxu0 %vm10345_vm2, %v10344_v3  ;;  %v1775_v10 = vpop.f32.mrb[10].mxu1  ;;  %v4542_v1 = vsel %vm358_vm1, %v8516_v59, 0 }
 0x17a   : > { %9440 = vmatprep.subr.bf16.mxu0 %v10344_v3  ;;  %8340 = vst.msk [vmem:[%s10424_s28 + $0x28] sm:$0xf] %vm578_vm6, %v8746_v7  ;;  %v8747_v15 = vpack.c.bf16 %v1775_v10, %v1775_v10  ;;  %v1792_v16 = vsel %vm581_vm7, %v1775_v10, 0.0  ;;  %v1802_v18 = vmul.f32 %v1775_v10, %v1775_v10  ;;  %v9199_v19 = vpop.f32.mrb[11].mxu1  ;;  %v1803_v26 = vsel %vm581_vm7, %v1801_v8, 0.0 }
 0x17b   : > { %v1543_v20 = vpop.f32.mrb[8].mxu0  ;;  %v1793_v21 = vadd.f32 %v1792_v16, %v1791_v14  ;;  %v4243_v7 = vsel %vm341_vm5, %v4238_v60, %v4242_v61  ;;  %v11137_v19 = vld [vmem:[%s10409_s7 + $0x3c] sm:$0xff]  }
 0x17c   : > { %v8744_v22 = vpack.c.bf16 %v1543_v20, %v1543_v20  ;;  %v9174_v23 = vpop.f32.mrb[9].mxu0  ;;  %8341 = vst.msk [vmem:[%s10424_s28 + $0x2c] sm:$0xf] %vm578_vm6, %v8747_v15  ;;  %v1804_v30 = vsel %vm581_vm7, %v1802_v18, 0.0  ;;  %v1573_v31 = vmul.f32 %v1543_v20, %v1543_v20  ;;  %v1563_v40 = vsel %vm581_vm7, %v1543_v20, 0.0 }
 0x17d   : > { %v1546_v32 = vpop.f32.mrb[10].mxu0  ;;  %v1794_v34 = vrot.slane %v1793_v21, 4  ;;  %v1805_v35 = vadd.f32 %v1804_v30, %v1803_v26  ;;  %v4398_v25 = vshll.u32 %v11137_v19, 16 }
 0x17e   : > { %8328 = vst.msk [vmem:[%s10424_s28 + $0x20] sm:$0xf] %vm578_vm6, %v8744_v22  ;;  %v8745_v36 = vpack.c.bf16 %v1546_v32, %v1546_v32  ;;  %v9175_v37 = vpop.f32.mrb[11].mxu0  ;;  %v1564_v41 = vsel %vm581_vm7, %v1546_v32, 0.0  ;;  %v1574_v43 = vmul.f32 %v1546_v32, %v1546_v32  ;;  %v1575_v48 = vsel %vm581_vm7, %v1573_v31, 0.0 }
 0x17f   : > { %v1795_v44 = vadd.f32 %v1794_v34, %v1793_v21  ;;  %v1806_v45 = vrot.slane %v1805_v35, 4  ;;  %v1565_v46 = vadd.f32 %v1564_v41, %v1563_v40  ;;  %v8520_v22 = vld [vmem:[%s12027_s2 + $0xc] sm:$0x3]  ;;  %v4396_v31 = vshrl.u32 %v11137_v19, 16 }
 0x180   : > { %8329 = vst.msk [vmem:[%s10424_s28 + $0x24] sm:$0xf] %vm578_vm6, %v8745_v36  ;;  %v1576_v49 = vsel %vm581_vm7, %v1574_v43, 0.0  ;;  %9437 = vmatmul.mubr.msk.bf16.vlgmr.msra.gmra.mrb[28].mxu1 %vm354_vm4, %v4130_v12  ;;  %v4587_v30 = vsel %vm358_vm1, %v8520_v22, 0  ;;  %v4400_v32 = vrot.slane %v4398_v25, 1 }
 0x181   : > { %v1796_v52 = vrot.slane %v1795_v44, 2  ;;  %v1807_v54 = vadd.f32 %v1806_v45, %v1805_v35  ;;  %v1566_v55 = vrot.slane %v1565_v46, 4  ;;  %v1577_v27 = vadd.f32 %v1576_v49, %v1575_v48  ;;  %9465 = vmatpush3.bf16.msra.mxu1 %v4498_v24  ;;  %9466 = vmatprep.mubr.msk.bf16.mxu1 %vm10345_vm2, %v10344_v3  ;;  %v10282_v24 = vld [vmem:[%s10409_s7 + $0x44] ss:$0 sps:$4 sm:$0x11]  }
 0x182   : > { %9470 = vmatprep.subr.bf16.mxu1 %v10344_v3  ;;  %v4403_v33 = vshll.u32 %v10282_v24, 16  ;;  %v4401_v34 = vor.u32 %v4400_v32, %v4396_v31  ;;  %v8522_v36 = vld [vmem:[%s12027_s2 + $0xe] sm:$0x3]  ;;  %v4633_v45 = vrot.slane %v11137_v19, 1  ;;  %v8542_v22 = vld [vmem:[%s12027_s2 + $0x18] sm:$0x3] }
 0x183   : > { %v1808_v57 = vrot.slane %v1807_v54, 2  ;;  %v1567_v29 = vadd.f32 %v1566_v55, %v1565_v46  ;;  %v1578_v58 = vrot.slane %v1577_v27, 4  ;;  %v1797_v42 = vadd.f32 %v1796_v52, %v1795_v44 }
 0x184   : > { %9413 = vmatmul.mubr.msk.bf16.vlgmr.msra.gmra.mrb[28].mxu0 %vm354_vm4, %v11060_v63  ;;  %v4222_v63 = vld [vmem:[%s12027_s2] sm:$0x3]  ;;  %v4405_v35 = vrot.slane %v4403_v33, 1  ;;  %v4634_v46 = vrot.slane %v10282_v24, 1 }
 0x185   : > { %9441 = vmatpush3.bf16.msra.mxu0 %v4248_v50  ;;  %9442 = vmatprep.mubr.msk.bf16.mxu0 %vm10345_vm2, %v10344_v3  ;;  %v1568_v62 = vrot.slane %v1567_v29, 2  ;;  %v1579_v28 = vadd.f32 %v1578_v58, %v1577_v27  ;;  %v1809_v2 = vadd.f32 %v1808_v57, %v1807_v54  ;;  %v1798_v8 = vrot.slane %v1797_v42, 1  ;;  %v8543_v57 = vld [vmem:[%s12027_s2 + $0x1a] sm:$0x3] }
 0x186   : > { %9446 = vmatprep.subr.bf16.mxu0 %v10344_v3  ;;  %v4294_v10 = vsel %vm358_vm1, %v4222_v63, 0  ;;  %v11168_v37 = vsel %vm341_vm5, %v4401_v34, %v4405_v35  ;;  %v8529_v63 = vld [vmem:[%s12027_s2 + $0x12] sm:$0x3] }
 0x187   : > { %v1569_v4 = vadd.f32 %v1568_v62, %v1567_v29  ;;  %v1580_v5 = vrot.slane %v1579_v28, 2  ;;  %v1810_v12 = vrot.slane %v1809_v2, 1  ;;  %v1799_v15 = vadd.f32 %v1798_v8, %v1797_v42 }
 0x188   : > { %9467 = vmatmul.mubr.msk.bf16.vlgmr.msra.gmra.mrb[32].mxu1 %vm354_vm4, %v4493_v0  ;;  %v4635_v0 = vsel %vm608_vm3, %v4633_v45, %v4634_v46 }
 0x189   : > { %v1570_v9 = vrot.slane %v1569_v4, 1  ;;  %v1581_v11 = vadd.f32 %v1580_v5, %v1579_v28  ;;  %9471 = vmatpush3.bf16.msra.mxu1 %v4542_v1  ;;  %9472 = vmatprep.mubr.msk.bf16.mxu1 %vm10345_vm2, %v10344_v3  ;;  %v1811_v20 = vadd.f32 %v1810_v12, %v1809_v2  ;;  %v4961_v5 = vsel %vm358_vm1, %v8543_v57, 0 }
 0x18a   : > { %9476 = vmatprep.subr.bf16.mxu1 %v10344_v3  ;;  %v4720_v12 = vsel %vm358_vm1, %v8529_v63, 0 }
 0x18b   : > { %v1571_v13 = vadd.f32 %v1570_v9, %v1569_v4  ;;  %v1582_v14 = vrot.slane %v1581_v11, 1 }
 0x18c   : > { %9443 = vmatmul.mubr.msk.bf16.vlgmr.msra.gmra.mrb[32].mxu0 %vm354_vm4, %v4243_v7 }
 0x18d   : > { %9447 = vmatpush3.bf16.msra.mxu0 %v4294_v10  ;;  %9448 = vmatprep.mubr.msk.bf16.mxu0 %vm10345_vm2, %v10344_v3  ;;  %v1572_v16 = vadd.f32 %v1571_v13, %v11036_v53  ;;  %v1583_v18 = vadd.f32 %v1582_v14, %v1581_v11  ;;  %v8506_v53 = vld [vmem:[%s12027_s2 + $0x4] sm:$0x3] }
 0x18e   : > { %9452 = vmatprep.subr.bf16.mxu0 %v10344_v3 }
 0x18f   : > { %v1584_v21 = vadd.f32 %v1583_v18, %v11039_v56  ;;  %v11143_v23 = vadd.f32 %v1799_v15, %v1572_v16  ;;  %v4347_v56 = vsel %vm358_vm1, %v8506_v53, 0 }
 0x191   : > { %v11147_v26 = vadd.f32 %v1811_v20, %v1584_v21 }
 0x194   : > { %9473 = vmatmul.mubr.msk.bf16.vlgmr.msra.gmra.mrb[32].mxu1 %vm354_vm4, %v4243_v7 }
 0x195   : > { %9477 = vmatpush3.bf16.msra.mxu1 %v4587_v30  ;;  %9478 = vmatprep.mubr.msk.bf16.mxu1 %vm10345_vm2, %v10344_v3  ;;  %v8528_v30 = vld [vmem:[%s12027_s2 + $0x10] sm:$0x3] }
 0x196   : > { %9482 = vmatprep.subr.bf16.mxu1 %v10344_v3  ;;  %v4764_v38 = vsel %vm358_vm1, %v8528_v30, 0 }
 0x198   : > { %9449 = vmatmul.mubr.msk.bf16.vlgmr.msra.gmra.mrb[32].mxu0 %vm354_vm4, %v11074_v6  ;;  %v4640_v6 = vsel %vm358_vm1, %v8522_v36, 0 }
 0x199   : > { %9453 = vmatpush3.bf16.msra.mxu0 %v4347_v56  ;;  %9454 = vmatprep.mubr.msk.bf16.mxu0 %vm10345_vm2, %v10344_v3  ;;  %v5005_v56 = vsel %vm358_vm1, %v8542_v22, 0 }
 0x19a   : > { %9458 = vmatprep.subr.bf16.mxu0 %v10344_v3 }
 0x1a0   : > { %9479 = vmatmul.mubr.msk.bf16.vlgmr.msra.gmra.mrb[32].mxu1 %vm354_vm4, %v11168_v37 }
 0x1a1   : > { %9483 = vmatpush3.bf16.msra.mxu1 %v4640_v6  ;;  %9484 = vmatprep.mubr.msk.bf16.mxu1 %vm10345_vm2, %v10344_v3 }
 0x1a2   : > { %9512 = vmatprep.subr.bf16.mxu1 %v10344_v3 }
 0x1a3   : > { %v2235_v40 = vpop.f32.mrb[12].mxu1 }
 0x1a4   : > { %9455 = vmatmul.mubr.msk.bf16.vlgmr.msra.gmra.mrb[32].mxu0 %vm354_vm4, %v11137_v19  ;;  %v8750_v41 = vpack.c.bf16 %v2235_v40, %v2235_v40  ;;  %v2264_v43 = vmul.f32 %v2235_v40, %v2235_v40  ;;  %v9246_v17 = vpop.f32.mrb[13].mxu1  ;;  %v2254_v47 = vsel %vm581_vm7, %v2235_v40, 0.0 }
 0x1a5   : > { %9459 = vmatpush3.bf16.msra.mxu0 %v4411_v39  ;;  %9460 = vmatprep.mubr.msk.bf16.mxu0 %vm10345_vm2, %v10344_v3  ;;  %v2238_v44 = vpop.f32.mrb[14].mxu1 }
 0x1a6   : > { %9488 = vmatprep.subr.bf16.mxu0 %v10344_v3  ;;  %8366 = vst.msk [vmem:[%s10424_s28 + $0x38] sm:$0xf] %vm578_vm6, %v8750_v41  ;;  %v8751_v48 = vpack.c.bf16 %v2238_v44, %v2238_v44  ;;  %v2255_v49 = vsel %vm581_vm7, %v2238_v44, 0.0  ;;  %v2265_v50 = vmul.f32 %v2238_v44, %v2238_v44  ;;  %v9247_v51 = vpop.f32.mrb[15].mxu1  ;;  %v2266_v29 = vsel %vm581_vm7, %v2264_v43, 0.0  ;;  %v10283_v44 = vld [vmem:[%s10409_s7 + $0x48] sm:$0xff]  }
 0x1a7   : > { %v2013_v52 = vpop.f32.mrb[12].mxu0  ;;  %v2256_v54 = vadd.f32 %v2255_v49, %v2254_v47  ;;  %v8546_v47 = vld [vmem:[%s12027_s2 + $0x1c] sm:$0x3]  ;;  %v10284_v49 = vld [vmem:[%s10409_s7 + $0x50] ss:$0 sps:$4 sm:$0x11]  }
 0x1a8   : > { %v8748_v55 = vpack.c.bf16 %v2013_v52, %v2013_v52  ;;  %v9222_v27 = vpop.f32.mrb[13].mxu0  ;;  %8367 = vst.msk [vmem:[%s10424_s28 + $0x3c] sm:$0xf] %vm578_vm6, %v8751_v48  ;;  %v2267_v58 = vsel %vm581_vm7, %v2265_v50, 0.0  ;;  %v2042_v59 = vmul.f32 %v2013_v52, %v2013_v52  ;;  %v2032_v1 = vsel %vm581_vm7, %v2013_v52, 0.0 }
 0x1a9   : > { %v2016_v60 = vpop.f32.mrb[14].mxu0  ;;  %v2257_v61 = vrot.slane %v2256_v54, 4  ;;  %v2268_v42 = vadd.f32 %v2267_v58, %v2266_v29  ;;  %v4868_v50 = vshll.u32 %v10283_v44, 16  ;;  %v5050_v52 = vsel %vm358_vm1, %v8546_v47, 0  ;;  %v8548_v29 = vld [vmem:[%s12027_s2 + $0x1e] sm:$0x3] }
 0x1aa   : > { %8354 = vst.msk [vmem:[%s10424_s28 + $0x30] sm:$0xf] %vm578_vm6, %v8748_v55  ;;  %v8749_v62 = vpack.c.bf16 %v2016_v60, %v2016_v60  ;;  %v9223_v28 = vpop.f32.mrb[15].mxu0  ;;  %v2033_v2 = vsel %vm581_vm7, %v2016_v60, 0.0  ;;  %v2043_v4 = vmul.f32 %v2016_v60, %v2016_v60  ;;  %v2044_v11 = vsel %vm581_vm7, %v2042_v59, 0.0 }
 0x1ab   : > { %v2258_v7 = vadd.f32 %v2257_v61, %v2256_v54  ;;  %v2269_v8 = vrot.slane %v2268_v42, 4  ;;  %v2034_v9 = vadd.f32 %v2033_v2, %v2032_v1  ;;  %v4866_v54 = vshrl.u32 %v10283_v44, 16  ;;  %v11281_v28 = vld [vmem:[%s10409_s7 + $0x3c] sm:$0xff]   ;;  %v8579_v2 = vld [vmem:[%s12027_s2 + $0xa] sm:$0x3] }
 0x1ac   : > { %8355 = vst.msk [vmem:[%s10424_s28 + $0x34] sm:$0xf] %vm578_vm6, %v8749_v62  ;;  %v2045_v10 = vsel %vm581_vm7, %v2043_v4, 0.0  ;;  %9485 = vmatmul.mubr.msk.bf16.vlgmr.msra.gmra.mrb[32].mxu1 %vm354_vm4, %v4635_v0  ;;  %v4870_v55 = vrot.slane %v4868_v50, 1  ;;  %v4873_v27 = vshll.u32 %v10284_v49, 16  ;;  %v5103_v59 = vsel %vm358_vm1, %v8548_v29, 0 }
 0x1ad   : > { %v2259_v13 = vrot.slane %v2258_v7, 2  ;;  %v2270_v14 = vadd.f32 %v2269_v8, %v2268_v42  ;;  %v2035_v15 = vrot.slane %v2034_v9, 4  ;;  %v2046_v16 = vadd.f32 %v2045_v10, %v2044_v11  ;;  %9513 = vmatpush3.bf16.msra.mxu1 %v4961_v5  ;;  %9514 = vmatprep.mubr.msk.bf16.mxu1 %vm10345_vm2, %v10344_v3 }
 0x1ae   : > { %9518 = vmatprep.subr.bf16.mxu1 %v10344_v3  ;;  %v4871_v57 = vor.u32 %v4870_v55, %v4866_v54  ;;  %v5096_v61 = vrot.slane %v10283_v44, 1  ;;  %v5097_v42 = vrot.slane %v10284_v49, 1  ;;  %v8578_v55 = vld [vmem:[%s12027_s2 + $0x8] sm:$0x3] }
 0x1af   : > { %v2271_v18 = vrot.slane %v2270_v14, 2  ;;  %v2036_v20 = vadd.f32 %v2035_v15, %v2034_v9  ;;  %v2047_v21 = vrot.slane %v2046_v16, 4  ;;  %v2260_v24 = vadd.f32 %v2259_v13, %v2258_v7  ;;  %v10286_v7 = vld [vmem:[%s10409_s7 + $0x44] ss:$0 sps:$4 sm:$0x11]  }
 0x1b0   : > { %9461 = vmatmul.mubr.msk.bf16.vlgmr.msra.gmra.mrb[32].mxu0 %vm354_vm4, %v11168_v37  ;;  %v5098_v5 = vsel %vm608_vm3, %v5096_v61, %v5097_v42 }
 0x1b1   : > { %9489 = vmatpush3.bf16.msra.mxu0 %v4720_v12  ;;  %9490 = vmatprep.mubr.msk.bf16.mxu0 %vm10345_vm2, %v10344_v3  ;;  %v2037_v25 = vrot.slane %v2036_v20, 2  ;;  %v2048_v53 = vadd.f32 %v2047_v21, %v2046_v16  ;;  %v2272_v31 = vadd.f32 %v2271_v18, %v2270_v14  ;;  %v2261_v34 = vrot.slane %v2260_v24, 1 }
 0x1b2   : > { %9494 = vmatprep.subr.bf16.mxu0 %v10344_v3  ;;  %v5466_v18 = vsel %vm358_vm1, %v8579_v2, 0 }
 0x1b3   : > { %v2038_v32 = vadd.f32 %v2037_v25, %v2036_v20  ;;  %v2049_v33 = vrot.slane %v2048_v53, 2  ;;  %v2273_v6 = vrot.slane %v2272_v31, 1  ;;  %v2262_v41 = vadd.f32 %v2261_v34, %v2260_v24 }
 0x1b4   : > { %9515 = vmatmul.mubr.msk.bf16.vlgmr.msra.gmra.mrb[36].mxu1 %vm354_vm4, %v4635_v0  ;;  %v5459_v20 = vrot.slane %v11281_v28, 1  ;;  %v5460_v34 = vrot.slane %v10286_v7, 1 }
 0x1b5   : > { %v2039_v35 = vrot.slane %v2038_v32, 1  ;;  %v2050_v36 = vadd.f32 %v2049_v33, %v2048_v53  ;;  %9519 = vmatpush3.bf16.msra.mxu1 %v5005_v56  ;;  %9520 = vmatprep.mubr.msk.bf16.mxu1 %vm10345_vm2, %v10344_v3  ;;  %v2274_v45 = vadd.f32 %v2273_v6, %v2272_v31  ;;  %v5203_v53 = vshll.u32 %v11281_v28, 16  ;;  %v8563_v33 = vld [vmem:[%s12027_s2 + $0x2] sm:$0x3] }
 0x1b6   : > { %9524 = vmatprep.subr.bf16.mxu1 %v10344_v3  ;;  %v5201_v6 = vshrl.u32 %v11281_v28, 16 }
 0x1b7   : > { %v2040_v39 = vadd.f32 %v2039_v35, %v2038_v32  ;;  %v2051_v40 = vrot.slane %v2050_v36, 1 }
 0x1b8   : > { %9491 = vmatmul.mubr.msk.bf16.vlgmr.msra.gmra.mrb[36].mxu0 %vm354_vm4, %v11168_v37 }
 0x1b9   : > { %9495 = vmatpush3.bf16.msra.mxu0 %v4764_v38  ;;  %9496 = vmatprep.mubr.msk.bf16.mxu0 %vm10345_vm2, %v10344_v3  ;;  %v2041_v43 = vadd.f32 %v2040_v39, %v11143_v23  ;;  %v2052_v17 = vadd.f32 %v2051_v40, %v2050_v36  ;;  %v8532_v23 = vld [vmem:[%s12027_s2 + $0x14] sm:$0x3] }
 0x1ba   : > { %9500 = vmatprep.subr.bf16.mxu0 %v10344_v3 }
 0x1bb   : > { %v2053_v46 = vadd.f32 %v2052_v17, %v11147_v26  ;;  %v11243_v48 = vadd.f32 %v2262_v41, %v2041_v43  ;;  %v4817_v26 = vsel %vm358_vm1, %v8532_v23, 0  ;;  %v5208_v43 = vshll.u32 %v10286_v7, 16 }
 0x1bd   : > { %v11246_v51 = vadd.f32 %v2274_v45, %v2053_v46  ;;  %v5216_v45 = vsel %vm358_vm1, %v8563_v33, 0  ;;  %v5205_v46 = vrot.slane %v5203_v53, 1  ;;  %v8571_v33 = vld [vmem:[%s12027_s2 + $0x6] sm:$0x3] }
 0x1c0   : > { %9521 = vmatmul.mubr.msk.bf16.vlgmr.msra.gmra.mrb[36].mxu1 %vm354_vm4, %v11168_v37  ;;  %v4875_v37 = vrot.slane %v4873_v27, 1  ;;  %v5206_v27 = vor.u32 %v5205_v46, %v5201_v6 }
 0x1c1   : > { %9525 = vmatpush3.bf16.msra.mxu1 %v5050_v52  ;;  %9526 = vmatprep.mubr.msk.bf16.mxu1 %vm10345_vm2, %v10344_v3 }
 0x1c2   : > { %9530 = vmatprep.subr.bf16.mxu1 %v10344_v3  ;;  %v11267_v58 = vsel %vm341_vm5, %v4871_v57, %v4875_v37  ;;  %v5210_v57 = vrot.slane %v5208_v43, 1 }
 0x1c4   : > { %9497 = vmatmul.mubr.msk.bf16.vlgmr.msra.gmra.mrb[36].mxu0 %vm354_vm4, %v11137_v19  ;;  %v8535_v19 = vld [vmem:[%s12027_s2 + $0x16] sm:$0x3] }
 0x1c5   : > { %9501 = vmatpush3.bf16.msra.mxu0 %v4817_v26  ;;  %9502 = vmatprep.mubr.msk.bf16.mxu0 %vm10345_vm2, %v10344_v3  ;;  %v4881_v60 = vsel %vm358_vm1, %v8535_v19, 0 }
 0x1c6   : > { %9506 = vmatprep.subr.bf16.mxu0 %v10344_v3 }
 0x1cc   : > { %9527 = vmatmul.mubr.msk.bf16.vlgmr.msra.gmra.mrb[36].mxu1 %vm354_vm4, %v11267_v58 }
 0x1cd   : > { %9531 = vmatpush3.bf16.msra.mxu1 %v5103_v59  ;;  %9532 = vmatprep.mubr.msk.bf16.mxu1 %vm10345_vm2, %v10344_v3  ;;  %v5461_v59 = vsel %vm608_vm3, %v5459_v20, %v5460_v34  ;;  %v5379_v34 = vsel %vm358_vm1, %v8571_v33, 0 }
 0x1ce   : > { %9560 = vmatprep.subr.bf16.mxu1 %v10344_v3 }
 0x1cf   : > { %v2740_v62 = vpop.f32.mrb[16].mxu1 }
 0x1d0   : > { %9503 = vmatmul.mubr.msk.bf16.vlgmr.msra.gmra.mrb[36].mxu0 %vm354_vm4, %v10283_v44  ;;  %v8754_v0 = vpack.c.bf16 %v2740_v62, %v2740_v62  ;;  %v2769_v63 = vmul.f32 %v2740_v62, %v2740_v62  ;;  %v9294_v1 = vpop.f32.mrb[17].mxu1  ;;  %v2759_v8 = vsel %vm581_vm7, %v2740_v62, 0.0 }
 0x1d1   : > { %9507 = vmatpush3.bf16.msra.mxu0 %v4881_v60  ;;  %9508 = vmatprep.mubr.msk.bf16.mxu0 %vm10345_vm2, %v10344_v3  ;;  %v2743_v4 = vpop.f32.mrb[18].mxu1  ;;  %v5510_v60 = vsel %vm358_vm1, %v8578_v55, 0 }
 0x1d2   : > { %9536 = vmatprep.subr.bf16.mxu0 %v10344_v3  ;;  %8402 = vst.msk [vmem:[%s10424_s28 + $0x48] sm:$0xf] %vm578_vm6, %v8754_v0  ;;  %v8755_v9 = vpack.c.bf16 %v2743_v4, %v2743_v4  ;;  %v2760_v11 = vsel %vm581_vm7, %v2743_v4, 0.0  ;;  %v2770_v10 = vmul.f32 %v2743_v4, %v2743_v4  ;;  %v9295_v12 = vpop.f32.mrb[19].mxu1  ;;  %v2771_v21 = vsel %vm581_vm7, %v2769_v63, 0.0 }
 0x1d3   : > { %v2511_v13 = vpop.f32.mrb[16].mxu0  ;;  %v2761_v14 = vadd.f32 %v2760_v11, %v2759_v8  ;;  %v5211_v0 = vsel %vm341_vm5, %v5206_v27, %v5210_v57  ;;  %v11344_v12 = vld [vmem:[%s10409_s7 + $0x48] sm:$0xff]  }
 0x1d4   : > { %v8752_v15 = vpack.c.bf16 %v2511_v13, %v2511_v13  ;;  %v9270_v16 = vpop.f32.mrb[17].mxu0  ;;  %8403 = vst.msk [vmem:[%s10424_s28 + $0x4c] sm:$0xf] %vm578_vm6, %v8755_v9  ;;  %v2772_v22 = vsel %vm581_vm7, %v2770_v10, 0.0  ;;  %v2541_v24 = vmul.f32 %v2511_v13, %v2511_v13  ;;  %v2531_v35 = vsel %vm581_vm7, %v2511_v13, 0.0 }
 0x1d5   : > { %v2514_v25 = vpop.f32.mrb[18].mxu0  ;;  %v2762_v30 = vrot.slane %v2761_v14, 4  ;;  %v2773_v56 = vadd.f32 %v2772_v22, %v2771_v21  ;;  %v5366_v20 = vshll.u32 %v11344_v12, 16 }
 0x1d6   : > { %8390 = vst.msk [vmem:[%s10424_s28 + $0x40] sm:$0xf] %vm578_vm6, %v8752_v15  ;;  %v8753_v31 = vpack.c.bf16 %v2514_v25, %v2514_v25  ;;  %v9271_v32 = vpop.f32.mrb[19].mxu0  ;;  %v2532_v36 = vsel %vm581_vm7, %v2514_v25, 0.0  ;;  %v2542_v38 = vmul.f32 %v2514_v25, %v2514_v25  ;;  %v2543_v17 = vsel %vm581_vm7, %v2541_v24, 0.0 }
 0x1d7   : > { %v2763_v39 = vadd.f32 %v2762_v30, %v2761_v14  ;;  %v2774_v40 = vrot.slane %v2773_v56, 4  ;;  %v2533_v41 = vadd.f32 %v2532_v36, %v2531_v35  ;;  %v8582_v15 = vld [vmem:[%s12027_s2 + $0xc] sm:$0x3]  ;;  %v5364_v24 = vshrl.u32 %v11344_v12, 16 }
 0x1d8   : > { %8391 = vst.msk [vmem:[%s10424_s28 + $0x44] sm:$0xf] %vm578_vm6, %v8753_v31  ;;  %v2544_v44 = vsel %vm581_vm7, %v2542_v38, 0.0  ;;  %9533 = vmatmul.mubr.msk.bf16.vlgmr.msra.gmra.mrb[36].mxu1 %vm354_vm4, %v5098_v5  ;;  %v5555_v22 = vsel %vm358_vm1, %v8582_v15, 0  ;;  %v5368_v25 = vrot.slane %v5366_v20, 1 }
 0x1d9   : > { %v2764_v47 = vrot.slane %v2763_v39, 2  ;;  %v2775_v49 = vadd.f32 %v2774_v40, %v2773_v56  ;;  %v2534_v50 = vrot.slane %v2533_v41, 4  ;;  %v2545_v23 = vadd.f32 %v2544_v44, %v2543_v17  ;;  %9561 = vmatpush3.bf16.msra.mxu1 %v5466_v18  ;;  %9562 = vmatprep.mubr.msk.bf16.mxu1 %vm10345_vm2, %v10344_v3  ;;  %v10288_v18 = vld [vmem:[%s10409_s7 + $0x50] ss:$0 sps:$4 sm:$0x11]  }
 0x1da   : > { %9566 = vmatprep.subr.bf16.mxu1 %v10344_v3  ;;  %v5371_v53 = vshll.u32 %v10288_v18, 16  ;;  %v5369_v30 = vor.u32 %v5368_v25, %v5364_v24  ;;  %v8584_v31 = vld [vmem:[%s12027_s2 + $0xe] sm:$0x3]  ;;  %v5601_v40 = vrot.slane %v11344_v12, 1  ;;  %v8604_v15 = vld [vmem:[%s12027_s2 + $0x18] sm:$0x3] }
 0x1db   : > { %v2776_v52 = vrot.slane %v2775_v49, 2  ;;  %v2535_v26 = vadd.f32 %v2534_v50, %v2533_v41  ;;  %v2546_v54 = vrot.slane %v2545_v23, 4  ;;  %v2765_v37 = vadd.f32 %v2764_v47, %v2763_v39 }
 0x1dc   : > { %9509 = vmatmul.mubr.msk.bf16.vlgmr.msra.gmra.mrb[36].mxu0 %vm354_vm4, %v11267_v58  ;;  %v5190_v58 = vld [vmem:[%s12027_s2] sm:$0x3]  ;;  %v5373_v56 = vrot.slane %v5371_v53, 1  ;;  %v5602_v41 = vrot.slane %v10288_v18, 1 }
 0x1dd   : > { %9537 = vmatpush3.bf16.msra.mxu0 %v5216_v45  ;;  %9538 = vmatprep.mubr.msk.bf16.mxu0 %vm10345_vm2, %v10344_v3  ;;  %v2536_v29 = vrot.slane %v2535_v26, 2  ;;  %v2547_v19 = vadd.f32 %v2546_v54, %v2545_v23  ;;  %v2777_v61 = vadd.f32 %v2776_v52, %v2775_v49  ;;  %v2766_v63 = vrot.slane %v2765_v37, 1  ;;  %v8605_v52 = vld [vmem:[%s12027_s2 + $0x1a] sm:$0x3] }
 0x1de   : > { %9542 = vmatprep.subr.bf16.mxu0 %v10344_v3  ;;  %v5262_v4 = vsel %vm358_vm1, %v5190_v58, 0  ;;  %v11375_v32 = vsel %vm341_vm5, %v5369_v30, %v5373_v56  ;;  %v8591_v58 = vld [vmem:[%s12027_s2 + $0x12] sm:$0x3] }
 0x1df   : > { %v2537_v42 = vadd.f32 %v2536_v29, %v2535_v26  ;;  %v2548_v62 = vrot.slane %v2547_v19, 2  ;;  %v2778_v5 = vrot.slane %v2777_v61, 1  ;;  %v2767_v9 = vadd.f32 %v2766_v63, %v2765_v37 }
 0x1e0   : > { %9563 = vmatmul.mubr.msk.bf16.vlgmr.msra.gmra.mrb[40].mxu1 %vm354_vm4, %v5461_v59  ;;  %v5603_v59 = vsel %vm608_vm3, %v5601_v40, %v5602_v41 }
 0x1e1   : > { %v2538_v1 = vrot.slane %v2537_v42, 1  ;;  %v2549_v2 = vadd.f32 %v2548_v62, %v2547_v19  ;;  %9567 = vmatpush3.bf16.msra.mxu1 %v5510_v60  ;;  %9568 = vmatprep.mubr.msk.bf16.mxu1 %vm10345_vm2, %v10344_v3  ;;  %v2779_v13 = vadd.f32 %v2778_v5, %v2777_v61  ;;  %v5929_v62 = vsel %vm358_vm1, %v8605_v52, 0 }
 0x1e2   : > { %9572 = vmatprep.subr.bf16.mxu1 %v10344_v3  ;;  %v5688_v5 = vsel %vm358_vm1, %v8591_v58, 0 }
 0x1e3   : > { %v2539_v7 = vadd.f32 %v2538_v1, %v2537_v42  ;;  %v2550_v8 = vrot.slane %v2549_v2, 1 }
 0x1e4   : > { %9539 = vmatmul.mubr.msk.bf16.vlgmr.msra.gmra.mrb[40].mxu0 %vm354_vm4, %v5211_v0 }
 0x1e5   : > { %9543 = vmatpush3.bf16.msra.mxu0 %v5262_v4  ;;  %9544 = vmatprep.mubr.msk.bf16.mxu0 %vm10345_vm2, %v10344_v3  ;;  %v2540_v11 = vadd.f32 %v2539_v7, %v11243_v48  ;;  %v2551_v10 = vadd.f32 %v2550_v8, %v2549_v2  ;;  %v8568_v48 = vld [vmem:[%s12027_s2 + $0x4] sm:$0x3] }
 0x1e6   : > { %9548 = vmatprep.subr.bf16.mxu0 %v10344_v3 }
 0x1e7   : > { %v2552_v14 = vadd.f32 %v2551_v10, %v11246_v51  ;;  %v11350_v16 = vadd.f32 %v2767_v9, %v2540_v11  ;;  %v5315_v51 = vsel %vm358_vm1, %v8568_v48, 0 }
 0x1e9   : > { %v11354_v21 = vadd.f32 %v2779_v13, %v2552_v14 }
 0x1ec   : > { %9569 = vmatmul.mubr.msk.bf16.vlgmr.msra.gmra.mrb[40].mxu1 %vm354_vm4, %v5211_v0 }
 0x1ed   : > { %9573 = vmatpush3.bf16.msra.mxu1 %v5555_v22  ;;  %9574 = vmatprep.mubr.msk.bf16.mxu1 %vm10345_vm2, %v10344_v3  ;;  %v8590_v22 = vld [vmem:[%s12027_s2 + $0x10] sm:$0x3] }
 0x1ee   : > { %9578 = vmatprep.subr.bf16.mxu1 %v10344_v3  ;;  %v5732_v33 = vsel %vm358_vm1, %v8590_v22, 0 }
 0x1f0   : > { %9545 = vmatmul.mubr.msk.bf16.vlgmr.msra.gmra.mrb[40].mxu0 %vm354_vm4, %v11281_v28  ;;  %v5608_v28 = vsel %vm358_vm1, %v8584_v31, 0 }
 0x1f1   : > { %9549 = vmatpush3.bf16.msra.mxu0 %v5315_v51  ;;  %9550 = vmatprep.mubr.msk.bf16.mxu0 %vm10345_vm2, %v10344_v3  ;;  %v5973_v51 = vsel %vm358_vm1, %v8604_v15, 0 }
 0x1f2   : > { %9554 = vmatprep.subr.bf16.mxu0 %v10344_v3 }
 0x1f8   : > { %9575 = vmatmul.mubr.msk.bf16.vlgmr.msra.gmra.mrb[40].mxu1 %vm354_vm4, %v11375_v32 }
 0x1f9   : > { %9579 = vmatpush3.bf16.msra.mxu1 %v5608_v28  ;;  %9580 = vmatprep.mubr.msk.bf16.mxu1 %vm10345_vm2, %v10344_v3 }
 0x1fa   : > { %9608 = vmatprep.subr.bf16.mxu1 %v10344_v3 }
 0x1fb   : > { %v3203_v35 = vpop.f32.mrb[20].mxu1 }
 0x1fc   : > { %9551 = vmatmul.mubr.msk.bf16.vlgmr.msra.gmra.mrb[40].mxu0 %vm354_vm4, %v11344_v12  ;;  %v8758_v36 = vpack.c.bf16 %v3203_v35, %v3203_v35  ;;  %v3232_v38 = vmul.f32 %v3203_v35, %v3203_v35  ;;  %v9342_v6 = vpop.f32.mrb[21].mxu1  ;;  %v3222_v43 = vsel %vm581_vm7, %v3203_v35, 0.0 }
 0x1fd   : > { %9555 = vmatpush3.bf16.msra.mxu0 %v5379_v34  ;;  %9556 = vmatprep.mubr.msk.bf16.mxu0 %vm10345_vm2, %v10344_v3  ;;  %v3206_v39 = vpop.f32.mrb[22].mxu1 }
 0x1fe   : > { %9584 = vmatprep.subr.bf16.mxu0 %v10344_v3  ;;  %8428 = vst.msk [vmem:[%s10424_s28 + $0x58] sm:$0xf] %vm578_vm6, %v8758_v36  ;;  %v8759_v17 = vpack.c.bf16 %v3206_v39, %v3206_v39  ;;  %v3223_v44 = vsel %vm581_vm7, %v3206_v39, 0.0  ;;  %v3233_v45 = vmul.f32 %v3206_v39, %v3206_v39  ;;  %v9343_v46 = vpop.f32.mrb[23].mxu1  ;;  %v3234_v26 = vsel %vm581_vm7, %v3232_v38, 0.0  ;;  %v10289_v39 = vld [vmem:[%s10409_s7 + $0x54] sm:$0xff]  }
 0x1ff   : > { %v2981_v47 = vpop.f32.mrb[20].mxu0  ;;  %v3224_v49 = vadd.f32 %v3223_v44, %v3222_v43  ;;  %v8608_v43 = vld [vmem:[%s12027_s2 + $0x1c] sm:$0x3] }
 0x200   : > { %v8756_v50 = vpack.c.bf16 %v2981_v47, %v2981_v47  ;;  %v9318_v23 = vpop.f32.mrb[21].mxu0  ;;  %8429 = vst.msk [vmem:[%s10424_s28 + $0x5c] sm:$0xf] %vm578_vm6, %v8759_v17  ;;  %v3235_v54 = vsel %vm581_vm7, %v3233_v45, 0.0  ;;  %v3010_v55 = vmul.f32 %v2981_v47, %v2981_v47  ;;  %v3000_v60 = vsel %vm581_vm7, %v2981_v47, 0.0 }
 0x201   : > { %v2984_v27 = vpop.f32.mrb[22].mxu0  ;;  %v3225_v57 = vrot.slane %v3224_v49, 4  ;;  %v3236_v37 = vadd.f32 %v3235_v54, %v3234_v26  ;;  %v10290_v44 = vld [vmem:[%s10409_s7 + $0x5c] ss:$0 sps:$4 sm:$0x11]   ;;  %v5836_v45 = vshll.u32 %v10289_v39, 16 }
 0x202   : > { %8416 = vst.msk [vmem:[%s10424_s28 + $0x50] sm:$0xf] %vm578_vm6, %v8756_v50  ;;  %v8757_v29 = vpack.c.bf16 %v2984_v27, %v2984_v27  ;;  %v9319_v19 = vpop.f32.mrb[23].mxu0  ;;  %v3001_v61 = vsel %vm581_vm7, %v2984_v27, 0.0  ;;  %v3011_v42 = vmul.f32 %v2984_v27, %v2984_v27  ;;  %v3012_v2 = vsel %vm581_vm7, %v3010_v55, 0.0 }
 0x203   : > { %v3226_v0 = vadd.f32 %v3225_v57, %v3224_v49  ;;  %v3237_v63 = vrot.slane %v3236_v37, 4  ;;  %v3002_v1 = vadd.f32 %v3001_v61, %v3000_v60  ;;  %v6018_v47 = vsel %vm358_vm1, %v8608_v43, 0  ;;  %v8610_v26 = vld [vmem:[%s12027_s2 + $0x1e] sm:$0x3]  ;;  %v11488_v19 = vld [vmem:[%s10409_s7 + $0x48] sm:$0xff]  }
 0x204   : > { %8417 = vst.msk [vmem:[%s10424_s28 + $0x54] sm:$0xf] %vm578_vm6, %v8757_v29  ;;  %v3013_v4 = vsel %vm581_vm7, %v3011_v42, 0.0  ;;  %9581 = vmatmul.mubr.msk.bf16.vlgmr.msra.gmra.mrb[40].mxu1 %vm354_vm4, %v5603_v59  ;;  %v5834_v49 = vshrl.u32 %v10289_v39, 16  ;;  %v5838_v50 = vrot.slane %v5836_v45, 1  ;;  %v5841_v23 = vshll.u32 %v10290_v44, 16 }
 0x205   : > { %v3227_v7 = vrot.slane %v3226_v0, 2  ;;  %v3238_v8 = vadd.f32 %v3237_v63, %v3236_v37  ;;  %v3003_v9 = vrot.slane %v3002_v1, 4  ;;  %v3014_v11 = vadd.f32 %v3013_v4, %v3012_v2  ;;  %9609 = vmatpush3.bf16.msra.mxu1 %v5929_v62  ;;  %9610 = vmatprep.mubr.msk.bf16.mxu1 %vm10345_vm2, %v10344_v3  ;;  %v8638_v61 = vld [vmem:[%s12027_s2 + $0xa] sm:$0x3] }
 0x206   : > { %9614 = vmatprep.subr.bf16.mxu1 %v10344_v3  ;;  %v5839_v52 = vor.u32 %v5838_v50, %v5834_v49  ;;  %v6071_v55 = vsel %vm358_vm1, %v8610_v26, 0  ;;  %v6064_v57 = vrot.slane %v10289_v39, 1  ;;  %v6065_v37 = vrot.slane %v10290_v44, 1  ;;  %v8637_v50 = vld [vmem:[%s12027_s2 + $0x8] sm:$0x3] }
 0x207   : > { %v3239_v10 = vrot.slane %v3238_v8, 2  ;;  %v3004_v13 = vadd.f32 %v3003_v9, %v3002_v1  ;;  %v3015_v14 = vrot.slane %v3014_v11, 4  ;;  %v3228_v18 = vadd.f32 %v3227_v7, %v3226_v0  ;;  %v10292_v0 = vld [vmem:[%s10409_s7 + $0x50] ss:$0 sps:$4 sm:$0x11]  }
 0x208   : > { %9557 = vmatmul.mubr.msk.bf16.vlgmr.msra.gmra.mrb[40].mxu0 %vm354_vm4, %v11375_v32  ;;  %v6066_v62 = vsel %vm608_vm3, %v6064_v57, %v6065_v37 }
 0x209   : > { %9585 = vmatpush3.bf16.msra.mxu0 %v5688_v5  ;;  %9586 = vmatprep.mubr.msk.bf16.mxu0 %vm10345_vm2, %v10344_v3  ;;  %v3005_v20 = vrot.slane %v3004_v13, 2  ;;  %v3016_v48 = vadd.f32 %v3015_v14, %v3014_v11  ;;  %v3240_v24 = vadd.f32 %v3239_v10, %v3238_v8  ;;  %v3229_v30 = vrot.slane %v3228_v18, 1 }
 0x20a   : > { %9590 = vmatprep.subr.bf16.mxu0 %v10344_v3  ;;  %v6433_v10 = vsel %vm358_vm1, %v8638_v61, 0 }
 0x20b   : > { %v3006_v25 = vadd.f32 %v3005_v20, %v3004_v13  ;;  %v3017_v53 = vrot.slane %v3016_v48, 2  ;;  %v3241_v28 = vrot.slane %v3240_v24, 1  ;;  %v3230_v36 = vadd.f32 %v3229_v30, %v3228_v18 }
 0x20c   : > { %9611 = vmatmul.mubr.msk.bf16.vlgmr.msra.gmra.mrb[44].mxu1 %vm354_vm4, %v5603_v59  ;;  %v6426_v13 = vrot.slane %v11488_v19, 1  ;;  %v6427_v30 = vrot.slane %v10292_v0, 1 }
 0x20d   : > { %v3007_v56 = vrot.slane %v3006_v25, 1  ;;  %v3018_v31 = vadd.f32 %v3017_v53, %v3016_v48  ;;  %9615 = vmatpush3.bf16.msra.mxu1 %v5973_v51  ;;  %9616 = vmatprep.mubr.msk.bf16.mxu1 %vm10345_vm2, %v10344_v3  ;;  %v3242_v40 = vadd.f32 %v3241_v28, %v3240_v24  ;;  %v6170_v48 = vshll.u32 %v11488_v19, 16  ;;  %v8622_v53 = vld [vmem:[%s12027_s2 + $0x2] sm:$0x3] }
 0x20e   : > { %9620 = vmatprep.subr.bf16.mxu1 %v10344_v3  ;;  %v6168_v28 = vshrl.u32 %v11488_v19, 16 }
 0x20f   : > { %v3008_v34 = vadd.f32 %v3007_v56, %v3006_v25  ;;  %v3019_v35 = vrot.slane %v3018_v31, 1 }
 0x210   : > { %9587 = vmatmul.mubr.msk.bf16.vlgmr.msra.gmra.mrb[44].mxu0 %vm354_vm4, %v11375_v32 }
 0x211   : > { %9591 = vmatpush3.bf16.msra.mxu0 %v5732_v33  ;;  %9592 = vmatprep.mubr.msk.bf16.mxu0 %vm10345_vm2, %v10344_v3  ;;  %v3009_v38 = vadd.f32 %v3008_v34, %v11350_v16  ;;  %v3020_v6 = vadd.f32 %v3019_v35, %v3018_v31  ;;  %v8594_v16 = vld [vmem:[%s12027_s2 + $0x14] sm:$0x3] }
 0x212   : > { %9596 = vmatprep.subr.bf16.mxu0 %v10344_v3 }
 0x213   : > { %v3021_v41 = vadd.f32 %v3020_v6, %v11354_v21  ;;  %v11450_v17 = vadd.f32 %v3230_v36, %v3009_v38  ;;  %v5785_v21 = vsel %vm358_vm1, %v8594_v16, 0  ;;  %v6175_v38 = vshll.u32 %v10292_v0, 16 }
 0x215   : > { %v11453_v46 = vadd.f32 %v3242_v40, %v3021_v41  ;;  %v6183_v40 = vsel %vm358_vm1, %v8622_v53, 0  ;;  %v6172_v41 = vrot.slane %v6170_v48, 1  ;;  %v8630_v53 = vld [vmem:[%s12027_s2 + $0x6] sm:$0x3] }
 0x218   : > { %9617 = vmatmul.mubr.msk.bf16.vlgmr.msra.gmra.mrb[44].mxu1 %vm354_vm4, %v11375_v32  ;;  %v5843_v32 = vrot.slane %v5841_v23, 1  ;;  %v6173_v23 = vor.u32 %v6172_v41, %v6168_v28 }
 0x219   : > { %9621 = vmatpush3.bf16.msra.mxu1 %v6018_v47  ;;  %9622 = vmatprep.mubr.msk.bf16.mxu1 %vm10345_vm2, %v10344_v3 }
 0x21a   : > { %9626 = vmatprep.subr.bf16.mxu1 %v10344_v3  ;;  %v11474_v54 = vsel %vm341_vm5, %v5839_v52, %v5843_v32  ;;  %v6177_v52 = vrot.slane %v6175_v38, 1 }
 0x21c   : > { %9593 = vmatmul.mubr.msk.bf16.vlgmr.msra.gmra.mrb[44].mxu0 %vm354_vm4, %v11344_v12  ;;  %v8597_v12 = vld [vmem:[%s12027_s2 + $0x16] sm:$0x3] }
 0x21d   : > { %9597 = vmatpush3.bf16.msra.mxu0 %v5785_v21  ;;  %9598 = vmatprep.mubr.msk.bf16.mxu0 %vm10345_vm2, %v10344_v3  ;;  %v5849_v27 = vsel %vm358_vm1, %v8597_v12, 0 }
 0x21e   : > { %9602 = vmatprep.subr.bf16.mxu0 %v10344_v3 }
 0x224   : > { %9623 = vmatmul.mubr.msk.bf16.vlgmr.msra.gmra.mrb[44].mxu1 %vm354_vm4, %v11474_v54 }
 0x225   : > { %9627 = vmatpush3.bf16.msra.mxu1 %v6071_v55  ;;  %9628 = vmatprep.mubr.msk.bf16.mxu1 %vm10345_vm2, %v10344_v3  ;;  %v6428_v55 = vsel %vm608_vm3, %v6426_v13, %v6427_v30  ;;  %v6346_v30 = vsel %vm358_vm1, %v8630_v53, 0 }
 0x226   : > { %9656 = vmatprep.subr.bf16.mxu1 %v10344_v3 }
 0x227   : > { %v3708_v29 = vpop.f32.mrb[24].mxu1 }
 0x228   : > { %9599 = vmatmul.mubr.msk.bf16.vlgmr.msra.gmra.mrb[44].mxu0 %vm354_vm4, %v10289_v39  ;;  %v8762_v59 = vpack.c.bf16 %v3708_v29, %v3708_v29  ;;  %v3737_v58 = vmul.f32 %v3708_v29, %v3708_v29  ;;  %v9390_v60 = vpop.f32.mrb[25].mxu1  ;;  %v3727_v63 = vsel %vm581_vm7, %v3708_v29, 0.0 }
 0x229   : > { %9603 = vmatpush3.bf16.msra.mxu0 %v5849_v27  ;;  %9604 = vmatprep.mubr.msk.bf16.mxu0 %vm10345_vm2, %v10344_v3  ;;  %v3711_v42 = vpop.f32.mrb[26].mxu1  ;;  %v6477_v27 = vsel %vm358_vm1, %v8637_v50, 0 }
 0x22a   : > { %9632 = vmatprep.subr.bf16.mxu0 %v10344_v3  ;;  %8464 = vst.msk [vmem:[%s10424_s28 + $0x68] sm:$0xf] %vm578_vm6, %v8762_v59  ;;  %v8763_v1 = vpack.c.bf16 %v3711_v42, %v3711_v42  ;;  %v3728_v2 = vsel %vm581_vm7, %v3711_v42, 0.0  ;;  %v3738_v4 = vmul.f32 %v3711_v42, %v3711_v42  ;;  %v9391_v5 = vpop.f32.mrb[27].mxu1  ;;  %v3739_v14 = vsel %vm581_vm7, %v3737_v58, 0.0 }
 0x22b   : > { %v3479_v7 = vpop.f32.mrb[24].mxu0  ;;  %v3729_v8 = vadd.f32 %v3728_v2, %v3727_v63  ;;  %v6178_v59 = vsel %vm341_vm5, %v6173_v23, %v6177_v52  ;;  %v11551_v5 = vld [vmem:[%s10409_s7 + $0x54] sm:$0xff]  }
 0x22c   : > { %v8760_v9 = vpack.c.bf16 %v3479_v7, %v3479_v7  ;;  %v9366_v11 = vpop.f32.mrb[25].mxu0  ;;  %8465 = vst.msk [vmem:[%s10424_s28 + $0x6c] sm:$0xf] %vm578_vm6, %v8763_v1  ;;  %v3740_v15 = vsel %vm581_vm7, %v3738_v4, 0.0  ;;  %v3509_v18 = vmul.f32 %v3479_v7, %v3479_v7  ;;  %v3499_v56 = vsel %vm581_vm7, %v3479_v7, 0.0 }
 0x22d   : > { %v3482_v20 = vpop.f32.mrb[26].mxu0  ;;  %v3730_v22 = vrot.slane %v3729_v8, 4  ;;  %v3741_v51 = vadd.f32 %v3740_v15, %v3739_v14  ;;  %v6333_v13 = vshll.u32 %v11551_v5, 16 }
 0x22e   : > { %8452 = vst.msk [vmem:[%s10424_s28 + $0x60] sm:$0xf] %vm578_vm6, %v8760_v9  ;;  %v8761_v24 = vpack.c.bf16 %v3482_v20, %v3482_v20  ;;  %v9367_v25 = vpop.f32.mrb[27].mxu0  ;;  %v3500_v31 = vsel %vm581_vm7, %v3482_v20, 0.0  ;;  %v3510_v33 = vmul.f32 %v3482_v20, %v3482_v20  ;;  %v3511_v6 = vsel %vm581_vm7, %v3509_v18, 0.0 }
 0x22f   : > { %v3731_v34 = vadd.f32 %v3730_v22, %v3729_v8  ;;  %v3742_v35 = vrot.slane %v3741_v51, 4  ;;  %v3501_v36 = vadd.f32 %v3500_v31, %v3499_v56  ;;  %v8641_v9 = vld [vmem:[%s12027_s2 + $0xc] sm:$0x3]  ;;  %v6331_v18 = vshrl.u32 %v11551_v5, 16 }
 0x230   : > { %8453 = vst.msk [vmem:[%s10424_s28 + $0x64] sm:$0xf] %vm578_vm6, %v8761_v24  ;;  %v3512_v39 = vsel %vm581_vm7, %v3510_v33, 0.0  ;;  %9629 = vmatmul.mubr.msk.bf16.vlgmr.msra.gmra.mrb[44].mxu1 %vm354_vm4, %v6066_v62  ;;  %v6522_v15 = vsel %vm358_vm1, %v8641_v9, 0  ;;  %v6335_v20 = vrot.slane %v6333_v13, 1 }
 0x231   : > { %v3732_v43 = vrot.slane %v3731_v34, 2  ;;  %v3743_v44 = vadd.f32 %v3742_v35, %v3741_v51  ;;  %v3502_v45 = vrot.slane %v3501_v36, 4  ;;  %v3513_v16 = vadd.f32 %v3512_v39, %v3511_v6  ;;  %9657 = vmatpush3.bf16.msra.mxu1 %v6433_v10  ;;  %9658 = vmatprep.mubr.msk.bf16.mxu1 %vm10345_vm2, %v10344_v3  ;;  %v10294_v10 = vld [vmem:[%s10409_s7 + $0x5c] ss:$0 sps:$4 sm:$0x11]  }
 0x232   : > { %9662 = vmatprep.subr.bf16.mxu1 %v10344_v3  ;;  %v6338_v48 = vshll.u32 %v10294_v10, 16  ;;  %v6336_v22 = vor.u32 %v6335_v20, %v6331_v18  ;;  %v8643_v24 = vld [vmem:[%s12027_s2 + $0xe] sm:$0x3]  ;;  %v6568_v35 = vrot.slane %v11551_v5, 1  ;;  %v8663_v9 = vld [vmem:[%s12027_s2 + $0x18] sm:$0x3] }
 0x233   : > { %v3744_v47 = vrot.slane %v3743_v44, 2  ;;  %v3503_v21 = vadd.f32 %v3502_v45, %v3501_v36  ;;  %v3514_v49 = vrot.slane %v3513_v16, 4  ;;  %v3733_v32 = vadd.f32 %v3732_v43, %v3731_v34 }
 0x234   : > { %9605 = vmatmul.mubr.msk.bf16.vlgmr.msra.gmra.mrb[44].mxu0 %vm354_vm4, %v11474_v54  ;;  %v6157_v54 = vld [vmem:[%s12027_s2] sm:$0x3]  ;;  %v6340_v51 = vrot.slane %v6338_v48, 1  ;;  %v6569_v36 = vrot.slane %v10294_v10, 1 }
 0x235   : > { %9633 = vmatpush3.bf16.msra.mxu0 %v6183_v40  ;;  %9634 = vmatprep.mubr.msk.bf16.mxu0 %vm10345_vm2, %v10344_v3  ;;  %v3504_v26 = vrot.slane %v3503_v21, 2  ;;  %v3515_v12 = vadd.f32 %v3514_v49, %v3513_v16  ;;  %v3745_v57 = vadd.f32 %v3744_v47, %v3743_v44  ;;  %v3734_v58 = vrot.slane %v3733_v32, 1  ;;  %v8664_v47 = vld [vmem:[%s12027_s2 + $0x1a] sm:$0x3] }
 0x236   : > { %9638 = vmatprep.subr.bf16.mxu0 %v10344_v3  ;;  %v6229_v42 = vsel %vm358_vm1, %v6157_v54, 0  ;;  %v11582_v25 = vsel %vm341_vm5, %v6336_v22, %v6340_v51  ;;  %v8650_v54 = vld [vmem:[%s12027_s2 + $0x12] sm:$0x3] }
 0x237   : > { %v3505_v37 = vadd.f32 %v3504_v26, %v3503_v21  ;;  %v3516_v29 = vrot.slane %v3515_v12, 2  ;;  %v3746_v62 = vrot.slane %v3745_v57, 1  ;;  %v3735_v1 = vadd.f32 %v3734_v58, %v3733_v32 }
 0x238   : > { %9659 = vmatmul.mubr.msk.bf16.vlgmr.msra.gmra.mrb[48].mxu1 %vm354_vm4, %v6428_v55  ;;  %v6570_v55 = vsel %vm608_vm3, %v6568_v35, %v6569_v36 }
 0x239   : > { %v3506_v60 = vrot.slane %v3505_v37, 1  ;;  %v3517_v61 = vadd.f32 %v3516_v29, %v3515_v12  ;;  %9663 = vmatpush3.bf16.msra.mxu1 %v6477_v27  ;;  %9664 = vmatprep.mubr.msk.bf16.mxu1 %vm10345_vm2, %v10344_v3  ;;  %v3747_v7 = vadd.f32 %v3746_v62, %v3745_v57  ;;  %v6896_v29 = vsel %vm358_vm1, %v8664_v47, 0 }
 0x23a   : > { %9668 = vmatprep.subr.bf16.mxu1 %v10344_v3  ;;  %v6655_v62 = vsel %vm358_vm1, %v8650_v54, 0 }
 0x23b   : > { %v3507_v0 = vadd.f32 %v3506_v60, %v3505_v37  ;;  %v3518_v63 = vrot.slane %v3517_v61, 1 }
 0x23c   : > { %9635 = vmatmul.mubr.msk.bf16.vlgmr.msra.gmra.mrb[48].mxu0 %vm354_vm4, %v6178_v59 }
 0x23d   : > { %9639 = vmatpush3.bf16.msra.mxu0 %v6229_v42  ;;  %9640 = vmatprep.mubr.msk.bf16.mxu0 %vm10345_vm2, %v10344_v3  ;;  %v3508_v2 = vadd.f32 %v3507_v0, %v11450_v17  ;;  %v3519_v4 = vadd.f32 %v3518_v63, %v3517_v61  ;;  %v8627_v17 = vld [vmem:[%s12027_s2 + $0x4] sm:$0x3] }
 0x23e   : > { %9644 = vmatprep.subr.bf16.mxu0 %v10344_v3 }
 0x23f   : > { %v3520_v8 = vadd.f32 %v3519_v4, %v11453_v46  ;;  %v11557_v11 = vadd.f32 %v3735_v1, %v3508_v2  ;;  %v6282_v46 = vsel %vm358_vm1, %v8627_v17, 0 }
 0x241   : > { %v11561_v14 = vadd.f32 %v3747_v7, %v3520_v8 }
 0x244   : > { %9665 = vmatmul.mubr.msk.bf16.vlgmr.msra.gmra.mrb[48].mxu1 %vm354_vm4, %v6178_v59 }
 0x245   : > { %9669 = vmatpush3.bf16.msra.mxu1 %v6522_v15  ;;  %9670 = vmatprep.mubr.msk.bf16.mxu1 %vm10345_vm2, %v10344_v3  ;;  %v8649_v15 = vld [vmem:[%s12027_s2 + $0x10] sm:$0x3] }
 0x246   : > { %9674 = vmatprep.subr.bf16.mxu1 %v10344_v3  ;;  %v6699_v53 = vsel %vm358_vm1, %v8649_v15, 0 }
 0x248   : > { %9641 = vmatmul.mubr.msk.bf16.vlgmr.msra.gmra.mrb[48].mxu0 %vm354_vm4, %v11488_v19  ;;  %v6575_v19 = vsel %vm358_vm1, %v8643_v24, 0 }
 0x249   : > { %9645 = vmatpush3.bf16.msra.mxu0 %v6282_v46  ;;  %9646 = vmatprep.mubr.msk.bf16.mxu0 %vm10345_vm2, %v10344_v3  ;;  %v6940_v46 = vsel %vm358_vm1, %v8663_v9, 0 }
 0x24a   : > { %9650 = vmatprep.subr.bf16.mxu0 %v10344_v3 }
 0x250   : > { %9671 = vmatmul.mubr.msk.bf16.vlgmr.msra.gmra.mrb[48].mxu1 %vm354_vm4, %v11582_v25 }
 0x251   : > { %9675 = vmatpush3.bf16.msra.mxu1 %v6575_v19  ;;  %9676 = vmatprep.mubr.msk.bf16.mxu1 %vm10345_vm2, %v10344_v3 }
 0x252   : > { %9704 = vmatprep.subr.bf16.mxu1 %v10344_v3 }
 0x253   : > { %v4171_v56 = vpop.f32.mrb[28].mxu1 }
 0x254   : > { %9647 = vmatmul.mubr.msk.bf16.vlgmr.msra.gmra.mrb[48].mxu0 %vm354_vm4, %v11551_v5  ;;  %v8766_v31 = vpack.c.bf16 %v4171_v56, %v4171_v56  ;;  %v4200_v33 = vmul.f32 %v4171_v56, %v4171_v56  ;;  %v9438_v28 = vpop.f32.mrb[29].mxu1  ;;  %v4190_v38 = vsel %vm581_vm7, %v4171_v56, 0.0 }
 0x255   : > { %9651 = vmatpush3.bf16.msra.mxu0 %v6346_v30  ;;  %9652 = vmatprep.mubr.msk.bf16.mxu0 %vm10345_vm2, %v10344_v3  ;;  %v4174_v34 = vpop.f32.mrb[30].mxu1 }
 0x256   : > { %9680 = vmatprep.subr.bf16.mxu0 %v10344_v3  ;;  %8490 = vst.msk [vmem:[%s10424_s28 + $0x78] sm:$0xf] %vm578_vm6, %v8766_v31  ;;  %v8767_v6 = vpack.c.bf16 %v4174_v34, %v4174_v34  ;;  %v4191_v39 = vsel %vm581_vm7, %v4174_v34, 0.0  ;;  %v4201_v40 = vmul.f32 %v4174_v34, %v4174_v34  ;;  %v9439_v41 = vpop.f32.mrb[31].mxu1  ;;  %v4202_v21 = vsel %vm581_vm7, %v4200_v33, 0.0  ;;  %v10295_v34 = vld [vmem:[%s10419_s24] sm:$0xff]  }
 0x257   : > { %v3949_v43 = vpop.f32.mrb[28].mxu0  ;;  %v4192_v44 = vadd.f32 %v4191_v39, %v4190_v38  ;;  %v8667_v38 = vld [vmem:[%s12027_s2 + $0x1c] sm:$0x3]  ;;  %v10296_v39 = vld [vmem:[%s10419_s24 + $0x8] ss:$0 sps:$4 sm:$0x11]  }
 0x258   : > { %v8764_v45 = vpack.c.bf16 %v3949_v43, %v3949_v43  ;;  %v9414_v16 = vpop.f32.mrb[29].mxu0  ;;  %8491 = vst.msk [vmem:[%s10424_s28 + $0x7c] sm:$0xf] %vm578_vm6, %v8767_v6  ;;  %v4203_v49 = vsel %vm581_vm7, %v4201_v40, 0.0  ;;  %v3978_v50 = vmul.f32 %v3949_v43, %v3949_v43  ;;  %v3968_v27 = vsel %vm581_vm7, %v3949_v43, 0.0 }
 0x259   : > { %v3952_v23 = vpop.f32.mrb[30].mxu0  ;;  %v4193_v52 = vrot.slane %v4192_v44, 4  ;;  %v4204_v32 = vadd.f32 %v4203_v49, %v4202_v21  ;;  %v6803_v40 = vshll.u32 %v10295_v34, 16  ;;  %v6985_v43 = vsel %vm358_vm1, %v8667_v38, 0  ;;  %v8669_v21 = vld [vmem:[%s12027_s2 + $0x1e] sm:$0x3] }
 0x25a   : > { %8478 = vst.msk [vmem:[%s10424_s28 + $0x70] sm:$0xf] %vm578_vm6, %v8764_v45  ;;  %v8765_v26 = vpack.c.bf16 %v3952_v23, %v3952_v23  ;;  %v9415_v12 = vpop.f32.mrb[31].mxu0  ;;  %v3969_v57 = vsel %vm581_vm7, %v3952_v23, 0.0  ;;  %v3979_v37 = vmul.f32 %v3952_v23, %v3952_v23  ;;  %v3980_v61 = vsel %vm581_vm7, %v3978_v50, 0.0 }
 0x25b   : > { %v4194_v59 = vadd.f32 %v4193_v52, %v4192_v44  ;;  %v4205_v58 = vrot.slane %v4204_v32, 4  ;;  %v3970_v60 = vadd.f32 %v3969_v57, %v3968_v27  ;;  %v6801_v44 = vshrl.u32 %v10295_v34, 16  ;;  %v11695_v12 = vld [vmem:[%s10409_s7 + $0x54] sm:$0xff]   ;;  %v8697_v57 = vld [vmem:[%s12027_s2 + $0xa] sm:$0x3] }
 0x25c   : > { %8479 = vst.msk [vmem:[%s10424_s28 + $0x74] sm:$0xf] %vm578_vm6, %v8765_v26  ;;  %v3981_v42 = vsel %vm581_vm7, %v3979_v37, 0.0  ;;  %9677 = vmatmul.mubr.msk.bf16.vlgmr.msra.gmra.mrb[48].mxu1 %vm354_vm4, %v6570_v55  ;;  %v6805_v45 = vrot.slane %v6803_v40, 1  ;;  %v6808_v16 = vshll.u32 %v10296_v39, 16  ;;  %v7038_v50 = vsel %vm358_vm1, %v8669_v21, 0 }
 0x25d   : > { %v4195_v0 = vrot.slane %v4194_v59, 2  ;;  %v4206_v63 = vadd.f32 %v4205_v58, %v4204_v32  ;;  %v3971_v1 = vrot.slane %v3970_v60, 4  ;;  %v3982_v2 = vadd.f32 %v3981_v42, %v3980_v61  ;;  %9705 = vmatpush3.bf16.msra.mxu1 %v6896_v29  ;;  %9706 = vmatprep.mubr.msk.bf16.mxu1 %vm10345_vm2, %v10344_v3 }
 0x25e   : > { %9710 = vmatprep.subr.bf16.mxu1 %v10344_v3  ;;  %v6806_v47 = vor.u32 %v6805_v45, %v6801_v44  ;;  %v7031_v52 = vrot.slane %v10295_v34, 1  ;;  %v7032_v32 = vrot.slane %v10296_v39, 1  ;;  %v8696_v45 = vld [vmem:[%s12027_s2 + $0x8] sm:$0x3] }
 0x25f   : > { %v4207_v4 = vrot.slane %v4206_v63, 2  ;;  %v3972_v7 = vadd.f32 %v3971_v1, %v3970_v60  ;;  %v3983_v8 = vrot.slane %v3982_v2, 4  ;;  %v4196_v10 = vadd.f32 %v4195_v0, %v4194_v59  ;;  %v10298_v59 = vld [vmem:[%s10409_s7 + $0x5c] ss:$0 sps:$4 sm:$0x11]  }
 0x260   : > { %9653 = vmatmul.mubr.msk.bf16.vlgmr.msra.gmra.mrb[48].mxu0 %vm354_vm4, %v11582_v25  ;;  %v7033_v29 = vsel %vm608_vm3, %v7031_v52, %v7032_v32 }
 0x261   : > { %9681 = vmatpush3.bf16.msra.mxu0 %v6655_v62  ;;  %9682 = vmatprep.mubr.msk.bf16.mxu0 %vm10345_vm2, %v10344_v3  ;;  %v3973_v13 = vrot.slane %v3972_v7, 2  ;;  %v3984_v17 = vadd.f32 %v3983_v8, %v3982_v2  ;;  %v4208_v18 = vadd.f32 %v4207_v4, %v4206_v63  ;;  %v4197_v22 = vrot.slane %v4196_v10, 1 }
 0x262   : > { %9686 = vmatprep.subr.bf16.mxu0 %v10344_v3  ;;  %v7401_v4 = vsel %vm358_vm1, %v8697_v57, 0 }
 0x263   : > { %v3974_v20 = vadd.f32 %v3973_v13, %v3972_v7  ;;  %v3985_v48 = vrot.slane %v3984_v17, 2  ;;  %v4209_v19 = vrot.slane %v4208_v18, 1  ;;  %v4198_v31 = vadd.f32 %v4197_v22, %v4196_v10 }
 0x264   : > { %9707 = vmatmul.mubr.msk.bf16.vlgmr.msra.gmra.mrb[52].mxu1 %vm354_vm4, %v6570_v55  ;;  %v7394_v7 = vrot.slane %v11695_v12, 1  ;;  %v7395_v22 = vrot.slane %v10298_v59, 1 }
 0x265   : > { %v3975_v51 = vrot.slane %v3974_v20, 1  ;;  %v3986_v24 = vadd.f32 %v3985_v48, %v3984_v17  ;;  %9711 = vmatpush3.bf16.msra.mxu1 %v6940_v46  ;;  %9712 = vmatprep.mubr.msk.bf16.mxu1 %vm10345_vm2, %v10344_v3  ;;  %v4210_v35 = vadd.f32 %v4209_v19, %v4208_v18  ;;  %v7138_v17 = vshll.u32 %v11695_v12, 16  ;;  %v8681_v48 = vld [vmem:[%s12027_s2 + $0x2] sm:$0x3] }
 0x266   : > { %9716 = vmatprep.subr.bf16.mxu1 %v10344_v3  ;;  %v7136_v19 = vshrl.u32 %v11695_v12, 16 }
 0x267   : > { %v3976_v30 = vadd.f32 %v3975_v51, %v3974_v20  ;;  %v3987_v56 = vrot.slane %v3986_v24, 1 }
 0x268   : > { %9683 = vmatmul.mubr.msk.bf16.vlgmr.msra.gmra.mrb[52].mxu0 %vm354_vm4, %v11582_v25 }
 0x269   : > { %9687 = vmatpush3.bf16.msra.mxu0 %v6699_v53  ;;  %9688 = vmatprep.mubr.msk.bf16.mxu0 %vm10345_vm2, %v10344_v3  ;;  %v3977_v33 = vadd.f32 %v3976_v30, %v11557_v11  ;;  %v3988_v28 = vadd.f32 %v3987_v56, %v3986_v24  ;;  %v8653_v11 = vld [vmem:[%s12027_s2 + $0x14] sm:$0x3] }
 0x26a   : > { %9692 = vmatprep.subr.bf16.mxu0 %v10344_v3 }
 0x26b   : > { %v3989_v36 = vadd.f32 %v3988_v28, %v11561_v14  ;;  %v11657_v6 = vadd.f32 %v4198_v31, %v3977_v33  ;;  %v6752_v14 = vsel %vm358_vm1, %v8653_v11, 0  ;;  %v7143_v33 = vshll.u32 %v10298_v59, 16 }
 0x26d   : > { %v11660_v41 = vadd.f32 %v4210_v35, %v3989_v36  ;;  %v7151_v35 = vsel %vm358_vm1, %v8681_v48, 0  ;;  %v7140_v36 = vrot.slane %v7138_v17, 1  ;;  %v8689_v48 = vld [vmem:[%s12027_s2 + $0x6] sm:$0x3] }
 0x270   : > { %9713 = vmatmul.mubr.msk.bf16.vlgmr.msra.gmra.mrb[52].mxu1 %vm354_vm4, %v11582_v25  ;;  %v6810_v25 = vrot.slane %v6808_v16, 1  ;;  %v7141_v16 = vor.u32 %v7140_v36, %v7136_v19 }
 0x271   : > { %9717 = vmatpush3.bf16.msra.mxu1 %v6985_v43  ;;  %9718 = vmatprep.mubr.msk.bf16.mxu1 %vm10345_vm2, %v10344_v3 }
 0x272   : > { %9722 = vmatprep.subr.bf16.mxu1 %v10344_v3  ;;  %v11681_v49 = vsel %vm341_vm5, %v6806_v47, %v6810_v25  ;;  %v7145_v47 = vrot.slane %v7143_v33, 1 }
 0x274   : > { %9689 = vmatmul.mubr.msk.bf16.vlgmr.msra.gmra.mrb[52].mxu0 %vm354_vm4, %v11551_v5  ;;  %v8656_v5 = vld [vmem:[%s12027_s2 + $0x16] sm:$0x3] }
 0x275   : > { %9693 = vmatpush3.bf16.msra.mxu0 %v6752_v14  ;;  %9694 = vmatprep.mubr.msk.bf16.mxu0 %vm10345_vm2, %v10344_v3  ;;  %v6816_v23 = vsel %vm358_vm1, %v8656_v5, 0 }
 0x276   : > { %9698 = vmatprep.subr.bf16.mxu0 %v10344_v3 }
 0x27c   : > { %9719 = vmatmul.mubr.msk.bf16.vlgmr.msra.gmra.mrb[52].mxu1 %vm354_vm4, %v11681_v49 }
 0x27d   : > { %9723 = vmatpush3.bf16.msra.mxu1 %v7038_v50  ;;  %9724 = vmatprep.mubr.msk.bf16.mxu1 %vm10345_vm2, %v10344_v3  ;;  %v7396_v50 = vsel %vm608_vm3, %v7394_v7, %v7395_v22  ;;  %v7314_v22 = vsel %vm358_vm1, %v8689_v48, 0 }
 0x27e   : > { %9752 = vmatprep.subr.bf16.mxu1 %v10344_v3 }
 0x27f   : > { %v4676_v26 = vpop.f32.mrb[32].mxu1 }
 0x280   : > { %9695 = vmatmul.mubr.msk.bf16.vlgmr.msra.gmra.mrb[52].mxu0 %vm354_vm4, %v10295_v34  ;;  %v8770_v55 = vpack.c.bf16 %v4676_v26, %v4676_v26  ;;  %v4705_v54 = vmul.f32 %v4676_v26, %v4676_v26  ;;  %v9486_v27 = vpop.f32.mrb[33].mxu1  ;;  %v4695_v58 = vsel %vm581_vm7, %v4676_v26, 0.0 }
 0x281   : > { %9699 = vmatpush3.bf16.msra.mxu0 %v6816_v23  ;;  %9700 = vmatprep.mubr.msk.bf16.mxu0 %vm10345_vm2, %v10344_v3  ;;  %v4679_v37 = vpop.f32.mrb[34].mxu1  ;;  %v7445_v23 = vsel %vm358_vm1, %v8696_v45, 0 }
 0x282   : > { %9728 = vmatprep.subr.bf16.mxu0 %v10344_v3  ;;  %8526 = vst.msk [vmem:[%s10424_s28 + $0x88] sm:$0xf] %vm578_vm6, %v8770_v55  ;;  %v8771_v60 = vpack.c.bf16 %v4679_v37, %v4679_v37  ;;  %v4696_v61 = vsel %vm581_vm7, %v4679_v37, 0.0  ;;  %v4706_v42 = vmul.f32 %v4679_v37, %v4679_v37  ;;  %v9487_v62 = vpop.f32.mrb[35].mxu1  ;;  %v4707_v8 = vsel %vm581_vm7, %v4705_v54, 0.0 }
 0x283   : > { %v4447_v0 = vpop.f32.mrb[32].mxu0  ;;  %v4697_v63 = vadd.f32 %v4696_v61, %v4695_v58  ;;  %v7146_v55 = vsel %vm341_vm5, %v7141_v16, %v7145_v47  ;;  %v11758_v62 = vld [vmem:[%s10419_s24] sm:$0xff]  }
 0x284   : > { %v8768_v1 = vpack.c.bf16 %v4447_v0, %v4447_v0  ;;  %v9462_v2 = vpop.f32.mrb[33].mxu0  ;;  %8527 = vst.msk [vmem:[%s10424_s28 + $0x8c] sm:$0xf] %vm578_vm6, %v8771_v60  ;;  %v4708_v9 = vsel %vm581_vm7, %v4706_v42, 0.0  ;;  %v4477_v10 = vmul.f32 %v4447_v0, %v4447_v0  ;;  %v4467_v51 = vsel %vm581_vm7, %v4447_v0, 0.0 }
 0x285   : > { %v4450_v13 = vpop.f32.mrb[34].mxu0  ;;  %v4698_v15 = vrot.slane %v4697_v63, 4  ;;  %v4709_v46 = vadd.f32 %v4708_v9, %v4707_v8  ;;  %v7301_v7 = vshll.u32 %v11758_v62, 16 }
 0x286   : > { %8514 = vst.msk [vmem:[%s10424_s28 + $0x80] sm:$0xf] %vm578_vm6, %v8768_v1  ;;  %v8769_v18 = vpack.c.bf16 %v4450_v13, %v4450_v13  ;;  %v9463_v20 = vpop.f32.mrb[35].mxu0  ;;  %v4468_v24 = vsel %vm581_vm7, %v4450_v13, 0.0  ;;  %v4478_v53 = vmul.f32 %v4450_v13, %v4450_v13  ;;  %v4479_v28 = vsel %vm581_vm7, %v4477_v10, 0.0 }
 0x287   : > { %v4699_v30 = vadd.f32 %v4698_v15, %v4697_v63  ;;  %v4710_v56 = vrot.slane %v4709_v46, 4  ;;  %v4469_v31 = vadd.f32 %v4468_v24, %v4467_v51  ;;  %v8700_v1 = vld [vmem:[%s12027_s2 + $0xc] sm:$0x3]  ;;  %v7299_v10 = vshrl.u32 %v11758_v62, 16 }
 0x288   : > { %8515 = vst.msk [vmem:[%s10424_s28 + $0x84] sm:$0xf] %vm578_vm6, %v8769_v18  ;;  %v4480_v34 = vsel %vm581_vm7, %v4478_v53, 0.0  ;;  %9725 = vmatmul.mubr.msk.bf16.vlgmr.msra.gmra.mrb[52].mxu1 %vm354_vm4, %v7033_v29  ;;  %v7490_v9 = vsel %vm358_vm1, %v8700_v1, 0  ;;  %v7303_v13 = vrot.slane %v7301_v7, 1 }
 0x289   : > { %v4700_v38 = vrot.slane %v4699_v30, 2  ;;  %v4711_v39 = vadd.f32 %v4710_v56, %v4709_v46  ;;  %v4470_v40 = vrot.slane %v4469_v31, 4  ;;  %v4481_v11 = vadd.f32 %v4480_v34, %v4479_v28  ;;  %9753 = vmatpush3.bf16.msra.mxu1 %v7401_v4  ;;  %9754 = vmatprep.mubr.msk.bf16.mxu1 %vm10345_vm2, %v10344_v3  ;;  %v10300_v4 = vld [vmem:[%s10419_s24 + $0x8] ss:$0 sps:$4 sm:$0x11]  }
 0x28a   : > { %9758 = vmatprep.subr.bf16.mxu1 %v10344_v3  ;;  %v7306_v17 = vshll.u32 %v10300_v4, 16  ;;  %v7304_v15 = vor.u32 %v7303_v13, %v7299_v10  ;;  %v8702_v18 = vld [vmem:[%s12027_s2 + $0xe] sm:$0x3]  ;;  %v7536_v56 = vrot.slane %v11758_v62, 1  ;;  %v8722_v1 = vld [vmem:[%s12027_s2 + $0x18] sm:$0x3] }
 0x28b   : > { %v4712_v43 = vrot.slane %v4711_v39, 2  ;;  %v4471_v14 = vadd.f32 %v4470_v40, %v4469_v31  ;;  %v4482_v44 = vrot.slane %v4481_v11, 4  ;;  %v4701_v25 = vadd.f32 %v4700_v38, %v4699_v30 }
 0x28c   : > { %9701 = vmatmul.mubr.msk.bf16.vlgmr.msra.gmra.mrb[52].mxu0 %vm354_vm4, %v11681_v49  ;;  %v7125_v49 = vld [vmem:[%s12027_s2] sm:$0x3]  ;;  %v7308_v46 = vrot.slane %v7306_v17, 1  ;;  %v7537_v31 = vrot.slane %v10300_v4, 1 }
 0x28d   : > { %9729 = vmatpush3.bf16.msra.mxu0 %v7151_v35  ;;  %9730 = vmatprep.mubr.msk.bf16.mxu0 %vm10345_vm2, %v10344_v3  ;;  %v4472_v21 = vrot.slane %v4471_v14, 2  ;;  %v4483_v5 = vadd.f32 %v4482_v44, %v4481_v11  ;;  %v4713_v52 = vadd.f32 %v4712_v43, %v4711_v39  ;;  %v4702_v54 = vrot.slane %v4701_v25, 1  ;;  %v8723_v43 = vld [vmem:[%s12027_s2 + $0x1a] sm:$0x3] }
 0x28e   : > { %9734 = vmatprep.subr.bf16.mxu0 %v10344_v3  ;;  %v7197_v37 = vsel %vm358_vm1, %v7125_v49, 0  ;;  %v11789_v20 = vsel %vm341_vm5, %v7304_v15, %v7308_v46  ;;  %v8709_v49 = vld [vmem:[%s12027_s2 + $0x12] sm:$0x3] }
 0x28f   : > { %v4473_v32 = vadd.f32 %v4472_v21, %v4471_v14  ;;  %v4484_v26 = vrot.slane %v4483_v5, 2  ;;  %v4714_v29 = vrot.slane %v4713_v52, 1  ;;  %v4703_v60 = vadd.f32 %v4702_v54, %v4701_v25 }
 0x290   : > { %9755 = vmatmul.mubr.msk.bf16.vlgmr.msra.gmra.mrb[56].mxu1 %vm354_vm4, %v7396_v50  ;;  %v7538_v50 = vsel %vm608_vm3, %v7536_v56, %v7537_v31 }
 0x291   : > { %v4474_v27 = vrot.slane %v4473_v32, 1  ;;  %v4485_v57 = vadd.f32 %v4484_v26, %v4483_v5  ;;  %9759 = vmatpush3.bf16.msra.mxu1 %v7445_v23  ;;  %9760 = vmatprep.mubr.msk.bf16.mxu1 %vm10345_vm2, %v10344_v3  ;;  %v4715_v0 = vadd.f32 %v4714_v29, %v4713_v52  ;;  %v7864_v26 = vsel %vm358_vm1, %v8723_v43, 0 }
 0x292   : > { %9764 = vmatprep.subr.bf16.mxu1 %v10344_v3  ;;  %v7623_v29 = vsel %vm358_vm1, %v8709_v49, 0 }
 0x293   : > { %v4475_v59 = vadd.f32 %v4474_v27, %v4473_v32  ;;  %v4486_v58 = vrot.slane %v4485_v57, 1 }
 0x294   : > { %9731 = vmatmul.mubr.msk.bf16.vlgmr.msra.gmra.mrb[56].mxu0 %vm354_vm4, %v7146_v55 }
 0x295   : > { %9735 = vmatpush3.bf16.msra.mxu0 %v7197_v37  ;;  %9736 = vmatprep.mubr.msk.bf16.mxu0 %vm10345_vm2, %v10344_v3  ;;  %v4476_v61 = vadd.f32 %v4475_v59, %v11657_v6  ;;  %v4487_v42 = vadd.f32 %v4486_v58, %v4485_v57  ;;  %v8686_v6 = vld [vmem:[%s12027_s2 + $0x4] sm:$0x3] }
 0x296   : > { %9740 = vmatprep.subr.bf16.mxu0 %v10344_v3 }
 0x297   : > { %v4488_v63 = vadd.f32 %v4487_v42, %v11660_v41  ;;  %v11764_v2 = vadd.f32 %v4703_v60, %v4476_v61  ;;  %v7250_v41 = vsel %vm358_vm1, %v8686_v6, 0 }
 0x299   : > { %v11768_v8 = vadd.f32 %v4715_v0, %v4488_v63 }
 0x29c   : > { %9761 = vmatmul.mubr.msk.bf16.vlgmr.msra.gmra.mrb[56].mxu1 %vm354_vm4, %v7146_v55 }
 0x29d   : > { %9765 = vmatpush3.bf16.msra.mxu1 %v7490_v9  ;;  %9766 = vmatprep.mubr.msk.bf16.mxu1 %vm10345_vm2, %v10344_v3  ;;  %v8708_v9 = vld [vmem:[%s12027_s2 + $0x10] sm:$0x3] }
 0x29e   : > { %9770 = vmatprep.subr.bf16.mxu1 %v10344_v3  ;;  %v7667_v48 = vsel %vm358_vm1, %v8708_v9, 0 }
 0x2a0   : > { %9737 = vmatmul.mubr.msk.bf16.vlgmr.msra.gmra.mrb[56].mxu0 %vm354_vm4, %v11695_v12  ;;  %v7543_v12 = vsel %vm358_vm1, %v8702_v18, 0 }
 0x2a1   : > { %9741 = vmatpush3.bf16.msra.mxu0 %v7250_v41  ;;  %9742 = vmatprep.mubr.msk.bf16.mxu0 %vm10345_vm2, %v10344_v3  ;;  %v7908_v41 = vsel %vm358_vm1, %v8722_v1, 0 }
 0x2a2   : > { %9746 = vmatprep.subr.bf16.mxu0 %v10344_v3 }
 0x2a8   : > { %9767 = vmatmul.mubr.msk.bf16.vlgmr.msra.gmra.mrb[56].mxu1 %vm354_vm4, %v11789_v20 }
 0x2a9   : > { %9771 = vmatpush3.bf16.msra.mxu1 %v7543_v12  ;;  %9772 = vmatprep.mubr.msk.bf16.mxu1 %vm10345_vm2, %v10344_v3 }
 0x2aa   : > { %9800 = vmatprep.subr.bf16.mxu1 %v10344_v3 }
 0x2ab   : > { %v5139_v51 = vpop.f32.mrb[36].mxu1 }
 0x2ac   : > { %9743 = vmatmul.mubr.msk.bf16.vlgmr.msra.gmra.mrb[56].mxu0 %vm354_vm4, %v11758_v62  ;;  %v8774_v24 = vpack.c.bf16 %v5139_v51, %v5139_v51  ;;  %v5168_v53 = vmul.f32 %v5139_v51, %v5139_v51  ;;  %v9534_v19 = vpop.f32.mrb[37].mxu1  ;;  %v5158_v33 = vsel %vm581_vm7, %v5139_v51, 0.0 }
 0x2ad   : > { %9747 = vmatpush3.bf16.msra.mxu0 %v7314_v22  ;;  %9748 = vmatprep.mubr.msk.bf16.mxu0 %vm10345_vm2, %v10344_v3  ;;  %v5142_v30 = vpop.f32.mrb[38].mxu1 }
 0x2ae   : > { %9776 = vmatprep.subr.bf16.mxu0 %v10344_v3  ;;  %8552 = vst.msk [vmem:[%s10424_s28 + $0x98] sm:$0xf] %vm578_vm6, %v8774_v24  ;;  %v8775_v28 = vpack.c.bf16 %v5142_v30, %v5142_v30  ;;  %v5159_v34 = vsel %vm581_vm7, %v5142_v30, 0.0  ;;  %v5169_v35 = vmul.f32 %v5142_v30, %v5142_v30  ;;  %v9535_v36 = vpop.f32.mrb[39].mxu1  ;;  %v5170_v14 = vsel %vm581_vm7, %v5168_v53, 0.0  ;;  %v11860_v30 = vld [vmem:[%s10419_s24 + $0xc] sm:$0xff]  }
 0x2af   : > { %v4917_v38 = vpop.f32.mrb[36].mxu0  ;;  %v5160_v39 = vadd.f32 %v5159_v34, %v5158_v33  ;;  %v8726_v33 = vld [vmem:[%s12027_s2 + $0x1c] sm:$0x3]  ;;  %v10302_v34 = vld [vmem:[%s10419_s24 + $0x14] ss:$0 sps:$4 sm:$0x11]  }
 0x2b0   : > { %v8772_v40 = vpack.c.bf16 %v4917_v38, %v4917_v38  ;;  %v9510_v11 = vpop.f32.mrb[37].mxu0  ;;  %8553 = vst.msk [vmem:[%s10424_s28 + $0x9c] sm:$0xf] %vm578_vm6, %v8775_v28  ;;  %v5171_v44 = vsel %vm581_vm7, %v5169_v35, 0.0  ;;  %v4946_v45 = vmul.f32 %v4917_v38, %v4917_v38  ;;  %v4936_v23 = vsel %vm581_vm7, %v4917_v38, 0.0 }
 0x2b1   : > { %v4920_v16 = vpop.f32.mrb[38].mxu0  ;;  %v5161_v47 = vrot.slane %v5160_v39, 4  ;;  %v5172_v25 = vadd.f32 %v5171_v44, %v5170_v14  ;;  %v7771_v35 = vshll.u32 %v11860_v30, 16  ;;  %v7953_v38 = vsel %vm358_vm1, %v8726_v33, 0  ;;  %v8728_v14 = vld [vmem:[%s12027_s2 + $0x1e] sm:$0x3] }
 0x2b2   : > { %8540 = vst.msk [vmem:[%s10424_s28 + $0x90] sm:$0xf] %vm578_vm6, %v8772_v40  ;;  %v8773_v21 = vpack.c.bf16 %v4920_v16, %v4920_v16  ;;  %v9511_v5 = vpop.f32.mrb[39].mxu0  ;;  %v4937_v52 = vsel %vm581_vm7, %v4920_v16, 0.0  ;;  %v4947_v32 = vmul.f32 %v4920_v16, %v4920_v16  ;;  %v4948_v57 = vsel %vm581_vm7, %v4946_v45, 0.0 }
 0x2b3   : > { %v5162_v55 = vadd.f32 %v5161_v47, %v5160_v39  ;;  %v5173_v54 = vrot.slane %v5172_v25, 4  ;;  %v4938_v27 = vadd.f32 %v4937_v52, %v4936_v23  ;;  %v7769_v39 = vshrl.u32 %v11860_v30, 16  ;;  %v8715_v45 = vld [vmem:[%s12027_s2 + $0x16] sm:$0x3] }
 0x2b4   : > { %8541 = vst.msk [vmem:[%s10424_s28 + $0x94] sm:$0xf] %vm578_vm6, %v8773_v21  ;;  %v4949_v37 = vsel %vm581_vm7, %v4947_v32, 0.0  ;;  %9773 = vmatmul.mubr.msk.bf16.vlgmr.msra.gmra.mrb[56].mxu1 %vm354_vm4, %v7538_v50  ;;  %v7773_v40 = vrot.slane %v7771_v35, 1  ;;  %v7776_v11 = vshll.u32 %v10302_v34, 16  ;;  %v7784_v16 = vsel %vm358_vm1, %v8715_v45, 0 }
 0x2b5   : > { %v5163_v59 = vrot.slane %v5162_v55, 2  ;;  %v5174_v58 = vadd.f32 %v5173_v54, %v5172_v25  ;;  %v4939_v60 = vrot.slane %v4938_v27, 4  ;;  %v4950_v61 = vadd.f32 %v4949_v37, %v4948_v57  ;;  %9801 = vmatpush3.bf16.msra.mxu1 %v7864_v26  ;;  %9802 = vmatprep.mubr.msk.bf16.mxu1 %vm10345_vm2, %v10344_v3 }
 0x2b6   : > { %9806 = vmatprep.subr.bf16.mxu1 %v10344_v3  ;;  %v7778_v43 = vrot.slane %v7776_v11, 1  ;;  %v7999_v49 = vrot.slane %v11860_v30, 1  ;;  %v8000_v23 = vrot.slane %v10302_v34, 1 }
 0x2b7   : > { %v5175_v42 = vrot.slane %v5174_v58, 2  ;;  %v4940_v0 = vadd.f32 %v4939_v60, %v4938_v27  ;;  %v4951_v63 = vrot.slane %v4950_v61, 4  ;;  %v5164_v4 = vadd.f32 %v5163_v59, %v5162_v55 }
 0x2b8   : > { %9749 = vmatmul.mubr.msk.bf16.vlgmr.msra.gmra.mrb[56].mxu0 %vm354_vm4, %v11789_v20  ;;  %v8001_v1 = vsel %vm608_vm3, %v7999_v49, %v8000_v23 }
 0x2b9   : > { %9777 = vmatpush3.bf16.msra.mxu0 %v7623_v29  ;;  %9778 = vmatprep.mubr.msk.bf16.mxu0 %vm10345_vm2, %v10344_v3  ;;  %v4941_v7 = vrot.slane %v4940_v0, 2  ;;  %v4952_v6 = vadd.f32 %v4951_v63, %v4950_v61  ;;  %v5176_v10 = vadd.f32 %v5175_v42, %v5174_v58  ;;  %v5165_v15 = vrot.slane %v5164_v4, 1 }
 0x2ba   : > { %9782 = vmatprep.subr.bf16.mxu0 %v10344_v3 }
 0x2bb   : > { %v4942_v13 = vadd.f32 %v4941_v7, %v4940_v0  ;;  %v4953_v17 = vrot.slane %v4952_v6, 2  ;;  %v5177_v12 = vrot.slane %v5176_v10, 1  ;;  %v5166_v24 = vadd.f32 %v5165_v15, %v5164_v4 }
 0x2bc   : > { %9803 = vmatmul.mubr.msk.bf16.vlgmr.msra.gmra.mrb[60].mxu1 %vm354_vm4, %v7538_v50 }
 0x2bd   : > { %v4943_v46 = vrot.slane %v4942_v13, 1  ;;  %v4954_v18 = vadd.f32 %v4953_v17, %v4952_v6  ;;  %9807 = vmatpush3.bf16.msra.mxu1 %v7908_v41  ;;  %9808 = vmatprep.mubr.msk.bf16.mxu1 %vm10345_vm2, %v10344_v3  ;;  %v5178_v56 = vadd.f32 %v5177_v12, %v5176_v10 }
 0x2be   : > { %9812 = vmatprep.subr.bf16.mxu1 %v10344_v3 }
 0x2bf   : > { %v4944_v22 = vadd.f32 %v4943_v46, %v4942_v13  ;;  %v4955_v51 = vrot.slane %v4954_v18, 1 }
 0x2c0   : > { %9779 = vmatmul.mubr.msk.bf16.vlgmr.msra.gmra.mrb[60].mxu0 %vm354_vm4, %v11789_v20 }
 0x2c1   : > { %9783 = vmatpush3.bf16.msra.mxu0 %v7667_v48  ;;  %9784 = vmatprep.mubr.msk.bf16.mxu0 %vm10345_vm2, %v10344_v3  ;;  %v4945_v53 = vadd.f32 %v4944_v22, %v11764_v2  ;;  %v4956_v19 = vadd.f32 %v4955_v51, %v4954_v18  ;;  %v8712_v2 = vld [vmem:[%s12027_s2 + $0x14] sm:$0x3] }
 0x2c2   : > { %9788 = vmatprep.subr.bf16.mxu0 %v10344_v3 }
 0x2c3   : > { %v4957_v31 = vadd.f32 %v4956_v19, %v11768_v8  ;;  %v11866_v28 = vadd.f32 %v5166_v24, %v4945_v53  ;;  %v7720_v8 = vsel %vm358_vm1, %v8712_v2, 0 }
 0x2c5   : > { %v11870_v36 = vadd.f32 %v5178_v56, %v4957_v31 }
 0x2c8   : > { %9809 = vmatmul.mubr.msk.bf16.vlgmr.msra.gmra.mrb[60].mxu1 %vm354_vm4, %v11789_v20  ;;  %v7774_v20 = vor.u32 %v7773_v40, %v7769_v39 }
 0x2c9   : > { %9813 = vmatpush3.bf16.msra.mxu1 %v7953_v38  ;;  %9814 = vmatprep.mubr.msk.bf16.mxu1 %vm10345_vm2, %v10344_v3 }
 0x2ca   : > { %9818 = vmatprep.subr.bf16.mxu1 %v10344_v3  ;;  %v7779_v44 = vsel %vm341_vm5, %v7774_v20, %v7778_v43 }
 0x2cc   : > { %9785 = vmatmul.mubr.msk.bf16.vlgmr.msra.gmra.mrb[60].mxu0 %vm354_vm4, %v11758_v62  ;;  %v8006_v62 = vsel %vm358_vm1, %v8728_v14, 0 }
 0x2cd   : > { %9789 = vmatpush3.bf16.msra.mxu0 %v7720_v8  ;;  %9790 = vmatprep.mubr.msk.bf16.mxu0 %vm10345_vm2, %v10344_v3 }
 0x2ce   : > { %9794 = vmatprep.subr.bf16.mxu0 %v10344_v3 }
 0x2d4   : > { %9815 = vmatmul.mubr.msk.bf16.vlgmr.msra.gmra.mrb[60].mxu1 %vm354_vm4, %v7779_v44 }
 0x2d5   : > { %9819 = vmatpush3.bf16.msra.mxu1 %v8006_v62  ;;  %9820 = vmatprep.mubr.msk.bf16.mxu1 %vm10345_vm2, %v10344_v3 }
 0x2d7   : > { %v5644_v47 = vpop.f32.mrb[40].mxu1 }
 0x2d8   : > { %9791 = vmatmul.mubr.msk.bf16.vlgmr.msra.gmra.mrb[60].mxu0 %vm354_vm4, %v11860_v30  ;;  %v8778_v25 = vpack.c.bf16 %v5644_v47, %v5644_v47  ;;  %v5673_v21 = vmul.f32 %v5644_v47, %v5644_v47  ;;  %v9582_v5 = vpop.f32.mrb[41].mxu1  ;;  %v5663_v52 = vsel %vm581_vm7, %v5644_v47, 0.0 }
 0x2d9   : > { %9795 = vmatpush3.bf16.msra.mxu0 %v7784_v16  ;;  %9796 = vmatprep.mubr.msk.bf16.mxu0 %vm10345_vm2, %v10344_v3  ;;  %v5647_v50 = vpop.f32.mrb[42].mxu1 }
 0x2da   : > { %8588 = vst.msk [vmem:[%s10424_s28 + $0xa8] sm:$0xf] %vm578_vm6, %v8778_v25  ;;  %v8779_v32 = vpack.c.bf16 %v5647_v50, %v5647_v50  ;;  %v5664_v26 = vsel %vm581_vm7, %v5647_v50, 0.0  ;;  %v5674_v55 = vmul.f32 %v5647_v50, %v5647_v50  ;;  %v9583_v54 = vpop.f32.mrb[43].mxu1  ;;  %v5675_v3 = vsel %vm581_vm7, %v5673_v21, 0.0 }
 0x2db   : > { %v5415_v27 = vpop.f32.mrb[40].mxu0  ;;  %v5665_v57 = vadd.f32 %v5664_v26, %v5663_v52 }
 0x2dc   : > { %v8776_v37 = vpack.c.bf16 %v5415_v27, %v5415_v27  ;;  %v9558_v29 = vpop.f32.mrb[41].mxu0  ;;  %8589 = vst.msk [vmem:[%s10424_s28 + $0xac] sm:$0xf] %vm578_vm6, %v8779_v32  ;;  %v5676_v59 = vsel %vm581_vm7, %v5674_v55, 0.0  ;;  %v5445_v58 = vmul.f32 %v5415_v27, %v5415_v27  ;;  %v5435_v4 = vsel %vm581_vm7, %v5415_v27, 0.0 }
 0x2dd   : > { %v5418_v60 = vpop.f32.mrb[42].mxu0  ;;  %v5666_v61 = vrot.slane %v5665_v57, 4  ;;  %v5677_v42 = vadd.f32 %v5676_v59, %v5675_v3 }
 0x2de   : > { %8576 = vst.msk [vmem:[%s10424_s28 + $0xa0] sm:$0xf] %vm578_vm6, %v8776_v37  ;;  %v8777_v0 = vpack.c.bf16 %v5418_v60, %v5418_v60  ;;  %v9559_v63 = vpop.f32.mrb[43].mxu0  ;;  %v5436_v7 = vsel %vm581_vm7, %v5418_v60, 0.0  ;;  %v5446_v6 = vmul.f32 %v5418_v60, %v5418_v60  ;;  %v5447_v13 = vsel %vm581_vm7, %v5445_v58, 0.0 }
 0x2df   : > { %v5667_v9 = vadd.f32 %v5666_v61, %v5665_v57  ;;  %v5678_v41 = vrot.slane %v5677_v42, 4  ;;  %v5437_v10 = vadd.f32 %v5436_v7, %v5435_v4 }
 0x2e0   : > { %8577 = vst.msk [vmem:[%s10424_s28 + $0xa4] sm:$0xf] %vm578_vm6, %v8777_v0  ;;  %v5448_v17 = vsel %vm581_vm7, %v5446_v6, 0.0  ;;  %9821 = vmatmul.mubr.msk.bf16.vlgmr.msra.gmra.mrb[60].mxu1 %vm354_vm4, %v8001_v1 }
 0x2e1   : > { %v5668_v15 = vrot.slane %v5667_v9, 2  ;;  %v5679_v46 = vadd.f32 %v5678_v41, %v5677_v42  ;;  %v5438_v18 = vrot.slane %v5437_v10, 4  ;;  %v5449_v48 = vadd.f32 %v5448_v17, %v5447_v13 }
 0x2e3   : > { %v5680_v12 = vrot.slane %v5679_v46, 2  ;;  %v5439_v22 = vadd.f32 %v5438_v18, %v5437_v10  ;;  %v5450_v51 = vrot.slane %v5449_v48, 4  ;;  %v5669_v24 = vadd.f32 %v5668_v15, %v5667_v9 }
 0x2e4   : > { %9797 = vmatmul.mubr.msk.bf16.vlgmr.msra.gmra.mrb[60].mxu0 %vm354_vm4, %v7779_v44 }
 0x2e5   : > { %v5440_v53 = vrot.slane %v5439_v22, 2  ;;  %v5451_v19 = vadd.f32 %v5450_v51, %v5449_v48  ;;  %v5681_v30 = vadd.f32 %v5680_v12, %v5679_v46  ;;  %v5670_v33 = vrot.slane %v5669_v24, 1 }
 0x2e7   : > { %v5441_v56 = vadd.f32 %v5440_v53, %v5439_v22  ;;  %v5452_v31 = vrot.slane %v5451_v19, 2  ;;  %v5682_v2 = vrot.slane %v5681_v30, 1  ;;  %v5671_v39 = vadd.f32 %v5670_v33, %v5669_v24 }
 0x2e9   : > { %v5442_v34 = vrot.slane %v5441_v56, 1  ;;  %v5453_v35 = vadd.f32 %v5452_v31, %v5451_v19  ;;  %v5683_v20 = vadd.f32 %v5682_v2, %v5681_v30 }
 0x2eb   : > { %v5443_v38 = vadd.f32 %v5442_v34, %v5441_v56  ;;  %v5454_v8 = vrot.slane %v5453_v35, 1 }
 0x2ed   : > { %v5444_v40 = vadd.f32 %v5443_v38, %v11866_v28  ;;  %v5455_v11 = vadd.f32 %v5454_v8, %v5453_v35 }
 0x2ef   : > { %v5456_v43 = vadd.f32 %v5455_v11, %v11870_v36  ;;  %v5672_v14 = vadd.f32 %v5671_v39, %v5444_v40 }
 0x2f1   : > { %v5684_v44 = vadd.f32 %v5683_v20, %v5456_v43 }
 0x303   : > { %v6107_v45 = vpop.f32.mrb[44].mxu1 }
 0x304   : > { %v8782_v62 = vpack.c.bf16 %v6107_v45, %v6107_v45  ;;  %v6136_v16 = vmul.f32 %v6107_v45, %v6107_v45  ;;  %v9630_v47 = vpop.f32.mrb[45].mxu1  ;;  %v6126_v21 = vsel %vm581_vm7, %v6107_v45, 0.0 }
 0x305   : > { %v6110_v25 = vpop.f32.mrb[46].mxu1 }
 0x306   : > { %8614 = vst.msk [vmem:[%s10424_s28 + $0xb8] sm:$0xf] %vm578_vm6, %v8782_v62  ;;  %v8783_v5 = vpack.c.bf16 %v6110_v25, %v6110_v25  ;;  %v6127_v28 = vsel %vm581_vm7, %v6110_v25, 0.0  ;;  %v6137_v50 = vmul.f32 %v6110_v25, %v6110_v25  ;;  %v9631_v49 = vpop.f32.mrb[47].mxu1  ;;  %v6138_v26 = vsel %vm581_vm7, %v6136_v16, 0.0 }
 0x307   : > { %v5885_v23 = vpop.f32.mrb[44].mxu0  ;;  %v6128_v36 = vadd.f32 %v6127_v28, %v6126_v21 }
 0x308   : > { %v8780_v52 = vpack.c.bf16 %v5885_v23, %v5885_v23  ;;  %v9606_v32 = vpop.f32.mrb[45].mxu0  ;;  %8615 = vst.msk [vmem:[%s10424_s28 + $0xbc] sm:$0xf] %vm578_vm6, %v8783_v5  ;;  %v6139_v55 = vsel %vm581_vm7, %v6137_v50, 0.0  ;;  %v5914_v54 = vmul.f32 %v5885_v23, %v5885_v23  ;;  %v5904_v59 = vsel %vm581_vm7, %v5885_v23, 0.0 }
 0x309   : > { %v5888_v27 = vpop.f32.mrb[46].mxu0  ;;  %v6129_v57 = vrot.slane %v6128_v36, 4  ;;  %v6140_v37 = vadd.f32 %v6139_v55, %v6138_v26 }
 0x30a   : > { %8602 = vst.msk [vmem:[%s10424_s28 + $0xb0] sm:$0xf] %vm578_vm6, %v8780_v52  ;;  %v8781_v29 = vpack.c.bf16 %v5888_v27, %v5888_v27  ;;  %v9607_v3 = vpop.f32.mrb[47].mxu0  ;;  %v5905_v58 = vsel %vm581_vm7, %v5888_v27, 0.0  ;;  %v5915_v60 = vmul.f32 %v5888_v27, %v5888_v27  ;;  %v5916_v63 = vsel %vm581_vm7, %v5914_v54, 0.0 }
 0x30b   : > { %v6130_v61 = vadd.f32 %v6129_v57, %v6128_v36  ;;  %v6141_v42 = vrot.slane %v6140_v37, 4  ;;  %v5906_v0 = vadd.f32 %v5905_v58, %v5904_v59 }
 0x30c   : > { %8603 = vst.msk [vmem:[%s10424_s28 + $0xb4] sm:$0xf] %vm578_vm6, %v8781_v29  ;;  %v5917_v1 = vsel %vm581_vm7, %v5915_v60, 0.0 }
 0x30d   : > { %v6131_v4 = vrot.slane %v6130_v61, 2  ;;  %v6142_v7 = vadd.f32 %v6141_v42, %v6140_v37  ;;  %v5907_v6 = vrot.slane %v5906_v0, 4  ;;  %v5918_v9 = vadd.f32 %v5917_v1, %v5916_v63 }
 0x30f   : > { %v6143_v41 = vrot.slane %v6142_v7, 2  ;;  %v5908_v10 = vadd.f32 %v5907_v6, %v5906_v0  ;;  %v5919_v13 = vrot.slane %v5918_v9, 4  ;;  %v6132_v17 = vadd.f32 %v6131_v4, %v6130_v61 }
 0x311   : > { %v5909_v15 = vrot.slane %v5908_v10, 2  ;;  %v5920_v46 = vadd.f32 %v5919_v13, %v5918_v9  ;;  %v6144_v18 = vadd.f32 %v6143_v41, %v6142_v7  ;;  %v6133_v22 = vrot.slane %v6132_v17, 1 }
 0x313   : > { %v5910_v48 = vadd.f32 %v5909_v15, %v5908_v10  ;;  %v5921_v12 = vrot.slane %v5920_v46, 2  ;;  %v6145_v53 = vrot.slane %v6144_v18, 1  ;;  %v6134_v56 = vadd.f32 %v6133_v22, %v6132_v17 }
 0x315   : > { %v5911_v51 = vrot.slane %v5910_v48, 1  ;;  %v5922_v24 = vadd.f32 %v5921_v12, %v5920_v46  ;;  %v6146_v34 = vadd.f32 %v6145_v53, %v6144_v18 }
 0x317   : > { %v5912_v19 = vadd.f32 %v5911_v51, %v5910_v48  ;;  %v5923_v30 = vrot.slane %v5922_v24, 1 }
 0x319   : > { %v5913_v31 = vadd.f32 %v5912_v19, %v5672_v14  ;;  %v5924_v33 = vadd.f32 %v5923_v30, %v5922_v24 }
 0x31b   : > { %v5925_v35 = vadd.f32 %v5924_v33, %v5684_v44  ;;  %v6135_v2 = vadd.f32 %v6134_v56, %v5913_v31 }
 0x31d   : > { %v6147_v38 = vadd.f32 %v6146_v34, %v5925_v35 }
 0x32f   : > { %v6611_v8 = vpop.f32.mrb[48].mxu1 }
 0x330   : > { %v8786_v39 = vpack.c.bf16 %v6611_v8, %v6611_v8  ;;  %v6640_v40 = vmul.f32 %v6611_v8, %v6611_v8  ;;  %v9678_v11 = vpop.f32.mrb[49].mxu1  ;;  %v6630_v43 = vsel %vm581_vm7, %v6611_v8, 0.0 }
 0x331   : > { %v6614_v20 = vpop.f32.mrb[50].mxu1 }
 0x332   : > { %8647 = vst.msk [vmem:[%s10424_s28 + $0xc8] sm:$0xf] %vm578_vm6, %v8786_v39  ;;  %v8787_v45 = vpack.c.bf16 %v6614_v20, %v6614_v20  ;;  %v6631_v62 = vsel %vm581_vm7, %v6614_v20, 0.0  ;;  %v6641_v14 = vmul.f32 %v6614_v20, %v6614_v20  ;;  %v9679_v16 = vpop.f32.mrb[51].mxu1  ;;  %v6642_v5 = vsel %vm581_vm7, %v6640_v40, 0.0 }
 0x333   : > { %v6382_v47 = vpop.f32.mrb[48].mxu0  ;;  %v6632_v44 = vadd.f32 %v6631_v62, %v6630_v43 }
 0x334   : > { %v8784_v25 = vpack.c.bf16 %v6382_v47, %v6382_v47  ;;  %v9654_v21 = vpop.f32.mrb[49].mxu0  ;;  %8648 = vst.msk [vmem:[%s10424_s28 + $0xcc] sm:$0xf] %vm578_vm6, %v8787_v45  ;;  %v6643_v28 = vsel %vm581_vm7, %v6641_v14, 0.0  ;;  %v6412_v50 = vmul.f32 %v6382_v47, %v6382_v47  ;;  %v6402_v26 = vsel %vm581_vm7, %v6382_v47, 0.0 }
 0x335   : > { %v6385_v49 = vpop.f32.mrb[50].mxu0  ;;  %v6633_v23 = vrot.slane %v6632_v44, 4  ;;  %v6644_v36 = vadd.f32 %v6643_v28, %v6642_v5 }
 0x336   : > { %8635 = vst.msk [vmem:[%s10424_s28 + $0xc0] sm:$0xf] %vm578_vm6, %v8784_v25  ;;  %v8785_v52 = vpack.c.bf16 %v6385_v49, %v6385_v49  ;;  %v9655_v32 = vpop.f32.mrb[51].mxu0  ;;  %v6403_v55 = vsel %vm581_vm7, %v6385_v49, 0.0  ;;  %v6413_v54 = vmul.f32 %v6385_v49, %v6385_v49  ;;  %v6414_v29 = vsel %vm581_vm7, %v6412_v50, 0.0 }
 0x337   : > { %v6634_v27 = vadd.f32 %v6633_v23, %v6632_v44  ;;  %v6645_v57 = vrot.slane %v6644_v36, 4  ;;  %v6404_v37 = vadd.f32 %v6403_v55, %v6402_v26 }
 0x338   : > { %8636 = vst.msk [vmem:[%s10424_s28 + $0xc4] sm:$0xf] %vm578_vm6, %v8785_v52  ;;  %v6415_v3 = vsel %vm581_vm7, %v6413_v54, 0.0 }
 0x339   : > { %v6635_v59 = vrot.slane %v6634_v27, 2  ;;  %v6646_v58 = vadd.f32 %v6645_v57, %v6644_v36  ;;  %v6405_v60 = vrot.slane %v6404_v37, 4  ;;  %v6416_v61 = vadd.f32 %v6415_v3, %v6414_v29 }
 0x33b   : > { %v6647_v42 = vrot.slane %v6646_v58, 2  ;;  %v6406_v0 = vadd.f32 %v6405_v60, %v6404_v37  ;;  %v6417_v63 = vrot.slane %v6416_v61, 4  ;;  %v6636_v1 = vadd.f32 %v6635_v59, %v6634_v27 }
 0x33d   : > { %v6407_v4 = vrot.slane %v6406_v0, 2  ;;  %v6418_v7 = vadd.f32 %v6417_v63, %v6416_v61  ;;  %v6648_v6 = vadd.f32 %v6647_v42, %v6646_v58  ;;  %v6637_v10 = vrot.slane %v6636_v1, 1 }
 0x33f   : > { %v6408_v9 = vadd.f32 %v6407_v4, %v6406_v0  ;;  %v6419_v41 = vrot.slane %v6418_v7, 2  ;;  %v6649_v15 = vrot.slane %v6648_v6, 1  ;;  %v6638_v48 = vadd.f32 %v6637_v10, %v6636_v1 }
 0x341   : > { %v6409_v13 = vrot.slane %v6408_v9, 1  ;;  %v6420_v17 = vadd.f32 %v6419_v41, %v6418_v7  ;;  %v6650_v51 = vadd.f32 %v6649_v15, %v6648_v6 }
 0x343   : > { %v6410_v46 = vadd.f32 %v6409_v13, %v6408_v9  ;;  %v6421_v18 = vrot.slane %v6420_v17, 1 }
 0x345   : > { %v6411_v12 = vadd.f32 %v6410_v46, %v6135_v2  ;;  %v6422_v22 = vadd.f32 %v6421_v18, %v6420_v17 }
 0x347   : > { %v6423_v24 = vadd.f32 %v6422_v22, %v6147_v38  ;;  %v6639_v53 = vadd.f32 %v6638_v48, %v6411_v12 }
 0x349   : > { %v6651_v19 = vadd.f32 %v6650_v51, %v6423_v24 }
 0x35b   : > { %v7074_v30 = vpop.f32.mrb[52].mxu1 }
 0x35c   : > { %v8790_v56 = vpack.c.bf16 %v7074_v30, %v7074_v30  ;;  %v7103_v31 = vmul.f32 %v7074_v30, %v7074_v30  ;;  %v9726_v33 = vpop.f32.mrb[53].mxu1  ;;  %v7093_v35 = vsel %vm581_vm7, %v7074_v30, 0.0 }
 0x35d   : > { %v7077_v34 = vpop.f32.mrb[54].mxu1 }
 0x35e   : > { %8673 = vst.msk [vmem:[%s10424_s28 + $0xd8] sm:$0xf] %vm578_vm6, %v8790_v56  ;;  %v8791_v8 = vpack.c.bf16 %v7077_v34, %v7077_v34  ;;  %v7094_v39 = vsel %vm581_vm7, %v7077_v34, 0.0  ;;  %v7104_v2 = vmul.f32 %v7077_v34, %v7077_v34  ;;  %v9727_v40 = vpop.f32.mrb[55].mxu1  ;;  %v7105_v45 = vsel %vm581_vm7, %v7103_v31, 0.0 }
 0x35f   : > { %v6852_v11 = vpop.f32.mrb[52].mxu0  ;;  %v7095_v38 = vadd.f32 %v7094_v39, %v7093_v35 }
 0x360   : > { %v8788_v20 = vpack.c.bf16 %v6852_v11, %v6852_v11  ;;  %v9702_v43 = vpop.f32.mrb[53].mxu0  ;;  %8674 = vst.msk [vmem:[%s10424_s28 + $0xdc] sm:$0xf] %vm578_vm6, %v8791_v8  ;;  %v7106_v62 = vsel %vm581_vm7, %v7104_v2, 0.0  ;;  %v6881_v14 = vmul.f32 %v6852_v11, %v6852_v11  ;;  %v6871_v5 = vsel %vm581_vm7, %v6852_v11, 0.0 }
 0x361   : > { %v6855_v16 = vpop.f32.mrb[54].mxu0  ;;  %v7096_v47 = vrot.slane %v7095_v38, 4  ;;  %v7107_v44 = vadd.f32 %v7106_v62, %v7105_v45 }
 0x362   : > { %8661 = vst.msk [vmem:[%s10424_s28 + $0xd0] sm:$0xf] %vm578_vm6, %v8788_v20  ;;  %v8789_v25 = vpack.c.bf16 %v6855_v16, %v6855_v16  ;;  %v9703_v21 = vpop.f32.mrb[55].mxu0  ;;  %v6872_v28 = vsel %vm581_vm7, %v6855_v16, 0.0  ;;  %v6882_v50 = vmul.f32 %v6855_v16, %v6855_v16  ;;  %v6883_v52 = vsel %vm581_vm7, %v6881_v14, 0.0 }
 0x363   : > { %v7097_v49 = vadd.f32 %v7096_v47, %v7095_v38  ;;  %v7108_v23 = vrot.slane %v7107_v44, 4  ;;  %v6873_v36 = vadd.f32 %v6872_v28, %v6871_v5 }
 0x364   : > { %8662 = vst.msk [vmem:[%s10424_s28 + $0xd4] sm:$0xf] %vm578_vm6, %v8789_v25  ;;  %v6884_v32 = vsel %vm581_vm7, %v6882_v50, 0.0 }
 0x365   : > { %v7098_v26 = vrot.slane %v7097_v49, 2  ;;  %v7109_v55 = vadd.f32 %v7108_v23, %v7107_v44  ;;  %v6874_v54 = vrot.slane %v6873_v36, 4  ;;  %v6885_v27 = vadd.f32 %v6884_v32, %v6883_v52 }
 0x367   : > { %v7110_v57 = vrot.slane %v7109_v55, 2  ;;  %v6875_v37 = vadd.f32 %v6874_v54, %v6873_v36  ;;  %v6886_v29 = vrot.slane %v6885_v27, 4  ;;  %v7099_v3 = vadd.f32 %v7098_v26, %v7097_v49 }
 0x369   : > { %v6876_v59 = vrot.slane %v6875_v37, 2  ;;  %v6887_v58 = vadd.f32 %v6886_v29, %v6885_v27  ;;  %v7111_v60 = vadd.f32 %v7110_v57, %v7109_v55  ;;  %v7100_v0 = vrot.slane %v7099_v3, 1 }
 0x36b   : > { %v6877_v61 = vadd.f32 %v6876_v59, %v6875_v37  ;;  %v6888_v42 = vrot.slane %v6887_v58, 2  ;;  %v7112_v4 = vrot.slane %v7111_v60, 1  ;;  %v7101_v9 = vadd.f32 %v7100_v0, %v7099_v3 }
 0x36d   : > { %v6878_v63 = vrot.slane %v6877_v61, 1  ;;  %v6889_v1 = vadd.f32 %v6888_v42, %v6887_v58  ;;  %v7113_v13 = vadd.f32 %v7112_v4, %v7111_v60 }
 0x36f   : > { %v6879_v7 = vadd.f32 %v6878_v63, %v6877_v61  ;;  %v6890_v6 = vrot.slane %v6889_v1, 1 }
 0x371   : > { %v6880_v41 = vadd.f32 %v6879_v7, %v6639_v53  ;;  %v6891_v10 = vadd.f32 %v6890_v6, %v6889_v1 }
 0x373   : > { %v6892_v17 = vadd.f32 %v6891_v10, %v6651_v19  ;;  %v7102_v15 = vadd.f32 %v7101_v9, %v6880_v41 }
 0x375   : > { %v7114_v46 = vadd.f32 %v7113_v13, %v6892_v17 }
 0x387   : > { %v7579_v18 = vpop.f32.mrb[56].mxu1 }
 0x388   : > { %v8794_v48 = vpack.c.bf16 %v7579_v18, %v7579_v18  ;;  %v7608_v12 = vmul.f32 %v7579_v18, %v7579_v18  ;;  %v9774_v22 = vpop.f32.mrb[57].mxu1  ;;  %v7598_v24 = vsel %vm581_vm7, %v7579_v18, 0.0 }
 0x389   : > { %v7582_v51 = vpop.f32.mrb[58].mxu1 }
 0x38a   : > { %8706 = vst.msk [vmem:[%s10424_s28 + $0xe8] sm:$0xf] %vm578_vm6, %v8794_v48  ;;  %v8795_v30 = vpack.c.bf16 %v7582_v51, %v7582_v51  ;;  %v7599_v56 = vsel %vm581_vm7, %v7582_v51, 0.0  ;;  %v7609_v53 = vmul.f32 %v7582_v51, %v7582_v51  ;;  %v9775_v31 = vpop.f32.mrb[59].mxu1  ;;  %v7610_v8 = vsel %vm581_vm7, %v7608_v12, 0.0 }
 0x38b   : > { %v7350_v33 = vpop.f32.mrb[56].mxu0  ;;  %v7600_v19 = vadd.f32 %v7599_v56, %v7598_v24 }
 0x38c   : > { %v8792_v34 = vpack.c.bf16 %v7350_v33, %v7350_v33  ;;  %v9750_v35 = vpop.f32.mrb[57].mxu0  ;;  %8707 = vst.msk [vmem:[%s10424_s28 + $0xec] sm:$0xf] %vm578_vm6, %v8795_v30  ;;  %v7611_v39 = vsel %vm581_vm7, %v7609_v53, 0.0  ;;  %v7380_v2 = vmul.f32 %v7350_v33, %v7350_v33  ;;  %v7370_v45 = vsel %vm581_vm7, %v7350_v33, 0.0 }
 0x38d   : > { %v7353_v40 = vpop.f32.mrb[58].mxu0  ;;  %v7601_v11 = vrot.slane %v7600_v19, 4  ;;  %v7612_v38 = vadd.f32 %v7611_v39, %v7610_v8 }
 0x38e   : > { %8694 = vst.msk [vmem:[%s10424_s28 + $0xe0] sm:$0xf] %vm578_vm6, %v8792_v34  ;;  %v8793_v20 = vpack.c.bf16 %v7353_v40, %v7353_v40  ;;  %v9751_v43 = vpop.f32.mrb[59].mxu0  ;;  %v7371_v62 = vsel %vm581_vm7, %v7353_v40, 0.0  ;;  %v7381_v14 = vmul.f32 %v7353_v40, %v7353_v40  ;;  %v7382_v25 = vsel %vm581_vm7, %v7380_v2, 0.0 }
 0x38f   : > { %v7602_v16 = vadd.f32 %v7601_v11, %v7600_v19  ;;  %v7613_v47 = vrot.slane %v7612_v38, 4  ;;  %v7372_v44 = vadd.f32 %v7371_v62, %v7370_v45 }
 0x390   : > { %8695 = vst.msk [vmem:[%s10424_s28 + $0xe4] sm:$0xf] %vm578_vm6, %v8793_v20  ;;  %v7383_v21 = vsel %vm581_vm7, %v7381_v14, 0.0 }
 0x391   : > { %v7603_v5 = vrot.slane %v7602_v16, 2  ;;  %v7614_v28 = vadd.f32 %v7613_v47, %v7612_v38  ;;  %v7373_v50 = vrot.slane %v7372_v44, 4  ;;  %v7384_v49 = vadd.f32 %v7383_v21, %v7382_v25 }
 0x393   : > { %v7615_v23 = vrot.slane %v7614_v28, 2  ;;  %v7374_v36 = vadd.f32 %v7373_v50, %v7372_v44  ;;  %v7385_v52 = vrot.slane %v7384_v49, 4  ;;  %v7604_v32 = vadd.f32 %v7603_v5, %v7602_v16 }
 0x395   : > { %v7375_v26 = vrot.slane %v7374_v36, 2  ;;  %v7386_v55 = vadd.f32 %v7385_v52, %v7384_v49  ;;  %v7616_v54 = vadd.f32 %v7615_v23, %v7614_v28  ;;  %v7605_v37 = vrot.slane %v7604_v32, 1 }
 0x397   : > { %v7376_v27 = vadd.f32 %v7375_v26, %v7374_v36  ;;  %v7387_v57 = vrot.slane %v7386_v55, 2  ;;  %v7617_v59 = vrot.slane %v7616_v54, 1  ;;  %v7606_v61 = vadd.f32 %v7605_v37, %v7604_v32 }
 0x399   : > { %v7377_v29 = vrot.slane %v7376_v27, 1  ;;  %v7388_v3 = vadd.f32 %v7387_v57, %v7386_v55  ;;  %v7618_v63 = vadd.f32 %v7617_v59, %v7616_v54 }
 0x39b   : > { %v7378_v58 = vadd.f32 %v7377_v29, %v7376_v27  ;;  %v7389_v60 = vrot.slane %v7388_v3, 1  ;;  %v8083_v29 = vld [vmem:[%s10414_s12] sm:$0x1] }
 0x39d   : > { %v7379_v42 = vadd.f32 %v7378_v58, %v7102_v15  ;;  %v7390_v0 = vadd.f32 %v7389_v60, %v7388_v3  ;;  %v8087_v60 = vld [vmem:[%s10414_s12 + $0x1] sm:$0x1] }
 0x39f   : > { %v7391_v1 = vadd.f32 %v7390_v0, %v7114_v46  ;;  %v7607_v4 = vadd.f32 %v7606_v61, %v7379_v42 }
 0x3a1   : > { %v7619_v7 = vadd.f32 %v7618_v63, %v7391_v1 }
 0x3b3   : > { %v8042_v6 = vpop.f32.mrb[60].mxu1 }
 0x3b4   : > { %v8798_v9 = vpack.c.bf16 %v8042_v6, %v8042_v6  ;;  %v8071_v41 = vmul.f32 %v8042_v6, %v8042_v6  ;;  %v9822_v10 = vpop.f32.mrb[61].mxu1  ;;  %v8061_v17 = vsel %vm581_vm7, %v8042_v6, 0.0 }
 0x3b5   : > { %v8045_v13 = vpop.f32.mrb[62].mxu1 }
 0x3b6   : > { %8732 = vst.msk [vmem:[%s10424_s28 + $0xf8] sm:$0xf] %vm578_vm6, %v8798_v9  ;;  %v8799_v18 = vpack.c.bf16 %v8045_v13, %v8045_v13  ;;  %v8062_v48 = vsel %vm581_vm7, %v8045_v13, 0.0  ;;  %v8072_v15 = vmul.f32 %v8045_v13, %v8045_v13  ;;  %v9823_v12 = vpop.f32.mrb[63].mxu1  ;;  %v8073_v30 = vsel %vm581_vm7, %v8071_v41, 0.0 }
 0x3b7   : > { %v7820_v22 = vpop.f32.mrb[60].mxu0  ;;  %v8063_v46 = vadd.f32 %v8062_v48, %v8061_v17 }
 0x3b8   : > { %v8796_v51 = vpack.c.bf16 %v7820_v22, %v7820_v22  ;;  %v9798_v24 = vpop.f32.mrb[61].mxu0  ;;  %8733 = vst.msk [vmem:[%s10424_s28 + $0xfc] sm:$0xf] %vm578_vm6, %v8799_v18  ;;  %v8074_v56 = vsel %vm581_vm7, %v8072_v15, 0.0  ;;  %v7849_v53 = vmul.f32 %v7820_v22, %v7820_v22  ;;  %v7839_v8 = vsel %vm581_vm7, %v7820_v22, 0.0 }
 0x3b9   : > { %v7823_v31 = vpop.f32.mrb[62].mxu0  ;;  %v8064_v33 = vrot.slane %v8063_v46, 4  ;;  %v8075_v19 = vadd.f32 %v8074_v56, %v8073_v30 }
 0x3ba   : > { %8720 = vst.msk [vmem:[%s10424_s28 + $0xf0] sm:$0xf] %vm578_vm6, %v8796_v51  ;;  %v8797_v34 = vpack.c.bf16 %v7823_v31, %v7823_v31  ;;  %v9799_v35 = vpop.f32.mrb[63].mxu0  ;;  %v7840_v39 = vsel %vm581_vm7, %v7823_v31, 0.0  ;;  %v7850_v2 = vmul.f32 %v7823_v31, %v7823_v31  ;;  %v7851_v20 = vsel %vm581_vm7, %v7849_v53, 0.0 }
 0x3bb   : > { %v8065_v40 = vadd.f32 %v8064_v33, %v8063_v46  ;;  %v8076_v11 = vrot.slane %v8075_v19, 4  ;;  %v7841_v38 = vadd.f32 %v7840_v39, %v7839_v8 }
 0x3bc   : > { %8721 = vst.msk [vmem:[%s10424_s28 + $0xf4] sm:$0xf] %vm578_vm6, %v8797_v34  ;;  %v7852_v43 = vsel %vm581_vm7, %v7850_v2, 0.0 }
 0x3bd   : > { %v8066_v45 = vrot.slane %v8065_v40, 2  ;;  %v8077_v62 = vadd.f32 %v8076_v11, %v8075_v19  ;;  %v7842_v14 = vrot.slane %v7841_v38, 4  ;;  %v7853_v16 = vadd.f32 %v7852_v43, %v7851_v20 }
 0x3bf   : > { %v8078_v47 = vrot.slane %v8077_v62, 2  ;;  %v7843_v44 = vadd.f32 %v7842_v14, %v7841_v38  ;;  %v7854_v25 = vrot.slane %v7853_v16, 4  ;;  %v8067_v21 = vadd.f32 %v8066_v45, %v8065_v40 }
 0x3c1   : > { %v7844_v5 = vrot.slane %v7843_v44, 2  ;;  %v7855_v28 = vadd.f32 %v7854_v25, %v7853_v16  ;;  %v8079_v50 = vadd.f32 %v8078_v47, %v8077_v62  ;;  %v8068_v36 = vrot.slane %v8067_v21, 1 }
 0x3c3   : > { %v7845_v49 = vadd.f32 %v7844_v5, %v7843_v44  ;;  %v7856_v23 = vrot.slane %v7855_v28, 2  ;;  %v8080_v26 = vrot.slane %v8079_v50, 1  ;;  %v8069_v27 = vadd.f32 %v8068_v36, %v8067_v21 }
 0x3c5   : > { %v7846_v52 = vrot.slane %v7845_v49, 1  ;;  %v7857_v32 = vadd.f32 %v7856_v23, %v7855_v28  ;;  %v8081_v3 = vadd.f32 %v8080_v26, %v8079_v50 }
 0x3c7   : > { %v7847_v55 = vadd.f32 %v7846_v52, %v7845_v49  ;;  %v7858_v54 = vrot.slane %v7857_v32, 1 }
 0x3c9   : > { %v7848_v57 = vadd.f32 %v7847_v55, %v7607_v4  ;;  %v7859_v37 = vadd.f32 %v7858_v54, %v7857_v32 }
 0x3cb   : > { %v7860_v59 = vadd.f32 %v7859_v37, %v7619_v7  ;;  %v8070_v58 = vadd.f32 %v8069_v27, %v7848_v57 }
 0x3cd   : > { %v8082_v61 = vadd.f32 %v8081_v3, %v7860_v59  ;;  %v8084_v42 = vadd.f32 %v8083_v29, %v8070_v58 }
 0x3cf   : > { %8086 = vst.msk [vmem:[%s10414_s12] sm:$0x1] %vm8085_vm8, %v8084_v42  ;;  %v8088_v0 = vadd.f32 %v8087_v60, %v8082_v61 }
 0x3d1   : > { %8089 = vst.msk [vmem:[%s10414_s12 + $0x1] sm:$0x1] %vm8085_vm8, %v8088_v0 }
 0x3d2 PF: > { %s15_s19 = sadd.s32 1, %s10341_s19   ;;  %s12030_s15 = smov %s10333_s17 }
 0x3d3   : > { %p12_p10 = scmp.ge.s32.totalorder %s15_s19, 6   ;;  %s12031_s16 = smov %s10337_s18 }
 0x3d4   : > { %s12032_s17 = smov %s12035_s20  ;;  %s12033_s18 = smov %s12039_s21 }
 0x3d5   :  { %14 = sbr.rel (!%p12_p10) target bundleno = 3 (0x3), region = 111 }

</bundles_post_ra>
